<compile_context>
chip_gen: v6e
topology: v6e:2x2x1
jax: 0.10.0
libtpu: 0.0.40
codegen_flags: <defaults>
</compile_context>

<pallas_src>
import functools
from math import sqrt

import numpy as np
import jax
import jax.numpy as jnp
from jax import lax
from jax.experimental import pallas as pl
from jax.experimental.pallas import tpu as pltpu

PAD = 0                         # Constants.PAD
NEG_INF = -1e30                 # masked_fill(-inf) stand-in; exp underflows to 0
LN_EPS = 1e-5                   # nn.LayerNorm default eps
N_HEAD = 4                      # static head count shared by all layers
HIGH = lax.Precision.HIGHEST    # precision for glue / reference matmuls


# ---------------------------------------------------------------------------
# Pallas kernel: one full UNetEncoderLayer (MHA + FFN) per invocation.
# ---------------------------------------------------------------------------
def unet_layer_kernel(q_ref, kv_ref, bias_ref, npad_ref,
                      wq_ref, bq_ref, wk_ref, bk_ref, wv_ref, bv_ref,
                      wo_ref, bo_ref, g1_ref, be1_ref,
                      w1_ref, b1_ref, w2_ref, b2_ref, g2_ref, be2_ref,
                      out_ref, *, n_head):
    f32 = jnp.float32
    B, Lq, D = q_ref.shape
    Lk = kv_ref.shape[1]
    H = n_head
    dk = wq_ref.shape[1] // H
    dv = wv_ref.shape[1] // H
    inv_temp = 1.0 / (dk ** 0.5)

    q2 = q_ref[...].reshape(B * Lq, D)
    kv2 = kv_ref[...].reshape(B * Lk, D)
    npad2 = npad_ref[...].reshape(B * Lq, 1)
    bias = bias_ref[...]                                   # (B, Lq, Lk)

    # Fused, lane-dense head projections: ONE matmul each for Q / K / V.
    Q = (jnp.dot(q2, wq_ref[...], preferred_element_type=f32)
         + bq_ref[...]).reshape(B, Lq, H * dk)
    K = (jnp.dot(kv2, wk_ref[...], preferred_element_type=f32)
         + bk_ref[...]).reshape(B, Lk, H * dk)
    V = (jnp.dot(kv2, wv_ref[...], preferred_element_type=f32)
         + bv_ref[...]).reshape(B, Lk, H * dv)

    ctx_heads = []
    for h in range(H):                                     # static unroll, MXU work per head
        q_h = Q[:, :, h * dk:(h + 1) * dk]
        k_h = K[:, :, h * dk:(h + 1) * dk]
        v_h = V[:, :, h * dv:(h + 1) * dv]
        s = jnp.einsum('bqd,bkd->bqk', q_h, k_h,
                       preferred_element_type=f32) * inv_temp
        s = s + bias                                       # key-pad mask bias
        s = s - jnp.max(s, axis=-1, keepdims=True)
        e = jnp.exp(s)
        p = e * pl.reciprocal(jnp.sum(e, axis=-1, keepdims=True), approx=True)
        ctx_heads.append(jnp.einsum('bqk,bkd->bqd', p, v_h,
                                    preferred_element_type=f32))
    # Fold all heads into one lane-dense (B*Lq, H*dv) @ (H*dv, D) matmul.
    ctx = jnp.concatenate(ctx_heads, axis=-1).reshape(B * Lq, H * dv)

    # output projection + residual + LayerNorm 1
    o = jnp.dot(ctx, wo_ref[...], preferred_element_type=f32) + bo_ref[...] + q2
    mu = jnp.mean(o, axis=-1, keepdims=True)
    var = jnp.mean((o - mu) * (o - mu), axis=-1, keepdims=True)
    a = (o - mu) * lax.rsqrt(var + LN_EPS) * g1_ref[...] + be1_ref[...]
    a = a * npad2                                          # non-pad mask

    # position-wise FFN + residual + LayerNorm 2
    hdn = jnp.maximum(
        jnp.dot(a, w1_ref[...], preferred_element_type=f32) + b1_ref[...], 0.0)
    fo = jnp.dot(hdn, w2_ref[...], preferred_element_type=f32) + b2_ref[...] + a
    mu2 = jnp.mean(fo, axis=-1, keepdims=True)
    var2 = jnp.mean((fo - mu2) * (fo - mu2), axis=-1, keepdims=True)
    y = (fo - mu2) * lax.rsqrt(var2 + LN_EPS) * g2_ref[...] + be2_ref[...]
    y = y * npad2                                          # non-pad mask
    out_ref[...] = y.reshape(B, Lq, D)


def pallas_unet_layer(q, kv, bias, npad, lp):
    """One UNetEncoderLayer via a single fused Pallas kernel call."""
    B, Lq, D = q.shape
    Lk = kv.shape[1]
    Hdk = lp['wq'].shape[1]
    Hdv = lp['wv'].shape[1]
    d_inner = lp['w1'].shape[1]
    H = N_HEAD

    weight_names = ('wq', 'bq', 'wk', 'bk', 'wv', 'bv', 'wo', 'bo',
                    'g1', 'be1', 'w1', 'b1', 'w2', 'b2', 'g2', 'be2')
    flops = 2 * B * (Lq * D * Hdk + Lk * D * (Hdk + Hdv)
                     + Lq * Lk * (Hdk + Hdv) + Lq * Hdv * D
                     + 2 * Lq * D * d_inner)
    weight_elems = sum(int(np.prod(lp[k].shape)) for k in weight_names)
    bytes_accessed = 4 * (q.size + kv.size + bias.size + npad.size
                          + weight_elems + B * Lq * D)
    cost = pl.CostEstimate(flops=int(flops),
                           transcendentals=int(B * H * Lq * Lk),
                           bytes_accessed=int(bytes_accessed))

    vspec = pl.BlockSpec(memory_space=pltpu.MemorySpace.VMEM)
    return pl.pallas_call(
        functools.partial(unet_layer_kernel, n_head=H),
        out_shape=jax.ShapeDtypeStruct((B, Lq, D), jnp.float32),
        in_specs=[vspec] * 20,
        out_specs=vspec,
        cost_estimate=cost,
    )(q, kv, bias, npad,
      lp['wq'], lp['bq'], lp['wk'], lp['bk'], lp['wv'], lp['bv'],
      lp['wo'], lp['bo'], lp['g1'], lp['be1'],
      lp['w1'], lp['b1'], lp['w2'], lp['b2'], lp['g2'], lp['be2'])


# ---------------------------------------------------------------------------
# Pure-JAX reference of the same layer (exact softmax division) for checking.
# ---------------------------------------------------------------------------
def reference_unet_layer(q, kv, bias, npad, lp):
    B, Lq, D = q.shape
    Lk = kv.shape[1]
    H = N_HEAD
    dk = lp['wq'].shape[1] // H
    dv = lp['wv'].shape[1] // H
    q2 = q.reshape(B * Lq, D)
    kv2 = kv.reshape(B * Lk, D)
    npad2 = npad.reshape(B * Lq, 1)

    Q = (jnp.dot(q2, lp['wq'], precision=HIGH) + lp['bq']).reshape(B, Lq, H * dk)
    K = (jnp.dot(kv2, lp['wk'], precision=HIGH) + lp['bk']).reshape(B, Lk, H * dk)
    V = (jnp.dot(kv2, lp['wv'], precision=HIGH) + lp['bv']).reshape(B, Lk, H * dv)

    ctxs = []
    for h in range(H):
        q_h = Q[:, :, h * dk:(h + 1) * dk]
        k_h = K[:, :, h * dk:(h + 1) * dk]
        v_h = V[:, :, h * dv:(h + 1) * dv]
        s = jnp.einsum('bqd,bkd->bqk', q_h, k_h, precision=HIGH) / (dk ** 0.5)
        s = s + bias
        s = s - jnp.max(s, axis=-1, keepdims=True)
        e = jnp.exp(s)
        p = e / jnp.sum(e, axis=-1, keepdims=True)
        ctxs.append(jnp.einsum('bqk,bkd->bqd', p, v_h, precision=HIGH))
    ctx = jnp.concatenate(ctxs, axis=-1).reshape(B * Lq, H * dv)

    o = jnp.dot(ctx, lp['wo'], precision=HIGH) + lp['bo'] + q2
    mu = jnp.mean(o, -1, keepdims=True)
    var = jnp.mean((o - mu) ** 2, -1, keepdims=True)
    a = (o - mu) / jnp.sqrt(var + LN_EPS) * lp['g1'] + lp['be1']
    a = a * npad2

    hdn = jnp.maximum(jnp.dot(a, lp['w1'], precision=HIGH) + lp['b1'], 0.0)
    fo = jnp.dot(hdn, lp['w2'], precision=HIGH) + lp['b2'] + a
    mu2 = jnp.mean(fo, -1, keepdims=True)
    var2 = jnp.mean((fo - mu2) ** 2, -1, keepdims=True)
    y = (fo - mu2) / jnp.sqrt(var2 + LN_EPS) * lp['g2'] + lp['be2']
    return (y * npad2).reshape(B, Lq, D)


# ---------------------------------------------------------------------------
# JAX glue: embeddings, masks, pooling, up-sampling, tiny resize linears.
# ---------------------------------------------------------------------------
def maxpool_seq(x):
    """nn.MaxPool1d(3, stride=2, padding=1) over the sequence axis of (B, L, C)."""
    init = jnp.asarray(-jnp.inf, dtype=x.dtype)
    return lax.reduce_window(x, init, lax.max,
                             window_dimensions=(1, 3, 1),
                             window_strides=(1, 2, 1),
                             padding=((0, 0), (1, 1), (0, 0)))


def linear(x, w, b):
    return jnp.dot(x, w, precision=HIGH) + b


def key_bias_from_non_pad(np_mask, len_q):
    """get_attn_mask equivalent: -1e30 bias where the KEY position is pad."""
    kb = jnp.where(np_mask[:, :, 0] > 0, 0.0, NEG_INF).astype(jnp.float32)
    return jnp.broadcast_to(kb[:, None, :], (kb.shape[0], len_q, kb.shape[1]))


def unet_encoder_forward(src_seq, src_pos, params, layer_fn):
    B, L = src_seq.shape
    non_pad = (src_seq != PAD).astype(jnp.float32)[:, :, None]      # (B, L, 1)
    bias_full = key_bias_from_non_pad(non_pad, L)                   # (B, L, L)

    # TODO(synk): embedding gathers stay in JAX (data-dependent gather glue).
    enc = params['word_emb'][src_seq] + params['pos_table'][src_pos]

    enc = layer_fn(enc, enc, bias_full, non_pad, params['in_layer'])
    first_output = enc

    layer_non_pad = non_pad
    down_outputs, layer_pairs = [], []
    for lp in params['down_stack']:
        prev_np = layer_non_pad
        layer_non_pad = maxpool_seq(prev_np)
        bias = key_bias_from_non_pad(prev_np, layer_non_pad.shape[1])
        x = linear(enc, lp['resize_w'], lp['resize_b'])             # channel resize
        q = maxpool_seq(x)                                          # down-sampled queries
        enc = layer_fn(q, x, bias, layer_non_pad, lp)
        down_outputs.append(enc)
        layer_pairs.append((prev_np, layer_non_pad))

    down_outputs.reverse()
    layer_pairs.reverse()
    enc = None
    for i, lp in enumerate(params['up_stack']):
        fine_np, coarse_np = layer_pairs[i]
        bias = key_bias_from_non_pad(coarse_np, fine_np.shape[1])
        d_out = down_outputs[i]
        if enc is None:
            layer_input = d_out
        else:
            ul = params['up_lin'][i]
            layer_input = enc + linear(d_out, ul['w'], ul['b'])
        x = linear(layer_input, lp['resize_w'], lp['resize_b'])     # channel resize
        q = jnp.repeat(x, 2, axis=1)[:, :fine_np.shape[1]]          # nearest up-sample
        enc = layer_fn(q, x, bias, fine_np, lp)

    ul = params['up_lin'][-1]
    final_in = enc + linear(first_output, ul['w'], ul['b'])
    enc = layer_fn(final_in, final_in, bias_full, non_pad, params['out_layer'])
    return enc


# ---------------------------------------------------------------------------
# Parameter construction (synthetic, deterministic; module's shape logic).
# ---------------------------------------------------------------------------
def sinusoid_encoding_table(n_position, d_hid, padding_idx=None):
    def cal_angle(position, hid_idx):
        return position / np.power(10000, 2 * (hid_idx // 2) / d_hid)
    table = np.array([[cal_angle(pos, j) for j in range(d_hid)]
                      for pos in range(n_position)], dtype=np.float64)
    table[:, 0::2] = np.sin(table[:, 0::2])
    table[:, 1::2] = np.cos(table[:, 1::2])
    if padding_idx is not None:
        table[padding_idx] = 0.0
    return table.astype(np.float32)


def _uniform(key, shape, scale):
    return jax.random.uniform(key, shape, jnp.float32, -scale, scale)


def init_layer_params(key, d_model, d_inner, n_head, d_k, d_v, d_in=None):
    it = iter(jax.random.split(key, 20))
    def u(shape, scale):
        return _uniform(next(it), shape, scale)
    s_m = 1.0 / sqrt(d_model)
    s_o = 1.0 / sqrt(n_head * d_v)
    s_i = 1.0 / sqrt(d_inner)
    p = dict(
        wq=u((d_model, n_head * d_k), s_m), bq=u((1, n_head * d_k), s_m),
        wk=u((d_model, n_head * d_k), s_m), bk=u((1, n_head * d_k), s_m),
        wv=u((d_model, n_head * d_v), s_m), bv=u((1, n_head * d_v), s_m),
        wo=u((n_head * d_v, d_model), s_o), bo=u((1, d_model), s_o),
        g1=1.0 + u((1, d_model), 0.1), be1=u((1, d_model), 0.1),
        w1=u((d_model, d_inner), s_m), b1=u((1, d_inner), s_m),
        w2=u((d_inner, d_model), s_i), b2=u((1, d_model), s_i),
        g2=1.0 + u((1, d_model), 0.1), be2=u((1, d_model), 0.1),
    )
    if d_in is not None:
        s_r = 1.0 / sqrt(d_in)
        p['resize_w'] = u((d_in, d_model), s_r)
        p['resize_b'] = u((1, d_model), s_r)
    return p


def init_params(key, n_src_vocab, len_max_seq, d_word_vec, n_layers,
                n_head, d_k, d_v, d_model, d_inner):
    depth = n_layers // 2 - 1
    multiples = [sqrt(2) ** i for i in range(depth + 1)]
    layer_sizes = [round(d_model * m) for m in multiples]
    inner_sizes = [round(d_inner * m) for m in multiples]
    d_k_sizes = [round(d_k * multiples[i + 1]) for i in range(depth)]
    d_v_sizes = [round(d_v * multiples[i + 1]) for i in range(depth)]
    rs = list(reversed(layer_sizes))

    it = iter(jax.random.split(key, 64))
    word_emb = _uniform(next(it), (n_src_vocab, d_word_vec), 0.5).at[PAD].set(0.0)
    pos_table = jnp.asarray(
        sinusoid_encoding_table(len_max_seq + 1, d_word_vec, padding_idx=0))

    in_layer = init_layer_params(next(it), d_model, d_inner, n_head, d_k, d_v)
    out_layer = init_layer_params(next(it), d_model, d_inner, n_head, d_k, d_v)
    down_stack = [init_layer_params(next(it), layer_sizes[i + 1], inner_sizes[i + 1],
                                    n_head, d_k_sizes[i], d_v_sizes[i],
                                    d_in=layer_sizes[i])
                  for i in range(depth)]
    up_stack = [init_layer_params(next(it), rs[i + 1], inner_sizes[i + 1],
                                  n_head, d_k_sizes[i], d_v_sizes[i],
                                  d_in=rs[i])
                for i in range(depth)]
    up_lin = [dict(w=_uniform(next(it), (rs[i], rs[i]), 1.0 / sqrt(rs[i])),
                   b=_uniform(next(it), (1, rs[i]), 1.0 / sqrt(rs[i])))
              for i in range(depth + 1)]
    return dict(word_emb=word_emb, pos_table=pos_table,
                in_layer=in_layer, out_layer=out_layer,
                down_stack=down_stack, up_stack=up_stack, up_lin=up_lin)


# ---------------------------------------------------------------------------
if __name__ == "__main__":
    B, L = 2, 16
    n_src_vocab = 50
    len_max_seq = 16
    d_word_vec = d_model = 32
    d_inner = 64
    n_layers = 4                       # depth = n_layers // 2 - 1 = 1
    n_head, d_k, d_v = N_HEAD, 8, 8

    key = jax.random.PRNGKey(0)
    kp, k1 = jax.random.split(key, 2)
    params = init_params(kp, n_src_vocab, len_max_seq, d_word_vec, n_layers,
                         n_head, d_k, d_v, d_model, d_inner)

    src_tokens = jax.random.randint(k1, (B, L), 1, n_src_vocab)
    keep = jnp.array([[1] * L, [1] * 11 + [0] * (L - 11)], dtype=jnp.int32)  # row 1 padded
    src_seq = src_tokens * keep
    src_pos = jnp.arange(1, L + 1, dtype=jnp.int32)[None, :] * keep          # 0 at pads

    fwd = jax.jit(functools.partial(unet_encoder_forward, layer_fn=pallas_unet_layer))
    out = jax.block_until_ready(fwd(src_seq, src_pos, params))

    ref = unet_encoder_forward(src_seq, src_pos, params,
                               layer_fn=reference_unet_layer)
    max_err = float(jnp.max(jnp.abs(out - ref)))
    ok = (out.shape == (B, L, d_model)
          and not bool(jnp.any(jnp.isnan(out)))
          and max_err < 1e-2)
    if ok:
        print("KERNEL_OK")
    else:
        print("MISMATCH max_err=", max_err, "shape=", out.shape)
</pallas_src>

<mosaic_0001>
module attributes {stable_mosaic.version = 11 : i64} {
  func.func @unet_layer_kernel(%arg0: memref<2x16x32xf32, #tpu.memory_space<vmem>>, %arg1: memref<2x16x32xf32, #tpu.memory_space<vmem>>, %arg2: memref<2x16x16xf32, #tpu.memory_space<vmem>>, %arg3: memref<2x16x1xf32, #tpu.memory_space<vmem>>, %arg4: memref<32x32xf32, #tpu.memory_space<vmem>>, %arg5: memref<1x32xf32, #tpu.memory_space<vmem>>, %arg6: memref<32x32xf32, #tpu.memory_space<vmem>>, %arg7: memref<1x32xf32, #tpu.memory_space<vmem>>, %arg8: memref<32x32xf32, #tpu.memory_space<vmem>>, %arg9: memref<1x32xf32, #tpu.memory_space<vmem>>, %arg10: memref<32x32xf32, #tpu.memory_space<vmem>>, %arg11: memref<1x32xf32, #tpu.memory_space<vmem>>, %arg12: memref<1x32xf32, #tpu.memory_space<vmem>>, %arg13: memref<1x32xf32, #tpu.memory_space<vmem>>, %arg14: memref<32x64xf32, #tpu.memory_space<vmem>>, %arg15: memref<1x64xf32, #tpu.memory_space<vmem>>, %arg16: memref<64x32xf32, #tpu.memory_space<vmem>>, %arg17: memref<1x32xf32, #tpu.memory_space<vmem>>, %arg18: memref<1x32xf32, #tpu.memory_space<vmem>>, %arg19: memref<1x32xf32, #tpu.memory_space<vmem>>, %arg20: memref<2x16x32xf32, #tpu.memory_space<vmem>>) attributes {dimension_semantics = [], scalar_prefetch = 0 : i64, scratch_operands = 0 : i64, tpu.core_type = #tpu.core_type<tc>} {
    %c0 = arith.constant 0 : index
    %c0_0 = arith.constant 0 : index
    %c0_1 = arith.constant 0 : index
    %0 = vector.load %arg0[%c0, %c0_0, %c0_1] : memref<2x16x32xf32, #tpu.memory_space<vmem>>, vector<2x16x32xf32>
    %1 = vector.shape_cast %0 : vector<2x16x32xf32> to vector<32x32xf32>
    %c0_2 = arith.constant 0 : index
    %c0_3 = arith.constant 0 : index
    %c0_4 = arith.constant 0 : index
    %2 = vector.load %arg1[%c0_2, %c0_3, %c0_4] : memref<2x16x32xf32, #tpu.memory_space<vmem>>, vector<2x16x32xf32>
    %3 = vector.shape_cast %2 : vector<2x16x32xf32> to vector<32x32xf32>
    %c0_5 = arith.constant 0 : index
    %c0_6 = arith.constant 0 : index
    %c0_7 = arith.constant 0 : index
    %4 = vector.load %arg3[%c0_5, %c0_6, %c0_7] : memref<2x16x1xf32, #tpu.memory_space<vmem>>, vector<2x16x1xf32>
    %5 = vector.shape_cast %4 : vector<2x16x1xf32> to vector<32x1xf32>
    %c0_8 = arith.constant 0 : index
    %c0_9 = arith.constant 0 : index
    %c0_10 = arith.constant 0 : index
    %6 = vector.load %arg2[%c0_8, %c0_9, %c0_10] : memref<2x16x16xf32, #tpu.memory_space<vmem>>, vector<2x16x16xf32>
    %c0_11 = arith.constant 0 : index
    %c0_12 = arith.constant 0 : index
    %7 = vector.load %arg4[%c0_11, %c0_12] : memref<32x32xf32, #tpu.memory_space<vmem>>, vector<32x32xf32>
    %cst = arith.constant dense<0.000000e+00> : vector<32x32xf32>
    %8 = tpu.matmul %1, %7, %cst {dimension_numbers = #tpu.dot_dimension_numbers<[1], [0], [0], [1], [0, 0, 1, 1], [], []>} : vector<32x32xf32>, vector<32x32xf32>, vector<32x32xf32> -> vector<32x32xf32>
    %c0_13 = arith.constant 0 : index
    %c0_14 = arith.constant 0 : index
    %9 = vector.load %arg5[%c0_13, %c0_14] : memref<1x32xf32, #tpu.memory_space<vmem>>, vector<1x32xf32>
    %10 = vector.broadcast %9 : vector<1x32xf32> to vector<32x32xf32>
    %11 = arith.addf %8, %10 : vector<32x32xf32>
    %12 = vector.shape_cast %11 : vector<32x32xf32> to vector<2x16x32xf32>
    %c0_15 = arith.constant 0 : index
    %c0_16 = arith.constant 0 : index
    %13 = vector.load %arg6[%c0_15, %c0_16] : memref<32x32xf32, #tpu.memory_space<vmem>>, vector<32x32xf32>
    %cst_17 = arith.constant dense<0.000000e+00> : vector<32x32xf32>
    %14 = tpu.matmul %3, %13, %cst_17 {dimension_numbers = #tpu.dot_dimension_numbers<[1], [0], [0], [1], [0, 0, 1, 1], [], []>} : vector<32x32xf32>, vector<32x32xf32>, vector<32x32xf32> -> vector<32x32xf32>
    %c0_18 = arith.constant 0 : index
    %c0_19 = arith.constant 0 : index
    %15 = vector.load %arg7[%c0_18, %c0_19] : memref<1x32xf32, #tpu.memory_space<vmem>>, vector<1x32xf32>
    %16 = vector.broadcast %15 : vector<1x32xf32> to vector<32x32xf32>
    %17 = arith.addf %14, %16 : vector<32x32xf32>
    %18 = vector.shape_cast %17 : vector<32x32xf32> to vector<2x16x32xf32>
    %c0_20 = arith.constant 0 : index
    %c0_21 = arith.constant 0 : index
    %19 = vector.load %arg8[%c0_20, %c0_21] : memref<32x32xf32, #tpu.memory_space<vmem>>, vector<32x32xf32>
    %cst_22 = arith.constant dense<0.000000e+00> : vector<32x32xf32>
    %20 = tpu.matmul %3, %19, %cst_22 {dimension_numbers = #tpu.dot_dimension_numbers<[1], [0], [0], [1], [0, 0, 1, 1], [], []>} : vector<32x32xf32>, vector<32x32xf32>, vector<32x32xf32> -> vector<32x32xf32>
    %c0_23 = arith.constant 0 : index
    %c0_24 = arith.constant 0 : index
    %21 = vector.load %arg9[%c0_23, %c0_24] : memref<1x32xf32, #tpu.memory_space<vmem>>, vector<1x32xf32>
    %22 = vector.broadcast %21 : vector<1x32xf32> to vector<32x32xf32>
    %23 = arith.addf %20, %22 : vector<32x32xf32>
    %24 = vector.shape_cast %23 : vector<32x32xf32> to vector<2x16x32xf32>
    %25 = vector.extract_strided_slice %12 {offsets = [0, 0, 0], sizes = [2, 16, 8], strides = [1, 1, 1]} : vector<2x16x32xf32> to vector<2x16x8xf32>
    %26 = vector.extract_strided_slice %18 {offsets = [0, 0, 0], sizes = [2, 16, 8], strides = [1, 1, 1]} : vector<2x16x32xf32> to vector<2x16x8xf32>
    %27 = vector.extract_strided_slice %24 {offsets = [0, 0, 0], sizes = [2, 16, 8], strides = [1, 1, 1]} : vector<2x16x32xf32> to vector<2x16x8xf32>
    "tpu.trace_start"() <{level = 10 : i32, message = "bqd,bkd->bqk"}> : () -> ()
    %cst_25 = arith.constant dense<0.000000e+00> : vector<2x16x16xf32>
    %28 = tpu.matmul %25, %26, %cst_25 {dimension_numbers = #tpu.dot_dimension_numbers<[2], [2], [1], [1], [0, 0, 0, 1, 1, 1], [0], [0]>} : vector<2x16x8xf32>, vector<2x16x8xf32>, vector<2x16x16xf32> -> vector<2x16x16xf32>
    "tpu.trace_stop"() : () -> ()
    %cst_26 = arith.constant 0.353553385 : f32
    %29 = vector.broadcast %cst_26 : f32 to vector<2x16x16xf32>
    %30 = arith.mulf %28, %29 : vector<2x16x16xf32>
    %31 = arith.addf %30, %6 : vector<2x16x16xf32>
    %cst_27 = arith.constant dense<0xFF800000> : vector<2x16xf32>
    %32 = vector.multi_reduction <maximumf>, %31, %cst_27 [2] : vector<2x16x16xf32> to vector<2x16xf32>
    %33 = vector.shape_cast %32 : vector<2x16xf32> to vector<2x16x1xf32>
    %34 = vector.broadcast %33 : vector<2x16x1xf32> to vector<2x16x16xf32>
    %35 = arith.subf %31, %34 : vector<2x16x16xf32>
    %36 = math.exp %35 : vector<2x16x16xf32>
    %cst_28 = arith.constant dense<0.000000e+00> : vector<2x16xf32>
    %37 = vector.multi_reduction <add>, %36, %cst_28 [2] : vector<2x16x16xf32> to vector<2x16xf32>
    %38 = vector.shape_cast %37 : vector<2x16xf32> to vector<2x16x1xf32>
    %39 = tpu.reciprocal %38 {approx = true} : vector<2x16x1xf32> -> vector<2x16x1xf32>
    %40 = vector.broadcast %39 : vector<2x16x1xf32> to vector<2x16x16xf32>
    %41 = arith.mulf %36, %40 : vector<2x16x16xf32>
    "tpu.trace_start"() <{level = 10 : i32, message = "bqk,bkd->bqd"}> : () -> ()
    %cst_29 = arith.constant dense<0.000000e+00> : vector<2x16x8xf32>
    %42 = tpu.matmul %41, %27, %cst_29 {dimension_numbers = #tpu.dot_dimension_numbers<[2], [1], [1], [2], [0, 0, 0, 1, 1, 2], [0], [0]>} : vector<2x16x16xf32>, vector<2x16x8xf32>, vector<2x16x8xf32> -> vector<2x16x8xf32>
    "tpu.trace_stop"() : () -> ()
    %43 = vector.extract_strided_slice %12 {offsets = [0, 0, 8], sizes = [2, 16, 8], strides = [1, 1, 1]} : vector<2x16x32xf32> to vector<2x16x8xf32>
    %44 = vector.extract_strided_slice %18 {offsets = [0, 0, 8], sizes = [2, 16, 8], strides = [1, 1, 1]} : vector<2x16x32xf32> to vector<2x16x8xf32>
    %45 = vector.extract_strided_slice %24 {offsets = [0, 0, 8], sizes = [2, 16, 8], strides = [1, 1, 1]} : vector<2x16x32xf32> to vector<2x16x8xf32>
    "tpu.trace_start"() <{level = 10 : i32, message = "bqd,bkd->bqk"}> : () -> ()
    %cst_30 = arith.constant dense<0.000000e+00> : vector<2x16x16xf32>
    %46 = tpu.matmul %43, %44, %cst_30 {dimension_numbers = #tpu.dot_dimension_numbers<[2], [2], [1], [1], [0, 0, 0, 1, 1, 1], [0], [0]>} : vector<2x16x8xf32>, vector<2x16x8xf32>, vector<2x16x16xf32> -> vector<2x16x16xf32>
    "tpu.trace_stop"() : () -> ()
    %cst_31 = arith.constant 0.353553385 : f32
    %47 = vector.broadcast %cst_31 : f32 to vector<2x16x16xf32>
    %48 = arith.mulf %46, %47 : vector<2x16x16xf32>
    %49 = arith.addf %48, %6 : vector<2x16x16xf32>
    %cst_32 = arith.constant dense<0xFF800000> : vector<2x16xf32>
    %50 = vector.multi_reduction <maximumf>, %49, %cst_32 [2] : vector<2x16x16xf32> to vector<2x16xf32>
    %51 = vector.shape_cast %50 : vector<2x16xf32> to vector<2x16x1xf32>
    %52 = vector.broadcast %51 : vector<2x16x1xf32> to vector<2x16x16xf32>
    %53 = arith.subf %49, %52 : vector<2x16x16xf32>
    %54 = math.exp %53 : vector<2x16x16xf32>
    %cst_33 = arith.constant dense<0.000000e+00> : vector<2x16xf32>
    %55 = vector.multi_reduction <add>, %54, %cst_33 [2] : vector<2x16x16xf32> to vector<2x16xf32>
    %56 = vector.shape_cast %55 : vector<2x16xf32> to vector<2x16x1xf32>
    %57 = tpu.reciprocal %56 {approx = true} : vector<2x16x1xf32> -> vector<2x16x1xf32>
    %58 = vector.broadcast %57 : vector<2x16x1xf32> to vector<2x16x16xf32>
    %59 = arith.mulf %54, %58 : vector<2x16x16xf32>
    "tpu.trace_start"() <{level = 10 : i32, message = "bqk,bkd->bqd"}> : () -> ()
    %cst_34 = arith.constant dense<0.000000e+00> : vector<2x16x8xf32>
    %60 = tpu.matmul %59, %45, %cst_34 {dimension_numbers = #tpu.dot_dimension_numbers<[2], [1], [1], [2], [0, 0, 0, 1, 1, 2], [0], [0]>} : vector<2x16x16xf32>, vector<2x16x8xf32>, vector<2x16x8xf32> -> vector<2x16x8xf32>
    "tpu.trace_stop"() : () -> ()
    %61 = vector.extract_strided_slice %12 {offsets = [0, 0, 16], sizes = [2, 16, 8], strides = [1, 1, 1]} : vector<2x16x32xf32> to vector<2x16x8xf32>
    %62 = vector.extract_strided_slice %18 {offsets = [0, 0, 16], sizes = [2, 16, 8], strides = [1, 1, 1]} : vector<2x16x32xf32> to vector<2x16x8xf32>
    %63 = vector.extract_strided_slice %24 {offsets = [0, 0, 16], sizes = [2, 16, 8], strides = [1, 1, 1]} : vector<2x16x32xf32> to vector<2x16x8xf32>
    "tpu.trace_start"() <{level = 10 : i32, message = "bqd,bkd->bqk"}> : () -> ()
    %cst_35 = arith.constant dense<0.000000e+00> : vector<2x16x16xf32>
    %64 = tpu.matmul %61, %62, %cst_35 {dimension_numbers = #tpu.dot_dimension_numbers<[2], [2], [1], [1], [0, 0, 0, 1, 1, 1], [0], [0]>} : vector<2x16x8xf32>, vector<2x16x8xf32>, vector<2x16x16xf32> -> vector<2x16x16xf32>
    "tpu.trace_stop"() : () -> ()
    %cst_36 = arith.constant 0.353553385 : f32
    %65 = vector.broadcast %cst_36 : f32 to vector<2x16x16xf32>
    %66 = arith.mulf %64, %65 : vector<2x16x16xf32>
    %67 = arith.addf %66, %6 : vector<2x16x16xf32>
    %cst_37 = arith.constant dense<0xFF800000> : vector<2x16xf32>
    %68 = vector.multi_reduction <maximumf>, %67, %cst_37 [2] : vector<2x16x16xf32> to vector<2x16xf32>
    %69 = vector.shape_cast %68 : vector<2x16xf32> to vector<2x16x1xf32>
    %70 = vector.broadcast %69 : vector<2x16x1xf32> to vector<2x16x16xf32>
    %71 = arith.subf %67, %70 : vector<2x16x16xf32>
    %72 = math.exp %71 : vector<2x16x16xf32>
    %cst_38 = arith.constant dense<0.000000e+00> : vector<2x16xf32>
    %73 = vector.multi_reduction <add>, %72, %cst_38 [2] : vector<2x16x16xf32> to vector<2x16xf32>
    %74 = vector.shape_cast %73 : vector<2x16xf32> to vector<2x16x1xf32>
    %75 = tpu.reciprocal %74 {approx = true} : vector<2x16x1xf32> -> vector<2x16x1xf32>
    %76 = vector.broadcast %75 : vector<2x16x1xf32> to vector<2x16x16xf32>
    %77 = arith.mulf %72, %76 : vector<2x16x16xf32>
    "tpu.trace_start"() <{level = 10 : i32, message = "bqk,bkd->bqd"}> : () -> ()
    %cst_39 = arith.constant dense<0.000000e+00> : vector<2x16x8xf32>
    %78 = tpu.matmul %77, %63, %cst_39 {dimension_numbers = #tpu.dot_dimension_numbers<[2], [1], [1], [2], [0, 0, 0, 1, 1, 2], [0], [0]>} : vector<2x16x16xf32>, vector<2x16x8xf32>, vector<2x16x8xf32> -> vector<2x16x8xf32>
    "tpu.trace_stop"() : () -> ()
    %79 = vector.extract_strided_slice %12 {offsets = [0, 0, 24], sizes = [2, 16, 8], strides = [1, 1, 1]} : vector<2x16x32xf32> to vector<2x16x8xf32>
    %80 = vector.extract_strided_slice %18 {offsets = [0, 0, 24], sizes = [2, 16, 8], strides = [1, 1, 1]} : vector<2x16x32xf32> to vector<2x16x8xf32>
    %81 = vector.extract_strided_slice %24 {offsets = [0, 0, 24], sizes = [2, 16, 8], strides = [1, 1, 1]} : vector<2x16x32xf32> to vector<2x16x8xf32>
    "tpu.trace_start"() <{level = 10 : i32, message = "bqd,bkd->bqk"}> : () -> ()
    %cst_40 = arith.constant dense<0.000000e+00> : vector<2x16x16xf32>
    %82 = tpu.matmul %79, %80, %cst_40 {dimension_numbers = #tpu.dot_dimension_numbers<[2], [2], [1], [1], [0, 0, 0, 1, 1, 1], [0], [0]>} : vector<2x16x8xf32>, vector<2x16x8xf32>, vector<2x16x16xf32> -> vector<2x16x16xf32>
    "tpu.trace_stop"() : () -> ()
    %cst_41 = arith.constant 0.353553385 : f32
    %83 = vector.broadcast %cst_41 : f32 to vector<2x16x16xf32>
    %84 = arith.mulf %82, %83 : vector<2x16x16xf32>
    %85 = arith.addf %84, %6 : vector<2x16x16xf32>
    %cst_42 = arith.constant dense<0xFF800000> : vector<2x16xf32>
    %86 = vector.multi_reduction <maximumf>, %85, %cst_42 [2] : vector<2x16x16xf32> to vector<2x16xf32>
    %87 = vector.shape_cast %86 : vector<2x16xf32> to vector<2x16x1xf32>
    %88 = vector.broadcast %87 : vector<2x16x1xf32> to vector<2x16x16xf32>
    %89 = arith.subf %85, %88 : vector<2x16x16xf32>
    %90 = math.exp %89 : vector<2x16x16xf32>
    %cst_43 = arith.constant dense<0.000000e+00> : vector<2x16xf32>
    %91 = vector.multi_reduction <add>, %90, %cst_43 [2] : vector<2x16x16xf32> to vector<2x16xf32>
    %92 = vector.shape_cast %91 : vector<2x16xf32> to vector<2x16x1xf32>
    %93 = tpu.reciprocal %92 {approx = true} : vector<2x16x1xf32> -> vector<2x16x1xf32>
    %94 = vector.broadcast %93 : vector<2x16x1xf32> to vector<2x16x16xf32>
    %95 = arith.mulf %90, %94 : vector<2x16x16xf32>
    "tpu.trace_start"() <{level = 10 : i32, message = "bqk,bkd->bqd"}> : () -> ()
    %cst_44 = arith.constant dense<0.000000e+00> : vector<2x16x8xf32>
    %96 = tpu.matmul %95, %81, %cst_44 {dimension_numbers = #tpu.dot_dimension_numbers<[2], [1], [1], [2], [0, 0, 0, 1, 1, 2], [0], [0]>} : vector<2x16x16xf32>, vector<2x16x8xf32>, vector<2x16x8xf32> -> vector<2x16x8xf32>
    "tpu.trace_stop"() : () -> ()
    %97 = tpu.concatenate %42, %60, %78, %96 in 2 : vector<2x16x8xf32>, vector<2x16x8xf32>, vector<2x16x8xf32>, vector<2x16x8xf32> -> vector<2x16x32xf32>
    %98 = vector.shape_cast %97 : vector<2x16x32xf32> to vector<32x32xf32>
    %c0_45 = arith.constant 0 : index
    %c0_46 = arith.constant 0 : index
    %99 = vector.load %arg10[%c0_45, %c0_46] : memref<32x32xf32, #tpu.memory_space<vmem>>, vector<32x32xf32>
    %cst_47 = arith.constant dense<0.000000e+00> : vector<32x32xf32>
    %100 = tpu.matmul %98, %99, %cst_47 {dimension_numbers = #tpu.dot_dimension_numbers<[1], [0], [0], [1], [0, 0, 1, 1], [], []>} : vector<32x32xf32>, vector<32x32xf32>, vector<32x32xf32> -> vector<32x32xf32>
    %c0_48 = arith.constant 0 : index
    %c0_49 = arith.constant 0 : index
    %101 = vector.load %arg11[%c0_48, %c0_49] : memref<1x32xf32, #tpu.memory_space<vmem>>, vector<1x32xf32>
    %102 = vector.broadcast %101 : vector<1x32xf32> to vector<32x32xf32>
    %103 = arith.addf %100, %102 : vector<32x32xf32>
    %104 = arith.addf %103, %1 : vector<32x32xf32>
    %cst_50 = arith.constant dense<0.000000e+00> : vector<32xf32>
    %105 = vector.multi_reduction <add>, %104, %cst_50 [1] : vector<32x32xf32> to vector<32xf32>
    %106 = vector.shape_cast %105 : vector<32xf32> to vector<32x1xf32>
    %cst_51 = arith.constant 3.200000e+01 : f32
    %107 = vector.broadcast %cst_51 : f32 to vector<32x1xf32>
    %108 = arith.divf %106, %107 : vector<32x1xf32>
    %109 = vector.broadcast %108 : vector<32x1xf32> to vector<32x32xf32>
    %110 = arith.subf %104, %109 : vector<32x32xf32>
    %111 = vector.broadcast %108 : vector<32x1xf32> to vector<32x32xf32>
    %112 = arith.subf %104, %111 : vector<32x32xf32>
    %113 = arith.mulf %110, %112 : vector<32x32xf32>
    %cst_52 = arith.constant dense<0.000000e+00> : vector<32xf32>
    %114 = vector.multi_reduction <add>, %113, %cst_52 [1] : vector<32x32xf32> to vector<32xf32>
    %115 = vector.shape_cast %114 : vector<32xf32> to vector<32x1xf32>
    %cst_53 = arith.constant 3.200000e+01 : f32
    %116 = vector.broadcast %cst_53 : f32 to vector<32x1xf32>
    %117 = arith.divf %115, %116 : vector<32x1xf32>
    %118 = vector.broadcast %108 : vector<32x1xf32> to vector<32x32xf32>
    %119 = arith.subf %104, %118 : vector<32x32xf32>
    %cst_54 = arith.constant 9.99999974E-6 : f32
    %120 = vector.broadcast %cst_54 : f32 to vector<32x1xf32>
    %121 = arith.addf %117, %120 : vector<32x1xf32>
    %122 = math.rsqrt %121 : vector<32x1xf32>
    %123 = vector.broadcast %122 : vector<32x1xf32> to vector<32x32xf32>
    %124 = arith.mulf %119, %123 : vector<32x32xf32>
    %c0_55 = arith.constant 0 : index
    %c0_56 = arith.constant 0 : index
    %125 = vector.load %arg12[%c0_55, %c0_56] : memref<1x32xf32, #tpu.memory_space<vmem>>, vector<1x32xf32>
    %126 = vector.broadcast %125 : vector<1x32xf32> to vector<32x32xf32>
    %127 = arith.mulf %124, %126 : vector<32x32xf32>
    %c0_57 = arith.constant 0 : index
    %c0_58 = arith.constant 0 : index
    %128 = vector.load %arg13[%c0_57, %c0_58] : memref<1x32xf32, #tpu.memory_space<vmem>>, vector<1x32xf32>
    %129 = vector.broadcast %128 : vector<1x32xf32> to vector<32x32xf32>
    %130 = arith.addf %127, %129 : vector<32x32xf32>
    %131 = vector.broadcast %5 : vector<32x1xf32> to vector<32x32xf32>
    %132 = arith.mulf %130, %131 : vector<32x32xf32>
    %c0_59 = arith.constant 0 : index
    %c0_60 = arith.constant 0 : index
    %133 = vector.load %arg14[%c0_59, %c0_60] : memref<32x64xf32, #tpu.memory_space<vmem>>, vector<32x64xf32>
    %cst_61 = arith.constant dense<0.000000e+00> : vector<32x64xf32>
    %134 = tpu.matmul %132, %133, %cst_61 {dimension_numbers = #tpu.dot_dimension_numbers<[1], [0], [0], [1], [0, 0, 1, 1], [], []>} : vector<32x32xf32>, vector<32x64xf32>, vector<32x64xf32> -> vector<32x64xf32>
    %c0_62 = arith.constant 0 : index
    %c0_63 = arith.constant 0 : index
    %135 = vector.load %arg15[%c0_62, %c0_63] : memref<1x64xf32, #tpu.memory_space<vmem>>, vector<1x64xf32>
    %136 = vector.broadcast %135 : vector<1x64xf32> to vector<32x64xf32>
    %137 = arith.addf %134, %136 : vector<32x64xf32>
    %cst_64 = arith.constant 0.000000e+00 : f32
    %138 = vector.broadcast %cst_64 : f32 to vector<32x64xf32>
    %139 = arith.maximumf %137, %138 : vector<32x64xf32>
    %c0_65 = arith.constant 0 : index
    %c0_66 = arith.constant 0 : index
    %140 = vector.load %arg16[%c0_65, %c0_66] : memref<64x32xf32, #tpu.memory_space<vmem>>, vector<64x32xf32>
    %cst_67 = arith.constant dense<0.000000e+00> : vector<32x32xf32>
    %141 = tpu.matmul %139, %140, %cst_67 {dimension_numbers = #tpu.dot_dimension_numbers<[1], [0], [0], [1], [0, 0, 1, 1], [], []>} : vector<32x64xf32>, vector<64x32xf32>, vector<32x32xf32> -> vector<32x32xf32>
    %c0_68 = arith.constant 0 : index
    %c0_69 = arith.constant 0 : index
    %142 = vector.load %arg17[%c0_68, %c0_69] : memref<1x32xf32, #tpu.memory_space<vmem>>, vector<1x32xf32>
    %143 = vector.broadcast %142 : vector<1x32xf32> to vector<32x32xf32>
    %144 = arith.addf %141, %143 : vector<32x32xf32>
    %145 = arith.addf %144, %132 : vector<32x32xf32>
    %cst_70 = arith.constant dense<0.000000e+00> : vector<32xf32>
    %146 = vector.multi_reduction <add>, %145, %cst_70 [1] : vector<32x32xf32> to vector<32xf32>
    %147 = vector.shape_cast %146 : vector<32xf32> to vector<32x1xf32>
    %cst_71 = arith.constant 3.200000e+01 : f32
    %148 = vector.broadcast %cst_71 : f32 to vector<32x1xf32>
    %149 = arith.divf %147, %148 : vector<32x1xf32>
    %150 = vector.broadcast %149 : vector<32x1xf32> to vector<32x32xf32>
    %151 = arith.subf %145, %150 : vector<32x32xf32>
    %152 = vector.broadcast %149 : vector<32x1xf32> to vector<32x32xf32>
    %153 = arith.subf %145, %152 : vector<32x32xf32>
    %154 = arith.mulf %151, %153 : vector<32x32xf32>
    %cst_72 = arith.constant dense<0.000000e+00> : vector<32xf32>
    %155 = vector.multi_reduction <add>, %154, %cst_72 [1] : vector<32x32xf32> to vector<32xf32>
    %156 = vector.shape_cast %155 : vector<32xf32> to vector<32x1xf32>
    %cst_73 = arith.constant 3.200000e+01 : f32
    %157 = vector.broadcast %cst_73 : f32 to vector<32x1xf32>
    %158 = arith.divf %156, %157 : vector<32x1xf32>
    %159 = vector.broadcast %149 : vector<32x1xf32> to vector<32x32xf32>
    %160 = arith.subf %145, %159 : vector<32x32xf32>
    %cst_74 = arith.constant 9.99999974E-6 : f32
    %161 = vector.broadcast %cst_74 : f32 to vector<32x1xf32>
    %162 = arith.addf %158, %161 : vector<32x1xf32>
    %163 = math.rsqrt %162 : vector<32x1xf32>
    %164 = vector.broadcast %163 : vector<32x1xf32> to vector<32x32xf32>
    %165 = arith.mulf %160, %164 : vector<32x32xf32>
    %c0_75 = arith.constant 0 : index
    %c0_76 = arith.constant 0 : index
    %166 = vector.load %arg18[%c0_75, %c0_76] : memref<1x32xf32, #tpu.memory_space<vmem>>, vector<1x32xf32>
    %167 = vector.broadcast %166 : vector<1x32xf32> to vector<32x32xf32>
    %168 = arith.mulf %165, %167 : vector<32x32xf32>
    %c0_77 = arith.constant 0 : index
    %c0_78 = arith.constant 0 : index
    %169 = vector.load %arg19[%c0_77, %c0_78] : memref<1x32xf32, #tpu.memory_space<vmem>>, vector<1x32xf32>
    %170 = vector.broadcast %169 : vector<1x32xf32> to vector<32x32xf32>
    %171 = arith.addf %168, %170 : vector<32x32xf32>
    %172 = vector.broadcast %5 : vector<32x1xf32> to vector<32x32xf32>
    %173 = arith.mulf %171, %172 : vector<32x32xf32>
    %174 = vector.shape_cast %173 : vector<32x32xf32> to vector<2x16x32xf32>
    %c0_79 = arith.constant 0 : index
    %c0_80 = arith.constant 0 : index
    %c0_81 = arith.constant 0 : index
    %175 = vector.load %arg20[%c0_79, %c0_80, %c0_81] : memref<2x16x32xf32, #tpu.memory_space<vmem>>, vector<2x16x32xf32>
    tpu.vector_store %arg20[%c0_79, %c0_80, %c0_81], %174 {strides = array<i32>} : memref<2x16x32xf32, #tpu.memory_space<vmem>>, vector<2x16x32xf32>,
    return
  }
}

module attributes {stable_mosaic.version = 11 : i64} {
  func.func @unet_layer_kernel(%arg0: memref<2x8x45xf32, #tpu.memory_space<vmem>>, %arg1: memref<2x16x45xf32, #tpu.memory_space<vmem>>, %arg2: memref<2x8x16xf32, #tpu.memory_space<vmem>>, %arg3: memref<2x8x1xf32, #tpu.memory_space<vmem>>, %arg4: memref<45x44xf32, #tpu.memory_space<vmem>>, %arg5: memref<1x44xf32, #tpu.memory_space<vmem>>, %arg6: memref<45x44xf32, #tpu.memory_space<vmem>>, %arg7: memref<1x44xf32, #tpu.memory_space<vmem>>, %arg8: memref<45x44xf32, #tpu.memory_space<vmem>>, %arg9: memref<1x44xf32, #tpu.memory_space<vmem>>, %arg10: memref<44x45xf32, #tpu.memory_space<vmem>>, %arg11: memref<1x45xf32, #tpu.memory_space<vmem>>, %arg12: memref<1x45xf32, #tpu.memory_space<vmem>>, %arg13: memref<1x45xf32, #tpu.memory_space<vmem>>, %arg14: memref<45x91xf32, #tpu.memory_space<vmem>>, %arg15: memref<1x91xf32, #tpu.memory_space<vmem>>, %arg16: memref<91x45xf32, #tpu.memory_space<vmem>>, %arg17: memref<1x45xf32, #tpu.memory_space<vmem>>, %arg18: memref<1x45xf32, #tpu.memory_space<vmem>>, %arg19: memref<1x45xf32, #tpu.memory_space<vmem>>, %arg20: memref<2x8x45xf32, #tpu.memory_space<vmem>>) attributes {dimension_semantics = [], scalar_prefetch = 0 : i64, scratch_operands = 0 : i64, tpu.core_type = #tpu.core_type<tc>} {
    %c0 = arith.constant 0 : index
    %c0_0 = arith.constant 0 : index
    %c0_1 = arith.constant 0 : index
    %0 = vector.load %arg0[%c0, %c0_0, %c0_1] : memref<2x8x45xf32, #tpu.memory_space<vmem>>, vector<2x8x45xf32>
    %1 = vector.shape_cast %0 : vector<2x8x45xf32> to vector<16x45xf32>
    %c0_2 = arith.constant 0 : index
    %c0_3 = arith.constant 0 : index
    %c0_4 = arith.constant 0 : index
    %2 = vector.load %arg1[%c0_2, %c0_3, %c0_4] : memref<2x16x45xf32, #tpu.memory_space<vmem>>, vector<2x16x45xf32>
    %3 = vector.shape_cast %2 : vector<2x16x45xf32> to vector<32x45xf32>
    %c0_5 = arith.constant 0 : index
    %c0_6 = arith.constant 0 : index
    %c0_7 = arith.constant 0 : index
    %4 = vector.load %arg3[%c0_5, %c0_6, %c0_7] : memref<2x8x1xf32, #tpu.memory_space<vmem>>, vector<2x8x1xf32>
    %5 = vector.shape_cast %4 : vector<2x8x1xf32> to vector<16x1xf32>
    %c0_8 = arith.constant 0 : index
    %c0_9 = arith.constant 0 : index
    %c0_10 = arith.constant 0 : index
    %6 = vector.load %arg2[%c0_8, %c0_9, %c0_10] : memref<2x8x16xf32, #tpu.memory_space<vmem>>, vector<2x8x16xf32>
    %c0_11 = arith.constant 0 : index
    %c0_12 = arith.constant 0 : index
    %7 = vector.load %arg4[%c0_11, %c0_12] : memref<45x44xf32, #tpu.memory_space<vmem>>, vector<45x44xf32>
    %cst = arith.constant dense<0.000000e+00> : vector<16x44xf32>
    %8 = tpu.matmul %1, %7, %cst {dimension_numbers = #tpu.dot_dimension_numbers<[1], [0], [0], [1], [0, 0, 1, 1], [], []>} : vector<16x45xf32>, vector<45x44xf32>, vector<16x44xf32> -> vector<16x44xf32>
    %c0_13 = arith.constant 0 : index
    %c0_14 = arith.constant 0 : index
    %9 = vector.load %arg5[%c0_13, %c0_14] : memref<1x44xf32, #tpu.memory_space<vmem>>, vector<1x44xf32>
    %10 = vector.broadcast %9 : vector<1x44xf32> to vector<16x44xf32>
    %11 = arith.addf %8, %10 : vector<16x44xf32>
    %12 = vector.shape_cast %11 : vector<16x44xf32> to vector<2x8x44xf32>
    %c0_15 = arith.constant 0 : index
    %c0_16 = arith.constant 0 : index
    %13 = vector.load %arg6[%c0_15, %c0_16] : memref<45x44xf32, #tpu.memory_space<vmem>>, vector<45x44xf32>
    %cst_17 = arith.constant dense<0.000000e+00> : vector<32x44xf32>
    %14 = tpu.matmul %3, %13, %cst_17 {dimension_numbers = #tpu.dot_dimension_numbers<[1], [0], [0], [1], [0, 0, 1, 1], [], []>} : vector<32x45xf32>, vector<45x44xf32>, vector<32x44xf32> -> vector<32x44xf32>
    %c0_18 = arith.constant 0 : index
    %c0_19 = arith.constant 0 : index
    %15 = vector.load %arg7[%c0_18, %c0_19] : memref<1x44xf32, #tpu.memory_space<vmem>>, vector<1x44xf32>
    %16 = vector.broadcast %15 : vector<1x44xf32> to vector<32x44xf32>
    %17 = arith.addf %14, %16 : vector<32x44xf32>
    %18 = vector.shape_cast %17 : vector<32x44xf32> to vector<2x16x44xf32>
    %c0_20 = arith.constant 0 : index
    %c0_21 = arith.constant 0 : index
    %19 = vector.load %arg8[%c0_20, %c0_21] : memref<45x44xf32, #tpu.memory_space<vmem>>, vector<45x44xf32>
    %cst_22 = arith.constant dense<0.000000e+00> : vector<32x44xf32>
    %20 = tpu.matmul %3, %19, %cst_22 {dimension_numbers = #tpu.dot_dimension_numbers<[1], [0], [0], [1], [0, 0, 1, 1], [], []>} : vector<32x45xf32>, vector<45x44xf32>, vector<32x44xf32> -> vector<32x44xf32>
    %c0_23 = arith.constant 0 : index
    %c0_24 = arith.constant 0 : index
    %21 = vector.load %arg9[%c0_23, %c0_24] : memref<1x44xf32, #tpu.memory_space<vmem>>, vector<1x44xf32>
    %22 = vector.broadcast %21 : vector<1x44xf32> to vector<32x44xf32>
    %23 = arith.addf %20, %22 : vector<32x44xf32>
    %24 = vector.shape_cast %23 : vector<32x44xf32> to vector<2x16x44xf32>
    %25 = vector.extract_strided_slice %12 {offsets = [0, 0, 0], sizes = [2, 8, 11], strides = [1, 1, 1]} : vector<2x8x44xf32> to vector<2x8x11xf32>
    %26 = vector.extract_strided_slice %18 {offsets = [0, 0, 0], sizes = [2, 16, 11], strides = [1, 1, 1]} : vector<2x16x44xf32> to vector<2x16x11xf32>
    %27 = vector.extract_strided_slice %24 {offsets = [0, 0, 0], sizes = [2, 16, 11], strides = [1, 1, 1]} : vector<2x16x44xf32> to vector<2x16x11xf32>
    "tpu.trace_start"() <{level = 10 : i32, message = "bqd,bkd->bqk"}> : () -> ()
    %cst_25 = arith.constant dense<0.000000e+00> : vector<2x8x16xf32>
    %28 = tpu.matmul %25, %26, %cst_25 {dimension_numbers = #tpu.dot_dimension_numbers<[2], [2], [1], [1], [0, 0, 0, 1, 1, 1], [0], [0]>} : vector<2x8x11xf32>, vector<2x16x11xf32>, vector<2x8x16xf32> -> vector<2x8x16xf32>
    "tpu.trace_stop"() : () -> ()
    %cst_26 = arith.constant 0.301511347 : f32
    %29 = vector.broadcast %cst_26 : f32 to vector<2x8x16xf32>
    %30 = arith.mulf %28, %29 : vector<2x8x16xf32>
    %31 = arith.addf %30, %6 : vector<2x8x16xf32>
    %cst_27 = arith.constant dense<0xFF800000> : vector<2x8xf32>
    %32 = vector.multi_reduction <maximumf>, %31, %cst_27 [2] : vector<2x8x16xf32> to vector<2x8xf32>
    %33 = vector.shape_cast %32 : vector<2x8xf32> to vector<2x8x1xf32>
    %34 = vector.broadcast %33 : vector<2x8x1xf32> to vector<2x8x16xf32>
    %35 = arith.subf %31, %34 : vector<2x8x16xf32>
    %36 = math.exp %35 : vector<2x8x16xf32>
    %cst_28 = arith.constant dense<0.000000e+00> : vector<2x8xf32>
    %37 = vector.multi_reduction <add>, %36, %cst_28 [2] : vector<2x8x16xf32> to vector<2x8xf32>
    %38 = vector.shape_cast %37 : vector<2x8xf32> to vector<2x8x1xf32>
    %39 = tpu.reciprocal %38 {approx = true} : vector<2x8x1xf32> -> vector<2x8x1xf32>
    %40 = vector.broadcast %39 : vector<2x8x1xf32> to vector<2x8x16xf32>
    %41 = arith.mulf %36, %40 : vector<2x8x16xf32>
    "tpu.trace_start"() <{level = 10 : i32, message = "bqk,bkd->bqd"}> : () -> ()
    %cst_29 = arith.constant dense<0.000000e+00> : vector<2x8x11xf32>
    %42 = tpu.matmul %41, %27, %cst_29 {dimension_numbers = #tpu.dot_dimension_numbers<[2], [1], [1], [2], [0, 0, 0, 1, 1, 2], [0], [0]>} : vector<2x8x16xf32>, vector<2x16x11xf32>, vector<2x8x11xf32> -> vector<2x8x11xf32>
    "tpu.trace_stop"() : () -> ()
    %43 = vector.extract_strided_slice %12 {offsets = [0, 0, 11], sizes = [2, 8, 11], strides = [1, 1, 1]} : vector<2x8x44xf32> to vector<2x8x11xf32>
    %44 = vector.extract_strided_slice %18 {offsets = [0, 0, 11], sizes = [2, 16, 11], strides = [1, 1, 1]} : vector<2x16x44xf32> to vector<2x16x11xf32>
    %45 = vector.extract_strided_slice %24 {offsets = [0, 0, 11], sizes = [2, 16, 11], strides = [1, 1, 1]} : vector<2x16x44xf32> to vector<2x16x11xf32>
    "tpu.trace_start"() <{level = 10 : i32, message = "bqd,bkd->bqk"}> : () -> ()
    %cst_30 = arith.constant dense<0.000000e+00> : vector<2x8x16xf32>
    %46 = tpu.matmul %43, %44, %cst_30 {dimension_numbers = #tpu.dot_dimension_numbers<[2], [2], [1], [1], [0, 0, 0, 1, 1, 1], [0], [0]>} : vector<2x8x11xf32>, vector<2x16x11xf32>, vector<2x8x16xf32> -> vector<2x8x16xf32>
    "tpu.trace_stop"() : () -> ()
    %cst_31 = arith.constant 0.301511347 : f32
    %47 = vector.broadcast %cst_31 : f32 to vector<2x8x16xf32>
    %48 = arith.mulf %46, %47 : vector<2x8x16xf32>
    %49 = arith.addf %48, %6 : vector<2x8x16xf32>
    %cst_32 = arith.constant dense<0xFF800000> : vector<2x8xf32>
    %50 = vector.multi_reduction <maximumf>, %49, %cst_32 [2] : vector<2x8x16xf32> to vector<2x8xf32>
    %51 = vector.shape_cast %50 : vector<2x8xf32> to vector<2x8x1xf32>
    %52 = vector.broadcast %51 : vector<2x8x1xf32> to vector<2x8x16xf32>
    %53 = arith.subf %49, %52 : vector<2x8x16xf32>
    %54 = math.exp %53 : vector<2x8x16xf32>
    %cst_33 = arith.constant dense<0.000000e+00> : vector<2x8xf32>
    %55 = vector.multi_reduction <add>, %54, %cst_33 [2] : vector<2x8x16xf32> to vector<2x8xf32>
    %56 = vector.shape_cast %55 : vector<2x8xf32> to vector<2x8x1xf32>
    %57 = tpu.reciprocal %56 {approx = true} : vector<2x8x1xf32> -> vector<2x8x1xf32>
    %58 = vector.broadcast %57 : vector<2x8x1xf32> to vector<2x8x16xf32>
    %59 = arith.mulf %54, %58 : vector<2x8x16xf32>
    "tpu.trace_start"() <{level = 10 : i32, message = "bqk,bkd->bqd"}> : () -> ()
    %cst_34 = arith.constant dense<0.000000e+00> : vector<2x8x11xf32>
    %60 = tpu.matmul %59, %45, %cst_34 {dimension_numbers = #tpu.dot_dimension_numbers<[2], [1], [1], [2], [0, 0, 0, 1, 1, 2], [0], [0]>} : vector<2x8x16xf32>, vector<2x16x11xf32>, vector<2x8x11xf32> -> vector<2x8x11xf32>
    "tpu.trace_stop"() : () -> ()
    %61 = vector.extract_strided_slice %12 {offsets = [0, 0, 22], sizes = [2, 8, 11], strides = [1, 1, 1]} : vector<2x8x44xf32> to vector<2x8x11xf32>
    %62 = vector.extract_strided_slice %18 {offsets = [0, 0, 22], sizes = [2, 16, 11], strides = [1, 1, 1]} : vector<2x16x44xf32> to vector<2x16x11xf32>
    %63 = vector.extract_strided_slice %24 {offsets = [0, 0, 22], sizes = [2, 16, 11], strides = [1, 1, 1]} : vector<2x16x44xf32> to vector<2x16x11xf32>
    "tpu.trace_start"() <{level = 10 : i32, message = "bqd,bkd->bqk"}> : () -> ()
    %cst_35 = arith.constant dense<0.000000e+00> : vector<2x8x16xf32>
    %64 = tpu.matmul %61, %62, %cst_35 {dimension_numbers = #tpu.dot_dimension_numbers<[2], [2], [1], [1], [0, 0, 0, 1, 1, 1], [0], [0]>} : vector<2x8x11xf32>, vector<2x16x11xf32>, vector<2x8x16xf32> -> vector<2x8x16xf32>
    "tpu.trace_stop"() : () -> ()
    %cst_36 = arith.constant 0.301511347 : f32
    %65 = vector.broadcast %cst_36 : f32 to vector<2x8x16xf32>
    %66 = arith.mulf %64, %65 : vector<2x8x16xf32>
    %67 = arith.addf %66, %6 : vector<2x8x16xf32>
    %cst_37 = arith.constant dense<0xFF800000> : vector<2x8xf32>
    %68 = vector.multi_reduction <maximumf>, %67, %cst_37 [2] : vector<2x8x16xf32> to vector<2x8xf32>
    %69 = vector.shape_cast %68 : vector<2x8xf32> to vector<2x8x1xf32>
    %70 = vector.broadcast %69 : vector<2x8x1xf32> to vector<2x8x16xf32>
    %71 = arith.subf %67, %70 : vector<2x8x16xf32>
    %72 = math.exp %71 : vector<2x8x16xf32>
    %cst_38 = arith.constant dense<0.000000e+00> : vector<2x8xf32>
    %73 = vector.multi_reduction <add>, %72, %cst_38 [2] : vector<2x8x16xf32> to vector<2x8xf32>
    %74 = vector.shape_cast %73 : vector<2x8xf32> to vector<2x8x1xf32>
    %75 = tpu.reciprocal %74 {approx = true} : vector<2x8x1xf32> -> vector<2x8x1xf32>
    %76 = vector.broadcast %75 : vector<2x8x1xf32> to vector<2x8x16xf32>
    %77 = arith.mulf %72, %76 : vector<2x8x16xf32>
    "tpu.trace_start"() <{level = 10 : i32, message = "bqk,bkd->bqd"}> : () -> ()
    %cst_39 = arith.constant dense<0.000000e+00> : vector<2x8x11xf32>
    %78 = tpu.matmul %77, %63, %cst_39 {dimension_numbers = #tpu.dot_dimension_numbers<[2], [1], [1], [2], [0, 0, 0, 1, 1, 2], [0], [0]>} : vector<2x8x16xf32>, vector<2x16x11xf32>, vector<2x8x11xf32> -> vector<2x8x11xf32>
    "tpu.trace_stop"() : () -> ()
    %79 = vector.extract_strided_slice %12 {offsets = [0, 0, 33], sizes = [2, 8, 11], strides = [1, 1, 1]} : vector<2x8x44xf32> to vector<2x8x11xf32>
    %80 = vector.extract_strided_slice %18 {offsets = [0, 0, 33], sizes = [2, 16, 11], strides = [1, 1, 1]} : vector<2x16x44xf32> to vector<2x16x11xf32>
    %81 = vector.extract_strided_slice %24 {offsets = [0, 0, 33], sizes = [2, 16, 11], strides = [1, 1, 1]} : vector<2x16x44xf32> to vector<2x16x11xf32>
    "tpu.trace_start"() <{level = 10 : i32, message = "bqd,bkd->bqk"}> : () -> ()
    %cst_40 = arith.constant dense<0.000000e+00> : vector<2x8x16xf32>
    %82 = tpu.matmul %79, %80, %cst_40 {dimension_numbers = #tpu.dot_dimension_numbers<[2], [2], [1], [1], [0, 0, 0, 1, 1, 1], [0], [0]>} : vector<2x8x11xf32>, vector<2x16x11xf32>, vector<2x8x16xf32> -> vector<2x8x16xf32>
    "tpu.trace_stop"() : () -> ()
    %cst_41 = arith.constant 0.301511347 : f32
    %83 = vector.broadcast %cst_41 : f32 to vector<2x8x16xf32>
    %84 = arith.mulf %82, %83 : vector<2x8x16xf32>
    %85 = arith.addf %84, %6 : vector<2x8x16xf32>
    %cst_42 = arith.constant dense<0xFF800000> : vector<2x8xf32>
    %86 = vector.multi_reduction <maximumf>, %85, %cst_42 [2] : vector<2x8x16xf32> to vector<2x8xf32>
    %87 = vector.shape_cast %86 : vector<2x8xf32> to vector<2x8x1xf32>
    %88 = vector.broadcast %87 : vector<2x8x1xf32> to vector<2x8x16xf32>
    %89 = arith.subf %85, %88 : vector<2x8x16xf32>
    %90 = math.exp %89 : vector<2x8x16xf32>
    %cst_43 = arith.constant dense<0.000000e+00> : vector<2x8xf32>
    %91 = vector.multi_reduction <add>, %90, %cst_43 [2] : vector<2x8x16xf32> to vector<2x8xf32>
    %92 = vector.shape_cast %91 : vector<2x8xf32> to vector<2x8x1xf32>
    %93 = tpu.reciprocal %92 {approx = true} : vector<2x8x1xf32> -> vector<2x8x1xf32>
    %94 = vector.broadcast %93 : vector<2x8x1xf32> to vector<2x8x16xf32>
    %95 = arith.mulf %90, %94 : vector<2x8x16xf32>
    "tpu.trace_start"() <{level = 10 : i32, message = "bqk,bkd->bqd"}> : () -> ()
    %cst_44 = arith.constant dense<0.000000e+00> : vector<2x8x11xf32>
    %96 = tpu.matmul %95, %81, %cst_44 {dimension_numbers = #tpu.dot_dimension_numbers<[2], [1], [1], [2], [0, 0, 0, 1, 1, 2], [0], [0]>} : vector<2x8x16xf32>, vector<2x16x11xf32>, vector<2x8x11xf32> -> vector<2x8x11xf32>
    "tpu.trace_stop"() : () -> ()
    %97 = tpu.concatenate %42, %60, %78, %96 in 2 : vector<2x8x11xf32>, vector<2x8x11xf32>, vector<2x8x11xf32>, vector<2x8x11xf32> -> vector<2x8x44xf32>
    %98 = vector.shape_cast %97 : vector<2x8x44xf32> to vector<16x44xf32>
    %c0_45 = arith.constant 0 : index
    %c0_46 = arith.constant 0 : index
    %99 = vector.load %arg10[%c0_45, %c0_46] : memref<44x45xf32, #tpu.memory_space<vmem>>, vector<44x45xf32>
    %cst_47 = arith.constant dense<0.000000e+00> : vector<16x45xf32>
    %100 = tpu.matmul %98, %99, %cst_47 {dimension_numbers = #tpu.dot_dimension_numbers<[1], [0], [0], [1], [0, 0, 1, 1], [], []>} : vector<16x44xf32>, vector<44x45xf32>, vector<16x45xf32> -> vector<16x45xf32>
    %c0_48 = arith.constant 0 : index
    %c0_49 = arith.constant 0 : index
    %101 = vector.load %arg11[%c0_48, %c0_49] : memref<1x45xf32, #tpu.memory_space<vmem>>, vector<1x45xf32>
    %102 = vector.broadcast %101 : vector<1x45xf32> to vector<16x45xf32>
    %103 = arith.addf %100, %102 : vector<16x45xf32>
    %104 = arith.addf %103, %1 : vector<16x45xf32>
    %cst_50 = arith.constant dense<0.000000e+00> : vector<16xf32>
    %105 = vector.multi_reduction <add>, %104, %cst_50 [1] : vector<16x45xf32> to vector<16xf32>
    %106 = vector.shape_cast %105 : vector<16xf32> to vector<16x1xf32>
    %cst_51 = arith.constant 4.500000e+01 : f32
    %107 = vector.broadcast %cst_51 : f32 to vector<16x1xf32>
    %108 = arith.divf %106, %107 : vector<16x1xf32>
    %109 = vector.broadcast %108 : vector<16x1xf32> to vector<16x45xf32>
    %110 = arith.subf %104, %109 : vector<16x45xf32>
    %111 = vector.broadcast %108 : vector<16x1xf32> to vector<16x45xf32>
    %112 = arith.subf %104, %111 : vector<16x45xf32>
    %113 = arith.mulf %110, %112 : vector<16x45xf32>
    %cst_52 = arith.constant dense<0.000000e+00> : vector<16xf32>
    %114 = vector.multi_reduction <add>, %113, %cst_52 [1] : vector<16x45xf32> to vector<16xf32>
    %115 = vector.shape_cast %114 : vector<16xf32> to vector<16x1xf32>
    %cst_53 = arith.constant 4.500000e+01 : f32
    %116 = vector.broadcast %cst_53 : f32 to vector<16x1xf32>
    %117 = arith.divf %115, %116 : vector<16x1xf32>
    %118 = vector.broadcast %108 : vector<16x1xf32> to vector<16x45xf32>
    %119 = arith.subf %104, %118 : vector<16x45xf32>
    %cst_54 = arith.constant 9.99999974E-6 : f32
    %120 = vector.broadcast %cst_54 : f32 to vector<16x1xf32>
    %121 = arith.addf %117, %120 : vector<16x1xf32>
    %122 = math.rsqrt %121 : vector<16x1xf32>
    %123 = vector.broadcast %122 : vector<16x1xf32> to vector<16x45xf32>
    %124 = arith.mulf %119, %123 : vector<16x45xf32>
    %c0_55 = arith.constant 0 : index
    %c0_56 = arith.constant 0 : index
    %125 = vector.load %arg12[%c0_55, %c0_56] : memref<1x45xf32, #tpu.memory_space<vmem>>, vector<1x45xf32>
    %126 = vector.broadcast %125 : vector<1x45xf32> to vector<16x45xf32>
    %127 = arith.mulf %124, %126 : vector<16x45xf32>
    %c0_57 = arith.constant 0 : index
    %c0_58 = arith.constant 0 : index
    %128 = vector.load %arg13[%c0_57, %c0_58] : memref<1x45xf32, #tpu.memory_space<vmem>>, vector<1x45xf32>
    %129 = vector.broadcast %128 : vector<1x45xf32> to vector<16x45xf32>
    %130 = arith.addf %127, %129 : vector<16x45xf32>
    %131 = vector.broadcast %5 : vector<16x1xf32> to vector<16x45xf32>
    %132 = arith.mulf %130, %131 : vector<16x45xf32>
    %c0_59 = arith.constant 0 : index
    %c0_60 = arith.constant 0 : index
    %133 = vector.load %arg14[%c0_59, %c0_60] : memref<45x91xf32, #tpu.memory_space<vmem>>, vector<45x91xf32>
    %cst_61 = arith.constant dense<0.000000e+00> : vector<16x91xf32>
    %134 = tpu.matmul %132, %133, %cst_61 {dimension_numbers = #tpu.dot_dimension_numbers<[1], [0], [0], [1], [0, 0, 1, 1], [], []>} : vector<16x45xf32>, vector<45x91xf32>, vector<16x91xf32> -> vector<16x91xf32>
    %c0_62 = arith.constant 0 : index
    %c0_63 = arith.constant 0 : index
    %135 = vector.load %arg15[%c0_62, %c0_63] : memref<1x91xf32, #tpu.memory_space<vmem>>, vector<1x91xf32>
    %136 = vector.broadcast %135 : vector<1x91xf32> to vector<16x91xf32>
    %137 = arith.addf %134, %136 : vector<16x91xf32>
    %cst_64 = arith.constant 0.000000e+00 : f32
    %138 = vector.broadcast %cst_64 : f32 to vector<16x91xf32>
    %139 = arith.maximumf %137, %138 : vector<16x91xf32>
    %c0_65 = arith.constant 0 : index
    %c0_66 = arith.constant 0 : index
    %140 = vector.load %arg16[%c0_65, %c0_66] : memref<91x45xf32, #tpu.memory_space<vmem>>, vector<91x45xf32>
    %cst_67 = arith.constant dense<0.000000e+00> : vector<16x45xf32>
    %141 = tpu.matmul %139, %140, %cst_67 {dimension_numbers = #tpu.dot_dimension_numbers<[1], [0], [0], [1], [0, 0, 1, 1], [], []>} : vector<16x91xf32>, vector<91x45xf32>, vector<16x45xf32> -> vector<16x45xf32>
    %c0_68 = arith.constant 0 : index
    %c0_69 = arith.constant 0 : index
    %142 = vector.load %arg17[%c0_68, %c0_69] : memref<1x45xf32, #tpu.memory_space<vmem>>, vector<1x45xf32>
    %143 = vector.broadcast %142 : vector<1x45xf32> to vector<16x45xf32>
    %144 = arith.addf %141, %143 : vector<16x45xf32>
    %145 = arith.addf %144, %132 : vector<16x45xf32>
    %cst_70 = arith.constant dense<0.000000e+00> : vector<16xf32>
    %146 = vector.multi_reduction <add>, %145, %cst_70 [1] : vector<16x45xf32> to vector<16xf32>
    %147 = vector.shape_cast %146 : vector<16xf32> to vector<16x1xf32>
    %cst_71 = arith.constant 4.500000e+01 : f32
    %148 = vector.broadcast %cst_71 : f32 to vector<16x1xf32>
    %149 = arith.divf %147, %148 : vector<16x1xf32>
    %150 = vector.broadcast %149 : vector<16x1xf32> to vector<16x45xf32>
    %151 = arith.subf %145, %150 : vector<16x45xf32>
    %152 = vector.broadcast %149 : vector<16x1xf32> to vector<16x45xf32>
    %153 = arith.subf %145, %152 : vector<16x45xf32>
    %154 = arith.mulf %151, %153 : vector<16x45xf32>
    %cst_72 = arith.constant dense<0.000000e+00> : vector<16xf32>
    %155 = vector.multi_reduction <add>, %154, %cst_72 [1] : vector<16x45xf32> to vector<16xf32>
    %156 = vector.shape_cast %155 : vector<16xf32> to vector<16x1xf32>
    %cst_73 = arith.constant 4.500000e+01 : f32
    %157 = vector.broadcast %cst_73 : f32 to vector<16x1xf32>
    %158 = arith.divf %156, %157 : vector<16x1xf32>
    %159 = vector.broadcast %149 : vector<16x1xf32> to vector<16x45xf32>
    %160 = arith.subf %145, %159 : vector<16x45xf32>
    %cst_74 = arith.constant 9.99999974E-6 : f32
    %161 = vector.broadcast %cst_74 : f32 to vector<16x1xf32>
    %162 = arith.addf %158, %161 : vector<16x1xf32>
    %163 = math.rsqrt %162 : vector<16x1xf32>
    %164 = vector.broadcast %163 : vector<16x1xf32> to vector<16x45xf32>
    %165 = arith.mulf %160, %164 : vector<16x45xf32>
    %c0_75 = arith.constant 0 : index
    %c0_76 = arith.constant 0 : index
    %166 = vector.load %arg18[%c0_75, %c0_76] : memref<1x45xf32, #tpu.memory_space<vmem>>, vector<1x45xf32>
    %167 = vector.broadcast %166 : vector<1x45xf32> to vector<16x45xf32>
    %168 = arith.mulf %165, %167 : vector<16x45xf32>
    %c0_77 = arith.constant 0 : index
    %c0_78 = arith.constant 0 : index
    %169 = vector.load %arg19[%c0_77, %c0_78] : memref<1x45xf32, #tpu.memory_space<vmem>>, vector<1x45xf32>
    %170 = vector.broadcast %169 : vector<1x45xf32> to vector<16x45xf32>
    %171 = arith.addf %168, %170 : vector<16x45xf32>
    %172 = vector.broadcast %5 : vector<16x1xf32> to vector<16x45xf32>
    %173 = arith.mulf %171, %172 : vector<16x45xf32>
    %174 = vector.shape_cast %173 : vector<16x45xf32> to vector<2x8x45xf32>
    %c0_79 = arith.constant 0 : index
    %c0_80 = arith.constant 0 : index
    %c0_81 = arith.constant 0 : index
    %175 = vector.load %arg20[%c0_79, %c0_80, %c0_81] : memref<2x8x45xf32, #tpu.memory_space<vmem>>, vector<2x8x45xf32>
    tpu.vector_store %arg20[%c0_79, %c0_80, %c0_81], %174 {strides = array<i32>} : memref<2x8x45xf32, #tpu.memory_space<vmem>>, vector<2x8x45xf32>,
    return
  }
}

module attributes {stable_mosaic.version = 11 : i64} {
  func.func @unet_layer_kernel(%arg0: memref<2x16x32xf32, #tpu.memory_space<vmem>>, %arg1: memref<2x8x32xf32, #tpu.memory_space<vmem>>, %arg2: memref<2x16x8xf32, #tpu.memory_space<vmem>>, %arg3: memref<2x16x1xf32, #tpu.memory_space<vmem>>, %arg4: memref<32x44xf32, #tpu.memory_space<vmem>>, %arg5: memref<1x44xf32, #tpu.memory_space<vmem>>, %arg6: memref<32x44xf32, #tpu.memory_space<vmem>>, %arg7: memref<1x44xf32, #tpu.memory_space<vmem>>, %arg8: memref<32x44xf32, #tpu.memory_space<vmem>>, %arg9: memref<1x44xf32, #tpu.memory_space<vmem>>, %arg10: memref<44x32xf32, #tpu.memory_space<vmem>>, %arg11: memref<1x32xf32, #tpu.memory_space<vmem>>, %arg12: memref<1x32xf32, #tpu.memory_space<vmem>>, %arg13: memref<1x32xf32, #tpu.memory_space<vmem>>, %arg14: memref<32x91xf32, #tpu.memory_space<vmem>>, %arg15: memref<1x91xf32, #tpu.memory_space<vmem>>, %arg16: memref<91x32xf32, #tpu.memory_space<vmem>>, %arg17: memref<1x32xf32, #tpu.memory_space<vmem>>, %arg18: memref<1x32xf32, #tpu.memory_space<vmem>>, %arg19: memref<1x32xf32, #tpu.memory_space<vmem>>, %arg20: memref<2x16x32xf32, #tpu.memory_space<vmem>>) attributes {dimension_semantics = [], scalar_prefetch = 0 : i64, scratch_operands = 0 : i64, tpu.core_type = #tpu.core_type<tc>} {
    %c0 = arith.constant 0 : index
    %c0_0 = arith.constant 0 : index
    %c0_1 = arith.constant 0 : index
    %0 = vector.load %arg0[%c0, %c0_0, %c0_1] : memref<2x16x32xf32, #tpu.memory_space<vmem>>, vector<2x16x32xf32>
    %1 = vector.shape_cast %0 : vector<2x16x32xf32> to vector<32x32xf32>
    %c0_2 = arith.constant 0 : index
    %c0_3 = arith.constant 0 : index
    %c0_4 = arith.constant 0 : index
    %2 = vector.load %arg1[%c0_2, %c0_3, %c0_4] : memref<2x8x32xf32, #tpu.memory_space<vmem>>, vector<2x8x32xf32>
    %3 = vector.shape_cast %2 : vector<2x8x32xf32> to vector<16x32xf32>
    %c0_5 = arith.constant 0 : index
    %c0_6 = arith.constant 0 : index
    %c0_7 = arith.constant 0 : index
    %4 = vector.load %arg3[%c0_5, %c0_6, %c0_7] : memref<2x16x1xf32, #tpu.memory_space<vmem>>, vector<2x16x1xf32>
    %5 = vector.shape_cast %4 : vector<2x16x1xf32> to vector<32x1xf32>
    %c0_8 = arith.constant 0 : index
    %c0_9 = arith.constant 0 : index
    %c0_10 = arith.constant 0 : index
    %6 = vector.load %arg2[%c0_8, %c0_9, %c0_10] : memref<2x16x8xf32, #tpu.memory_space<vmem>>, vector<2x16x8xf32>
    %c0_11 = arith.constant 0 : index
    %c0_12 = arith.constant 0 : index
    %7 = vector.load %arg4[%c0_11, %c0_12] : memref<32x44xf32, #tpu.memory_space<vmem>>, vector<32x44xf32>
    %cst = arith.constant dense<0.000000e+00> : vector<32x44xf32>
    %8 = tpu.matmul %1, %7, %cst {dimension_numbers = #tpu.dot_dimension_numbers<[1], [0], [0], [1], [0, 0, 1, 1], [], []>} : vector<32x32xf32>, vector<32x44xf32>, vector<32x44xf32> -> vector<32x44xf32>
    %c0_13 = arith.constant 0 : index
    %c0_14 = arith.constant 0 : index
    %9 = vector.load %arg5[%c0_13, %c0_14] : memref<1x44xf32, #tpu.memory_space<vmem>>, vector<1x44xf32>
    %10 = vector.broadcast %9 : vector<1x44xf32> to vector<32x44xf32>
    %11 = arith.addf %8, %10 : vector<32x44xf32>
    %12 = vector.shape_cast %11 : vector<32x44xf32> to vector<2x16x44xf32>
    %c0_15 = arith.constant 0 : index
    %c0_16 = arith.constant 0 : index
    %13 = vector.load %arg6[%c0_15, %c0_16] : memref<32x44xf32, #tpu.memory_space<vmem>>, vector<32x44xf32>
    %cst_17 = arith.constant dense<0.000000e+00> : vector<16x44xf32>
    %14 = tpu.matmul %3, %13, %cst_17 {dimension_numbers = #tpu.dot_dimension_numbers<[1], [0], [0], [1], [0, 0, 1, 1], [], []>} : vector<16x32xf32>, vector<32x44xf32>, vector<16x44xf32> -> vector<16x44xf32>
    %c0_18 = arith.constant 0 : index
    %c0_19 = arith.constant 0 : index
    %15 = vector.load %arg7[%c0_18, %c0_19] : memref<1x44xf32, #tpu.memory_space<vmem>>, vector<1x44xf32>
    %16 = vector.broadcast %15 : vector<1x44xf32> to vector<16x44xf32>
    %17 = arith.addf %14, %16 : vector<16x44xf32>
    %18 = vector.shape_cast %17 : vector<16x44xf32> to vector<2x8x44xf32>
    %c0_20 = arith.constant 0 : index
    %c0_21 = arith.constant 0 : index
    %19 = vector.load %arg8[%c0_20, %c0_21] : memref<32x44xf32, #tpu.memory_space<vmem>>, vector<32x44xf32>
    %cst_22 = arith.constant dense<0.000000e+00> : vector<16x44xf32>
    %20 = tpu.matmul %3, %19, %cst_22 {dimension_numbers = #tpu.dot_dimension_numbers<[1], [0], [0], [1], [0, 0, 1, 1], [], []>} : vector<16x32xf32>, vector<32x44xf32>, vector<16x44xf32> -> vector<16x44xf32>
    %c0_23 = arith.constant 0 : index
    %c0_24 = arith.constant 0 : index
    %21 = vector.load %arg9[%c0_23, %c0_24] : memref<1x44xf32, #tpu.memory_space<vmem>>, vector<1x44xf32>
    %22 = vector.broadcast %21 : vector<1x44xf32> to vector<16x44xf32>
    %23 = arith.addf %20, %22 : vector<16x44xf32>
    %24 = vector.shape_cast %23 : vector<16x44xf32> to vector<2x8x44xf32>
    %25 = vector.extract_strided_slice %12 {offsets = [0, 0, 0], sizes = [2, 16, 11], strides = [1, 1, 1]} : vector<2x16x44xf32> to vector<2x16x11xf32>
    %26 = vector.extract_strided_slice %18 {offsets = [0, 0, 0], sizes = [2, 8, 11], strides = [1, 1, 1]} : vector<2x8x44xf32> to vector<2x8x11xf32>
    %27 = vector.extract_strided_slice %24 {offsets = [0, 0, 0], sizes = [2, 8, 11], strides = [1, 1, 1]} : vector<2x8x44xf32> to vector<2x8x11xf32>
    "tpu.trace_start"() <{level = 10 : i32, message = "bqd,bkd->bqk"}> : () -> ()
    %cst_25 = arith.constant dense<0.000000e+00> : vector<2x16x8xf32>
    %28 = tpu.matmul %25, %26, %cst_25 {dimension_numbers = #tpu.dot_dimension_numbers<[2], [2], [1], [1], [0, 0, 0, 1, 1, 1], [0], [0]>} : vector<2x16x11xf32>, vector<2x8x11xf32>, vector<2x16x8xf32> -> vector<2x16x8xf32>
    "tpu.trace_stop"() : () -> ()
    %cst_26 = arith.constant 0.301511347 : f32
    %29 = vector.broadcast %cst_26 : f32 to vector<2x16x8xf32>
    %30 = arith.mulf %28, %29 : vector<2x16x8xf32>
    %31 = arith.addf %30, %6 : vector<2x16x8xf32>
    %cst_27 = arith.constant dense<0xFF800000> : vector<2x16xf32>
    %32 = vector.multi_reduction <maximumf>, %31, %cst_27 [2] : vector<2x16x8xf32> to vector<2x16xf32>
    %33 = vector.shape_cast %32 : vector<2x16xf32> to vector<2x16x1xf32>
    %34 = vector.broadcast %33 : vector<2x16x1xf32> to vector<2x16x8xf32>
    %35 = arith.subf %31, %34 : vector<2x16x8xf32>
    %36 = math.exp %35 : vector<2x16x8xf32>
    %cst_28 = arith.constant dense<0.000000e+00> : vector<2x16xf32>
    %37 = vector.multi_reduction <add>, %36, %cst_28 [2] : vector<2x16x8xf32> to vector<2x16xf32>
    %38 = vector.shape_cast %37 : vector<2x16xf32> to vector<2x16x1xf32>
    %39 = tpu.reciprocal %38 {approx = true} : vector<2x16x1xf32> -> vector<2x16x1xf32>
    %40 = vector.broadcast %39 : vector<2x16x1xf32> to vector<2x16x8xf32>
    %41 = arith.mulf %36, %40 : vector<2x16x8xf32>
    "tpu.trace_start"() <{level = 10 : i32, message = "bqk,bkd->bqd"}> : () -> ()
    %cst_29 = arith.constant dense<0.000000e+00> : vector<2x16x11xf32>
    %42 = tpu.matmul %41, %27, %cst_29 {dimension_numbers = #tpu.dot_dimension_numbers<[2], [1], [1], [2], [0, 0, 0, 1, 1, 2], [0], [0]>} : vector<2x16x8xf32>, vector<2x8x11xf32>, vector<2x16x11xf32> -> vector<2x16x11xf32>
    "tpu.trace_stop"() : () -> ()
    %43 = vector.extract_strided_slice %12 {offsets = [0, 0, 11], sizes = [2, 16, 11], strides = [1, 1, 1]} : vector<2x16x44xf32> to vector<2x16x11xf32>
    %44 = vector.extract_strided_slice %18 {offsets = [0, 0, 11], sizes = [2, 8, 11], strides = [1, 1, 1]} : vector<2x8x44xf32> to vector<2x8x11xf32>
    %45 = vector.extract_strided_slice %24 {offsets = [0, 0, 11], sizes = [2, 8, 11], strides = [1, 1, 1]} : vector<2x8x44xf32> to vector<2x8x11xf32>
    "tpu.trace_start"() <{level = 10 : i32, message = "bqd,bkd->bqk"}> : () -> ()
    %cst_30 = arith.constant dense<0.000000e+00> : vector<2x16x8xf32>
    %46 = tpu.matmul %43, %44, %cst_30 {dimension_numbers = #tpu.dot_dimension_numbers<[2], [2], [1], [1], [0, 0, 0, 1, 1, 1], [0], [0]>} : vector<2x16x11xf32>, vector<2x8x11xf32>, vector<2x16x8xf32> -> vector<2x16x8xf32>
    "tpu.trace_stop"() : () -> ()
    %cst_31 = arith.constant 0.301511347 : f32
    %47 = vector.broadcast %cst_31 : f32 to vector<2x16x8xf32>
    %48 = arith.mulf %46, %47 : vector<2x16x8xf32>
    %49 = arith.addf %48, %6 : vector<2x16x8xf32>
    %cst_32 = arith.constant dense<0xFF800000> : vector<2x16xf32>
    %50 = vector.multi_reduction <maximumf>, %49, %cst_32 [2] : vector<2x16x8xf32> to vector<2x16xf32>
    %51 = vector.shape_cast %50 : vector<2x16xf32> to vector<2x16x1xf32>
    %52 = vector.broadcast %51 : vector<2x16x1xf32> to vector<2x16x8xf32>
    %53 = arith.subf %49, %52 : vector<2x16x8xf32>
    %54 = math.exp %53 : vector<2x16x8xf32>
    %cst_33 = arith.constant dense<0.000000e+00> : vector<2x16xf32>
    %55 = vector.multi_reduction <add>, %54, %cst_33 [2] : vector<2x16x8xf32> to vector<2x16xf32>
    %56 = vector.shape_cast %55 : vector<2x16xf32> to vector<2x16x1xf32>
    %57 = tpu.reciprocal %56 {approx = true} : vector<2x16x1xf32> -> vector<2x16x1xf32>
    %58 = vector.broadcast %57 : vector<2x16x1xf32> to vector<2x16x8xf32>
    %59 = arith.mulf %54, %58 : vector<2x16x8xf32>
    "tpu.trace_start"() <{level = 10 : i32, message = "bqk,bkd->bqd"}> : () -> ()
    %cst_34 = arith.constant dense<0.000000e+00> : vector<2x16x11xf32>
    %60 = tpu.matmul %59, %45, %cst_34 {dimension_numbers = #tpu.dot_dimension_numbers<[2], [1], [1], [2], [0, 0, 0, 1, 1, 2], [0], [0]>} : vector<2x16x8xf32>, vector<2x8x11xf32>, vector<2x16x11xf32> -> vector<2x16x11xf32>
    "tpu.trace_stop"() : () -> ()
    %61 = vector.extract_strided_slice %12 {offsets = [0, 0, 22], sizes = [2, 16, 11], strides = [1, 1, 1]} : vector<2x16x44xf32> to vector<2x16x11xf32>
    %62 = vector.extract_strided_slice %18 {offsets = [0, 0, 22], sizes = [2, 8, 11], strides = [1, 1, 1]} : vector<2x8x44xf32> to vector<2x8x11xf32>
    %63 = vector.extract_strided_slice %24 {offsets = [0, 0, 22], sizes = [2, 8, 11], strides = [1, 1, 1]} : vector<2x8x44xf32> to vector<2x8x11xf32>
    "tpu.trace_start"() <{level = 10 : i32, message = "bqd,bkd->bqk"}> : () -> ()
    %cst_35 = arith.constant dense<0.000000e+00> : vector<2x16x8xf32>
    %64 = tpu.matmul %61, %62, %cst_35 {dimension_numbers = #tpu.dot_dimension_numbers<[2], [2], [1], [1], [0, 0, 0, 1, 1, 1], [0], [0]>} : vector<2x16x11xf32>, vector<2x8x11xf32>, vector<2x16x8xf32> -> vector<2x16x8xf32>
    "tpu.trace_stop"() : () -> ()
    %cst_36 = arith.constant 0.301511347 : f32
    %65 = vector.broadcast %cst_36 : f32 to vector<2x16x8xf32>
    %66 = arith.mulf %64, %65 : vector<2x16x8xf32>
    %67 = arith.addf %66, %6 : vector<2x16x8xf32>
    %cst_37 = arith.constant dense<0xFF800000> : vector<2x16xf32>
    %68 = vector.multi_reduction <maximumf>, %67, %cst_37 [2] : vector<2x16x8xf32> to vector<2x16xf32>
    %69 = vector.shape_cast %68 : vector<2x16xf32> to vector<2x16x1xf32>
    %70 = vector.broadcast %69 : vector<2x16x1xf32> to vector<2x16x8xf32>
    %71 = arith.subf %67, %70 : vector<2x16x8xf32>
    %72 = math.exp %71 : vector<2x16x8xf32>
    %cst_38 = arith.constant dense<0.000000e+00> : vector<2x16xf32>
    %73 = vector.multi_reduction <add>, %72, %cst_38 [2] : vector<2x16x8xf32> to vector<2x16xf32>
    %74 = vector.shape_cast %73 : vector<2x16xf32> to vector<2x16x1xf32>
    %75 = tpu.reciprocal %74 {approx = true} : vector<2x16x1xf32> -> vector<2x16x1xf32>
    %76 = vector.broadcast %75 : vector<2x16x1xf32> to vector<2x16x8xf32>
    %77 = arith.mulf %72, %76 : vector<2x16x8xf32>
    "tpu.trace_start"() <{level = 10 : i32, message = "bqk,bkd->bqd"}> : () -> ()
    %cst_39 = arith.constant dense<0.000000e+00> : vector<2x16x11xf32>
    %78 = tpu.matmul %77, %63, %cst_39 {dimension_numbers = #tpu.dot_dimension_numbers<[2], [1], [1], [2], [0, 0, 0, 1, 1, 2], [0], [0]>} : vector<2x16x8xf32>, vector<2x8x11xf32>, vector<2x16x11xf32> -> vector<2x16x11xf32>
    "tpu.trace_stop"() : () -> ()
    %79 = vector.extract_strided_slice %12 {offsets = [0, 0, 33], sizes = [2, 16, 11], strides = [1, 1, 1]} : vector<2x16x44xf32> to vector<2x16x11xf32>
    %80 = vector.extract_strided_slice %18 {offsets = [0, 0, 33], sizes = [2, 8, 11], strides = [1, 1, 1]} : vector<2x8x44xf32> to vector<2x8x11xf32>
    %81 = vector.extract_strided_slice %24 {offsets = [0, 0, 33], sizes = [2, 8, 11], strides = [1, 1, 1]} : vector<2x8x44xf32> to vector<2x8x11xf32>
    "tpu.trace_start"() <{level = 10 : i32, message = "bqd,bkd->bqk"}> : () -> ()
    %cst_40 = arith.constant dense<0.000000e+00> : vector<2x16x8xf32>
    %82 = tpu.matmul %79, %80, %cst_40 {dimension_numbers = #tpu.dot_dimension_numbers<[2], [2], [1], [1], [0, 0, 0, 1, 1, 1], [0], [0]>} : vector<2x16x11xf32>, vector<2x8x11xf32>, vector<2x16x8xf32> -> vector<2x16x8xf32>
    "tpu.trace_stop"() : () -> ()
    %cst_41 = arith.constant 0.301511347 : f32
    %83 = vector.broadcast %cst_41 : f32 to vector<2x16x8xf32>
    %84 = arith.mulf %82, %83 : vector<2x16x8xf32>
    %85 = arith.addf %84, %6 : vector<2x16x8xf32>
    %cst_42 = arith.constant dense<0xFF800000> : vector<2x16xf32>
    %86 = vector.multi_reduction <maximumf>, %85, %cst_42 [2] : vector<2x16x8xf32> to vector<2x16xf32>
    %87 = vector.shape_cast %86 : vector<2x16xf32> to vector<2x16x1xf32>
    %88 = vector.broadcast %87 : vector<2x16x1xf32> to vector<2x16x8xf32>
    %89 = arith.subf %85, %88 : vector<2x16x8xf32>
    %90 = math.exp %89 : vector<2x16x8xf32>
    %cst_43 = arith.constant dense<0.000000e+00> : vector<2x16xf32>
    %91 = vector.multi_reduction <add>, %90, %cst_43 [2] : vector<2x16x8xf32> to vector<2x16xf32>
    %92 = vector.shape_cast %91 : vector<2x16xf32> to vector<2x16x1xf32>
    %93 = tpu.reciprocal %92 {approx = true} : vector<2x16x1xf32> -> vector<2x16x1xf32>
    %94 = vector.broadcast %93 : vector<2x16x1xf32> to vector<2x16x8xf32>
    %95 = arith.mulf %90, %94 : vector<2x16x8xf32>
    "tpu.trace_start"() <{level = 10 : i32, message = "bqk,bkd->bqd"}> : () -> ()
    %cst_44 = arith.constant dense<0.000000e+00> : vector<2x16x11xf32>
    %96 = tpu.matmul %95, %81, %cst_44 {dimension_numbers = #tpu.dot_dimension_numbers<[2], [1], [1], [2], [0, 0, 0, 1, 1, 2], [0], [0]>} : vector<2x16x8xf32>, vector<2x8x11xf32>, vector<2x16x11xf32> -> vector<2x16x11xf32>
    "tpu.trace_stop"() : () -> ()
    %97 = tpu.concatenate %42, %60, %78, %96 in 2 : vector<2x16x11xf32>, vector<2x16x11xf32>, vector<2x16x11xf32>, vector<2x16x11xf32> -> vector<2x16x44xf32>
    %98 = vector.shape_cast %97 : vector<2x16x44xf32> to vector<32x44xf32>
    %c0_45 = arith.constant 0 : index
    %c0_46 = arith.constant 0 : index
    %99 = vector.load %arg10[%c0_45, %c0_46] : memref<44x32xf32, #tpu.memory_space<vmem>>, vector<44x32xf32>
    %cst_47 = arith.constant dense<0.000000e+00> : vector<32x32xf32>
    %100 = tpu.matmul %98, %99, %cst_47 {dimension_numbers = #tpu.dot_dimension_numbers<[1], [0], [0], [1], [0, 0, 1, 1], [], []>} : vector<32x44xf32>, vector<44x32xf32>, vector<32x32xf32> -> vector<32x32xf32>
    %c0_48 = arith.constant 0 : index
    %c0_49 = arith.constant 0 : index
    %101 = vector.load %arg11[%c0_48, %c0_49] : memref<1x32xf32, #tpu.memory_space<vmem>>, vector<1x32xf32>
    %102 = vector.broadcast %101 : vector<1x32xf32> to vector<32x32xf32>
    %103 = arith.addf %100, %102 : vector<32x32xf32>
    %104 = arith.addf %103, %1 : vector<32x32xf32>
    %cst_50 = arith.constant dense<0.000000e+00> : vector<32xf32>
    %105 = vector.multi_reduction <add>, %104, %cst_50 [1] : vector<32x32xf32> to vector<32xf32>
    %106 = vector.shape_cast %105 : vector<32xf32> to vector<32x1xf32>
    %cst_51 = arith.constant 3.200000e+01 : f32
    %107 = vector.broadcast %cst_51 : f32 to vector<32x1xf32>
    %108 = arith.divf %106, %107 : vector<32x1xf32>
    %109 = vector.broadcast %108 : vector<32x1xf32> to vector<32x32xf32>
    %110 = arith.subf %104, %109 : vector<32x32xf32>
    %111 = vector.broadcast %108 : vector<32x1xf32> to vector<32x32xf32>
    %112 = arith.subf %104, %111 : vector<32x32xf32>
    %113 = arith.mulf %110, %112 : vector<32x32xf32>
    %cst_52 = arith.constant dense<0.000000e+00> : vector<32xf32>
    %114 = vector.multi_reduction <add>, %113, %cst_52 [1] : vector<32x32xf32> to vector<32xf32>
    %115 = vector.shape_cast %114 : vector<32xf32> to vector<32x1xf32>
    %cst_53 = arith.constant 3.200000e+01 : f32
    %116 = vector.broadcast %cst_53 : f32 to vector<32x1xf32>
    %117 = arith.divf %115, %116 : vector<32x1xf32>
    %118 = vector.broadcast %108 : vector<32x1xf32> to vector<32x32xf32>
    %119 = arith.subf %104, %118 : vector<32x32xf32>
    %cst_54 = arith.constant 9.99999974E-6 : f32
    %120 = vector.broadcast %cst_54 : f32 to vector<32x1xf32>
    %121 = arith.addf %117, %120 : vector<32x1xf32>
    %122 = math.rsqrt %121 : vector<32x1xf32>
    %123 = vector.broadcast %122 : vector<32x1xf32> to vector<32x32xf32>
    %124 = arith.mulf %119, %123 : vector<32x32xf32>
    %c0_55 = arith.constant 0 : index
    %c0_56 = arith.constant 0 : index
    %125 = vector.load %arg12[%c0_55, %c0_56] : memref<1x32xf32, #tpu.memory_space<vmem>>, vector<1x32xf32>
    %126 = vector.broadcast %125 : vector<1x32xf32> to vector<32x32xf32>
    %127 = arith.mulf %124, %126 : vector<32x32xf32>
    %c0_57 = arith.constant 0 : index
    %c0_58 = arith.constant 0 : index
    %128 = vector.load %arg13[%c0_57, %c0_58] : memref<1x32xf32, #tpu.memory_space<vmem>>, vector<1x32xf32>
    %129 = vector.broadcast %128 : vector<1x32xf32> to vector<32x32xf32>
    %130 = arith.addf %127, %129 : vector<32x32xf32>
    %131 = vector.broadcast %5 : vector<32x1xf32> to vector<32x32xf32>
    %132 = arith.mulf %130, %131 : vector<32x32xf32>
    %c0_59 = arith.constant 0 : index
    %c0_60 = arith.constant 0 : index
    %133 = vector.load %arg14[%c0_59, %c0_60] : memref<32x91xf32, #tpu.memory_space<vmem>>, vector<32x91xf32>
    %cst_61 = arith.constant dense<0.000000e+00> : vector<32x91xf32>
    %134 = tpu.matmul %132, %133, %cst_61 {dimension_numbers = #tpu.dot_dimension_numbers<[1], [0], [0], [1], [0, 0, 1, 1], [], []>} : vector<32x32xf32>, vector<32x91xf32>, vector<32x91xf32> -> vector<32x91xf32>
    %c0_62 = arith.constant 0 : index
    %c0_63 = arith.constant 0 : index
    %135 = vector.load %arg15[%c0_62, %c0_63] : memref<1x91xf32, #tpu.memory_space<vmem>>, vector<1x91xf32>
    %136 = vector.broadcast %135 : vector<1x91xf32> to vector<32x91xf32>
    %137 = arith.addf %134, %136 : vector<32x91xf32>
    %cst_64 = arith.constant 0.000000e+00 : f32
    %138 = vector.broadcast %cst_64 : f32 to vector<32x91xf32>
    %139 = arith.maximumf %137, %138 : vector<32x91xf32>
    %c0_65 = arith.constant 0 : index
    %c0_66 = arith.constant 0 : index
    %140 = vector.load %arg16[%c0_65, %c0_66] : memref<91x32xf32, #tpu.memory_space<vmem>>, vector<91x32xf32>
    %cst_67 = arith.constant dense<0.000000e+00> : vector<32x32xf32>
    %141 = tpu.matmul %139, %140, %cst_67 {dimension_numbers = #tpu.dot_dimension_numbers<[1], [0], [0], [1], [0, 0, 1, 1], [], []>} : vector<32x91xf32>, vector<91x32xf32>, vector<32x32xf32> -> vector<32x32xf32>
    %c0_68 = arith.constant 0 : index
    %c0_69 = arith.constant 0 : index
    %142 = vector.load %arg17[%c0_68, %c0_69] : memref<1x32xf32, #tpu.memory_space<vmem>>, vector<1x32xf32>
    %143 = vector.broadcast %142 : vector<1x32xf32> to vector<32x32xf32>
    %144 = arith.addf %141, %143 : vector<32x32xf32>
    %145 = arith.addf %144, %132 : vector<32x32xf32>
    %cst_70 = arith.constant dense<0.000000e+00> : vector<32xf32>
    %146 = vector.multi_reduction <add>, %145, %cst_70 [1] : vector<32x32xf32> to vector<32xf32>
    %147 = vector.shape_cast %146 : vector<32xf32> to vector<32x1xf32>
    %cst_71 = arith.constant 3.200000e+01 : f32
    %148 = vector.broadcast %cst_71 : f32 to vector<32x1xf32>
    %149 = arith.divf %147, %148 : vector<32x1xf32>
    %150 = vector.broadcast %149 : vector<32x1xf32> to vector<32x32xf32>
    %151 = arith.subf %145, %150 : vector<32x32xf32>
    %152 = vector.broadcast %149 : vector<32x1xf32> to vector<32x32xf32>
    %153 = arith.subf %145, %152 : vector<32x32xf32>
    %154 = arith.mulf %151, %153 : vector<32x32xf32>
    %cst_72 = arith.constant dense<0.000000e+00> : vector<32xf32>
    %155 = vector.multi_reduction <add>, %154, %cst_72 [1] : vector<32x32xf32> to vector<32xf32>
    %156 = vector.shape_cast %155 : vector<32xf32> to vector<32x1xf32>
    %cst_73 = arith.constant 3.200000e+01 : f32
    %157 = vector.broadcast %cst_73 : f32 to vector<32x1xf32>
    %158 = arith.divf %156, %157 : vector<32x1xf32>
    %159 = vector.broadcast %149 : vector<32x1xf32> to vector<32x32xf32>
    %160 = arith.subf %145, %159 : vector<32x32xf32>
    %cst_74 = arith.constant 9.99999974E-6 : f32
    %161 = vector.broadcast %cst_74 : f32 to vector<32x1xf32>
    %162 = arith.addf %158, %161 : vector<32x1xf32>
    %163 = math.rsqrt %162 : vector<32x1xf32>
    %164 = vector.broadcast %163 : vector<32x1xf32> to vector<32x32xf32>
    %165 = arith.mulf %160, %164 : vector<32x32xf32>
    %c0_75 = arith.constant 0 : index
    %c0_76 = arith.constant 0 : index
    %166 = vector.load %arg18[%c0_75, %c0_76] : memref<1x32xf32, #tpu.memory_space<vmem>>, vector<1x32xf32>
    %167 = vector.broadcast %166 : vector<1x32xf32> to vector<32x32xf32>
    %168 = arith.mulf %165, %167 : vector<32x32xf32>
    %c0_77 = arith.constant 0 : index
    %c0_78 = arith.constant 0 : index
    %169 = vector.load %arg19[%c0_77, %c0_78] : memref<1x32xf32, #tpu.memory_space<vmem>>, vector<1x32xf32>
    %170 = vector.broadcast %169 : vector<1x32xf32> to vector<32x32xf32>
    %171 = arith.addf %168, %170 : vector<32x32xf32>
    %172 = vector.broadcast %5 : vector<32x1xf32> to vector<32x32xf32>
    %173 = arith.mulf %171, %172 : vector<32x32xf32>
    %174 = vector.shape_cast %173 : vector<32x32xf32> to vector<2x16x32xf32>
    %c0_79 = arith.constant 0 : index
    %c0_80 = arith.constant 0 : index
    %c0_81 = arith.constant 0 : index
    %175 = vector.load %arg20[%c0_79, %c0_80, %c0_81] : memref<2x16x32xf32, #tpu.memory_space<vmem>>, vector<2x16x32xf32>
    tpu.vector_store %arg20[%c0_79, %c0_80, %c0_81], %174 {strides = array<i32>} : memref<2x16x32xf32, #tpu.memory_space<vmem>>, vector<2x16x32xf32>,
    return
  }
}

module attributes {stable_mosaic.version = 11 : i64} {
  func.func @unet_layer_kernel(%arg0: memref<2x16x32xf32, #tpu.memory_space<vmem>>, %arg1: memref<2x16x32xf32, #tpu.memory_space<vmem>>, %arg2: memref<2x16x16xf32, #tpu.memory_space<vmem>>, %arg3: memref<2x16x1xf32, #tpu.memory_space<vmem>>, %arg4: memref<32x32xf32, #tpu.memory_space<vmem>>, %arg5: memref<1x32xf32, #tpu.memory_space<vmem>>, %arg6: memref<32x32xf32, #tpu.memory_space<vmem>>, %arg7: memref<1x32xf32, #tpu.memory_space<vmem>>, %arg8: memref<32x32xf32, #tpu.memory_space<vmem>>, %arg9: memref<1x32xf32, #tpu.memory_space<vmem>>, %arg10: memref<32x32xf32, #tpu.memory_space<vmem>>, %arg11: memref<1x32xf32, #tpu.memory_space<vmem>>, %arg12: memref<1x32xf32, #tpu.memory_space<vmem>>, %arg13: memref<1x32xf32, #tpu.memory_space<vmem>>, %arg14: memref<32x64xf32, #tpu.memory_space<vmem>>, %arg15: memref<1x64xf32, #tpu.memory_space<vmem>>, %arg16: memref<64x32xf32, #tpu.memory_space<vmem>>, %arg17: memref<1x32xf32, #tpu.memory_space<vmem>>, %arg18: memref<1x32xf32, #tpu.memory_space<vmem>>, %arg19: memref<1x32xf32, #tpu.memory_space<vmem>>, %arg20: memref<2x16x32xf32, #tpu.memory_space<vmem>>) attributes {dimension_semantics = [], scalar_prefetch = 0 : i64, scratch_operands = 0 : i64, tpu.core_type = #tpu.core_type<tc>} {
    %c0 = arith.constant 0 : index
    %c0_0 = arith.constant 0 : index
    %c0_1 = arith.constant 0 : index
    %0 = vector.load %arg0[%c0, %c0_0, %c0_1] : memref<2x16x32xf32, #tpu.memory_space<vmem>>, vector<2x16x32xf32>
    %1 = vector.shape_cast %0 : vector<2x16x32xf32> to vector<32x32xf32>
    %c0_2 = arith.constant 0 : index
    %c0_3 = arith.constant 0 : index
    %c0_4 = arith.constant 0 : index
    %2 = vector.load %arg1[%c0_2, %c0_3, %c0_4] : memref<2x16x32xf32, #tpu.memory_space<vmem>>, vector<2x16x32xf32>
    %3 = vector.shape_cast %2 : vector<2x16x32xf32> to vector<32x32xf32>
    %c0_5 = arith.constant 0 : index
    %c0_6 = arith.constant 0 : index
    %c0_7 = arith.constant 0 : index
    %4 = vector.load %arg3[%c0_5, %c0_6, %c0_7] : memref<2x16x1xf32, #tpu.memory_space<vmem>>, vector<2x16x1xf32>
    %5 = vector.shape_cast %4 : vector<2x16x1xf32> to vector<32x1xf32>
    %c0_8 = arith.constant 0 : index
    %c0_9 = arith.constant 0 : index
    %c0_10 = arith.constant 0 : index
    %6 = vector.load %arg2[%c0_8, %c0_9, %c0_10] : memref<2x16x16xf32, #tpu.memory_space<vmem>>, vector<2x16x16xf32>
    %c0_11 = arith.constant 0 : index
    %c0_12 = arith.constant 0 : index
    %7 = vector.load %arg4[%c0_11, %c0_12] : memref<32x32xf32, #tpu.memory_space<vmem>>, vector<32x32xf32>
    %cst = arith.constant dense<0.000000e+00> : vector<32x32xf32>
    %8 = tpu.matmul %1, %7, %cst {dimension_numbers = #tpu.dot_dimension_numbers<[1], [0], [0], [1], [0, 0, 1, 1], [], []>} : vector<32x32xf32>, vector<32x32xf32>, vector<32x32xf32> -> vector<32x32xf32>
    %c0_13 = arith.constant 0 : index
    %c0_14 = arith.constant 0 : index
    %9 = vector.load %arg5[%c0_13, %c0_14] : memref<1x32xf32, #tpu.memory_space<vmem>>, vector<1x32xf32>
    %10 = vector.broadcast %9 : vector<1x32xf32> to vector<32x32xf32>
    %11 = arith.addf %8, %10 : vector<32x32xf32>
    %12 = vector.shape_cast %11 : vector<32x32xf32> to vector<2x16x32xf32>
    %c0_15 = arith.constant 0 : index
    %c0_16 = arith.constant 0 : index
    %13 = vector.load %arg6[%c0_15, %c0_16] : memref<32x32xf32, #tpu.memory_space<vmem>>, vector<32x32xf32>
    %cst_17 = arith.constant dense<0.000000e+00> : vector<32x32xf32>
    %14 = tpu.matmul %3, %13, %cst_17 {dimension_numbers = #tpu.dot_dimension_numbers<[1], [0], [0], [1], [0, 0, 1, 1], [], []>} : vector<32x32xf32>, vector<32x32xf32>, vector<32x32xf32> -> vector<32x32xf32>
    %c0_18 = arith.constant 0 : index
    %c0_19 = arith.constant 0 : index
    %15 = vector.load %arg7[%c0_18, %c0_19] : memref<1x32xf32, #tpu.memory_space<vmem>>, vector<1x32xf32>
    %16 = vector.broadcast %15 : vector<1x32xf32> to vector<32x32xf32>
    %17 = arith.addf %14, %16 : vector<32x32xf32>
    %18 = vector.shape_cast %17 : vector<32x32xf32> to vector<2x16x32xf32>
    %c0_20 = arith.constant 0 : index
    %c0_21 = arith.constant 0 : index
    %19 = vector.load %arg8[%c0_20, %c0_21] : memref<32x32xf32, #tpu.memory_space<vmem>>, vector<32x32xf32>
    %cst_22 = arith.constant dense<0.000000e+00> : vector<32x32xf32>
    %20 = tpu.matmul %3, %19, %cst_22 {dimension_numbers = #tpu.dot_dimension_numbers<[1], [0], [0], [1], [0, 0, 1, 1], [], []>} : vector<32x32xf32>, vector<32x32xf32>, vector<32x32xf32> -> vector<32x32xf32>
    %c0_23 = arith.constant 0 : index
    %c0_24 = arith.constant 0 : index
    %21 = vector.load %arg9[%c0_23, %c0_24] : memref<1x32xf32, #tpu.memory_space<vmem>>, vector<1x32xf32>
    %22 = vector.broadcast %21 : vector<1x32xf32> to vector<32x32xf32>
    %23 = arith.addf %20, %22 : vector<32x32xf32>
    %24 = vector.shape_cast %23 : vector<32x32xf32> to vector<2x16x32xf32>
    %25 = vector.extract_strided_slice %12 {offsets = [0, 0, 0], sizes = [2, 16, 8], strides = [1, 1, 1]} : vector<2x16x32xf32> to vector<2x16x8xf32>
    %26 = vector.extract_strided_slice %18 {offsets = [0, 0, 0], sizes = [2, 16, 8], strides = [1, 1, 1]} : vector<2x16x32xf32> to vector<2x16x8xf32>
    %27 = vector.extract_strided_slice %24 {offsets = [0, 0, 0], sizes = [2, 16, 8], strides = [1, 1, 1]} : vector<2x16x32xf32> to vector<2x16x8xf32>
    "tpu.trace_start"() <{level = 10 : i32, message = "bqd,bkd->bqk"}> : () -> ()
    %cst_25 = arith.constant dense<0.000000e+00> : vector<2x16x16xf32>
    %28 = tpu.matmul %25, %26, %cst_25 {dimension_numbers = #tpu.dot_dimension_numbers<[2], [2], [1], [1], [0, 0, 0, 1, 1, 1], [0], [0]>} : vector<2x16x8xf32>, vector<2x16x8xf32>, vector<2x16x16xf32> -> vector<2x16x16xf32>
    "tpu.trace_stop"() : () -> ()
    %cst_26 = arith.constant 0.353553385 : f32
    %29 = vector.broadcast %cst_26 : f32 to vector<2x16x16xf32>
    %30 = arith.mulf %28, %29 : vector<2x16x16xf32>
    %31 = arith.addf %30, %6 : vector<2x16x16xf32>
    %cst_27 = arith.constant dense<0xFF800000> : vector<2x16xf32>
    %32 = vector.multi_reduction <maximumf>, %31, %cst_27 [2] : vector<2x16x16xf32> to vector<2x16xf32>
    %33 = vector.shape_cast %32 : vector<2x16xf32> to vector<2x16x1xf32>
    %34 = vector.broadcast %33 : vector<2x16x1xf32> to vector<2x16x16xf32>
    %35 = arith.subf %31, %34 : vector<2x16x16xf32>
    %36 = math.exp %35 : vector<2x16x16xf32>
    %cst_28 = arith.constant dense<0.000000e+00> : vector<2x16xf32>
    %37 = vector.multi_reduction <add>, %36, %cst_28 [2] : vector<2x16x16xf32> to vector<2x16xf32>
    %38 = vector.shape_cast %37 : vector<2x16xf32> to vector<2x16x1xf32>
    %39 = tpu.reciprocal %38 {approx = true} : vector<2x16x1xf32> -> vector<2x16x1xf32>
    %40 = vector.broadcast %39 : vector<2x16x1xf32> to vector<2x16x16xf32>
    %41 = arith.mulf %36, %40 : vector<2x16x16xf32>
    "tpu.trace_start"() <{level = 10 : i32, message = "bqk,bkd->bqd"}> : () -> ()
    %cst_29 = arith.constant dense<0.000000e+00> : vector<2x16x8xf32>
    %42 = tpu.matmul %41, %27, %cst_29 {dimension_numbers = #tpu.dot_dimension_numbers<[2], [1], [1], [2], [0, 0, 0, 1, 1, 2], [0], [0]>} : vector<2x16x16xf32>, vector<2x16x8xf32>, vector<2x16x8xf32> -> vector<2x16x8xf32>
    "tpu.trace_stop"() : () -> ()
    %43 = vector.extract_strided_slice %12 {offsets = [0, 0, 8], sizes = [2, 16, 8], strides = [1, 1, 1]} : vector<2x16x32xf32> to vector<2x16x8xf32>
    %44 = vector.extract_strided_slice %18 {offsets = [0, 0, 8], sizes = [2, 16, 8], strides = [1, 1, 1]} : vector<2x16x32xf32> to vector<2x16x8xf32>
    %45 = vector.extract_strided_slice %24 {offsets = [0, 0, 8], sizes = [2, 16, 8], strides = [1, 1, 1]} : vector<2x16x32xf32> to vector<2x16x8xf32>
    "tpu.trace_start"() <{level = 10 : i32, message = "bqd,bkd->bqk"}> : () -> ()
    %cst_30 = arith.constant dense<0.000000e+00> : vector<2x16x16xf32>
    %46 = tpu.matmul %43, %44, %cst_30 {dimension_numbers = #tpu.dot_dimension_numbers<[2], [2], [1], [1], [0, 0, 0, 1, 1, 1], [0], [0]>} : vector<2x16x8xf32>, vector<2x16x8xf32>, vector<2x16x16xf32> -> vector<2x16x16xf32>
    "tpu.trace_stop"() : () -> ()
    %cst_31 = arith.constant 0.353553385 : f32
    %47 = vector.broadcast %cst_31 : f32 to vector<2x16x16xf32>
    %48 = arith.mulf %46, %47 : vector<2x16x16xf32>
    %49 = arith.addf %48, %6 : vector<2x16x16xf32>
    %cst_32 = arith.constant dense<0xFF800000> : vector<2x16xf32>
    %50 = vector.multi_reduction <maximumf>, %49, %cst_32 [2] : vector<2x16x16xf32> to vector<2x16xf32>
    %51 = vector.shape_cast %50 : vector<2x16xf32> to vector<2x16x1xf32>
    %52 = vector.broadcast %51 : vector<2x16x1xf32> to vector<2x16x16xf32>
    %53 = arith.subf %49, %52 : vector<2x16x16xf32>
    %54 = math.exp %53 : vector<2x16x16xf32>
    %cst_33 = arith.constant dense<0.000000e+00> : vector<2x16xf32>
    %55 = vector.multi_reduction <add>, %54, %cst_33 [2] : vector<2x16x16xf32> to vector<2x16xf32>
    %56 = vector.shape_cast %55 : vector<2x16xf32> to vector<2x16x1xf32>
    %57 = tpu.reciprocal %56 {approx = true} : vector<2x16x1xf32> -> vector<2x16x1xf32>
    %58 = vector.broadcast %57 : vector<2x16x1xf32> to vector<2x16x16xf32>
    %59 = arith.mulf %54, %58 : vector<2x16x16xf32>
    "tpu.trace_start"() <{level = 10 : i32, message = "bqk,bkd->bqd"}> : () -> ()
    %cst_34 = arith.constant dense<0.000000e+00> : vector<2x16x8xf32>
    %60 = tpu.matmul %59, %45, %cst_34 {dimension_numbers = #tpu.dot_dimension_numbers<[2], [1], [1], [2], [0, 0, 0, 1, 1, 2], [0], [0]>} : vector<2x16x16xf32>, vector<2x16x8xf32>, vector<2x16x8xf32> -> vector<2x16x8xf32>
    "tpu.trace_stop"() : () -> ()
    %61 = vector.extract_strided_slice %12 {offsets = [0, 0, 16], sizes = [2, 16, 8], strides = [1, 1, 1]} : vector<2x16x32xf32> to vector<2x16x8xf32>
    %62 = vector.extract_strided_slice %18 {offsets = [0, 0, 16], sizes = [2, 16, 8], strides = [1, 1, 1]} : vector<2x16x32xf32> to vector<2x16x8xf32>
    %63 = vector.extract_strided_slice %24 {offsets = [0, 0, 16], sizes = [2, 16, 8], strides = [1, 1, 1]} : vector<2x16x32xf32> to vector<2x16x8xf32>
    "tpu.trace_start"() <{level = 10 : i32, message = "bqd,bkd->bqk"}> : () -> ()
    %cst_35 = arith.constant dense<0.000000e+00> : vector<2x16x16xf32>
    %64 = tpu.matmul %61, %62, %cst_35 {dimension_numbers = #tpu.dot_dimension_numbers<[2], [2], [1], [1], [0, 0, 0, 1, 1, 1], [0], [0]>} : vector<2x16x8xf32>, vector<2x16x8xf32>, vector<2x16x16xf32> -> vector<2x16x16xf32>
    "tpu.trace_stop"() : () -> ()
    %cst_36 = arith.constant 0.353553385 : f32
    %65 = vector.broadcast %cst_36 : f32 to vector<2x16x16xf32>
    %66 = arith.mulf %64, %65 : vector<2x16x16xf32>
    %67 = arith.addf %66, %6 : vector<2x16x16xf32>
    %cst_37 = arith.constant dense<0xFF800000> : vector<2x16xf32>
    %68 = vector.multi_reduction <maximumf>, %67, %cst_37 [2] : vector<2x16x16xf32> to vector<2x16xf32>
    %69 = vector.shape_cast %68 : vector<2x16xf32> to vector<2x16x1xf32>
    %70 = vector.broadcast %69 : vector<2x16x1xf32> to vector<2x16x16xf32>
    %71 = arith.subf %67, %70 : vector<2x16x16xf32>
    %72 = math.exp %71 : vector<2x16x16xf32>
    %cst_38 = arith.constant dense<0.000000e+00> : vector<2x16xf32>
    %73 = vector.multi_reduction <add>, %72, %cst_38 [2] : vector<2x16x16xf32> to vector<2x16xf32>
    %74 = vector.shape_cast %73 : vector<2x16xf32> to vector<2x16x1xf32>
    %75 = tpu.reciprocal %74 {approx = true} : vector<2x16x1xf32> -> vector<2x16x1xf32>
    %76 = vector.broadcast %75 : vector<2x16x1xf32> to vector<2x16x16xf32>
    %77 = arith.mulf %72, %76 : vector<2x16x16xf32>
    "tpu.trace_start"() <{level = 10 : i32, message = "bqk,bkd->bqd"}> : () -> ()
    %cst_39 = arith.constant dense<0.000000e+00> : vector<2x16x8xf32>
    %78 = tpu.matmul %77, %63, %cst_39 {dimension_numbers = #tpu.dot_dimension_numbers<[2], [1], [1], [2], [0, 0, 0, 1, 1, 2], [0], [0]>} : vector<2x16x16xf32>, vector<2x16x8xf32>, vector<2x16x8xf32> -> vector<2x16x8xf32>
    "tpu.trace_stop"() : () -> ()
    %79 = vector.extract_strided_slice %12 {offsets = [0, 0, 24], sizes = [2, 16, 8], strides = [1, 1, 1]} : vector<2x16x32xf32> to vector<2x16x8xf32>
    %80 = vector.extract_strided_slice %18 {offsets = [0, 0, 24], sizes = [2, 16, 8], strides = [1, 1, 1]} : vector<2x16x32xf32> to vector<2x16x8xf32>
    %81 = vector.extract_strided_slice %24 {offsets = [0, 0, 24], sizes = [2, 16, 8], strides = [1, 1, 1]} : vector<2x16x32xf32> to vector<2x16x8xf32>
    "tpu.trace_start"() <{level = 10 : i32, message = "bqd,bkd->bqk"}> : () -> ()
    %cst_40 = arith.constant dense<0.000000e+00> : vector<2x16x16xf32>
    %82 = tpu.matmul %79, %80, %cst_40 {dimension_numbers = #tpu.dot_dimension_numbers<[2], [2], [1], [1], [0, 0, 0, 1, 1, 1], [0], [0]>} : vector<2x16x8xf32>, vector<2x16x8xf32>, vector<2x16x16xf32> -> vector<2x16x16xf32>
    "tpu.trace_stop"() : () -> ()
    %cst_41 = arith.constant 0.353553385 : f32
    %83 = vector.broadcast %cst_41 : f32 to vector<2x16x16xf32>
    %84 = arith.mulf %82, %83 : vector<2x16x16xf32>
    %85 = arith.addf %84, %6 : vector<2x16x16xf32>
    %cst_42 = arith.constant dense<0xFF800000> : vector<2x16xf32>
    %86 = vector.multi_reduction <maximumf>, %85, %cst_42 [2] : vector<2x16x16xf32> to vector<2x16xf32>
    %87 = vector.shape_cast %86 : vector<2x16xf32> to vector<2x16x1xf32>
    %88 = vector.broadcast %87 : vector<2x16x1xf32> to vector<2x16x16xf32>
    %89 = arith.subf %85, %88 : vector<2x16x16xf32>
    %90 = math.exp %89 : vector<2x16x16xf32>
    %cst_43 = arith.constant dense<0.000000e+00> : vector<2x16xf32>
    %91 = vector.multi_reduction <add>, %90, %cst_43 [2] : vector<2x16x16xf32> to vector<2x16xf32>
    %92 = vector.shape_cast %91 : vector<2x16xf32> to vector<2x16x1xf32>
    %93 = tpu.reciprocal %92 {approx = true} : vector<2x16x1xf32> -> vector<2x16x1xf32>
    %94 = vector.broadcast %93 : vector<2x16x1xf32> to vector<2x16x16xf32>
    %95 = arith.mulf %90, %94 : vector<2x16x16xf32>
    "tpu.trace_start"() <{level = 10 : i32, message = "bqk,bkd->bqd"}> : () -> ()
    %cst_44 = arith.constant dense<0.000000e+00> : vector<2x16x8xf32>
    %96 = tpu.matmul %95, %81, %cst_44 {dimension_numbers = #tpu.dot_dimension_numbers<[2], [1], [1], [2], [0, 0, 0, 1, 1, 2], [0], [0]>} : vector<2x16x16xf32>, vector<2x16x8xf32>, vector<2x16x8xf32> -> vector<2x16x8xf32>
    "tpu.trace_stop"() : () -> ()
    %97 = tpu.concatenate %42, %60, %78, %96 in 2 : vector<2x16x8xf32>, vector<2x16x8xf32>, vector<2x16x8xf32>, vector<2x16x8xf32> -> vector<2x16x32xf32>
    %98 = vector.shape_cast %97 : vector<2x16x32xf32> to vector<32x32xf32>
    %c0_45 = arith.constant 0 : index
    %c0_46 = arith.constant 0 : index
    %99 = vector.load %arg10[%c0_45, %c0_46] : memref<32x32xf32, #tpu.memory_space<vmem>>, vector<32x32xf32>
    %cst_47 = arith.constant dense<0.000000e+00> : vector<32x32xf32>
    %100 = tpu.matmul %98, %99, %cst_47 {dimension_numbers = #tpu.dot_dimension_numbers<[1], [0], [0], [1], [0, 0, 1, 1], [], []>} : vector<32x32xf32>, vector<32x32xf32>, vector<32x32xf32> -> vector<32x32xf32>
    %c0_48 = arith.constant 0 : index
    %c0_49 = arith.constant 0 : index
    %101 = vector.load %arg11[%c0_48, %c0_49] : memref<1x32xf32, #tpu.memory_space<vmem>>, vector<1x32xf32>
    %102 = vector.broadcast %101 : vector<1x32xf32> to vector<32x32xf32>
    %103 = arith.addf %100, %102 : vector<32x32xf32>
    %104 = arith.addf %103, %1 : vector<32x32xf32>
    %cst_50 = arith.constant dense<0.000000e+00> : vector<32xf32>
    %105 = vector.multi_reduction <add>, %104, %cst_50 [1] : vector<32x32xf32> to vector<32xf32>
    %106 = vector.shape_cast %105 : vector<32xf32> to vector<32x1xf32>
    %cst_51 = arith.constant 3.200000e+01 : f32
    %107 = vector.broadcast %cst_51 : f32 to vector<32x1xf32>
    %108 = arith.divf %106, %107 : vector<32x1xf32>
    %109 = vector.broadcast %108 : vector<32x1xf32> to vector<32x32xf32>
    %110 = arith.subf %104, %109 : vector<32x32xf32>
    %111 = vector.broadcast %108 : vector<32x1xf32> to vector<32x32xf32>
    %112 = arith.subf %104, %111 : vector<32x32xf32>
    %113 = arith.mulf %110, %112 : vector<32x32xf32>
    %cst_52 = arith.constant dense<0.000000e+00> : vector<32xf32>
    %114 = vector.multi_reduction <add>, %113, %cst_52 [1] : vector<32x32xf32> to vector<32xf32>
    %115 = vector.shape_cast %114 : vector<32xf32> to vector<32x1xf32>
    %cst_53 = arith.constant 3.200000e+01 : f32
    %116 = vector.broadcast %cst_53 : f32 to vector<32x1xf32>
    %117 = arith.divf %115, %116 : vector<32x1xf32>
    %118 = vector.broadcast %108 : vector<32x1xf32> to vector<32x32xf32>
    %119 = arith.subf %104, %118 : vector<32x32xf32>
    %cst_54 = arith.constant 9.99999974E-6 : f32
    %120 = vector.broadcast %cst_54 : f32 to vector<32x1xf32>
    %121 = arith.addf %117, %120 : vector<32x1xf32>
    %122 = math.rsqrt %121 : vector<32x1xf32>
    %123 = vector.broadcast %122 : vector<32x1xf32> to vector<32x32xf32>
    %124 = arith.mulf %119, %123 : vector<32x32xf32>
    %c0_55 = arith.constant 0 : index
    %c0_56 = arith.constant 0 : index
    %125 = vector.load %arg12[%c0_55, %c0_56] : memref<1x32xf32, #tpu.memory_space<vmem>>, vector<1x32xf32>
    %126 = vector.broadcast %125 : vector<1x32xf32> to vector<32x32xf32>
    %127 = arith.mulf %124, %126 : vector<32x32xf32>
    %c0_57 = arith.constant 0 : index
    %c0_58 = arith.constant 0 : index
    %128 = vector.load %arg13[%c0_57, %c0_58] : memref<1x32xf32, #tpu.memory_space<vmem>>, vector<1x32xf32>
    %129 = vector.broadcast %128 : vector<1x32xf32> to vector<32x32xf32>
    %130 = arith.addf %127, %129 : vector<32x32xf32>
    %131 = vector.broadcast %5 : vector<32x1xf32> to vector<32x32xf32>
    %132 = arith.mulf %130, %131 : vector<32x32xf32>
    %c0_59 = arith.constant 0 : index
    %c0_60 = arith.constant 0 : index
    %133 = vector.load %arg14[%c0_59, %c0_60] : memref<32x64xf32, #tpu.memory_space<vmem>>, vector<32x64xf32>
    %cst_61 = arith.constant dense<0.000000e+00> : vector<32x64xf32>
    %134 = tpu.matmul %132, %133, %cst_61 {dimension_numbers = #tpu.dot_dimension_numbers<[1], [0], [0], [1], [0, 0, 1, 1], [], []>} : vector<32x32xf32>, vector<32x64xf32>, vector<32x64xf32> -> vector<32x64xf32>
    %c0_62 = arith.constant 0 : index
    %c0_63 = arith.constant 0 : index
    %135 = vector.load %arg15[%c0_62, %c0_63] : memref<1x64xf32, #tpu.memory_space<vmem>>, vector<1x64xf32>
    %136 = vector.broadcast %135 : vector<1x64xf32> to vector<32x64xf32>
    %137 = arith.addf %134, %136 : vector<32x64xf32>
    %cst_64 = arith.constant 0.000000e+00 : f32
    %138 = vector.broadcast %cst_64 : f32 to vector<32x64xf32>
    %139 = arith.maximumf %137, %138 : vector<32x64xf32>
    %c0_65 = arith.constant 0 : index
    %c0_66 = arith.constant 0 : index
    %140 = vector.load %arg16[%c0_65, %c0_66] : memref<64x32xf32, #tpu.memory_space<vmem>>, vector<64x32xf32>
    %cst_67 = arith.constant dense<0.000000e+00> : vector<32x32xf32>
    %141 = tpu.matmul %139, %140, %cst_67 {dimension_numbers = #tpu.dot_dimension_numbers<[1], [0], [0], [1], [0, 0, 1, 1], [], []>} : vector<32x64xf32>, vector<64x32xf32>, vector<32x32xf32> -> vector<32x32xf32>
    %c0_68 = arith.constant 0 : index
    %c0_69 = arith.constant 0 : index
    %142 = vector.load %arg17[%c0_68, %c0_69] : memref<1x32xf32, #tpu.memory_space<vmem>>, vector<1x32xf32>
    %143 = vector.broadcast %142 : vector<1x32xf32> to vector<32x32xf32>
    %144 = arith.addf %141, %143 : vector<32x32xf32>
    %145 = arith.addf %144, %132 : vector<32x32xf32>
    %cst_70 = arith.constant dense<0.000000e+00> : vector<32xf32>
    %146 = vector.multi_reduction <add>, %145, %cst_70 [1] : vector<32x32xf32> to vector<32xf32>
    %147 = vector.shape_cast %146 : vector<32xf32> to vector<32x1xf32>
    %cst_71 = arith.constant 3.200000e+01 : f32
    %148 = vector.broadcast %cst_71 : f32 to vector<32x1xf32>
    %149 = arith.divf %147, %148 : vector<32x1xf32>
    %150 = vector.broadcast %149 : vector<32x1xf32> to vector<32x32xf32>
    %151 = arith.subf %145, %150 : vector<32x32xf32>
    %152 = vector.broadcast %149 : vector<32x1xf32> to vector<32x32xf32>
    %153 = arith.subf %145, %152 : vector<32x32xf32>
    %154 = arith.mulf %151, %153 : vector<32x32xf32>
    %cst_72 = arith.constant dense<0.000000e+00> : vector<32xf32>
    %155 = vector.multi_reduction <add>, %154, %cst_72 [1] : vector<32x32xf32> to vector<32xf32>
    %156 = vector.shape_cast %155 : vector<32xf32> to vector<32x1xf32>
    %cst_73 = arith.constant 3.200000e+01 : f32
    %157 = vector.broadcast %cst_73 : f32 to vector<32x1xf32>
    %158 = arith.divf %156, %157 : vector<32x1xf32>
    %159 = vector.broadcast %149 : vector<32x1xf32> to vector<32x32xf32>
    %160 = arith.subf %145, %159 : vector<32x32xf32>
    %cst_74 = arith.constant 9.99999974E-6 : f32
    %161 = vector.broadcast %cst_74 : f32 to vector<32x1xf32>
    %162 = arith.addf %158, %161 : vector<32x1xf32>
    %163 = math.rsqrt %162 : vector<32x1xf32>
    %164 = vector.broadcast %163 : vector<32x1xf32> to vector<32x32xf32>
    %165 = arith.mulf %160, %164 : vector<32x32xf32>
    %c0_75 = arith.constant 0 : index
    %c0_76 = arith.constant 0 : index
    %166 = vector.load %arg18[%c0_75, %c0_76] : memref<1x32xf32, #tpu.memory_space<vmem>>, vector<1x32xf32>
    %167 = vector.broadcast %166 : vector<1x32xf32> to vector<32x32xf32>
    %168 = arith.mulf %165, %167 : vector<32x32xf32>
    %c0_77 = arith.constant 0 : index
    %c0_78 = arith.constant 0 : index
    %169 = vector.load %arg19[%c0_77, %c0_78] : memref<1x32xf32, #tpu.memory_space<vmem>>, vector<1x32xf32>
    %170 = vector.broadcast %169 : vector<1x32xf32> to vector<32x32xf32>
    %171 = arith.addf %168, %170 : vector<32x32xf32>
    %172 = vector.broadcast %5 : vector<32x1xf32> to vector<32x32xf32>
    %173 = arith.mulf %171, %172 : vector<32x32xf32>
    %174 = vector.shape_cast %173 : vector<32x32xf32> to vector<2x16x32xf32>
    %c0_79 = arith.constant 0 : index
    %c0_80 = arith.constant 0 : index
    %c0_81 = arith.constant 0 : index
    %175 = vector.load %arg20[%c0_79, %c0_80, %c0_81] : memref<2x16x32xf32, #tpu.memory_space<vmem>>, vector<2x16x32xf32>
    tpu.vector_store %arg20[%c0_79, %c0_80, %c0_81], %174 {strides = array<i32>} : memref<2x16x32xf32, #tpu.memory_space<vmem>>, vector<2x16x32xf32>,
    return
  }
}

</mosaic_0001>

<bundles_post_ra>
// kernel: unet_encoder_forward.5
= control target key start
LH: loop header
LB: loop body
LE: loop exit
PB: predicated region body
PF: predicated region fallthrough
CT: control target
= control target key end

     0   :  { %vm95_vm0 = vcmask 1044480   ;;  %vm88_vm1 = vcmask 367616   ;;  %v2657_v18 = vmov 0.0   ;;  %vm2658_vm2 = vmmov 0   ;;  %s2659_s22 = smov 117   ;;  %s2662_s24 = smov 11   ;;  %s3255_s4 = inlined_call_operand.vmem [shape: f32[45,44], index: 4, kind: input, shape index: {}]   ;;  %s3256_s0 = inlined_call_operand.vmem [shape: f32[2,8,45], index: 0, kind: input, shape index: {}]   ;;  %s3257_s1 = inlined_call_operand.vmem [shape: f32[2,16,45], index: 1, kind: input, shape index: {}]   ;;  %s3258_s6 = inlined_call_operand.vmem [shape: f32[45,44], index: 6, kind: input, shape index: {}]   ;;  %s3259_s7 = inlined_call_operand.vmem [shape: f32[1,44], index: 7, kind: input, shape index: {}]   ;;  %s3260_s5 = inlined_call_operand.vmem [shape: f32[1,44], index: 5, kind: input, shape index: {}]   ;;  %s3261_s8 = inlined_call_operand.vmem [shape: f32[45,44], index: 8, kind: input, shape index: {}]   ;;  %s3262_s2 = inlined_call_operand.vmem [shape: f32[2,8,16], index: 2, kind: input, shape index: {}]   ;;  %s3263_s9 = inlined_call_operand.vmem [shape: f32[1,44], index: 9, kind: input, shape index: {}]   ;;  %s3264_s10 = inlined_call_operand.vmem [shape: f32[44,45], index: 10, kind: input, shape index: {}]   ;;  %s3265_s11 = inlined_call_operand.vmem [shape: f32[1,45], index: 11, kind: input, shape index: {}]   ;;  %s3266_s3 = inlined_call_operand.vmem [shape: f32[2,8,1], index: 3, kind: input, shape index: {}]   ;;  %s3267_s14 = inlined_call_operand.vmem [shape: f32[45,91], index: 14, kind: input, shape index: {}]   ;;  %s3268_s16 = inlined_call_operand.vmem [shape: f32[91,45], index: 16, kind: input, shape index: {}]   ;;  %s3269_s12 = inlined_call_operand.vmem [shape: f32[1,45], index: 12, kind: input, shape index: {}]   ;;  %s3270_s13 = inlined_call_operand.vmem [shape: f32[1,45], index: 13, kind: input, shape index: {}]   ;;  %s3271_s15 = inlined_call_operand.vmem [shape: f32[1,91], index: 15, kind: input, shape index: {}]   ;;  %s3272_s17 = inlined_call_operand.vmem [shape: f32[1,45], index: 17, kind: input, shape index: {}]   ;;  %s3273_s18 = inlined_call_operand.vmem [shape: f32[1,45], index: 18, kind: input, shape index: {}]   ;;  %s3274_s19 = inlined_call_operand.vmem [shape: f32[1,45], index: 19, kind: input, shape index: {}]   ;;  %s3275_s20 = inlined_call_operand.vmem [shape: f32[2,8,45], index: 20, kind: output, shape index: {}]  }
   0x1   :  { %3280 = sst [smem:[#allocation2_spill]] %s3255_s4  ;;  %vm388_vm3 = vcmask 89088   ;;  %v2216_v26 = vld [vmem:[%s3260_s5] ss:$0 sm:$0xff]  ;;  %v292_v33 = vld [vmem:[%s3261_s8 + $0x28] sm:$0x1f] }
   0x2   :  { %3281 = sst [smem:[#allocation3_spill]] %s3256_s0  ;;  %v291_v34 = vld [vmem:[%s3261_s8 + $0x20] sm:$0xff]  ;;  %2419 = vmatprep.subr.msk.mxu0 %vm95_vm0, %v292_v33  ;;  %v290_v35 = vld [vmem:[%s3261_s8 + $0x18] sm:$0xff]  ;;  %v289_v36 = vld [vmem:[%s3261_s8 + $0x10] sm:$0xff]  ;;  %vm551_vm4 = vcmask 130048   ;;  %vm1820_vm5 = vcmask 1043456  }
   0x3   :  { %3282 = sst [smem:[#allocation4_spill]] %s3257_s1  ;;  %2420 = vmatpush3.msk.msra.mxu0 %vm95_vm0, %v292_v33  ;;  %v288_v37 = vld [vmem:[%s3261_s8 + $0x8] sm:$0xff]  ;;  %v287_v38 = vld [vmem:[%s3261_s8] sm:$0xff]  ;;  %s2663_s1 = smov 22   ;;  %vm1797_vm6 = vcmask 269312   ;;  %vm1794_vm7 = vcmask 179200  }
   0x4   :  { %3283 = sst [smem:[#allocation5_spill]] %s3258_s6  ;;  %2421 = vmatprep.subr.mxu0 %v291_v34  ;;  %v2926_v40 = vld [vmem:[%s3262_s2] sm:$0xff]  ;;  %v2933_v46 = vld [vmem:[%s3262_s2 + $0x8] sm:$0xff]  ;;  %s2664_s0 = smov 33   ;;  %vm1813_vm8 = vcmask 359424   ;;  %vm2083_vm9 = vcmask 1042432  }
   0x5   :  { %3284 = sst [smem:[#allocation6_spill]] %s3259_s7  ;;  %2422 = vmatpush3.msra.mxu0 %v291_v34  ;;  %v2226_v62 = vld [vmem:[%s3263_s9] ss:$0 sm:$0xff]  ;;  %s2660_s9 = smov 106   ;;  %vm2076_vm10 = vcmask 744448  }
   0x6   :  { %s3285_s23 = sld [smem:[#allocation2_spill]]  ;;  %2423 = vmatprep.subr.mxu0 %v290_v35 }
   0x7   :  { %s3286_s28 = sld [smem:[#allocation3_spill]]  ;;  %2424 = vmatpush3.msra.mxu0 %v290_v35 }
   0x8   :  { %s3287_s21 = sld [smem:[#allocation4_spill]]  ;;  %2425 = vmatprep.subr.mxu0 %v289_v36 }
   0x9   :  { %s3288_s7 = sld [smem:[#allocation5_spill]]  ;;  %2426 = vmatpush3.msra.mxu0 %v289_v36 }
   0xa   :  { %s3289_s4 = sld [smem:[#allocation6_spill]]  ;;  %2427 = vmatprep.subr.mxu0 %v288_v37 }
   0xb   :  { %2428 = vmatpush3.msra.mxu0 %v288_v37 }
   0xc   :  { %v80_v0 = vld [vmem:[%s3285_s23 + $0x28] sm:$0x1f]  ;;  %v79_v1 = vld [vmem:[%s3285_s23 + $0x20] sm:$0xff]  ;;  %v78_v2 = vld [vmem:[%s3285_s23 + $0x18] sm:$0xff]  ;;  %2429 = vmatprep.subr.mxu0 %v287_v38 }
   0xd   :  { %2386 = vmatprep.subr.msk.mxu1 %vm95_vm0, %v80_v0  ;;  %v2785_v3 = vld [vmem:[%s3286_s28] sm:$0xff]  ;;  %v77_v4 = vld [vmem:[%s3285_s23 + $0x10] sm:$0xff]  ;;  %v76_v6 = vld [vmem:[%s3285_s23 + $0x8] sm:$0xff]  ;;  %2430 = vmatpush3.msra.mxu0 %v287_v38 }
   0xe   :  { %2387 = vmatpush3.msk.msra.mxu1 %vm95_vm0, %v80_v0  ;;  %2398 = vmatprep.mubr.msk.f32.mxu1 %vm88_vm1, %v2785_v3  ;;  %v67_v5 = vld [vmem:[%s3287_s21] sm:$0xff]  ;;  %v2805_v8 = vld [vmem:[%s3286_s28 + $0x8] sm:$0xff]  ;;  %v2838_v16 = vld [vmem:[%s3287_s21 + $0x10] sm:$0xff] }
   0xf   :  { %2388 = vmatprep.subr.mxu1 %v79_v1  ;;  %2431 = vmatprep.mubr.msk.f32.mxu0 %vm88_vm1, %v67_v5  ;;  %v75_v7 = vld [vmem:[%s3285_s23] sm:$0xff]  ;;  %v179_v9 = vld [vmem:[%s3288_s7 + $0x28] sm:$0x1f]  ;;  %v177_v11 = vld [vmem:[%s3288_s7 + $0x18] sm:$0xff] }
  0x10   :  { %2389 = vmatpush3.msra.mxu1 %v79_v1  ;;  %v178_v10 = vld [vmem:[%s3288_s7 + $0x20] sm:$0xff]  ;;  %v176_v12 = vld [vmem:[%s3288_s7 + $0x10] sm:$0xff]  ;;  %v175_v13 = vld [vmem:[%s3288_s7 + $0x8] sm:$0xff]  ;;  %2451 = vmatprep.subr.mxu0 %v2657_v18 }
  0x11   :  { %2390 = vmatprep.subr.mxu1 %v78_v2  ;;  %v174_v14 = vld [vmem:[%s3288_s7] sm:$0xff]  ;;  %v2833_v15 = vld [vmem:[%s3287_s21 + $0x8] sm:$0xff]  ;;  %v70_v17 = vld [vmem:[%s3287_s21 + $0x18] sm:$0xff] }
  0x12   :  { %2391 = vmatpush3.msra.mxu1 %v78_v2  ;;  %v2220_v21 = vld [vmem:[%s3289_s4] ss:$0 sm:$0xff]  ;;  %2432 = vmatmul.mubr.msk.f32.vlgmr.msra.gmra.mxu0 %vm88_vm1, %v2833_v15 }
  0x13   :  { %2392 = vmatprep.subr.mxu1 %v77_v4  ;;  %2434 = vmatprep.mubr.msk.f32.mxu0 %vm88_vm1, %v2838_v16 }
  0x14   :  { %2393 = vmatpush3.msra.mxu1 %v77_v4 }
  0x15   :  { %2394 = vmatprep.subr.mxu1 %v76_v6 }
  0x16   :  { %2395 = vmatpush3.msra.mxu1 %v76_v6  ;;  %2435 = vmatmul.mubr.msk.f32.gmra.mxu0 %vm88_vm1, %v70_v17 }
  0x17   :  { %2396 = vmatprep.subr.mxu1 %v75_v7  ;;  %2455 = vmatprep.mubr.msk.f32.mxu0 %vm2658_vm2, %v2657_v18 }
  0x18   :  { %2397 = vmatpush3.msra.mxu1 %v75_v7 }
  0x19   :  { %2399 = vmatmul.mubr.msk.f32.vlgmr.msra.gmra.mxu1 %vm88_vm1, %v2805_v8  ;;  %2401 = vmatprep.subr.msk.mxu1 %vm95_vm0, %v179_v9 }
  0x1a   :  { %2402 = vmatpush3.msk.msra.mxu1 %vm95_vm0, %v179_v9  ;;  %2413 = vmatprep.mubr.msk.f32.mxu1 %vm88_vm1, %v67_v5 }
  0x1b   :  { %2403 = vmatprep.subr.mxu1 %v178_v10 }
  0x1c   :  { %2404 = vmatpush3.msra.mxu1 %v178_v10 }
  0x1d   :  { %2405 = vmatprep.subr.mxu1 %v177_v11 }
  0x1e   :  { %2406 = vmatpush3.msra.mxu1 %v177_v11 }
  0x1f   :  { %2407 = vmatprep.subr.mxu1 %v176_v12 }
  0x20   :  { %2408 = vmatpush3.msra.mxu1 %v176_v12 }
  0x21   :  { %2409 = vmatprep.subr.mxu1 %v175_v13 }
  0x22   :  { %2410 = vmatpush3.msra.mxu1 %v175_v13 }
  0x23   :  { %2411 = vmatprep.subr.mxu1 %v174_v14 }
  0x24   :  { %2412 = vmatpush3.msra.mxu1 %v174_v14 }
  0x25   :  { %2414 = vmatmul.mubr.msk.f32.vlgmr.msra.gmra.mxu1 %vm88_vm1, %v2833_v15  ;;  %2437 = vmatprep.subr.mxu1 %v2657_v18 }
  0x26   :  { %2416 = vmatprep.mubr.msk.f32.mxu1 %vm88_vm1, %v2838_v16 }
  0x29   :  { %2417 = vmatmul.mubr.msk.f32.gmra.mxu1 %vm88_vm1, %v70_v17 }
  0x2a   :  { %2441 = vmatprep.mubr.msk.f32.mxu1 %vm2658_vm2, %v2657_v18 }
  0xd2   :  { %v2433_v61 = vpop.f32.mrf.mxu0 }
  0xd3   :  { %v2946_v63 = vadd.f32 %v2433_v61, %v2226_v62 }
  0xd4   :  { %v369_v0 = vpop.f32.mrf.mxu0 }
  0xd5   :  { %v2948_v1 = vadd.f32 %v2226_v62, %v369_v0  ;;  %2452 = vmatpush3.msra.mxu0 %v2946_v63 }
  0xd6   :  { %2453 = vmatprep.subr.mxu0 %v2657_v18  ;;  %v2436_v2 = vpop.f32.mrf.mxu0 }
  0xd7   :  { %2454 = vmatpush3.msra.mxu0 %v2948_v1  ;;  %v2955_v4 = vadd.f32 %v2436_v2, %v2226_v62 }
  0xd8   :  { %2465 = vmatprep.subr.mxu0 %v2657_v18  ;;  %v379_v5 = vpop.f32.mrf.mxu0 }
  0xd9   :  { %v2400_v19 = vpop.f32.mrf.mxu1  ;;  %v2959_v6 = vadd.f32 %v2226_v62, %v379_v5 }
  0xda   :  { %v2888_v32 = vadd.f32 %v2400_v19, %v2216_v26 }
  0xdb   :  { %v165_v20 = vpop.f32.mrf.mxu1 }
  0xdc   :  { %v2870_v29 = vadd.f32 %v2216_v26, %v165_v20 }
  0xe5   :  { %v2415_v22 = vpop.f32.mrf.mxu1 }
  0xe6   :  { %v2854_v23 = vadd.f32 %v2415_v22, %v2220_v21 }
  0xe7   :  { %v268_v24 = vpop.f32.mrf.mxu1 }
  0xe8   :  { %2438 = vmatpush3.xpose.msk.msra.mxu1 %vm388_vm3, %v2854_v23  ;;  %v2862_v27 = vadd.f32 %v2220_v21, %v268_v24 }
  0xe9   :  { %v2418_v25 = vpop.f32.mrf.mxu1  ;;  %2439 = vmatprep.subr.mxu1 %v2657_v18 }
  0xea   :  { %v2864_v28 = vadd.f32 %v2418_v25, %v2220_v21 }
  0xeb   :  { %v278_v30 = vpop.f32.mrf.mxu1 }
  0xec   :  { %806 = vrot.lane.b32.xlu1 %v2864_v28, %s2659_s22  ;;  %2440 = vmatpush3.xpose.msk.msra.mxu1 %vm388_vm3, %v2862_v27  ;;  %v2882_v31 = vadd.f32 %v2220_v21, %v278_v30 }
  0xed   :  { %2444 = vmatprep.subr.mxu1 %v2657_v18 }
  0xef   :  { %2442 = vmatmul.mubr.msk.f32.vlgmr.msra.gmra.mxu1 %vm388_vm3, %v2870_v29 }
  0xf0   :  { %722 = vrot.lane.b32.xlu1 %v2862_v27, %s2659_s22  ;;  %2445 = vmatpush3.xpose.msk.msra.mxu1 %vm388_vm3, %v2864_v28 }
  0xf1   :  { %2446 = vmatprep.subr.mxu1 %v2657_v18  ;;  %2448 = vmatprep.mubr.msk.f32.mxu1 %vm2658_vm2, %v2657_v18 }
  0xf4   :  { %804 = vrot.lane.b32.xlu1 %v2882_v31, %s2659_s22  ;;  %2447 = vmatpush3.xpose.msk.msra.mxu1 %vm388_vm3, %v2882_v31 }
  0xf5   :  { %2458 = vmatprep.subr.mxu1 %v2657_v18 }
  0xf7   :  { %2449 = vmatmul.mubr.msk.f32.vlgmr.msra.gmra.mxu1 %vm388_vm3, %v2888_v32 }
  0xf8   :  { %2462 = vmatprep.mubr.msk.f32.mxu1 %vm2658_vm2, %v2657_v18  ;;  %2459 = vmatpush3.msra.mxu1 %v2955_v4 }
  0xf9   :  { %2460 = vmatprep.subr.mxu1 %v2657_v18 }
  0xfa   :  { %2461 = vmatpush3.msra.mxu1 %v2959_v6 }
  0xfb   :  { %2472 = vmatprep.subr.mxu1 %v2657_v18 }
 0x15e   :  { %v807_v7 = vpop.permute.xlu1 %806 }
 0x162   :  { %v723_v9 = vpop.permute.xlu1 %722 }
 0x166   :  { %v805_v10 = vpop.permute.xlu1 %804 }
 0x1af   :  { %v464_v39 = vpop.f32.mrf.mxu1 }
 0x1b0   :  { %v547_v41 = vmul.f32 0.30151135, %v464_v39 }
 0x1b1   :  { %v2443_v42 = vpop.f32.mrf.mxu1 }
 0x1b2   :  { %v549_v43 = vadd.f32 %v547_v41, %v2926_v40 }
 0x1b4   :  { %v552_v44 = vsel %vm551_vm4, %v549_v43, -inf }
 0x1b5   :  { %553 = vmax.xlane.f32.xlu0 %v552_v44 }
 0x1b7   :  { %v543_v45 = vpop.f32.mrf.mxu1 }
 0x1b8   :  { %v548_v47 = vmul.f32 0.30151135, %v543_v45 }
 0x1b9   :  { %v2450_v48 = vpop.f32.mrf.mxu1 }
 0x1ba   :  { %v550_v49 = vadd.f32 %v548_v47, %v2933_v46 }
 0x1bc   :  { %v555_v50 = vsel %vm551_vm4, %v550_v49, -inf }
 0x1bd   :  { %556 = vmax.xlane.f32.xlu0 %v555_v50 }
 0x1d3   :  { %724 = vrot.lane.b32.xlu0 %v2854_v23, %s2659_s22 }
 0x1d7   :  { %720 = vrot.lane.b32.xlu0 %v2870_v29, %s2659_s22 }
 0x23e   :  { %v554_v51 = vpop.xlane.xlu0 %553 }
 0x23f   :  { %v558_v52 = vsub.f32 %v549_v43, %v554_v51 }
 0x241   :  { %v560_v53 = vmul.f32 1.442695, %v558_v52 }
 0x243   :  { %2617 = vpow2.f32 %v560_v53 }
 0x246   :  { %v557_v54 = vpop.xlane.xlu0 %556 }
 0x247   :  { %v559_v55 = vsub.f32 %v550_v49, %v557_v54 }
 0x249   :  { %v562_v56 = vmul.f32 1.442695, %v559_v55 }
 0x24a   :  { %v725_v15 = vpop.permute.xlu0 %724 }
 0x24b   :  { %2619 = vpow2.f32 %v562_v56 }
 0x24e   :  { %v721_v19 = vpop.permute.xlu0 %720 }
 0x250   :  { %v2618_v57 = vpop.eup %2617 }
 0x251   :  { %v564_v58 = vsel %vm551_vm4, %v2618_v57, 0.0 }
 0x252   :  { %565 = vadd.xlane.f32.xlu1 %v564_v58 }
 0x258   :  { %v2620_v59 = vpop.eup %2619 }
 0x259   :  { %v567_v60 = vsel %vm551_vm4, %v2620_v59, 0.0 }
 0x25a   :  { %568 = vadd.xlane.f32.xlu1 %v567_v60 }
 0x26b   :  { %802 = vrot.lane.b32.xlu1 %v2888_v32, %s2659_s22 }
 0x2db   :  { %v566_v11 = vpop.xlane.xlu1 %565 }
 0x2dc   :  { %2621 = vrcp.f32 %v566_v11 }
 0x2e3   :  { %v569_v12 = vpop.xlane.xlu1 %568 }
 0x2e4   :  { %2623 = vrcp.f32 %v569_v12 }
 0x2e7   :  { %v803_v20 = vpop.permute.xlu1 %802 }
 0x2e9   :  { %v2622_v13 = vpop.eup %2621 }
 0x2ea   :  { %v572_v14 = vmul.f32 %v2622_v13, %v2618_v57 }
 0x2ec   :  { %2456 = vmatmul.mubr.msk.f32.vlgmr.msra.gmra.mxu0 %vm551_vm4, %v572_v14 }
 0x2ed   :  { %2466 = vmatpush3.xpose.msk.msra.mxu0 %vm388_vm3, %v725_v15  ;;  %2469 = vmatprep.mubr.msk.f32.mxu0 %vm2658_vm2, %v2657_v18 }
 0x2ee   :  { %2467 = vmatprep.subr.mxu0 %v2657_v18 }
 0x2f1   :  { %v2624_v16 = vpop.eup %2623  ;;  %2468 = vmatpush3.xpose.msk.msra.mxu0 %vm388_vm3, %v723_v9 }
 0x2f2   :  { %v573_v17 = vmul.f32 %v2624_v16, %v2620_v59  ;;  %2479 = vmatprep.subr.mxu0 %v2657_v18 }
 0x2f4   :  { %2470 = vmatmul.mubr.msk.f32.vlgmr.msra.gmra.mxu0 %vm388_vm3, %v721_v19  ;;  %2463 = vmatmul.mubr.msk.f32.vlgmr.msra.gmra.mxu1 %vm551_vm4, %v573_v17 }
 0x2f5   :  { %2473 = vmatpush3.xpose.msk.msra.mxu1 %vm388_vm3, %v807_v7  ;;  %2476 = vmatprep.mubr.msk.f32.mxu1 %vm2658_vm2, %v2657_v18 }
 0x2f6   :  { %2474 = vmatprep.subr.mxu1 %v2657_v18  ;;  %2483 = vmatprep.mubr.msk.f32.mxu0 %vm2658_vm2, %v2657_v18 }
 0x2f9   :  { %2475 = vmatpush3.xpose.msk.msra.mxu1 %vm388_vm3, %v805_v10 }
 0x2fa   :  { %2486 = vmatprep.subr.mxu1 %v2657_v18 }
 0x2fc   :  { %2477 = vmatmul.mubr.msk.f32.vlgmr.msra.gmra.mxu1 %vm388_vm3, %v803_v20 }
 0x2fd   :  { %2490 = vmatprep.mubr.msk.f32.mxu1 %vm2658_vm2, %v2657_v18 }
 0x3ac   :  { %v2984_v21 = vpop.f32.mrf.mxu0 }
 0x3ae   :  { %v2457_v22 = vpop.f32.mrf.mxu0 }
 0x3b4   :  { %v798_v24 = vpop.f32.mrf.mxu0  ;;  %v2986_v25 = vpop.f32.mrf.mxu1 }
 0x3b5   :  { %v884_v26 = vmul.f32 0.30151135, %v798_v24 }
 0x3b6   :  { %v2471_v30 = vpop.f32.mrf.mxu0  ;;  %v2464_v33 = vpop.f32.mrf.mxu1 }
 0x3b7   :  { %v886_v34 = vadd.f32 %v884_v26, %v2926_v40 }
 0x3b9   :  { %v888_v35 = vsel %vm551_vm4, %v886_v34, -inf }
 0x3ba   :  { %889 = vmax.xlane.f32.xlu0 %v888_v35 }
 0x3bc   :  { %v880_v36 = vpop.f32.mrf.mxu1 }
 0x3bd   :  { %v885_v37 = vmul.f32 0.30151135, %v880_v36 }
 0x3be   :  { %v2478_v38 = vpop.f32.mrf.mxu1 }
 0x3bf   :  { %v887_v39 = vadd.f32 %v885_v37, %v2933_v46 }
 0x3c1   :  { %v891_v41 = vsel %vm551_vm4, %v887_v39, -inf }
 0x3c2   :  { %892 = vmax.xlane.f32.xlu1 %v891_v41 }
 0x3d0   :  { %914 = vrot.lane.b32.xlu0 %v2946_v63, %s2659_s22 }
 0x3d3   :  { %995 = vrot.lane.b32.xlu1 %v2955_v4, %s2659_s22 }
 0x3d4   :  { %1076 = vrot.lane.b32.xlu0 %v2854_v23, %s2660_s9 }
 0x3d7   :  { %912 = vrot.lane.b32.xlu1 %v2948_v1, %s2659_s22 }
 0x3db   :  { %993 = vrot.lane.b32.xlu1 %v2959_v6, %s2659_s22  ;;  %s2661_s22 = smov 95  }
 0x3df   :  { %1158 = vrot.lane.b32.xlu1 %v2864_v28, %s2660_s9 }
 0x3e3   :  { %1156 = vrot.lane.b32.xlu1 %v2882_v31, %s2660_s9 }
 0x3e7   :  { %1154 = vrot.lane.b32.xlu1 %v2888_v32, %s2660_s9 }
 0x443   :  { %v890_v42 = vpop.xlane.xlu0 %889 }
 0x444   :  { %v894_v43 = vsub.f32 %v886_v34, %v890_v42 }
 0x446   :  { %v896_v44 = vmul.f32 1.442695, %v894_v43 }
 0x447   :  { %v915_v45 = vpop.permute.xlu0 %914 }
 0x448   :  { %2625 = vpow2.f32 %v896_v44  ;;  %2480 = vmatpush3.msra.mxu0 %v915_v45 }
 0x449   :  { %2481 = vmatprep.subr.mxu0 %v2657_v18 }
 0x44b   :  { %v893_v47 = vpop.xlane.xlu1 %892  ;;  %v1077_v57 = vpop.permute.xlu0 %1076 }
 0x44c   :  { %v895_v48 = vsub.f32 %v887_v39, %v893_v47 }
 0x44e   :  { %v898_v49 = vmul.f32 1.442695, %v895_v48 }
 0x44f   :  { %v996_v50 = vpop.permute.xlu1 %995 }
 0x450   :  { %2627 = vpow2.f32 %v898_v49  ;;  %2487 = vmatpush3.msra.mxu1 %v996_v50 }
 0x451   :  { %2488 = vmatprep.subr.mxu1 %v2657_v18 }
 0x453   :  { %v913_v51 = vpop.permute.xlu1 %912 }
 0x454   :  { %2482 = vmatpush3.msra.mxu0 %v913_v51 }
 0x455   :  { %v2626_v52 = vpop.eup %2625  ;;  %2493 = vmatprep.subr.mxu0 %v2657_v18 }
 0x456   :  { %v900_v53 = vsel %vm551_vm4, %v2626_v52, 0.0 }
 0x457   :  { %901 = vadd.xlane.f32.xlu0 %v900_v53  ;;  %v994_v54 = vpop.permute.xlu1 %993 }
 0x458   :  { %2489 = vmatpush3.msra.mxu1 %v994_v54 }
 0x459   :  { %2500 = vmatprep.subr.mxu1 %v2657_v18 }
 0x45b   :  { %v1159_v0 = vpop.permute.xlu1 %1158 }
 0x45d   :  { %v2628_v55 = vpop.eup %2627 }
 0x45e   :  { %v903_v56 = vsel %vm551_vm4, %v2628_v55, 0.0 }
 0x45f   :  { %904 = vadd.xlane.f32.xlu0 %v903_v56  ;;  %v1157_v9 = vpop.permute.xlu1 %1156 }
 0x463   :  { %v1155_v10 = vpop.permute.xlu1 %1154 }
 0x475   :  { %1074 = vrot.lane.b32.xlu0 %v2862_v27, %s2660_s9 }
 0x479   :  { %1072 = vrot.lane.b32.xlu0 %v2870_v29, %s2660_s9 }
 0x4e0   :  { %v902_v58 = vpop.xlane.xlu0 %901 }
 0x4e1   :  { %2629 = vrcp.f32 %v902_v58 }
 0x4e8   :  { %v905_v59 = vpop.xlane.xlu0 %904 }
 0x4e9   :  { %2631 = vrcp.f32 %v905_v59 }
 0x4ec   :  { %v1075_v62 = vpop.permute.xlu0 %1074 }
 0x4ee   :  { %v2630_v60 = vpop.eup %2629 }
 0x4ef   :  { %v908_v61 = vmul.f32 %v2630_v60, %v2626_v52 }
 0x4f0   :  { %v1073_v7 = vpop.permute.xlu0 %1072 }
 0x4f1   :  { %2484 = vmatmul.mubr.msk.f32.vlgmr.msra.gmra.mxu0 %vm551_vm4, %v908_v61 }
 0x4f2   :  { %2494 = vmatpush3.xpose.msk.msra.mxu0 %vm388_vm3, %v1077_v57  ;;  %2497 = vmatprep.mubr.msk.f32.mxu0 %vm2658_vm2, %v2657_v18 }
 0x4f3   :  { %2495 = vmatprep.subr.mxu0 %v2657_v18 }
 0x4f6   :  { %v2632_v2 = vpop.eup %2631  ;;  %2496 = vmatpush3.xpose.msk.msra.mxu0 %vm388_vm3, %v1075_v62 }
 0x4f7   :  { %v909_v5 = vmul.f32 %v2632_v2, %v2628_v55  ;;  %2507 = vmatprep.subr.mxu0 %v2657_v18 }
 0x4f9   :  { %2498 = vmatmul.mubr.msk.f32.vlgmr.msra.gmra.mxu0 %vm388_vm3, %v1073_v7  ;;  %2491 = vmatmul.mubr.msk.f32.vlgmr.msra.gmra.mxu1 %vm551_vm4, %v909_v5 }
 0x4fa   :  { %2501 = vmatpush3.xpose.msk.msra.mxu1 %vm388_vm3, %v1159_v0  ;;  %2504 = vmatprep.mubr.msk.f32.mxu1 %vm2658_vm2, %v2657_v18 }
 0x4fb   :  { %2502 = vmatprep.subr.mxu1 %v2657_v18  ;;  %2511 = vmatprep.mubr.msk.f32.mxu0 %vm2658_vm2, %v2657_v18 }
 0x4fe   :  { %2503 = vmatpush3.xpose.msk.msra.mxu1 %vm388_vm3, %v1157_v9 }
 0x4ff   :  { %2514 = vmatprep.subr.mxu1 %v2657_v18 }
 0x501   :  { %2505 = vmatmul.mubr.msk.f32.vlgmr.msra.gmra.mxu1 %vm388_vm3, %v1155_v10 }
 0x502   :  { %2518 = vmatprep.mubr.msk.f32.mxu1 %vm2658_vm2, %v2657_v18 }
 0x5b1   :  { %v3038_v11 = vpop.f32.mrf.mxu0 }
 0x5b3   :  { %v2485_v12 = vpop.f32.mrf.mxu0 }
 0x5b9   :  { %v1150_v13 = vpop.f32.mrf.mxu0  ;;  %v3040_v14 = vpop.f32.mrf.mxu1 }
 0x5ba   :  { %v1236_v15 = vmul.f32 0.30151135, %v1150_v13 }
 0x5bb   :  { %v2499_v16 = vpop.f32.mrf.mxu0  ;;  %v2492_v17 = vpop.f32.mrf.mxu1 }
 0x5bc   :  { %v1238_v19 = vadd.f32 %v1236_v15, %v2926_v40 }
 0x5be   :  { %v1240_v20 = vsel %vm551_vm4, %v1238_v19, -inf }
 0x5bf   :  { %1241 = vmax.xlane.f32.xlu0 %v1240_v20 }
 0x5c1   :  { %v1232_v22 = vpop.f32.mrf.mxu1 }
 0x5c2   :  { %v1237_v24 = vmul.f32 0.30151135, %v1232_v22 }
 0x5c3   :  { %v2506_v26 = vpop.f32.mrf.mxu1 }
 0x5c4   :  { %v1239_v30 = vadd.f32 %v1237_v24, %v2933_v46 }
 0x5c6   :  { %v1243_v33 = vsel %vm551_vm4, %v1239_v30, -inf }
 0x5c7   :  { %1244 = vmax.xlane.f32.xlu1 %v1243_v33 }
 0x5d5   :  { %1264 = vrot.lane.b32.xlu0 %v2946_v63, %s2660_s9 }
 0x5d8   :  { %1343 = vrot.lane.b32.xlu1 %v2955_v4, %s2660_s9 }
 0x5d9   :  { %1424 = vrot.lane.b32.xlu0 %v2854_v23, %s2661_s22 }
 0x5dc   :  { %1262 = vrot.lane.b32.xlu1 %v2948_v1, %s2660_s9 }
 0x5e0   :  { %1341 = vrot.lane.b32.xlu1 %v2959_v6, %s2660_s9 }
 0x5e4   :  { %1506 = vrot.lane.b32.xlu1 %v2864_v28, %s2661_s22 }
 0x5e8   :  { %1504 = vrot.lane.b32.xlu1 %v2882_v31, %s2661_s22 }
 0x5ec   :  { %1502 = vrot.lane.b32.xlu1 %v2888_v32, %s2661_s22 }
 0x648   :  { %v1242_v34 = vpop.xlane.xlu0 %1241 }
 0x649   :  { %v1246_v35 = vsub.f32 %v1238_v19, %v1242_v34 }
 0x64b   :  { %v1248_v36 = vmul.f32 1.442695, %v1246_v35 }
 0x64c   :  { %v1265_v37 = vpop.permute.xlu0 %1264 }
 0x64d   :  { %2633 = vpow2.f32 %v1248_v36  ;;  %2508 = vmatpush3.msra.mxu0 %v1265_v37  ;;  %v1802_v37 = vld [vmem:[%s3264_s10 + $0x10] sm:$0xff] }
 0x64e   :  { %2509 = vmatprep.subr.mxu0 %v2657_v18 }
 0x650   :  { %v1245_v23 = vpop.xlane.xlu1 %1244  ;;  %v1425_v45 = vpop.permute.xlu0 %1424 }
 0x651   :  { %v1247_v38 = vsub.f32 %v1239_v30, %v1245_v23  ;;  %v1801_v23 = vld [vmem:[%s3264_s10 + $0x8] sm:$0xff] }
 0x653   :  { %v1250_v39 = vmul.f32 1.442695, %v1247_v38  ;;  %v1800_v38 = vld [vmem:[%s3264_s10] sm:$0xff] }
 0x654   :  { %v1344_v41 = vpop.permute.xlu1 %1343 }
 0x655   :  { %2635 = vpow2.f32 %v1250_v39  ;;  %2515 = vmatpush3.msra.mxu1 %v1344_v41 }
 0x656   :  { %2516 = vmatprep.subr.mxu1 %v2657_v18 }
 0x658   :  { %v1263_v28 = vpop.permute.xlu1 %1262 }
 0x659   :  { %2510 = vmatpush3.msra.mxu0 %v1263_v28 }
 0x65a   :  { %v2634_v31 = vpop.eup %2633  ;;  %2521 = vmatprep.subr.mxu0 %v2657_v18 }
 0x65b   :  { %v1252_v32 = vsel %vm551_vm4, %v2634_v31, 0.0 }
 0x65c   :  { %1253 = vadd.xlane.f32.xlu0 %v1252_v32  ;;  %v1342_v42 = vpop.permute.xlu1 %1341 }
 0x65d   :  { %2517 = vmatpush3.msra.mxu1 %v1342_v42 }
 0x65e   :  { %2528 = vmatprep.subr.mxu1 %v2657_v18 }
 0x662   :  { %v2636_v43 = vpop.eup %2635 }
 0x663   :  { %v1255_v44 = vsel %vm551_vm4, %v2636_v43, 0.0 }
 0x664   :  { %1256 = vadd.xlane.f32.xlu0 %v1255_v44 }
 0x67a   :  { %1422 = vrot.lane.b32.xlu0 %v2862_v27, %s2661_s22  ;;  %v1507_v27 = vpop.permute.xlu1 %1506 }
 0x67e   :  { %1420 = vrot.lane.b32.xlu0 %v2870_v29, %s2661_s22  ;;  %v1505_v54 = vpop.permute.xlu1 %1504 }
 0x682   :  { %v1503_v55 = vpop.permute.xlu1 %1502 }
 0x6e5   :  { %v1254_v47 = vpop.xlane.xlu0 %1253 }
 0x6e6   :  { %2637 = vrcp.f32 %v1254_v47 }
 0x6ed   :  { %v1257_v48 = vpop.xlane.xlu0 %1256 }
 0x6ee   :  { %2639 = vrcp.f32 %v1257_v48 }
 0x6f1   :  { %v1423_v51 = vpop.permute.xlu0 %1422 }
 0x6f3   :  { %v2638_v49 = vpop.eup %2637 }
 0x6f4   :  { %v1260_v50 = vmul.f32 %v2638_v49, %v2634_v31 }
 0x6f5   :  { %v1421_v53 = vpop.permute.xlu0 %1420 }
 0x6f6   :  { %2512 = vmatmul.mubr.msk.f32.vlgmr.msra.gmra.mxu0 %vm551_vm4, %v1260_v50 }
 0x6f7   :  { %2522 = vmatpush3.xpose.msk.msra.mxu0 %vm388_vm3, %v1425_v45  ;;  %2525 = vmatprep.mubr.msk.f32.mxu0 %vm2658_vm2, %v2657_v18 }
 0x6f8   :  { %2523 = vmatprep.subr.mxu0 %v2657_v18 }
 0x6fb   :  { %v2640_v52 = vpop.eup %2639  ;;  %2524 = vmatpush3.xpose.msk.msra.mxu0 %vm388_vm3, %v1423_v51 }
 0x6fc   :  { %v1261_v29 = vmul.f32 %v2640_v52, %v2636_v43  ;;  %2535 = vmatprep.subr.mxu0 %v2657_v18 }
 0x6fe   :  { %2526 = vmatmul.mubr.msk.f32.vlgmr.msra.gmra.mxu0 %vm388_vm3, %v1421_v53  ;;  %2519 = vmatmul.mubr.msk.f32.vlgmr.msra.gmra.mxu1 %vm551_vm4, %v1261_v29  ;;  %v2264_v29 = vld [vmem:[%s3265_s11] ss:$0 sm:$0xff] }
 0x6ff   :  { %2529 = vmatpush3.xpose.msk.msra.mxu1 %vm388_vm3, %v1507_v27  ;;  %2532 = vmatprep.mubr.msk.f32.mxu1 %vm2658_vm2, %v2657_v18 }
 0x700   :  { %2530 = vmatprep.subr.mxu1 %v2657_v18  ;;  %2539 = vmatprep.mubr.msk.f32.mxu0 %vm2658_vm2, %v2657_v18 }
 0x703   :  { %2531 = vmatpush3.xpose.msk.msra.mxu1 %vm388_vm3, %v1505_v54 }
 0x704   :  { %2542 = vmatprep.subr.mxu1 %v2657_v18 }
 0x706   :  { %2533 = vmatmul.mubr.msk.f32.vlgmr.msra.gmra.mxu1 %vm388_vm3, %v1503_v55 }
 0x707   :  { %2546 = vmatprep.mubr.msk.f32.mxu1 %vm2658_vm2, %v2657_v18 }
 0x7b6   :  { %v1337_v56 = vpop.f32.mrf.mxu0 }
 0x7b8   :  { %v2513_v57 = vpop.f32.mrf.mxu0 }
 0x7be   :  { %v1498_v58 = vpop.f32.mrf.mxu0  ;;  %v1416_v59 = vpop.f32.mrf.mxu1 }
 0x7bf   :  { %v1584_v60 = vmul.f32 0.30151135, %v1498_v58 }
 0x7c0   :  { %v2527_v61 = vpop.f32.mrf.mxu0  ;;  %v2520_v62 = vpop.f32.mrf.mxu1 }
 0x7c1   :  { %v1586_v0 = vadd.f32 %v1584_v60, %v2926_v40  ;;  %v72_v60 = vld [vmem:[%s3266_s3 + $0x8] sm:$0xff] }
 0x7c3   :  { %v1588_v2 = vsel %vm551_vm4, %v1586_v0, -inf }
 0x7c4   :  { %1589 = vmax.xlane.f32.xlu0 %v1588_v2 }
 0x7c6   :  { %v1580_v5 = vpop.f32.mrf.mxu1 }
 0x7c7   :  { %v1585_v7 = vmul.f32 0.30151135, %v1580_v5 }
 0x7c8   :  { %v2534_v9 = vpop.f32.mrf.mxu1 }
 0x7c9   :  { %v1587_v10 = vadd.f32 %v1585_v7, %v2933_v46 }
 0x7cb   :  { %v1591_v12 = vsel %vm551_vm4, %v1587_v10, -inf }
 0x7cc   :  { %1592 = vmax.xlane.f32.xlu1 %v1591_v12  ;;  %v1963_v12 = vld [vmem:[%s3267_s14 + $0x28] sm:$0x1f] }
 0x7dd   :  { %1691 = vrot.lane.b32.xlu1 %v2955_v4, %s2661_s22 }
 0x7e1   :  { %1610 = vrot.lane.b32.xlu1 %v2948_v1, %s2661_s22 }
 0x7e5   :  { %1689 = vrot.lane.b32.xlu1 %v2959_v6, %s2661_s22 }
 0x7e9   :  { %1772 = vrot.lane.b32.xlu1 %v3040_v14, %s2662_s24 }
 0x7ed   :  { %1780 = vrot.lane.b32.xlu1 %v1416_v59, %s2663_s1  ;;  %v2665_v59 = vmov 0  }
 0x7ee   :  { %2616 = vset.pattern.permute.xlu1 %v2665_v59  ;;  %2615 = vset.pattern.permute.xlu0 %v2665_v59 }
 0x84d   :  { %v1590_v40 = vpop.xlane.xlu0 %1589 }
 0x84e   :  { %v1594_v13 = vsub.f32 %v1586_v0, %v1590_v40  ;;  %v1962_v40 = vld [vmem:[%s3267_s14 + $0x20] sm:$0xff] }
 0x850   :  { %v1596_v46 = vmul.f32 1.442695, %v1594_v13  ;;  %v1961_v13 = vld [vmem:[%s3267_s14 + $0x18] sm:$0xff] }
 0x852   :  { %2641 = vpow2.f32 %v1596_v46  ;;  %v71_v46 = vld [vmem:[%s3266_s3] sm:$0xff] }
 0x855   :  { %v1593_v15 = vpop.xlane.xlu1 %1592 }
 0x856   :  { %v1595_v16 = vsub.f32 %v1587_v10, %v1593_v15  ;;  %v1960_v15 = vld [vmem:[%s3267_s14 + $0x10] sm:$0xff] }
 0x858   :  { %v1598_v17 = vmul.f32 1.442695, %v1595_v16  ;;  %v1959_v16 = vld [vmem:[%s3267_s14 + $0x8] sm:$0xff] }
 0x859   :  { %v1692_v19 = vpop.permute.xlu1 %1691 }
 0x85a   :  { %2643 = vpow2.f32 %v1598_v17  ;;  %2543 = vmatpush3.msra.mxu1 %v1692_v19  ;;  %v1958_v17 = vld [vmem:[%s3267_s14] sm:$0xff]  ;;  %v2068_v19 = vld [vmem:[%s3268_s16 + $0x58] sm:$0x7] }
 0x85b   :  { %2544 = vmatprep.subr.mxu1 %v2657_v18 }
 0x85d   :  { %v1611_v1 = vpop.permute.xlu1 %1610 }
 0x85f   :  { %v2642_v4 = vpop.eup %2641 }
 0x860   :  { %v1600_v6 = vsel %vm551_vm4, %v2642_v4, 0.0 }
 0x861   :  { %1601 = vadd.xlane.f32.xlu0 %v1600_v6  ;;  %v1690_v14 = vpop.permute.xlu1 %1689  ;;  %v2065_v6 = vld [vmem:[%s3268_s16 + $0x40] sm:$0xff] }
 0x862   :  { %2545 = vmatpush3.msra.mxu1 %v1690_v14  ;;  %v2064_v14 = vld [vmem:[%s3268_s16 + $0x38] sm:$0xff] }
 0x863   :  { %2564 = vmatprep.subr.msk.mxu1 %vm95_vm0, %v1963_v12 }
 0x865   :  { %v1773_v43 = vpop.permute.xlu1 %1772 }
 0x866   :  { %v1793_v50 = vsel %vm388_vm3, %v2986_v25, %v1773_v43 }
 0x867   :  { %v2644_v20 = vpop.eup %2643 }
 0x868   :  { %v1603_v22 = vsel %vm551_vm4, %v2644_v20, 0.0 }
 0x869   :  { %1604 = vadd.xlane.f32.xlu0 %v1603_v22  ;;  %v1781_v49 = vpop.permute.xlu1 %1780  ;;  %v2062_v22 = vld [vmem:[%s3268_s16 + $0x28] sm:$0xff] }
 0x86a   :  { %v1796_v51 = vsel %vm1794_vm7, %v1793_v50, %v1781_v49  ;;  %v2057_v49 = vld [vmem:[%s3268_s16] sm:$0xff] }
 0x86b   :  { %v2270_v50 = vld [vmem:[%s3271_s15] ss:$0 sm:$0xff] }
 0x87f   :  { %1612 = vrot.lane.b32.xlu0 %v2946_v63, %s2661_s22  ;;  %v1805_v63 = vld [vmem:[%s3264_s10 + $0x28] sm:$0xf] }
 0x883   :  { %1770 = vrot.lane.b32.xlu0 %v3038_v11, %s2662_s24  ;;  %v1804_v11 = vld [vmem:[%s3264_s10 + $0x20] sm:$0xff] }
 0x887   :  { %1778 = vrot.lane.b32.xlu0 %v1337_v56, %s2663_s1 }
 0x8ea   :  { %v1602_v24 = vpop.xlane.xlu0 %1601 }
 0x8eb   :  { %2645 = vrcp.f32 %v1602_v24  ;;  %v2061_v24 = vld [vmem:[%s3268_s16 + $0x20] sm:$0xff] }
 0x8f2   :  { %v1605_v26 = vpop.xlane.xlu0 %1604 }
 0x8f3   :  { %2647 = vrcp.f32 %v1605_v26 }
 0x8f6   :  { %v1613_v30 = vpop.permute.xlu0 %1612 }
 0x8f7   :  { %2536 = vmatpush3.msra.mxu0 %v1613_v30 }
 0x8f8   :  { %v2646_v33 = vpop.eup %2645  ;;  %2537 = vmatprep.subr.mxu0 %v2657_v18  ;;  %v1803_v18 = vld [vmem:[%s3264_s10 + $0x18] sm:$0xff] }
 0x8f9   :  { %2538 = vmatpush3.msra.mxu0 %v1611_v1  ;;  %v1608_v34 = vmul.f32 %v2646_v33, %v2642_v4  ;;  %v2067_v1 = vld [vmem:[%s3268_s16 + $0x50] sm:$0xff]  ;;  %v2066_v4 = vld [vmem:[%s3268_s16 + $0x48] sm:$0xff] }
 0x8fa   :  { %2549 = vmatprep.subr.msk.mxu0 %vm1820_vm5, %v1805_v63  ;;  %v1771_v32 = vpop.permute.xlu0 %1770 }
 0x8fb   :  { %2540 = vmatmul.mubr.msk.f32.vlgmr.msra.gmra.mxu0 %vm551_vm4, %v1608_v34  ;;  %v1792_v44 = vsel %vm388_vm3, %v2984_v21, %v1771_v32 }
 0x8fc   :  { %2550 = vmatpush3.msk.msra.mxu0 %vm1820_vm5, %v1805_v63 }
 0x8fd   :  { %2551 = vmatprep.subr.mxu0 %v1804_v11 }
 0x8fe   :  { %2552 = vmatpush3.msra.mxu0 %v1804_v11  ;;  %v1779_v42 = vpop.permute.xlu0 %1778  ;;  %v2268_v11 = vld [vmem:[%s3269_s12] ss:$0 sm:$0xff] }
 0x8ff   :  { %2553 = vmatprep.subr.mxu0 %v1803_v18  ;;  %v1795_v45 = vsel %vm1794_vm7, %v1792_v44, %v1779_v42 }
 0x900   :  { %v2648_v35 = vpop.eup %2647  ;;  %2554 = vmatpush3.msra.mxu0 %v1803_v18 }
 0x901   :  { %v1609_v36 = vmul.f32 %v2648_v35, %v2644_v20  ;;  %2555 = vmatprep.subr.mxu0 %v1802_v37  ;;  %v2063_v20 = vld [vmem:[%s3268_s16 + $0x30] sm:$0xff] }
 0x902   :  { %2556 = vmatpush3.msra.mxu0 %v1802_v37 }
 0x903   :  { %2547 = vmatmul.mubr.msk.f32.vlgmr.msra.gmra.mxu1 %vm551_vm4, %v1609_v36  ;;  %2557 = vmatprep.subr.mxu0 %v1801_v23 }
 0x904   :  { %2558 = vmatpush3.msra.mxu0 %v1801_v23  ;;  %2565 = vmatpush3.msk.msra.mxu1 %vm95_vm0, %v1963_v12 }
 0x905   :  { %2559 = vmatprep.subr.mxu0 %v1800_v38  ;;  %2566 = vmatprep.subr.mxu1 %v1962_v40 }
 0x906   :  { %2560 = vmatpush3.msra.mxu0 %v1800_v38  ;;  %2567 = vmatpush3.msra.mxu1 %v1962_v40  ;;  %v2269_v38 = vld [vmem:[%s3270_s13] ss:$0 sm:$0xff] }
 0x907   :  { %2568 = vmatprep.subr.mxu1 %v1961_v13  ;;  %2579 = vmatprep.subr.msk.mxu0 %vm2083_vm9, %v2068_v19 }
 0x908   :  { %2569 = vmatpush3.msra.mxu1 %v1961_v13 }
 0x909   :  { %2570 = vmatprep.subr.mxu1 %v1960_v15 }
 0x90a   :  { %2571 = vmatpush3.msra.mxu1 %v1960_v15 }
 0x90b   :  { %2572 = vmatprep.subr.mxu1 %v1959_v16 }
 0x90c   :  { %2573 = vmatpush3.msra.mxu1 %v1959_v16 }
 0x90d   :  { %2574 = vmatprep.subr.mxu1 %v1958_v17 }
 0x90e   :  { %2575 = vmatpush3.msra.mxu1 %v1958_v17 }
 0x9bb   :  { %v1685_v39 = vpop.f32.mrf.mxu0 }
 0x9bc   :  { %1786 = vrot.lane.b32.xlu0 %v1685_v39, %s2664_s0 }
 0x9bd   :  { %v2541_v41 = vpop.f32.mrf.mxu0 }
 0x9c3   :  { %v1764_v28 = vpop.f32.mrf.mxu1 }
 0x9c4   :  { %1788 = vrot.lane.b32.xlu1 %v1764_v28, %s2664_s0 }
 0x9c5   :  { %v2548_v31 = vpop.f32.mrf.mxu1 }
 0xa2e   :  { %v1787_v47 = vpop.permute.xlu0 %1786 }
 0xa2f   :  { %v1798_v48 = vsel %vm1797_vm6, %v1795_v45, %v1787_v47  ;;  %v2060_v45 = vld [vmem:[%s3268_s16 + $0x18] sm:$0xff]  ;;  %v2059_v47 = vld [vmem:[%s3268_s16 + $0x10] sm:$0xff] }
 0xa30   :  { %2561 = vmatprep.mubr.msk.f32.mxu0 %vm1813_vm8, %v1798_v48  ;;  %v2058_v48 = vld [vmem:[%s3268_s16 + $0x8] sm:$0xff] }
 0xa36   :  { %v1789_v27 = vpop.permute.xlu1 %1788 }
 0xa37   :  { %v1799_v52 = vsel %vm1797_vm6, %v1796_v51, %v1789_v27 }
 0xa38   :  { %2562 = vmatmul.mubr.msk.f32.vlgmr.msra.gmra.mxu0 %vm1813_vm8, %v1799_v52 }
 0xa39   :  { %2580 = vmatpush3.msk.msra.mxu0 %vm2083_vm9, %v2068_v19 }
 0xa3a   :  { %2581 = vmatprep.subr.mxu0 %v2067_v1 }
 0xa3b   :  { %2582 = vmatpush3.msra.mxu0 %v2067_v1  ;;  %v2278_v1 = vld [vmem:[%s3273_s18] ss:$0 sm:$0xff] }
 0xa3c   :  { %2583 = vmatprep.subr.mxu0 %v2066_v4 }
 0xa3d   :  { %2584 = vmatpush3.msra.mxu0 %v2066_v4 }
 0xa3e   :  { %2585 = vmatprep.subr.mxu0 %v2065_v6 }
 0xa3f   :  { %2586 = vmatpush3.msra.mxu0 %v2065_v6  ;;  %v2279_v6 = vld [vmem:[%s3274_s19] ss:$0 sm:$0xff] }
 0xa40   :  { %2587 = vmatprep.subr.mxu0 %v2064_v14 }
 0xa41   :  { %2588 = vmatpush3.msra.mxu0 %v2064_v14 }
 0xa42   :  { %2589 = vmatprep.subr.mxu0 %v2063_v20 }
 0xa43   :  { %2590 = vmatpush3.msra.mxu0 %v2063_v20 }
 0xa44   :  { %2591 = vmatprep.subr.mxu0 %v2062_v22 }
 0xa45   :  { %2592 = vmatpush3.msra.mxu0 %v2062_v22 }
 0xa46   :  { %2593 = vmatprep.subr.mxu0 %v2061_v24 }
 0xa47   :  { %2594 = vmatpush3.msra.mxu0 %v2061_v24 }
 0xa48   :  { %2595 = vmatprep.subr.mxu0 %v2060_v45 }
 0xa49   :  { %2596 = vmatpush3.msra.mxu0 %v2060_v45 }
 0xa4a   :  { %2597 = vmatprep.subr.mxu0 %v2059_v47 }
 0xa4b   :  { %2598 = vmatpush3.msra.mxu0 %v2059_v47 }
 0xa4c   :  { %2599 = vmatprep.subr.mxu0 %v2058_v48 }
 0xa4d   :  { %2600 = vmatpush3.msra.mxu0 %v2058_v48 }
 0xa4e   :  { %2601 = vmatprep.subr.mxu0 %v2057_v49 }
 0xa4f   :  { %2602 = vmatpush3.msra.mxu0 %v2057_v49 }
 0xaf8   :  { %v2563_v53 = vpop.f32.mrf.mxu0 }
 0xaf9   :  { %v1896_v54 = vadd.f32 %v2563_v53, %v2264_v29 }
 0xafa   :  { %v1890_v21 = vpop.f32.mrf.mxu0 }
 0xafb   :  { %v1891_v55 = vadd.f32 %v2264_v29, %v1890_v21  ;;  %v1900_v56 = vadd.f32 %v1896_v54, %v2805_v8  ;;  %v2274_v21 = vld [vmem:[%s3272_s17] ss:$0 sm:$0xff] }
 0xafd   :  { %v1904_v57 = vsel %vm88_vm1, %v1900_v56, 0.0  ;;  %v1899_v58 = vadd.f32 %v1891_v55, %v2785_v3 }
 0xafe   :  { %1905 = vadd.xlane.f32.xlu1 %v1904_v57 }
 0xaff   :  { %v1901_v25 = vsel %vm88_vm1, %v1899_v58, 0.0 }
 0xb00   :  { %1902 = vadd.xlane.f32.xlu0 %v1901_v25 }
 0xb0f   :  { %1953 = vperm.xlu1 %2616, %v72_v60  }
 0xb87   :  { %v1906_v61 = vpop.xlane.xlu1 %1905 }
 0xb88   :  { %v1909_v62 = vmul.f32 0.022222223, %v1906_v61 }
 0xb89   :  { %v1903_v0 = vpop.xlane.xlu0 %1902 }
 0xb8a   :  { %v3144_v8 = vsub.f32 %v1900_v56, %v1909_v62  ;;  %v1908_v2 = vmul.f32 0.022222223, %v1903_v0 }
 0xb8b   :  { %v3211_v32 = vpop.permute.xlu1 %1953 }
 0xb8c   :  { %v3146_v5 = vsub.f32 %v1899_v58, %v1908_v2  ;;  %v1913_v3 = vmul.f32 %v3144_v8, %v3144_v8 }
 0xb8e   :  { %v1917_v7 = vsel %vm88_vm1, %v1913_v3, 0.0  ;;  %v1912_v9 = vmul.f32 %v3146_v5, %v3146_v5 }
 0xb8f   :  { %1918 = vadd.xlane.f32.xlu0 %v1917_v7 }
 0xb90   :  { %v1914_v10 = vsel %vm88_vm1, %v1912_v9, 0.0 }
 0xb93   :  { %1915 = vadd.xlane.f32.xlu0 %v1914_v10 }
 0xba9   :  { %1948 = vperm.xlu0 %2615, %v71_v46  }
 0xc18   :  { %v1919_v26 = vpop.xlane.xlu0 %1918 }
 0xc19   :  { %v1921_v30 = vmul.f32 0.022222223, %v1919_v26 }
 0xc1b   :  { %v1923_v33 = vadd.f32 1e-05, %v1921_v30 }
 0xc1c   :  { %v1916_v34 = vpop.xlane.xlu0 %1915 }
 0xc1d   :  { %2649 = vrsqrt.f32 %v1923_v33  ;;  %v1920_v35 = vmul.f32 0.022222223, %v1916_v34 }
 0xc1f   :  { %v1922_v36 = vadd.f32 1e-05, %v1920_v35 }
 0xc21   :  { %2651 = vrsqrt.f32 %v1922_v36 }
 0xc24   :  { %v3209_v31 = vpop.permute.xlu0 %1948 }
 0xc2a   :  { %v2650_v63 = vpop.eup %2649 }
 0xc2b   :  { %v1927_v18 = vmul.f32 %v2650_v63, %v3144_v8 }
 0xc2d   :  { %v1936_v23 = vmul.f32 %v2268_v11, %v1927_v18 }
 0xc2e   :  { %v2652_v37 = vpop.eup %2651 }
 0xc2f   :  { %v1926_v39 = vmul.f32 %v2652_v37, %v3146_v5  ;;  %v1945_v28 = vadd.f32 %v2269_v38, %v1936_v23 }
 0xc31   :  { %v1935_v41 = vmul.f32 %v2268_v11, %v1926_v39  ;;  %v1957_v44 = vmul.f32 %v3211_v32, %v1945_v28 }
 0xc33   :  { %v1944_v42 = vadd.f32 %v2269_v38, %v1935_v41 }
 0xc35   :  { %v1956_v43 = vmul.f32 %v3209_v31, %v1944_v42 }
 0xc37   :  { %2576 = vmatprep.mubr.msk.f32.mxu1 %vm88_vm1, %v1956_v43 }
 0xc38   :  { %2577 = vmatmul.mubr.msk.f32.vlgmr.msra.gmra.mxu1 %vm88_vm1, %v1957_v44 }
 0xcf8   :  { %v2578_v51 = vpop.f32.mrf.mxu1 }
 0xcf9   :  { %v2052_v27 = vadd.f32 %v2578_v51, %v2270_v50 }
 0xcfa   :  { %v2046_v52 = vpop.f32.mrf.mxu1 }
 0xcfb   :  { %v2047_v29 = vadd.f32 %v2270_v50, %v2046_v52  ;;  %v2056_v54 = vmax.f32 %v2052_v27, 0.0 }
 0xcfd   :  { %v2055_v53 = vmax.f32 %v2047_v29, 0.0 }
 0xcff   :  { %2603 = vmatprep.mubr.msk.f32.mxu0 %vm2076_vm10, %v2055_v53 }
 0xd00   :  { %2604 = vmatmul.mubr.msk.f32.vlgmr.msra.gmra.mxu0 %vm2076_vm10, %v2056_v54 }
 0xdc0   :  { %v2605_v55 = vpop.f32.mrf.mxu0 }
 0xdc1   :  { %v2159_v56 = vadd.f32 %v2605_v55, %v2274_v21 }
 0xdc2   :  { %v2153_v57 = vpop.f32.mrf.mxu0 }
 0xdc3   :  { %v2154_v58 = vadd.f32 %v2274_v21, %v2153_v57  ;;  %v2163_v25 = vadd.f32 %v2159_v56, %v1957_v44 }
 0xdc5   :  { %v2167_v59 = vsel %vm88_vm1, %v2163_v25, 0.0  ;;  %v2162_v60 = vadd.f32 %v2154_v58, %v1956_v43 }
 0xdc6   :  { %2168 = vadd.xlane.f32.xlu0 %v2167_v59 }
 0xdc7   :  { %v2164_v61 = vsel %vm88_vm1, %v2162_v60, 0.0 }
 0xdc8   :  { %2165 = vadd.xlane.f32.xlu1 %v2164_v61 }
 0xe4f   :  { %v2169_v62 = vpop.xlane.xlu0 %2168 }
 0xe50   :  { %v2171_v0 = vmul.f32 0.022222223, %v2169_v62 }
 0xe51   :  { %v2166_v8 = vpop.xlane.xlu1 %2165 }
 0xe52   :  { %v2170_v2 = vmul.f32 0.022222223, %v2166_v8  ;;  %v2173_v5 = vsub.f32 %v2163_v25, %v2171_v0 }
 0xe54   :  { %v2172_v3 = vsub.f32 %v2162_v60, %v2170_v2  ;;  %v2175_v10 = vmul.f32 %v2173_v5, %v2173_v5 }
 0xe56   :  { %v2174_v7 = vmul.f32 %v2172_v3, %v2172_v3  ;;  %v2179_v12 = vsel %vm88_vm1, %v2175_v10, 0.0 }
 0xe58   :  { %v2176_v9 = vsel %vm88_vm1, %v2174_v7, 0.0 }
 0xe59   :  { %2177 = vadd.xlane.f32.xlu1 %v2176_v9 }
 0xe5d   :  { %2180 = vadd.xlane.f32.xlu1 %v2179_v12 }
 0xee2   :  { %v2178_v40 = vpop.xlane.xlu1 %2177 }
 0xee3   :  { %v2182_v13 = vmul.f32 0.022222223, %v2178_v40 }
 0xee5   :  { %v2184_v46 = vadd.f32 1e-05, %v2182_v13 }
 0xee6   :  { %v2181_v15 = vpop.xlane.xlu1 %2180 }
 0xee7   :  { %2653 = vrsqrt.f32 %v2184_v46  ;;  %v2183_v16 = vmul.f32 0.022222223, %v2181_v15 }
 0xee9   :  { %v2185_v17 = vadd.f32 1e-05, %v2183_v16 }
 0xeeb   :  { %2655 = vrsqrt.f32 %v2185_v17 }
 0xef4   :  { %v2654_v19 = vpop.eup %2653 }
 0xef5   :  { %v2188_v4 = vmul.f32 %v2654_v19, %v2172_v3 }
 0xef7   :  { %v2197_v14 = vmul.f32 %v2278_v1, %v2188_v4 }
 0xef8   :  { %v2656_v20 = vpop.eup %2655 }
 0xef9   :  { %v2206_v22 = vadd.f32 %v2279_v6, %v2197_v14  ;;  %v2189_v24 = vmul.f32 %v2656_v20, %v2173_v5 }
 0xefb   :  { %v2208_v26 = vmul.f32 %v2206_v22, %v3209_v31  ;;  %v2198_v30 = vmul.f32 %v2278_v1, %v2189_v24 }
 0xefd   :  { %2210 = vst.msk [vmem:[%s3275_s20] sm:$0xff] %vm88_vm1, %v2208_v26  ;;  %v2207_v33 = vadd.f32 %v2279_v6, %v2198_v30 }
 0xeff   :  { %v2209_v34 = vmul.f32 %v2207_v33, %v3211_v32 }
 0xf01   :  { %2211 = vst.msk [vmem:[%s3275_s20 + $0x8] sm:$0xff] %vm88_vm1, %v2209_v34 }

// kernel: unet_encoder_forward.4
= control target key start
LH: loop header
LB: loop body
LE: loop exit
PB: predicated region body
PF: predicated region fallthrough
CT: control target
= control target key end

     0   :  { %vm92_vm0 = vcmask 261120   ;;  %vm394_vm1 = vcmask 64512   ;;  %vm577_vm2 = vcmask 130048   ;;  %s3096_s25 = smov 104   ;;  %s3099_s30 = smov 24   ;;  %vm2068_vm3 = vcmask 195584   ;;  %s3763_s4 = inlined_call_operand.vmem [shape: f32[32,32], index: 4, kind: input, shape index: {}]   ;;  %s3764_s0 = inlined_call_operand.vmem [shape: f32[2,16,32], index: 0, kind: input, shape index: {}, may-alias: {0,1}]   ;;  %s3765_s1 = inlined_call_operand.vmem [shape: f32[2,16,32], index: 1, kind: input, shape index: {}, may-alias: {0,1}]   ;;  %s3766_s8 = inlined_call_operand.vmem [shape: f32[32,32], index: 8, kind: input, shape index: {}]   ;;  %s3767_s6 = inlined_call_operand.vmem [shape: f32[32,32], index: 6, kind: input, shape index: {}]   ;;  %s3768_s5 = inlined_call_operand.vmem [shape: f32[1,32], index: 5, kind: input, shape index: {}]   ;;  %s3769_s7 = inlined_call_operand.vmem [shape: f32[1,32], index: 7, kind: input, shape index: {}]   ;;  %s3770_s9 = inlined_call_operand.vmem [shape: f32[1,32], index: 9, kind: input, shape index: {}]   ;;  %s3771_s2 = inlined_call_operand.vmem [shape: f32[2,16,16], index: 2, kind: input, shape index: {}]   ;;  %s3772_s10 = inlined_call_operand.vmem [shape: f32[32,32], index: 10, kind: input, shape index: {}]   ;;  %s3773_s11 = inlined_call_operand.vmem [shape: f32[1,32], index: 11, kind: input, shape index: {}]   ;;  %s3774_s3 = inlined_call_operand.vmem [shape: f32[2,16,1], index: 3, kind: input, shape index: {}]   ;;  %s3775_s14 = inlined_call_operand.vmem [shape: f32[32,64], index: 14, kind: input, shape index: {}]   ;;  %s3776_s16 = inlined_call_operand.vmem [shape: f32[64,32], index: 16, kind: input, shape index: {}]   ;;  %s3777_s12 = inlined_call_operand.vmem [shape: f32[1,32], index: 12, kind: input, shape index: {}]   ;;  %s3778_s13 = inlined_call_operand.vmem [shape: f32[1,32], index: 13, kind: input, shape index: {}]   ;;  %s3779_s15 = inlined_call_operand.vmem [shape: f32[1,64], index: 15, kind: input, shape index: {}]   ;;  %s3780_s17 = inlined_call_operand.vmem [shape: f32[1,32], index: 17, kind: input, shape index: {}]   ;;  %s3781_s18 = inlined_call_operand.vmem [shape: f32[1,32], index: 18, kind: input, shape index: {}]   ;;  %s3782_s19 = inlined_call_operand.vmem [shape: f32[1,32], index: 19, kind: input, shape index: {}]   ;;  %s3783_s20 = inlined_call_operand.vmem [shape: f32[2,16,32], index: 20, kind: output, shape index: {}]  }
   0x1   :  { %3789 = sst [smem:[#allocation2_spill]] %s3763_s4  ;;  %v2599_v21 = vld [vmem:[%s3768_s5] ss:$0 sm:$0xff]  ;;  %v3353_v52 = vld [vmem:[%s3771_s2 + $0x8] sm:$0xff]  ;;  %v3359_v55 = vld [vmem:[%s3771_s2 + $0x10] sm:$0xff]  ;;  %vm2411_vm4 = vcmask 523264  }
   0x2   :  { %3790 = sst [smem:[#allocation3_spill]] %s3764_s0  ;;  %v2604_v26 = vld [vmem:[%s3769_s7] ss:$0 sm:$0xff]  ;;  %v3366_v60 = vld [vmem:[%s3771_s2 + $0x18] sm:$0xff] }
   0x3   :  { %3791 = sst [smem:[#allocation4_spill]] %s3765_s1  ;;  %v3327_v38 = vld [vmem:[%s3770_s9] ss:$0 sm:$0xff]  ;;  %s3094_s1 = smov 120  }
   0x4   :  { %3792 = sst [smem:[#allocation5_spill]] %s3766_s8  ;;  %v3348_v48 = vld [vmem:[%s3771_s2] sm:$0xff]  ;;  %s3095_s2 = smov 112  }
   0x5   :  { %3793 = sst [smem:[#allocation6_spill]] %s3767_s6  ;;  %s3097_s8 = smov 8  }
   0x6   :  { %s3794_s23 = sld [smem:[#allocation2_spill]] }
   0x7   :  { %s3795_s26 = sld [smem:[#allocation3_spill]] }
   0x8   :  { %s3796_s21 = sld [smem:[#allocation4_spill]] }
   0x9   :  { %s3797_s24 = sld [smem:[#allocation5_spill]] }
   0xa   :  { %s3798_s6 = sld [smem:[#allocation6_spill]] }
   0xc   :  { %v84_v0 = vld [vmem:[%s3794_s23 + $0x18] sm:$0xff]  ;;  %v83_v1 = vld [vmem:[%s3794_s23 + $0x10] sm:$0xff]  ;;  %v82_v3 = vld [vmem:[%s3794_s23 + $0x8] sm:$0xff] }
   0xd   :  { %2797 = vmatprep.subr.mxu1 %v84_v0  ;;  %v65_v2 = vld [vmem:[%s3795_s26] sm:$0xff]  ;;  %v66_v8 = vld [vmem:[%s3795_s26 + $0x8] sm:$0xff]  ;;  %v67_v10 = vld [vmem:[%s3795_s26 + $0x10] sm:$0xff] }
   0xe   :  { %2798 = vmatpush3.msra.mxu1 %v84_v0  ;;  %2805 = vmatprep.mubr.msk.f32.mxu1 %vm92_vm0, %v65_v2  ;;  %v81_v4 = vld [vmem:[%s3794_s23] sm:$0xff]  ;;  %v68_v12 = vld [vmem:[%s3795_s26 + $0x18] sm:$0xff]  ;;  %v70_v15 = vld [vmem:[%s3796_s21 + $0x8] sm:$0xff] }
   0xf   :  { %2799 = vmatprep.subr.mxu1 %v83_v1  ;;  %v69_v5 = vld [vmem:[%s3796_s21] sm:$0xff]  ;;  %v301_v6 = vld [vmem:[%s3797_s24 + $0x18] sm:$0xff]  ;;  %v300_v7 = vld [vmem:[%s3797_s24 + $0x10] sm:$0xff] }
  0x10   :  { %2800 = vmatpush3.msra.mxu1 %v83_v1  ;;  %2833 = vmatprep.mubr.msk.f32.mxu0 %vm92_vm0, %v69_v5  ;;  %v193_v9 = vld [vmem:[%s3798_s6 + $0x18] sm:$0xff]  ;;  %v192_v11 = vld [vmem:[%s3798_s6 + $0x10] sm:$0xff]  ;;  %v191_v13 = vld [vmem:[%s3798_s6 + $0x8] sm:$0xff] }
  0x11   :  { %2801 = vmatprep.subr.mxu1 %v82_v3  ;;  %2825 = vmatprep.subr.mxu0 %v301_v6  ;;  %v190_v14 = vld [vmem:[%s3798_s6] sm:$0xff]  ;;  %v71_v16 = vld [vmem:[%s3796_s21 + $0x10] sm:$0xff]  ;;  %v72_v17 = vld [vmem:[%s3796_s21 + $0x18] sm:$0xff]  ;;  %s3098_s21 = smov 16  }
  0x12   :  { %2802 = vmatpush3.msra.mxu1 %v82_v3  ;;  %2826 = vmatpush3.msra.mxu0 %v301_v6  ;;  %v299_v18 = vld [vmem:[%s3797_s24 + $0x8] sm:$0xff]  ;;  %v298_v19 = vld [vmem:[%s3797_s24] sm:$0xff] }
  0x13   :  { %2803 = vmatprep.subr.mxu1 %v81_v4  ;;  %2827 = vmatprep.subr.mxu0 %v300_v7 }
  0x14   :  { %2804 = vmatpush3.msra.mxu1 %v81_v4  ;;  %2828 = vmatpush3.msra.mxu0 %v300_v7 }
  0x15   :  { %2806 = vmatmul.mubr.msk.f32.vlgmr.msra.gmra.mxu1 %vm92_vm0, %v66_v8  ;;  %2811 = vmatprep.subr.mxu1 %v193_v9 }
  0x16   :  { %2812 = vmatpush3.msra.mxu1 %v193_v9  ;;  %2808 = vmatprep.mubr.msk.f32.mxu1 %vm92_vm0, %v67_v10 }
  0x17   :  { %2813 = vmatprep.subr.mxu1 %v192_v11  ;;  %2829 = vmatprep.subr.mxu0 %v299_v18 }
  0x18   :  { %2814 = vmatpush3.msra.mxu1 %v192_v11  ;;  %2830 = vmatpush3.msra.mxu0 %v299_v18 }
  0x19   :  { %2809 = vmatmul.mubr.msk.f32.gmra.mxu1 %vm92_vm0, %v68_v12  ;;  %2815 = vmatprep.subr.mxu1 %v191_v13 }
  0x1a   :  { %2816 = vmatpush3.msra.mxu1 %v191_v13  ;;  %2819 = vmatprep.mubr.msk.f32.mxu1 %vm92_vm0, %v69_v5 }
  0x1b   :  { %2817 = vmatprep.subr.mxu1 %v190_v14  ;;  %2831 = vmatprep.subr.mxu0 %v298_v19 }
  0x1c   :  { %2818 = vmatpush3.msra.mxu1 %v190_v14  ;;  %2832 = vmatpush3.msra.mxu0 %v298_v19 }
  0x1d   :  { %2820 = vmatmul.mubr.msk.f32.vlgmr.msra.gmra.mxu1 %vm92_vm0, %v70_v15  ;;  %2834 = vmatmul.mubr.msk.f32.vlgmr.msra.gmra.mxu0 %vm92_vm0, %v70_v15 }
  0x1e   :  { %2822 = vmatprep.mubr.msk.f32.mxu1 %vm92_vm0, %v71_v16  ;;  %2836 = vmatprep.mubr.msk.f32.mxu0 %vm92_vm0, %v71_v16 }
  0x21   :  { %2823 = vmatmul.mubr.msk.f32.gmra.mxu1 %vm92_vm0, %v72_v17  ;;  %2837 = vmatmul.mubr.msk.f32.gmra.mxu0 %vm92_vm0, %v72_v17 }
  0xd5   :  { %v2807_v20 = vpop.f32.mrf.mxu1 }
  0xd6   :  { %v3312_v36 = vadd.f32 %v2807_v20, %v2599_v21 }
  0xd7   :  { %v171_v22 = vpop.f32.mrf.mxu1 }
  0xd8   :  { %v3281_v23 = vadd.f32 %v2599_v21, %v171_v22 }
  0xd9   :  { %v2810_v24 = vpop.f32.mrf.mxu1 }
  0xda   :  { %2843 = vmatprep.mubr.msk.f32.mxu1 %vm394_vm1, %v3281_v23  ;;  %v3320_v37 = vadd.f32 %v2810_v24, %v2599_v21 }
  0xdb   :  { %v181_v25 = vpop.f32.mrf.mxu1 }
  0xdc   :  { %v3288_v27 = vadd.f32 %v2599_v21, %v181_v25 }
  0xdd   :  { %v2821_v28 = vpop.f32.mrf.mxu1  ;;  %v2835_v39 = vpop.f32.mrf.mxu0 }
  0xde   :  { %v3290_v29 = vadd.f32 %v2821_v28, %v2604_v26  ;;  %2850 = vmatprep.mubr.msk.f32.mxu0 %vm394_vm1, %v3288_v27  ;;  %v3330_v40 = vadd.f32 %v2835_v39, %v3327_v38 }
  0xdf   :  { %v279_v30 = vpop.f32.mrf.mxu1  ;;  %v375_v41 = vpop.f32.mrf.mxu0 }
  0xe0   :  { %v3294_v31 = vadd.f32 %v2604_v26, %v279_v30  ;;  %2839 = vmatprep.subr.msk.mxu1 %vm394_vm1, %v3290_v29  ;;  %v3333_v42 = vadd.f32 %v3327_v38, %v375_v41 }
  0xe1   :  { %v2824_v32 = vpop.f32.mrf.mxu1  ;;  %2840 = vmatpush3.xpose.msk.msra.mxu1 %vm394_vm1, %v3290_v29  ;;  %v2838_v43 = vpop.f32.mrf.mxu0 }
  0xe2   :  { %v3300_v33 = vadd.f32 %v2824_v32, %v2604_v26  ;;  %2841 = vmatprep.subr.msk.mxu1 %vm394_vm1, %v3294_v31  ;;  %v3338_v44 = vadd.f32 %v2838_v43, %v3327_v38 }
  0xe3   :  { %v289_v34 = vpop.f32.mrf.mxu1  ;;  %v3343_v46 = vpop.f32.mrf.mxu0 }
  0xe4   :  { %v3304_v35 = vadd.f32 %v2604_v26, %v289_v34  ;;  %2846 = vmatprep.subr.msk.mxu0 %vm394_vm1, %v3300_v33 }
  0xe5   :  { %2842 = vmatpush3.xpose.msk.msra.mxu1 %vm394_vm1, %v3294_v31  ;;  %2847 = vmatpush3.xpose.msk.msra.mxu0 %vm394_vm1, %v3300_v33 }
  0xe6   :  { %2848 = vmatprep.subr.msk.mxu0 %vm394_vm1, %v3304_v35  ;;  %2853 = vmatprep.subr.mxu1 %v3330_v40 }
  0xe8   :  { %2844 = vmatmul.mubr.msk.f32.vlgmr.msra.gmra.mxu1 %vm394_vm1, %v3312_v36 }
  0xe9   :  { %2849 = vmatpush3.xpose.msk.msra.mxu0 %vm394_vm1, %v3304_v35  ;;  %2854 = vmatpush3.msra.mxu1 %v3330_v40 }
  0xea   :  { %2855 = vmatprep.subr.mxu1 %v3333_v42 }
  0xeb   :  { %2856 = vmatpush3.msra.mxu1 %v3333_v42 }
  0xec   :  { %2851 = vmatmul.mubr.msk.f32.vlgmr.msra.gmra.mxu0 %vm394_vm1, %v3320_v37  ;;  %2860 = vmatprep.subr.mxu1 %v3338_v44 }
 0x1a8   :  { %v2845_v45 = vpop.f32.mrf.mxu1 }
 0x1a9   :  { %v570_v49 = vmul.f32 0.35355338, %v2845_v45 }
 0x1aa   :  { %v473_v47 = vpop.f32.mrf.mxu1 }
 0x1ab   :  { %v569_v50 = vmul.f32 0.35355338, %v473_v47  ;;  %v574_v59 = vadd.f32 %v570_v49, %v3353_v52 }
 0x1ac   :  { %v2852_v51 = vpop.f32.mrf.mxu0 }
 0x1ad   :  { %v573_v53 = vadd.f32 %v569_v50, %v3348_v48  ;;  %v572_v56 = vmul.f32 0.35355338, %v2852_v51  ;;  %v581_v63 = vsel %vm577_vm2, %v574_v59, -inf  ;;  %v3402_v51 = vadd.f32 %v3327_v38, %v3343_v46 }
 0x1ae   :  { %v560_v54 = vpop.f32.mrf.mxu0 }
 0x1af   :  { %v571_v57 = vmul.f32 0.35355338, %v560_v54  ;;  %v578_v58 = vsel %vm577_vm2, %v573_v53, -inf  ;;  %v576_v0 = vadd.f32 %v572_v56, %v3366_v60 }
 0x1b0   :  { %579 = vmax.xlane.f32.xlu0 %v578_v58 }
 0x1b1   :  { %v575_v61 = vadd.f32 %v571_v57, %v3359_v55  ;;  %v587_v1 = vsel %vm577_vm2, %v576_v0, -inf }
 0x1b3   :  { %v584_v62 = vsel %vm577_vm2, %v575_v61, -inf }
 0x1b4   :  { %585 = vmax.xlane.f32.xlu1 %v584_v62  ;;  %582 = vmax.xlane.f32.xlu0 %v581_v63 }
 0x1b8   :  { %588 = vmax.xlane.f32.xlu1 %v587_v1 }
 0x1c9   :  { %788 = vrot.lane.b32.xlu1 %v3294_v31, %s3094_s1 }
 0x1ca   :  { %790 = vrot.lane.b32.xlu0 %v3290_v29, %s3094_s1 }
 0x1cd   :  { %881 = vrot.lane.b32.xlu1 %v3300_v33, %s3094_s1 }
 0x1d1   :  { %784 = vrot.lane.b32.xlu1 %v3281_v23, %s3094_s1 }
 0x239   :  { %v580_v2 = vpop.xlane.xlu0 %579 }
 0x23a   :  { %v590_v3 = vsub.f32 %v573_v53, %v580_v2 }
 0x23c   :  { %v594_v4 = vmul.f32 1.442695, %v590_v3 }
 0x23d   :  { %v586_v5 = vpop.xlane.xlu1 %585  ;;  %v583_v6 = vpop.xlane.xlu0 %582 }
 0x23e   :  { %3010 = vpow2.f32 %v594_v4  ;;  %v592_v7 = vsub.f32 %v575_v61, %v586_v5  ;;  %v591_v8 = vsub.f32 %v574_v59, %v583_v6 }
 0x240   :  { %v598_v9 = vmul.f32 1.442695, %v592_v7  ;;  %v596_v10 = vmul.f32 1.442695, %v591_v8 }
 0x241   :  { %v589_v11 = vpop.xlane.xlu1 %588  ;;  %v791_v12 = vpop.permute.xlu0 %790 }
 0x242   :  { %3012 = vpow2.f32 %v598_v9  ;;  %v593_v13 = vsub.f32 %v576_v0, %v589_v11  ;;  %2867 = vmatprep.subr.msk.mxu0 %vm394_vm1, %v791_v12 }
 0x243   :  { %3014 = vpow2.f32 %v596_v10  ;;  %2868 = vmatpush3.xpose.msk.msra.mxu0 %vm394_vm1, %v791_v12 }
 0x244   :  { %v600_v14 = vmul.f32 1.442695, %v593_v13 }
 0x245   :  { %v789_v15 = vpop.permute.xlu1 %788 }
 0x246   :  { %3016 = vpow2.f32 %v600_v14  ;;  %2869 = vmatprep.subr.msk.mxu0 %vm394_vm1, %v789_v15 }
 0x247   :  { %2870 = vmatpush3.xpose.msk.msra.mxu0 %vm394_vm1, %v789_v15 }
 0x249   :  { %v882_v16 = vpop.permute.xlu1 %881 }
 0x24b   :  { %v3011_v17 = vpop.eup %3010 }
 0x24c   :  { %v602_v18 = vsel %vm577_vm2, %v3011_v17, 0.0 }
 0x24d   :  { %v785_v19 = vpop.permute.xlu1 %784  ;;  %603 = vadd.xlane.f32.xlu0 %v602_v18 }
 0x24e   :  { %2871 = vmatprep.mubr.msk.f32.mxu0 %vm394_vm1, %v785_v19 }
 0x24f   :  { %v3013_v20 = vpop.eup %3012 }
 0x250   :  { %v3015_v21 = vpop.eup %3014  ;;  %v608_v22 = vsel %vm577_vm2, %v3013_v20, 0.0 }
 0x251   :  { %609 = vadd.xlane.f32.xlu0 %v608_v22  ;;  %v605_v24 = vsel %vm577_vm2, %v3015_v21, 0.0 }
 0x252   :  { %606 = vadd.xlane.f32.xlu1 %v605_v24 }
 0x253   :  { %v3017_v25 = vpop.eup %3016 }
 0x254   :  { %v611_v26 = vsel %vm577_vm2, %v3017_v25, 0.0 }
 0x256   :  { %612 = vadd.xlane.f32.xlu1 %v611_v26 }
 0x267   :  { %879 = vrot.lane.b32.xlu1 %v3304_v35, %s3094_s1  ;;  %786 = vrot.lane.b32.xlu0 %v3312_v36, %s3094_s1 }
 0x26b   :  { %877 = vrot.lane.b32.xlu1 %v3320_v37, %s3094_s1  ;;  %875 = vrot.lane.b32.xlu0 %v3288_v27, %s3094_s1 }
 0x2d6   :  { %v604_v28 = vpop.xlane.xlu0 %603 }
 0x2d7   :  { %3018 = vrcp.f32 %v604_v28 }
 0x2da   :  { %v610_v30 = vpop.xlane.xlu0 %609 }
 0x2db   :  { %v607_v32 = vpop.xlane.xlu1 %606  ;;  %3020 = vrcp.f32 %v610_v30 }
 0x2dc   :  { %3022 = vrcp.f32 %v607_v32 }
 0x2de   :  { %v787_v34 = vpop.permute.xlu0 %786 }
 0x2df   :  { %v613_v39 = vpop.xlane.xlu1 %612  ;;  %2872 = vmatmul.mubr.msk.f32.vlgmr.msra.gmra.mxu0 %vm394_vm1, %v787_v34 }
 0x2e0   :  { %3024 = vrcp.f32 %v613_v39 }
 0x2e2   :  { %v876_v56 = vpop.permute.xlu0 %875 }
 0x2e3   :  { %v880_v57 = vpop.permute.xlu1 %879 }
 0x2e4   :  { %v3019_v41 = vpop.eup %3018 }
 0x2e5   :  { %v618_v43 = vmul.f32 %v3019_v41, %v3011_v17 }
 0x2e7   :  { %2857 = vmatprep.mubr.msk.f32.mxu1 %vm577_vm2, %v618_v43  ;;  %v878_v38 = vpop.permute.xlu1 %877 }
 0x2e8   :  { %v3021_v45 = vpop.eup %3020 }
 0x2e9   :  { %v3023_v47 = vpop.eup %3022  ;;  %v620_v49 = vmul.f32 %v3021_v45, %v3013_v20 }
 0x2ea   :  { %v619_v50 = vmul.f32 %v3023_v47, %v3015_v21 }
 0x2ec   :  { %2858 = vmatmul.mubr.msk.f32.vlgmr.msra.gmra.mxu1 %vm577_vm2, %v619_v50 }
 0x2ed   :  { %v3025_v53 = vpop.eup %3024  ;;  %2861 = vmatpush3.msra.mxu1 %v3338_v44  ;;  %2864 = vmatprep.mubr.msk.f32.mxu1 %vm577_vm2, %v620_v49 }
 0x2ee   :  { %2862 = vmatprep.subr.mxu1 %v3402_v51  ;;  %v621_v54 = vmul.f32 %v3025_v53, %v3017_v25 }
 0x2ef   :  { %2863 = vmatpush3.msra.mxu1 %v3402_v51 }
 0x2f0   :  { %2874 = vmatprep.subr.msk.mxu1 %vm394_vm1, %v882_v16  ;;  %2865 = vmatmul.mubr.msk.f32.vlgmr.msra.gmra.mxu1 %vm577_vm2, %v621_v54 }
 0x2f1   :  { %2875 = vmatpush3.xpose.msk.msra.mxu1 %vm394_vm1, %v882_v16  ;;  %2878 = vmatprep.mubr.msk.f32.mxu1 %vm394_vm1, %v876_v56 }
 0x2f2   :  { %2876 = vmatprep.subr.msk.mxu1 %vm394_vm1, %v880_v57 }
 0x2f5   :  { %2877 = vmatpush3.xpose.msk.msra.mxu1 %vm394_vm1, %v880_v57 }
 0x2f8   :  { %2879 = vmatmul.mubr.msk.f32.vlgmr.msra.gmra.mxu1 %vm394_vm1, %v878_v38 }
 0x39f   :  { %v2873_v46 = vpop.f32.mrf.mxu0 }
 0x3a0   :  { %v967_v58 = vmul.f32 0.35355338, %v2873_v46 }
 0x3a1   :  { %v866_v59 = vpop.f32.mrf.mxu0 }
 0x3a2   :  { %v966_v61 = vmul.f32 0.35355338, %v866_v59  ;;  %v971_v62 = vadd.f32 %v967_v58, %v3353_v52 }
 0x3a4   :  { %v977_v63 = vsel %vm577_vm2, %v971_v62, -inf  ;;  %v970_v0 = vadd.f32 %v966_v61, %v3348_v48 }
 0x3a5   :  { %978 = vmax.xlane.f32.xlu1 %v977_v63 }
 0x3a6   :  { %v974_v1 = vsel %vm577_vm2, %v970_v0, -inf }
 0x3a7   :  { %975 = vmax.xlane.f32.xlu0 %v974_v1 }
 0x3ac   :  { %v3420_v2 = vpop.f32.mrf.mxu1 }
 0x3ae   :  { %v3422_v3 = vpop.f32.mrf.mxu1 }
 0x3b0   :  { %v3424_v4 = vpop.f32.mrf.mxu1 }
 0x3b2   :  { %v3426_v5 = vpop.f32.mrf.mxu1 }
 0x3b8   :  { %v2880_v6 = vpop.f32.mrf.mxu1 }
 0x3b9   :  { %v969_v8 = vmul.f32 0.35355338, %v2880_v6 }
 0x3ba   :  { %v957_v7 = vpop.f32.mrf.mxu1 }
 0x3bb   :  { %v968_v9 = vmul.f32 0.35355338, %v957_v7  ;;  %v973_v12 = vadd.f32 %v969_v8, %v3366_v60 }
 0x3bd   :  { %v972_v10 = vadd.f32 %v968_v9, %v3359_v55  ;;  %v983_v13 = vsel %vm577_vm2, %v973_v12, -inf }
 0x3bf   :  { %v980_v11 = vsel %vm577_vm2, %v972_v10, -inf }
 0x3c0   :  { %981 = vmax.xlane.f32.xlu0 %v980_v11 }
 0x3c4   :  { %984 = vmax.xlane.f32.xlu0 %v983_v13 }
 0x42e   :  { %v979_v14 = vpop.xlane.xlu1 %978 }
 0x42f   :  { %v987_v15 = vsub.f32 %v971_v62, %v979_v14 }
 0x430   :  { %v976_v16 = vpop.xlane.xlu0 %975 }
 0x431   :  { %v992_v17 = vmul.f32 1.442695, %v987_v15  ;;  %v986_v18 = vsub.f32 %v970_v0, %v976_v16 }
 0x433   :  { %3026 = vpow2.f32 %v992_v17  ;;  %v990_v19 = vmul.f32 1.442695, %v986_v18 }
 0x435   :  { %3028 = vpow2.f32 %v990_v19 }
 0x440   :  { %v3027_v20 = vpop.eup %3026 }
 0x441   :  { %v1001_v21 = vsel %vm577_vm2, %v3027_v20, 0.0 }
 0x442   :  { %v3029_v22 = vpop.eup %3028  ;;  %1002 = vadd.xlane.f32.xlu1 %v1001_v21 }
 0x443   :  { %v998_v24 = vsel %vm577_vm2, %v3029_v22, 0.0 }
 0x444   :  { %999 = vadd.xlane.f32.xlu0 %v998_v24 }
 0x449   :  { %v982_v25 = vpop.xlane.xlu0 %981 }
 0x44a   :  { %v988_v26 = vsub.f32 %v972_v10, %v982_v25 }
 0x44c   :  { %v994_v30 = vmul.f32 1.442695, %v988_v26 }
 0x44d   :  { %v985_v28 = vpop.xlane.xlu0 %984 }
 0x44e   :  { %v989_v32 = vsub.f32 %v973_v12, %v985_v28  ;;  %3030 = vpow2.f32 %v994_v30 }
 0x450   :  { %v996_v34 = vmul.f32 1.442695, %v989_v32 }
 0x452   :  { %3032 = vpow2.f32 %v996_v34 }
 0x453   :  { %1020 = vrot.lane.b32.xlu1 %v3333_v42, %s3094_s1 }
 0x457   :  { %1111 = vrot.lane.b32.xlu1 %v3338_v44, %s3094_s1 }
 0x45a   :  { %1022 = vrot.lane.b32.xlu0 %v3330_v40, %s3094_s1 }
 0x45b   :  { %1202 = vrot.lane.b32.xlu1 %v3290_v29, %s3095_s2  ;;  %v3031_v39 = vpop.eup %3030 }
 0x45c   :  { %v1004_v41 = vsel %vm577_vm2, %v3031_v39, 0.0 }
 0x45e   :  { %1109 = vrot.lane.b32.xlu0 %v3402_v51, %s3094_s1 }
 0x45f   :  { %1200 = vrot.lane.b32.xlu1 %v3294_v31, %s3095_s2  ;;  %v3033_v43 = vpop.eup %3032 }
 0x460   :  { %v1007_v45 = vsel %vm577_vm2, %v3033_v43, 0.0 }
 0x462   :  { %1293 = vrot.lane.b32.xlu0 %v3300_v33, %s3095_s2 }
 0x463   :  { %1196 = vrot.lane.b32.xlu1 %v3281_v23, %s3095_s2 }
 0x481   :  { %1005 = vadd.xlane.f32.xlu0 %v1004_v41 }
 0x487   :  { %1008 = vadd.xlane.f32.xlu1 %v1007_v45 }
 0x497   :  { %1198 = vrot.lane.b32.xlu0 %v3312_v36, %s3095_s2 }
 0x498   :  { %1291 = vrot.lane.b32.xlu1 %v3304_v35, %s3095_s2 }
 0x49b   :  { %1287 = vrot.lane.b32.xlu0 %v3288_v27, %s3095_s2 }
 0x49c   :  { %1289 = vrot.lane.b32.xlu1 %v3320_v37, %s3095_s2 }
 0x4cb   :  { %v1003_v47 = vpop.xlane.xlu1 %1002 }
 0x4cc   :  { %3034 = vrcp.f32 %v1003_v47 }
 0x4cd   :  { %v1000_v49 = vpop.xlane.xlu0 %999 }
 0x4ce   :  { %3036 = vrcp.f32 %v1000_v49 }
 0x4cf   :  { %v1021_v50 = vpop.permute.xlu1 %1020 }
 0x4d1   :  { %v1023_v53 = vpop.permute.xlu0 %1022 }
 0x4d2   :  { %2881 = vmatprep.subr.mxu0 %v1023_v53 }
 0x4d3   :  { %v1112_v54 = vpop.permute.xlu1 %1111  ;;  %2882 = vmatpush3.msra.mxu0 %v1023_v53 }
 0x4d4   :  { %2883 = vmatprep.subr.mxu0 %v1021_v50  ;;  %2888 = vmatprep.subr.mxu1 %v1112_v54 }
 0x4d5   :  { %2884 = vmatpush3.msra.mxu0 %v1021_v50  ;;  %2889 = vmatpush3.msra.mxu1 %v1112_v54  ;;  %v1110_v56 = vpop.permute.xlu0 %1109 }
 0x4d6   :  { %2890 = vmatprep.subr.mxu1 %v1110_v56 }
 0x4d7   :  { %v1203_v57 = vpop.permute.xlu1 %1202  ;;  %2891 = vmatpush3.msra.mxu1 %v1110_v56 }
 0x4d8   :  { %2895 = vmatprep.subr.msk.mxu0 %vm394_vm1, %v1203_v57 }
 0x4d9   :  { %v1294_v38 = vpop.permute.xlu0 %1293  ;;  %v3035_v46 = vpop.eup %3034 }
 0x4da   :  { %2902 = vmatprep.subr.msk.mxu1 %vm394_vm1, %v1294_v38  ;;  %v1015_v62 = vmul.f32 %v3035_v46, %v3027_v20 }
 0x4db   :  { %v3037_v58 = vpop.eup %3036  ;;  %v1201_v59 = vpop.permute.xlu1 %1200 }
 0x4dc   :  { %v1014_v61 = vmul.f32 %v3037_v58, %v3029_v22 }
 0x4de   :  { %2885 = vmatprep.mubr.msk.f32.mxu0 %vm577_vm2, %v1014_v61 }
 0x4df   :  { %v1197_v63 = vpop.permute.xlu1 %1196  ;;  %2886 = vmatmul.mubr.msk.f32.vlgmr.msra.gmra.mxu0 %vm577_vm2, %v1015_v62 }
 0x4e0   :  { %2896 = vmatpush3.xpose.msk.msra.mxu0 %vm394_vm1, %v1203_v57  ;;  %2899 = vmatprep.mubr.msk.f32.mxu0 %vm394_vm1, %v1197_v63 }
 0x4e1   :  { %2897 = vmatprep.subr.msk.mxu0 %vm394_vm1, %v1201_v59 }
 0x4e4   :  { %2898 = vmatpush3.xpose.msk.msra.mxu0 %vm394_vm1, %v1201_v59 }
 0x50a   :  { %v1006_v0 = vpop.xlane.xlu0 %1005 }
 0x50b   :  { %3038 = vrcp.f32 %v1006_v0 }
 0x50e   :  { %v1199_v1 = vpop.permute.xlu0 %1198 }
 0x50f   :  { %2900 = vmatmul.mubr.msk.f32.vlgmr.msra.gmra.mxu0 %vm394_vm1, %v1199_v1 }
 0x510   :  { %v1009_v6 = vpop.xlane.xlu1 %1008 }
 0x511   :  { %3040 = vrcp.f32 %v1009_v6 }
 0x512   :  { %v1288_v11 = vpop.permute.xlu0 %1287 }
 0x514   :  { %v1292_v12 = vpop.permute.xlu1 %1291 }
 0x518   :  { %v3039_v7 = vpop.eup %3038  ;;  %v1290_v13 = vpop.permute.xlu1 %1289 }
 0x519   :  { %v1016_v8 = vmul.f32 %v3039_v7, %v3031_v39 }
 0x51b   :  { %2892 = vmatprep.mubr.msk.f32.mxu1 %vm577_vm2, %v1016_v8 }
 0x51e   :  { %v3041_v9 = vpop.eup %3040 }
 0x51f   :  { %v1017_v10 = vmul.f32 %v3041_v9, %v3033_v43 }
 0x521   :  { %2893 = vmatmul.mubr.msk.f32.vlgmr.msra.gmra.mxu1 %vm577_vm2, %v1017_v10 }
 0x522   :  { %2903 = vmatpush3.xpose.msk.msra.mxu1 %vm394_vm1, %v1294_v38  ;;  %2906 = vmatprep.mubr.msk.f32.mxu1 %vm394_vm1, %v1288_v11 }
 0x523   :  { %2904 = vmatprep.subr.msk.mxu1 %vm394_vm1, %v1292_v12 }
 0x526   :  { %2905 = vmatpush3.xpose.msk.msra.mxu1 %vm394_vm1, %v1292_v12 }
 0x529   :  { %2907 = vmatmul.mubr.msk.f32.vlgmr.msra.gmra.mxu1 %vm394_vm1, %v1290_v13 }
 0x59f   :  { %v3476_v14 = vpop.f32.mrf.mxu0 }
 0x5a1   :  { %v3478_v15 = vpop.f32.mrf.mxu0 }
 0x5cf   :  { %v2901_v16 = vpop.f32.mrf.mxu0 }
 0x5d0   :  { %v1379_v17 = vmul.f32 0.35355338, %v2901_v16 }
 0x5d1   :  { %v1278_v18 = vpop.f32.mrf.mxu0 }
 0x5d2   :  { %v1378_v19 = vmul.f32 0.35355338, %v1278_v18  ;;  %v1383_v20 = vadd.f32 %v1379_v17, %v3353_v52 }
 0x5d4   :  { %v1389_v21 = vsel %vm577_vm2, %v1383_v20, -inf  ;;  %v1382_v22 = vadd.f32 %v1378_v19, %v3348_v48 }
 0x5d5   :  { %1390 = vmax.xlane.f32.xlu1 %v1389_v21 }
 0x5d6   :  { %v1386_v24 = vsel %vm577_vm2, %v1382_v22, -inf }
 0x5d7   :  { %1387 = vmax.xlane.f32.xlu0 %v1386_v24 }
 0x5e1   :  { %v3484_v25 = vpop.f32.mrf.mxu1 }
 0x5e3   :  { %v3486_v26 = vpop.f32.mrf.mxu1 }
 0x5e9   :  { %v2908_v28 = vpop.f32.mrf.mxu1 }
 0x5ea   :  { %v1381_v32 = vmul.f32 0.35355338, %v2908_v28 }
 0x5eb   :  { %v1369_v30 = vpop.f32.mrf.mxu1 }
 0x5ec   :  { %v1380_v34 = vmul.f32 0.35355338, %v1369_v30  ;;  %v1385_v43 = vadd.f32 %v1381_v32, %v3366_v60 }
 0x5ee   :  { %v1384_v39 = vadd.f32 %v1380_v34, %v3359_v55  ;;  %v1395_v45 = vsel %vm577_vm2, %v1385_v43, -inf }
 0x5f0   :  { %v1392_v41 = vsel %vm577_vm2, %v1384_v39, -inf }
 0x5f1   :  { %1393 = vmax.xlane.f32.xlu0 %v1392_v41 }
 0x5f5   :  { %1396 = vmax.xlane.f32.xlu0 %v1395_v45 }
 0x65e   :  { %v1391_v47 = vpop.xlane.xlu1 %1390 }
 0x65f   :  { %v1399_v49 = vsub.f32 %v1383_v20, %v1391_v47 }
 0x660   :  { %v1388_v50 = vpop.xlane.xlu0 %1387 }
 0x661   :  { %v1404_v53 = vmul.f32 1.442695, %v1399_v49  ;;  %v1398_v54 = vsub.f32 %v1382_v22, %v1388_v50 }
 0x663   :  { %3042 = vpow2.f32 %v1404_v53  ;;  %v1402_v56 = vmul.f32 1.442695, %v1398_v54 }
 0x665   :  { %3044 = vpow2.f32 %v1402_v56 }
 0x670   :  { %v3043_v57 = vpop.eup %3042 }
 0x671   :  { %v1413_v38 = vsel %vm577_vm2, %v3043_v57, 0.0 }
 0x672   :  { %v3045_v46 = vpop.eup %3044  ;;  %1414 = vadd.xlane.f32.xlu1 %v1413_v38 }
 0x673   :  { %v1410_v58 = vsel %vm577_vm2, %v3045_v46, 0.0 }
 0x674   :  { %1411 = vadd.xlane.f32.xlu0 %v1410_v58 }
 0x67a   :  { %v1394_v59 = vpop.xlane.xlu0 %1393 }
 0x67b   :  { %v1400_v61 = vsub.f32 %v1384_v39, %v1394_v59 }
 0x67d   :  { %v1406_v63 = vmul.f32 1.442695, %v1400_v61 }
 0x67e   :  { %v1397_v62 = vpop.xlane.xlu0 %1396 }
 0x67f   :  { %v1401_v0 = vsub.f32 %v1385_v43, %v1397_v62  ;;  %3046 = vpow2.f32 %v1406_v63 }
 0x681   :  { %v1408_v1 = vmul.f32 1.442695, %v1401_v0 }
 0x683   :  { %1430 = vrot.lane.b32.xlu1 %v3333_v42, %s3095_s2  ;;  %3048 = vpow2.f32 %v1408_v1 }
 0x687   :  { %1519 = vrot.lane.b32.xlu1 %v3338_v44, %s3095_s2 }
 0x68a   :  { %1432 = vrot.lane.b32.xlu0 %v3330_v40, %s3095_s2 }
 0x68b   :  { %1610 = vrot.lane.b32.xlu1 %v3290_v29, %s3096_s25 }
 0x68c   :  { %v3047_v29 = vpop.eup %3046 }
 0x68d   :  { %v1416_v6 = vsel %vm577_vm2, %v3047_v29, 0.0 }
 0x68e   :  { %1517 = vrot.lane.b32.xlu0 %v3402_v51, %s3095_s2 }
 0x68f   :  { %1608 = vrot.lane.b32.xlu1 %v3294_v31, %s3096_s25 }
 0x690   :  { %v3049_v7 = vpop.eup %3048 }
 0x691   :  { %v1419_v31 = vsel %vm577_vm2, %v3049_v7, 0.0 }
 0x692   :  { %1701 = vrot.lane.b32.xlu0 %v3300_v33, %s3096_s25 }
 0x693   :  { %1604 = vrot.lane.b32.xlu1 %v3281_v23, %s3096_s25 }
 0x6b1   :  { %1417 = vadd.xlane.f32.xlu0 %v1416_v6 }
 0x6b7   :  { %1420 = vadd.xlane.f32.xlu1 %v1419_v31 }
 0x6c7   :  { %1606 = vrot.lane.b32.xlu0 %v3312_v36, %s3096_s25 }
 0x6c8   :  { %1699 = vrot.lane.b32.xlu1 %v3304_v35, %s3096_s25 }
 0x6cb   :  { %1695 = vrot.lane.b32.xlu0 %v3288_v27, %s3096_s25 }
 0x6cc   :  { %1697 = vrot.lane.b32.xlu1 %v3320_v37, %s3096_s25 }
 0x6fb   :  { %v1415_v23 = vpop.xlane.xlu1 %1414 }
 0x6fc   :  { %3050 = vrcp.f32 %v1415_v23 }
 0x6fd   :  { %v1412_v33 = vpop.xlane.xlu0 %1411 }
 0x6fe   :  { %3052 = vrcp.f32 %v1412_v33 }
 0x6ff   :  { %v1431_v8 = vpop.permute.xlu1 %1430 }
 0x701   :  { %v1433_v9 = vpop.permute.xlu0 %1432 }
 0x702   :  { %2909 = vmatprep.subr.mxu0 %v1433_v9 }
 0x703   :  { %v1520_v10 = vpop.permute.xlu1 %1519  ;;  %2910 = vmatpush3.msra.mxu0 %v1433_v9 }
 0x704   :  { %2911 = vmatprep.subr.mxu0 %v1431_v8  ;;  %2916 = vmatprep.subr.mxu1 %v1520_v10 }
 0x705   :  { %2912 = vmatpush3.msra.mxu0 %v1431_v8  ;;  %2917 = vmatpush3.msra.mxu1 %v1520_v10  ;;  %v1518_v35 = vpop.permute.xlu0 %1517 }
 0x706   :  { %2918 = vmatprep.subr.mxu1 %v1518_v35 }
 0x707   :  { %v1611_v36 = vpop.permute.xlu1 %1610  ;;  %2919 = vmatpush3.msra.mxu1 %v1518_v35 }
 0x708   :  { %2923 = vmatprep.subr.msk.mxu0 %vm394_vm1, %v1611_v36 }
 0x709   :  { %v1702_v27 = vpop.permute.xlu0 %1701  ;;  %v3051_v37 = vpop.eup %3050 }
 0x70a   :  { %2930 = vmatprep.subr.msk.mxu1 %vm394_vm1, %v1702_v27  ;;  %v1427_v16 = vmul.f32 %v3051_v37, %v3043_v57 }
 0x70b   :  { %v3053_v11 = vpop.eup %3052  ;;  %v1609_v12 = vpop.permute.xlu1 %1608 }
 0x70c   :  { %v1426_v13 = vmul.f32 %v3053_v11, %v3045_v46 }
 0x70e   :  { %2913 = vmatprep.mubr.msk.f32.mxu0 %vm577_vm2, %v1426_v13 }
 0x70f   :  { %v1605_v17 = vpop.permute.xlu1 %1604  ;;  %2914 = vmatmul.mubr.msk.f32.vlgmr.msra.gmra.mxu0 %vm577_vm2, %v1427_v16 }
 0x710   :  { %2924 = vmatpush3.xpose.msk.msra.mxu0 %vm394_vm1, %v1611_v36  ;;  %2927 = vmatprep.mubr.msk.f32.mxu0 %vm394_vm1, %v1605_v17 }
 0x711   :  { %2925 = vmatprep.subr.msk.mxu0 %vm394_vm1, %v1609_v12 }
 0x714   :  { %2926 = vmatpush3.xpose.msk.msra.mxu0 %vm394_vm1, %v1609_v12 }
 0x73a   :  { %v1418_v18 = vpop.xlane.xlu0 %1417 }
 0x73b   :  { %3054 = vrcp.f32 %v1418_v18 }
 0x73e   :  { %v1607_v19 = vpop.permute.xlu0 %1606 }
 0x73f   :  { %2928 = vmatmul.mubr.msk.f32.vlgmr.msra.gmra.mxu0 %vm394_vm1, %v1607_v19 }
 0x740   :  { %v1421_v20 = vpop.xlane.xlu1 %1420 }
 0x741   :  { %3056 = vrcp.f32 %v1421_v20 }
 0x742   :  { %v1696_v30 = vpop.permute.xlu0 %1695 }
 0x744   :  { %v1700_v32 = vpop.permute.xlu1 %1699 }
 0x748   :  { %v3055_v21 = vpop.eup %3054  ;;  %v1698_v34 = vpop.permute.xlu1 %1697 }
 0x749   :  { %v1428_v22 = vmul.f32 %v3055_v21, %v3047_v29 }
 0x74b   :  { %2920 = vmatprep.mubr.msk.f32.mxu1 %vm577_vm2, %v1428_v22 }
 0x74e   :  { %v3057_v24 = vpop.eup %3056 }
 0x74f   :  { %v1429_v28 = vmul.f32 %v3057_v24, %v3049_v7 }
 0x751   :  { %2921 = vmatmul.mubr.msk.f32.vlgmr.msra.gmra.mxu1 %vm577_vm2, %v1429_v28 }
 0x752   :  { %2931 = vmatpush3.xpose.msk.msra.mxu1 %vm394_vm1, %v1702_v27  ;;  %2934 = vmatprep.mubr.msk.f32.mxu1 %vm394_vm1, %v1696_v30 }
 0x753   :  { %2932 = vmatprep.subr.msk.mxu1 %vm394_vm1, %v1700_v32 }
 0x756   :  { %2933 = vmatpush3.xpose.msk.msra.mxu1 %vm394_vm1, %v1700_v32  ;;  %v2076_v32 = vld [vmem:[%s3772_s10 + $0x18] sm:$0xff] }
 0x759   :  { %2935 = vmatmul.mubr.msk.f32.vlgmr.msra.gmra.mxu1 %vm394_vm1, %v1698_v34  ;;  %v2075_v34 = vld [vmem:[%s3772_s10 + $0x10] sm:$0xff] }
 0x7cf   :  { %v2915_v39 = vpop.f32.mrf.mxu0 }
 0x7d1   :  { %v1508_v41 = vpop.f32.mrf.mxu0 }
 0x7ff   :  { %v2929_v43 = vpop.f32.mrf.mxu0 }
 0x800   :  { %v1787_v45 = vmul.f32 0.35355338, %v2929_v43 }
 0x801   :  { %v1686_v47 = vpop.f32.mrf.mxu0 }
 0x802   :  { %v1786_v49 = vmul.f32 0.35355338, %v1686_v47  ;;  %v1791_v50 = vadd.f32 %v1787_v45, %v3353_v52 }
 0x804   :  { %v1797_v53 = vsel %vm577_vm2, %v1791_v50, -inf  ;;  %v1790_v54 = vadd.f32 %v1786_v49, %v3348_v48 }
 0x805   :  { %1798 = vmax.xlane.f32.xlu1 %v1797_v53 }
 0x806   :  { %v1794_v56 = vsel %vm577_vm2, %v1790_v54, -inf }
 0x807   :  { %1795 = vmax.xlane.f32.xlu0 %v1794_v56 }
 0x811   :  { %v3540_v57 = vpop.f32.mrf.mxu1 }
 0x813   :  { %v3542_v38 = vpop.f32.mrf.mxu1 }
 0x819   :  { %v2936_v46 = vpop.f32.mrf.mxu1 }
 0x81a   :  { %v1789_v59 = vmul.f32 0.35355338, %v2936_v46 }
 0x81b   :  { %v1777_v58 = vpop.f32.mrf.mxu1 }
 0x81c   :  { %v1788_v61 = vmul.f32 0.35355338, %v1777_v58  ;;  %v1793_v63 = vadd.f32 %v1789_v59, %v3366_v60 }
 0x81e   :  { %v1792_v62 = vadd.f32 %v1788_v61, %v3359_v55  ;;  %v1803_v48 = vsel %vm577_vm2, %v1793_v63, -inf }
 0x820   :  { %v1800_v52 = vsel %vm577_vm2, %v1792_v62, -inf }
 0x821   :  { %1801 = vmax.xlane.f32.xlu0 %v1800_v52 }
 0x825   :  { %1804 = vmax.xlane.f32.xlu0 %v1803_v48 }
 0x88e   :  { %v1799_v0 = vpop.xlane.xlu1 %1798 }
 0x88f   :  { %v1807_v1 = vsub.f32 %v1791_v50, %v1799_v0 }
 0x890   :  { %v1796_v29 = vpop.xlane.xlu0 %1795 }
 0x891   :  { %v1812_v6 = vmul.f32 1.442695, %v1807_v1  ;;  %v1806_v7 = vsub.f32 %v1790_v54, %v1796_v29 }
 0x893   :  { %3058 = vpow2.f32 %v1812_v6  ;;  %v1810_v31 = vmul.f32 1.442695, %v1806_v7 }
 0x895   :  { %3060 = vpow2.f32 %v1810_v31 }
 0x8a0   :  { %v3059_v23 = vpop.eup %3058 }
 0x8a1   :  { %v1821_v33 = vsel %vm577_vm2, %v3059_v23, 0.0 }
 0x8a2   :  { %v3061_v55 = vpop.eup %3060  ;;  %1822 = vadd.xlane.f32.xlu1 %v1821_v33 }
 0x8a3   :  { %v1818_v8 = vsel %vm577_vm2, %v3061_v55, 0.0 }
 0x8a4   :  { %1819 = vadd.xlane.f32.xlu0 %v1818_v8  ;;  %v3090_v8 = vld [vmem:[%s3795_s26 + $0x8] sm:$0xff] }
 0x8aa   :  { %v1802_v60 = vpop.xlane.xlu0 %1801 }
 0x8ab   :  { %v1808_v9 = vsub.f32 %v1792_v62, %v1802_v60 }
 0x8ad   :  { %v1814_v10 = vmul.f32 1.442695, %v1808_v9 }
 0x8ae   :  { %v1805_v35 = vpop.xlane.xlu0 %1804 }
 0x8af   :  { %3062 = vpow2.f32 %v1814_v10  ;;  %v1809_v36 = vsub.f32 %v1793_v63, %v1805_v35  ;;  %v3091_v10 = vld [vmem:[%s3795_s26] sm:$0xff] }
 0x8b1   :  { %v1816_v27 = vmul.f32 1.442695, %v1809_v36 }
 0x8b3   :  { %3064 = vpow2.f32 %v1816_v27 }
 0x8bc   :  { %v3063_v37 = vpop.eup %3062 }
 0x8bd   :  { %v1824_v11 = vsel %vm577_vm2, %v3063_v37, 0.0 }
 0x8be   :  { %1825 = vadd.xlane.f32.xlu0 %v1824_v11 }
 0x8c0   :  { %v3065_v12 = vpop.eup %3064 }
 0x8c1   :  { %v1827_v13 = vsel %vm577_vm2, %v3065_v12, 0.0 }
 0x8c2   :  { %1828 = vadd.xlane.f32.xlu1 %v1827_v13  ;;  %v3092_v13 = vld [vmem:[%s3795_s26 + $0x10] sm:$0xff] }
 0x8d3   :  { %1838 = vrot.lane.b32.xlu1 %v3333_v42, %s3096_s25 }
 0x8d4   :  { %1840 = vrot.lane.b32.xlu0 %v3330_v40, %s3096_s25 }
 0x8d7   :  { %1927 = vrot.lane.b32.xlu1 %v3338_v44, %s3096_s25 }
 0x8d8   :  { %2016 = vrot.lane.b32.xlu0 %v3478_v15, %s3097_s8 }
 0x8db   :  { %1925 = vrot.lane.b32.xlu1 %v3402_v51, %s3096_s25 }
 0x8dc   :  { %2032 = vrot.lane.b32.xlu0 %v1508_v41, %s3098_s21  ;;  %v2073_v41 = vld [vmem:[%s3772_s10] sm:$0xff] }
 0x8df   :  { %2018 = vrot.lane.b32.xlu1 %v3476_v14, %s3097_s8 }
 0x8e3   :  { %2034 = vrot.lane.b32.xlu1 %v2915_v39, %s3098_s21  ;;  %v2074_v39 = vld [vmem:[%s3772_s10 + $0x8] sm:$0xff] }
 0x92b   :  { %v1823_v44 = vpop.xlane.xlu1 %1822 }
 0x92d   :  { %v1820_v42 = vpop.xlane.xlu0 %1819 }
 0x92e   :  { %3066 = vrcp.f32 %v1820_v42 }
 0x92f   :  { %3068 = vrcp.f32 %v1823_v44 }
 0x93b   :  { %v3067_v40 = vpop.eup %3066 }
 0x93c   :  { %v1834_v16 = vmul.f32 %v3067_v40, %v3061_v55  ;;  %v3069_v18 = vpop.eup %3068 }
 0x93d   :  { %v1835_v14 = vmul.f32 %v3069_v18, %v3059_v23 }
 0x93e   :  { %2941 = vmatprep.mubr.msk.f32.mxu0 %vm577_vm2, %v1834_v16  ;;  %v3093_v16 = vld [vmem:[%s3795_s26 + $0x18] sm:$0xff] }
 0x947   :  { %v1826_v15 = vpop.xlane.xlu0 %1825 }
 0x948   :  { %3070 = vrcp.f32 %v1826_v15 }
 0x94b   :  { %v1829_v17 = vpop.xlane.xlu1 %1828  ;;  %v1841_v51 = vpop.permute.xlu0 %1840 }
 0x94c   :  { %3072 = vrcp.f32 %v1829_v17  ;;  %2937 = vmatprep.subr.mxu0 %v1841_v51  ;;  %v3100_v17 = vmov 0  }
 0x94d   :  { %2938 = vmatpush3.msra.mxu0 %v1841_v51  ;;  %3009 = vset.pattern.permute.xlu1 %v3100_v17 }
 0x94e   :  { %3008 = vset.pattern.permute.xlu0 %v3100_v17 }
 0x94f   :  { %v1839_v19 = vpop.permute.xlu1 %1838  ;;  %v2017_v53 = vpop.permute.xlu0 %2016 }
 0x950   :  { %2939 = vmatprep.subr.mxu0 %v1839_v19 }
 0x951   :  { %2940 = vmatpush3.msra.mxu0 %v1839_v19 }
 0x952   :  { %2942 = vmatmul.mubr.msk.f32.vlgmr.msra.gmra.mxu0 %vm577_vm2, %v1835_v14  ;;  %2951 = vmatprep.subr.mxu0 %v2076_v32 }
 0x953   :  { %v1928_v20 = vpop.permute.xlu1 %1927  ;;  %2952 = vmatpush3.msra.mxu0 %v2076_v32  ;;  %v2033_v56 = vpop.permute.xlu0 %2032 }
 0x954   :  { %2944 = vmatprep.subr.mxu1 %v1928_v20  ;;  %2953 = vmatprep.subr.mxu0 %v2075_v34 }
 0x955   :  { %v3071_v21 = vpop.eup %3070  ;;  %2945 = vmatpush3.msra.mxu1 %v1928_v20  ;;  %2954 = vmatpush3.msra.mxu0 %v2075_v34 }
 0x956   :  { %v1836_v22 = vmul.f32 %v3071_v21, %v3063_v37  ;;  %2955 = vmatprep.subr.mxu0 %v2074_v39 }
 0x957   :  { %v1926_v24 = vpop.permute.xlu1 %1925  ;;  %2956 = vmatpush3.msra.mxu0 %v2074_v39 }
 0x958   :  { %2946 = vmatprep.subr.mxu1 %v1926_v24  ;;  %2948 = vmatprep.mubr.msk.f32.mxu1 %vm577_vm2, %v1836_v22 }
 0x959   :  { %v3073_v28 = vpop.eup %3072  ;;  %2947 = vmatpush3.msra.mxu1 %v1926_v24  ;;  %2957 = vmatprep.subr.mxu0 %v2073_v41 }
 0x95a   :  { %v1837_v30 = vmul.f32 %v3073_v28, %v3065_v12  ;;  %2958 = vmatpush3.msra.mxu0 %v2073_v41 }
 0x95b   :  { %v2019_v50 = vpop.permute.xlu1 %2018 }
 0x95c   :  { %2949 = vmatmul.mubr.msk.f32.vlgmr.msra.gmra.mxu1 %vm577_vm2, %v1837_v30 }
 0x95f   :  { %v2035_v54 = vpop.permute.xlu1 %2034 }
 0xa12   :  { %v2943_v43 = vpop.f32.mrf.mxu0 }
 0xa13   :  { %2050 = vrot.lane.b32.xlu1 %v2943_v43, %s3099_s30 }
 0xa14   :  { %v1916_v45 = vpop.f32.mrf.mxu0 }
 0xa15   :  { %2048 = vrot.lane.b32.xlu0 %v1916_v45, %s3099_s30 }
 0xa17   :  { %2022 = vrot.lane.b32.xlu1 %v3484_v25, %s3097_s8  ;;  %v2060_v25 = vsel %vm394_vm1, %v3422_v3, %v2017_v53 }
 0xa19   :  { %2020 = vrot.lane.b32.xlu0 %v3486_v26, %s3097_s8  ;;  %v2064_v26 = vsel %vm577_vm2, %v2060_v25, %v2033_v56  ;;  %v74_v56 = vld [vmem:[%s3774_s3 + $0x8] sm:$0xff]  ;;  %v73_v25 = vld [vmem:[%s3774_s3] sm:$0xff] }
 0xa1b   :  { %2038 = vrot.lane.b32.xlu1 %v3540_v57, %s3098_s21  ;;  %v2061_v57 = vsel %vm394_vm1, %v3420_v2, %v2019_v50 }
 0xa1c   :  { %v2950_v47 = vpop.f32.mrf.mxu1 }
 0xa1d   :  { %2036 = vrot.lane.b32.xlu0 %v3542_v38, %s3098_s21  ;;  %v2065_v38 = vsel %vm577_vm2, %v2061_v57, %v2035_v54  ;;  %v2287_v54 = vld [vmem:[%s3775_s14 + $0x18] sm:$0xff]  ;;  %v75_v57 = vld [vmem:[%s3774_s3 + $0x10] sm:$0xff] }
 0xa1e   :  { %v2003_v49 = vpop.f32.mrf.mxu1  ;;  %2965 = vmatprep.subr.mxu1 %v2287_v54 }
 0xa1f   :  { %2054 = vrot.lane.b32.xlu1 %v2950_v47, %s3099_s30  ;;  %2966 = vmatpush3.msra.mxu1 %v2287_v54 }
 0xa21   :  { %2052 = vrot.lane.b32.xlu0 %v2003_v49, %s3099_s30 }
 0xa85   :  { %v2051_v46 = vpop.permute.xlu1 %2050 }
 0xa86   :  { %v2070_v61 = vsel %vm2068_vm3, %v2065_v38, %v2051_v46  ;;  %v2286_v46 = vld [vmem:[%s3775_s14 + $0x10] sm:$0xff]  ;;  %v76_v38 = vld [vmem:[%s3774_s3 + $0x18] sm:$0xff] }
 0xa87   :  { %v2049_v58 = vpop.permute.xlu0 %2048  ;;  %2967 = vmatprep.subr.mxu1 %v2286_v46 }
 0xa88   :  { %v2069_v59 = vsel %vm2068_vm3, %v2064_v26, %v2049_v58  ;;  %v2285_v26 = vld [vmem:[%s3775_s14 + $0x8] sm:$0xff]  ;;  %2968 = vmatpush3.msra.mxu1 %v2286_v46  ;;  %v2284_v58 = vld [vmem:[%s3775_s14] sm:$0xff] }
 0xa89   :  { %v2023_v62 = vpop.permute.xlu1 %2022  ;;  %2959 = vmatprep.mubr.msk.f32.mxu0 %vm92_vm0, %v2069_v59  ;;  %2969 = vmatprep.subr.mxu1 %v2285_v26  ;;  %v2403_v59 = vld [vmem:[%s3776_s16 + $0x38] sm:$0xff] }
 0xa8a   :  { %2960 = vmatmul.mubr.msk.f32.vlgmr.msra.gmra.mxu0 %vm92_vm0, %v2070_v61  ;;  %v2063_v2 = vsel %vm394_vm1, %v3424_v4, %v2023_v62  ;;  %2970 = vmatpush3.msra.mxu1 %v2285_v26  ;;  %v2402_v61 = vld [vmem:[%s3776_s16 + $0x30] sm:$0xff]  ;;  %v2401_v62 = vld [vmem:[%s3776_s16 + $0x28] sm:$0xff] }
 0xa8b   :  { %v2021_v52 = vpop.permute.xlu0 %2020  ;;  %2971 = vmatprep.subr.mxu1 %v2284_v58  ;;  %2979 = vmatprep.subr.mxu0 %v2403_v59 }
 0xa8c   :  { %v2062_v48 = vsel %vm394_vm1, %v3426_v5, %v2021_v52  ;;  %v2662_v5 = vld [vmem:[%s3773_s11] ss:$0 sm:$0xff]  ;;  %2972 = vmatpush3.msra.mxu1 %v2284_v58  ;;  %2980 = vmatpush3.msra.mxu0 %v2403_v59 }
 0xa8d   :  { %v2039_v3 = vpop.permute.xlu1 %2038  ;;  %2981 = vmatprep.subr.mxu0 %v2402_v61  ;;  %v2400_v52 = vld [vmem:[%s3776_s16 + $0x20] sm:$0xff] }
 0xa8e   :  { %v2067_v6 = vsel %vm577_vm2, %v2063_v2, %v2039_v3  ;;  %2982 = vmatpush3.msra.mxu0 %v2402_v61 }
 0xa8f   :  { %v2037_v63 = vpop.permute.xlu0 %2036  ;;  %2983 = vmatprep.subr.mxu0 %v2401_v62 }
 0xa90   :  { %v2066_v1 = vsel %vm577_vm2, %v2062_v48, %v2037_v63  ;;  %2984 = vmatpush3.msra.mxu0 %v2401_v62 }
 0xa91   :  { %v2055_v0 = vpop.permute.xlu1 %2054  ;;  %2985 = vmatprep.subr.mxu0 %v2400_v52 }
 0xa92   :  { %v2072_v31 = vsel %vm2068_vm3, %v2067_v6, %v2055_v0  ;;  %2986 = vmatpush3.msra.mxu0 %v2400_v52 }
 0xa93   :  { %v2053_v29 = vpop.permute.xlu0 %2052 }
 0xa94   :  { %v2071_v7 = vsel %vm2068_vm3, %v2066_v1, %v2053_v29 }
 0xa95   :  { %2962 = vmatprep.mubr.msk.f32.mxu0 %vm92_vm0, %v2071_v7 }
 0xa96   :  { %2963 = vmatmul.mubr.msk.f32.gmra.mxu0 %vm92_vm0, %v2072_v31 }
 0xb4a   :  { %v2961_v23 = vpop.f32.mrf.mxu0 }
 0xb4b   :  { %v2168_v33 = vadd.f32 %v2961_v23, %v2662_v5  ;;  %v2667_v23 = vld [vmem:[%s3777_s12] ss:$0 sm:$0xff] }
 0xb4c   :  { %v2162_v4 = vpop.f32.mrf.mxu0 }
 0xb4d   :  { %v2163_v55 = vadd.f32 %v2662_v5, %v2162_v4  ;;  %v2182_v60 = vadd.f32 %v3090_v8, %v2168_v33 }
 0xb4f   :  { %v2188_v9 = vsel %vm92_vm0, %v2182_v60, 0.0  ;;  %v2181_v35 = vadd.f32 %v3091_v10, %v2163_v55 }
 0xb50   :  { %2189 = vadd.xlane.f32.xlu1 %v2188_v9  ;;  %v2668_v9 = vld [vmem:[%s3778_s13] ss:$0 sm:$0xff] }
 0xb51   :  { %v2185_v36 = vsel %vm92_vm0, %v2181_v35, 0.0 }
 0xb52   :  { %2186 = vadd.xlane.f32.xlu0 %v2185_v36 }
 0xb56   :  { %v2964_v27 = vpop.f32.mrf.mxu0 }
 0xb57   :  { %v2178_v11 = vadd.f32 %v2964_v27, %v2662_v5 }
 0xb58   :  { %v2172_v37 = vpop.f32.mrf.mxu0 }
 0xb59   :  { %v2173_v12 = vadd.f32 %v2662_v5, %v2172_v37  ;;  %v2184_v44 = vadd.f32 %v3093_v16, %v2178_v11 }
 0xb5b   :  { %v2183_v42 = vadd.f32 %v3092_v13, %v2173_v12  ;;  %v2194_v15 = vsel %vm92_vm0, %v2184_v44, 0.0 }
 0xb5d   :  { %v2191_v40 = vsel %vm92_vm0, %v2183_v42, 0.0 }
 0xb5e   :  { %2192 = vadd.xlane.f32.xlu0 %v2191_v40 }
 0xb62   :  { %2195 = vadd.xlane.f32.xlu0 %v2194_v15 }
 0xbd9   :  { %v2190_v51 = vpop.xlane.xlu1 %2189 }
 0xbda   :  { %v2199_v18 = vmul.f32 0.03125, %v2190_v51 }
 0xbdb   :  { %v2187_v19 = vpop.xlane.xlu0 %2186 }
 0xbdc   :  { %v3629_v14 = vsub.f32 %v2182_v60, %v2199_v18  ;;  %v2198_v20 = vmul.f32 0.03125, %v2187_v19 }
 0xbde   :  { %v3631_v21 = vsub.f32 %v2181_v35, %v2198_v20  ;;  %v2207_v22 = vmul.f32 %v3629_v14, %v3629_v14 }
 0xbe0   :  { %v2213_v24 = vsel %vm92_vm0, %v2207_v22, 0.0  ;;  %v2206_v28 = vmul.f32 %v3631_v21, %v3631_v21  ;;  %v2399_v22 = vld [vmem:[%s3776_s16 + $0x18] sm:$0xff] }
 0xbe1   :  { %2214 = vadd.xlane.f32.xlu1 %v2213_v24  ;;  %2987 = vmatprep.subr.mxu0 %v2399_v22  ;;  %v2398_v24 = vld [vmem:[%s3776_s16 + $0x10] sm:$0xff] }
 0xbe2   :  { %v2210_v30 = vsel %vm92_vm0, %v2206_v28, 0.0  ;;  %2988 = vmatpush3.msra.mxu0 %v2399_v22  ;;  %v2397_v28 = vld [vmem:[%s3776_s16 + $0x8] sm:$0xff] }
 0xbe3   :  { %2211 = vadd.xlane.f32.xlu0 %v2210_v30  ;;  %2989 = vmatprep.subr.mxu0 %v2398_v24  ;;  %v2396_v30 = vld [vmem:[%s3776_s16] sm:$0xff] }
 0xbe4   :  { %2990 = vmatpush3.msra.mxu0 %v2398_v24 }
 0xbe5   :  { %2991 = vmatprep.subr.mxu0 %v2397_v28 }
 0xbe6   :  { %2992 = vmatpush3.msra.mxu0 %v2397_v28 }
 0xbe7   :  { %v2193_v32 = vpop.xlane.xlu0 %2192  ;;  %2993 = vmatprep.subr.mxu0 %v2396_v30 }
 0xbe8   :  { %v2200_v34 = vmul.f32 0.03125, %v2193_v32  ;;  %2994 = vmatpush3.msra.mxu0 %v2396_v30  ;;  %v2669_v32 = vld [vmem:[%s3779_s15] ss:$0 sm:$0xff] }
 0xbe9   :  { %v2679_v30 = vld [vmem:[%s3781_s18] ss:$0 sm:$0xff] }
 0xbea   :  { %v3639_v39 = vsub.f32 %v2183_v42, %v2200_v34 }
 0xbeb   :  { %v2196_v41 = vpop.xlane.xlu0 %2195 }
 0xbec   :  { %v2201_v43 = vmul.f32 0.03125, %v2196_v41  ;;  %v2208_v45 = vmul.f32 %v3639_v39, %v3639_v39 }
 0xbee   :  { %v3643_v47 = vsub.f32 %v2184_v44, %v2201_v43  ;;  %v2216_v49 = vsel %vm92_vm0, %v2208_v45, 0.0 }
 0xbef   :  { %2217 = vadd.xlane.f32.xlu0 %v2216_v49 }
 0xbf0   :  { %v2209_v50 = vmul.f32 %v3643_v47, %v3643_v47 }
 0xbf2   :  { %v2219_v53 = vsel %vm92_vm0, %v2209_v50, 0.0 }
 0xbf3   :  { %2220 = vadd.xlane.f32.xlu1 %v2219_v53 }
 0xc04   :  { %2267 = vperm.xlu1 %3009, %v74_v56  }
 0xc05   :  { %2262 = vperm.xlu0 %3008, %v73_v25   ;;  %v2674_v25 = vld [vmem:[%s3780_s17] ss:$0 sm:$0xff] }
 0xc08   :  { %2272 = vperm.xlu1 %3009, %v75_v57  }
 0xc0c   :  { %2277 = vperm.xlu1 %3009, %v76_v38  }
 0xc6a   :  { %v2215_v3 = vpop.xlane.xlu1 %2214 }
 0xc6b   :  { %v2223_v63 = vmul.f32 0.03125, %v2215_v3 }
 0xc6c   :  { %v2212_v48 = vpop.xlane.xlu0 %2211 }
 0xc6d   :  { %v2227_v0 = vadd.f32 1e-05, %v2223_v63  ;;  %v2222_v2 = vmul.f32 0.03125, %v2212_v48 }
 0xc6f   :  { %3074 = vrsqrt.f32 %v2227_v0  ;;  %v2226_v1 = vadd.f32 1e-05, %v2222_v2 }
 0xc71   :  { %3076 = vrsqrt.f32 %v2226_v1 }
 0xc78   :  { %v2218_v29 = vpop.xlane.xlu0 %2217 }
 0xc79   :  { %v2224_v6 = vmul.f32 0.03125, %v2218_v29 }
 0xc7b   :  { %v2228_v7 = vadd.f32 1e-05, %v2224_v6 }
 0xc7c   :  { %v3075_v31 = vpop.eup %3074  ;;  %v2221_v5 = vpop.xlane.xlu1 %2220 }
 0xc7d   :  { %3078 = vrsqrt.f32 %v2228_v7  ;;  %v2225_v33 = vmul.f32 0.03125, %v2221_v5  ;;  %v2235_v4 = vmul.f32 %v3075_v31, %v3629_v14 }
 0xc7e   :  { %v3077_v55 = vpop.eup %3076 }
 0xc7f   :  { %v2229_v8 = vadd.f32 1e-05, %v2225_v33  ;;  %v2246_v60 = vmul.f32 %v2667_v23, %v2235_v4  ;;  %v2234_v10 = vmul.f32 %v3077_v55, %v3631_v21 }
 0xc80   :  { %v3693_v27 = vpop.permute.xlu0 %2262  ;;  %v3695_v37 = vpop.permute.xlu1 %2267 }
 0xc81   :  { %3080 = vrsqrt.f32 %v2229_v8  ;;  %v2245_v35 = vmul.f32 %v2667_v23, %v2234_v10  ;;  %v2257_v36 = vadd.f32 %v2668_v9, %v2246_v60 }
 0xc83   :  { %v2256_v11 = vadd.f32 %v2668_v9, %v2245_v35  ;;  %v2281_v13 = vmul.f32 %v3695_v37, %v2257_v36 }
 0xc84   :  { %v3702_v15 = vpop.permute.xlu1 %2272 }
 0xc85   :  { %v2280_v12 = vmul.f32 %v3693_v27, %v2256_v11 }
 0xc87   :  { %2973 = vmatprep.mubr.msk.f32.mxu1 %vm92_vm0, %v2280_v12 }
 0xc88   :  { %2974 = vmatmul.mubr.msk.f32.vlgmr.msra.gmra.mxu1 %vm92_vm0, %v2281_v13  ;;  %v3707_v20 = vpop.permute.xlu1 %2277 }
 0xc8a   :  { %v3079_v42 = vpop.eup %3078 }
 0xc8b   :  { %v2236_v40 = vmul.f32 %v3079_v42, %v3639_v39 }
 0xc8d   :  { %v2247_v16 = vmul.f32 %v2667_v23, %v2236_v40 }
 0xc8e   :  { %v3081_v44 = vpop.eup %3080 }
 0xc8f   :  { %v2258_v17 = vadd.f32 %v2668_v9, %v2247_v16  ;;  %v2237_v51 = vmul.f32 %v3081_v44, %v3643_v47 }
 0xc91   :  { %v2282_v18 = vmul.f32 %v3702_v15, %v2258_v17  ;;  %v2248_v19 = vmul.f32 %v2667_v23, %v2237_v51 }
 0xc93   :  { %v2259_v14 = vadd.f32 %v2668_v9, %v2248_v19  ;;  %2976 = vmatprep.mubr.msk.f32.mxu1 %vm92_vm0, %v2282_v18 }
 0xc95   :  { %v2283_v21 = vmul.f32 %v3707_v20, %v2259_v14 }
 0xc97   :  { %2977 = vmatmul.mubr.msk.f32.gmra.mxu1 %vm92_vm0, %v2283_v21 }
 0xd48   :  { %v2975_v34 = vpop.f32.mrf.mxu1 }
 0xd49   :  { %v2379_v39 = vadd.f32 %v2975_v34, %v2669_v32 }
 0xd4a   :  { %v2373_v41 = vpop.f32.mrf.mxu1 }
 0xd4b   :  { %v2374_v43 = vadd.f32 %v2669_v32, %v2373_v41  ;;  %v2393_v47 = vmax.f32 %v2379_v39, 0.0  ;;  %v2680_v41 = vld [vmem:[%s3782_s19] ss:$0 sm:$0xff] }
 0xd4d   :  { %v2392_v45 = vmax.f32 %v2374_v43, 0.0 }
 0xd4f   :  { %2995 = vmatprep.mubr.msk.f32.mxu0 %vm2411_vm4, %v2392_v45 }
 0xd50   :  { %2996 = vmatmul.mubr.msk.f32.vlgmr.msra.gmra.mxu0 %vm2411_vm4, %v2393_v47 }
 0xd57   :  { %v2978_v49 = vpop.f32.mrf.mxu1 }
 0xd58   :  { %v2389_v50 = vadd.f32 %v2978_v49, %v2669_v32 }
 0xd59   :  { %v2383_v53 = vpop.f32.mrf.mxu1 }
 0xd5a   :  { %v2384_v54 = vadd.f32 %v2669_v32, %v2383_v53  ;;  %v2395_v46 = vmax.f32 %v2389_v50, 0.0 }
 0xd5c   :  { %v2394_v56 = vmax.f32 %v2384_v54, 0.0 }
 0xd5e   :  { %2998 = vmatprep.mubr.msk.f32.mxu0 %vm2411_vm4, %v2394_v56 }
 0xd5f   :  { %2999 = vmatmul.mubr.msk.f32.gmra.mxu0 %vm2411_vm4, %v2395_v46 }
 0xe10   :  { %v2997_v26 = vpop.f32.mrf.mxu0 }
 0xe11   :  { %v2496_v57 = vadd.f32 %v2997_v26, %v2674_v25 }
 0xe12   :  { %v2490_v58 = vpop.f32.mrf.mxu0 }
 0xe13   :  { %v2491_v38 = vadd.f32 %v2674_v25, %v2490_v58  ;;  %v2510_v59 = vadd.f32 %v2496_v57, %v2281_v13 }
 0xe15   :  { %v2516_v61 = vsel %vm92_vm0, %v2510_v59, 0.0  ;;  %v2509_v62 = vadd.f32 %v2491_v38, %v2280_v12 }
 0xe16   :  { %2517 = vadd.xlane.f32.xlu0 %v2516_v61 }
 0xe17   :  { %v2513_v52 = vsel %vm92_vm0, %v2509_v62, 0.0 }
 0xe18   :  { %2514 = vadd.xlane.f32.xlu1 %v2513_v52 }
 0xe1f   :  { %v3000_v3 = vpop.f32.mrf.mxu0 }
 0xe20   :  { %v2506_v48 = vadd.f32 %v3000_v3, %v2674_v25 }
 0xe21   :  { %v2500_v63 = vpop.f32.mrf.mxu0 }
 0xe22   :  { %v2501_v0 = vadd.f32 %v2674_v25, %v2500_v63  ;;  %v2512_v1 = vadd.f32 %v2506_v48, %v2283_v21 }
 0xe24   :  { %v2511_v2 = vadd.f32 %v2501_v0, %v2282_v18  ;;  %v2522_v6 = vsel %vm92_vm0, %v2512_v1, 0.0 }
 0xe26   :  { %v2519_v29 = vsel %vm92_vm0, %v2511_v2, 0.0 }
 0xe27   :  { %2520 = vadd.xlane.f32.xlu1 %v2519_v29 }
 0xe2b   :  { %2523 = vadd.xlane.f32.xlu1 %v2522_v6 }
 0xe9f   :  { %v2518_v7 = vpop.xlane.xlu0 %2517 }
 0xea0   :  { %v2526_v31 = vmul.f32 0.03125, %v2518_v7 }
 0xea1   :  { %v2515_v5 = vpop.xlane.xlu1 %2514 }
 0xea2   :  { %v2525_v23 = vmul.f32 0.03125, %v2515_v5  ;;  %v2530_v33 = vsub.f32 %v2510_v59, %v2526_v31 }
 0xea4   :  { %v2529_v4 = vsub.f32 %v2509_v62, %v2525_v23  ;;  %v2534_v60 = vmul.f32 %v2530_v33, %v2530_v33 }
 0xea6   :  { %v2533_v55 = vmul.f32 %v2529_v4, %v2529_v4  ;;  %v2540_v9 = vsel %vm92_vm0, %v2534_v60, 0.0 }
 0xea8   :  { %v2537_v8 = vsel %vm92_vm0, %v2533_v55, 0.0 }
 0xea9   :  { %2538 = vadd.xlane.f32.xlu1 %v2537_v8 }
 0xead   :  { %2541 = vadd.xlane.f32.xlu1 %v2540_v9 }
 0xeb0   :  { %v2521_v10 = vpop.xlane.xlu1 %2520 }
 0xeb1   :  { %v2527_v35 = vmul.f32 0.03125, %v2521_v10 }
 0xeb3   :  { %v2531_v36 = vsub.f32 %v2511_v2, %v2527_v35 }
 0xeb4   :  { %v2524_v11 = vpop.xlane.xlu1 %2523 }
 0xeb5   :  { %v2528_v12 = vmul.f32 0.03125, %v2524_v11  ;;  %v2535_v13 = vmul.f32 %v2531_v36, %v2531_v36 }
 0xeb7   :  { %v2532_v42 = vsub.f32 %v2512_v1, %v2528_v12  ;;  %v2543_v40 = vsel %vm92_vm0, %v2535_v13, 0.0 }
 0xeb8   :  { %2544 = vadd.xlane.f32.xlu0 %v2543_v40 }
 0xeb9   :  { %v2536_v16 = vmul.f32 %v2532_v42, %v2532_v42 }
 0xebb   :  { %v2546_v44 = vsel %vm92_vm0, %v2536_v16, 0.0 }
 0xebc   :  { %2547 = vadd.xlane.f32.xlu1 %v2546_v44 }
 0xf32   :  { %v2539_v17 = vpop.xlane.xlu1 %2538 }
 0xf33   :  { %v2549_v51 = vmul.f32 0.03125, %v2539_v17 }
 0xf35   :  { %v2553_v18 = vadd.f32 1e-05, %v2549_v51 }
 0xf36   :  { %v2542_v19 = vpop.xlane.xlu1 %2541 }
 0xf37   :  { %3082 = vrsqrt.f32 %v2553_v18  ;;  %v2550_v14 = vmul.f32 0.03125, %v2542_v19 }
 0xf39   :  { %v2554_v21 = vadd.f32 1e-05, %v2550_v14 }
 0xf3b   :  { %3084 = vrsqrt.f32 %v2554_v21 }
 0xf41   :  { %v2545_v22 = vpop.xlane.xlu0 %2544 }
 0xf42   :  { %v2551_v24 = vmul.f32 0.03125, %v2545_v22 }
 0xf44   :  { %v3083_v28 = vpop.eup %3082  ;;  %v2555_v32 = vadd.f32 1e-05, %v2551_v24 }
 0xf45   :  { %v2561_v34 = vmul.f32 %v3083_v28, %v2529_v4  ;;  %v2548_v39 = vpop.xlane.xlu1 %2547 }
 0xf46   :  { %3086 = vrsqrt.f32 %v2555_v32  ;;  %v2552_v43 = vmul.f32 0.03125, %v2548_v39 }
 0xf47   :  { %v2572_v45 = vmul.f32 %v2679_v30, %v2561_v34 }
 0xf48   :  { %v3085_v47 = vpop.eup %3084  ;;  %v2556_v49 = vadd.f32 1e-05, %v2552_v43 }
 0xf49   :  { %v2583_v50 = vadd.f32 %v2680_v41, %v2572_v45  ;;  %v2562_v53 = vmul.f32 %v3085_v47, %v2530_v33 }
 0xf4a   :  { %3088 = vrsqrt.f32 %v2556_v49 }
 0xf4b   :  { %v2587_v54 = vmul.f32 %v2583_v50, %v3693_v27  ;;  %v2573_v56 = vmul.f32 %v2679_v30, %v2562_v53 }
 0xf4d   :  { %2591 = vst.msk [vmem:[%s3783_s20] sm:$0xff] %vm92_vm0, %v2587_v54  ;;  %v2584_v46 = vadd.f32 %v2680_v41, %v2573_v56 }
 0xf4f   :  { %v2588_v25 = vmul.f32 %v2584_v46, %v3695_v37 }
 0xf51   :  { %2592 = vst.msk [vmem:[%s3783_s20 + $0x8] sm:$0xff] %vm92_vm0, %v2588_v25 }
 0xf53   :  { %v3087_v26 = vpop.eup %3086 }
 0xf54   :  { %v2563_v57 = vmul.f32 %v3087_v26, %v2531_v36 }
 0xf56   :  { %v2574_v58 = vmul.f32 %v2679_v30, %v2563_v57 }
 0xf57   :  { %v3089_v38 = vpop.eup %3088 }
 0xf58   :  { %v2585_v59 = vadd.f32 %v2680_v41, %v2574_v58  ;;  %v2564_v27 = vmul.f32 %v3089_v38, %v2532_v42 }
 0xf5a   :  { %v2589_v61 = vmul.f32 %v2585_v59, %v3702_v15  ;;  %v2575_v62 = vmul.f32 %v2679_v30, %v2564_v27 }
 0xf5c   :  { %2593 = vst.msk [vmem:[%s3783_s20 + $0x10] sm:$0xff] %vm92_vm0, %v2589_v61  ;;  %v2586_v37 = vadd.f32 %v2680_v41, %v2575_v62 }
 0xf5e   :  { %v2590_v52 = vmul.f32 %v2586_v37, %v3707_v20 }
 0xf60   :  { %2594 = vst.msk [vmem:[%s3783_s20 + $0x18] sm:$0xff] %vm92_vm0, %v2590_v52 }

// kernel: unet_encoder_forward.6
= control target key start
LH: loop header
LB: loop body
LE: loop exit
PB: predicated region body
PF: predicated region fallthrough
CT: control target
= control target key end

     0   :  { %vm90_vm0 = vcmask 261120   ;;  %vm366_vm1 = vcmask 89088   ;;  %vm543_vm2 = vcmask 64512   ;;  %s2982_s28 = smov 117   ;;  %s2985_s29 = smov 11   ;;  %vm2022_vm3 = vcmask 1043456   ;;  %s3590_s4 = inlined_call_operand.vmem [shape: f32[32,44], index: 4, kind: input, shape index: {}]   ;;  %s3591_s0 = inlined_call_operand.vmem [shape: f32[2,16,32], index: 0, kind: input, shape index: {}]   ;;  %s3592_s6 = inlined_call_operand.vmem [shape: f32[32,44], index: 6, kind: input, shape index: {}]   ;;  %s3593_s1 = inlined_call_operand.vmem [shape: f32[2,8,32], index: 1, kind: input, shape index: {}]   ;;  %s3594_s5 = inlined_call_operand.vmem [shape: f32[1,44], index: 5, kind: input, shape index: {}]   ;;  %s3595_s7 = inlined_call_operand.vmem [shape: f32[1,44], index: 7, kind: input, shape index: {}]   ;;  %s3596_s8 = inlined_call_operand.vmem [shape: f32[32,44], index: 8, kind: input, shape index: {}]   ;;  %s3597_s2 = inlined_call_operand.vmem [shape: f32[2,16,8], index: 2, kind: input, shape index: {}]   ;;  %s3598_s9 = inlined_call_operand.vmem [shape: f32[1,44], index: 9, kind: input, shape index: {}]   ;;  %s3599_s10 = inlined_call_operand.vmem [shape: f32[44,32], index: 10, kind: input, shape index: {}]   ;;  %s3600_s11 = inlined_call_operand.vmem [shape: f32[1,32], index: 11, kind: input, shape index: {}]   ;;  %s3601_s3 = inlined_call_operand.vmem [shape: f32[2,16,1], index: 3, kind: input, shape index: {}]   ;;  %s3602_s14 = inlined_call_operand.vmem [shape: f32[32,91], index: 14, kind: input, shape index: {}]   ;;  %s3603_s16 = inlined_call_operand.vmem [shape: f32[91,32], index: 16, kind: input, shape index: {}]   ;;  %s3604_s12 = inlined_call_operand.vmem [shape: f32[1,32], index: 12, kind: input, shape index: {}]   ;;  %s3605_s13 = inlined_call_operand.vmem [shape: f32[1,32], index: 13, kind: input, shape index: {}]   ;;  %s3606_s15 = inlined_call_operand.vmem [shape: f32[1,91], index: 15, kind: input, shape index: {}]   ;;  %s3607_s17 = inlined_call_operand.vmem [shape: f32[1,32], index: 17, kind: input, shape index: {}]   ;;  %s3608_s18 = inlined_call_operand.vmem [shape: f32[1,32], index: 18, kind: input, shape index: {}]   ;;  %s3609_s19 = inlined_call_operand.vmem [shape: f32[1,32], index: 19, kind: input, shape index: {}]   ;;  %s3610_s20 = inlined_call_operand.vmem [shape: f32[2,16,32], index: 20, kind: output, shape index: {}]  }
   0x1   :  { %3615 = sst [smem:[#allocation2_spill]] %s3590_s4  ;;  %v2542_v21 = vld [vmem:[%s3595_s7] ss:$0 sm:$0xff]  ;;  %v283_v28 = vld [vmem:[%s3596_s8 + $0x18] sm:$0xff]  ;;  %v282_v29 = vld [vmem:[%s3596_s8 + $0x10] sm:$0xff]  ;;  %s2986_s30 = smov 22  }
   0x2   :  { %3616 = sst [smem:[#allocation3_spill]] %s3591_s0  ;;  %v281_v30 = vld [vmem:[%s3596_s8 + $0x8] sm:$0xff]  ;;  %v280_v31 = vld [vmem:[%s3596_s8] sm:$0xff]  ;;  %v3204_v41 = vld [vmem:[%s3597_s2 + $0x10] sm:$0xff]  ;;  %s2987_s7 = smov 33   ;;  %vm1986_vm4 = vcmask 179200  }
   0x3   :  { %3617 = sst [smem:[#allocation4_spill]] %s3592_s6  ;;  %v3193_v34 = vld [vmem:[%s3597_s2] sm:$0xff]  ;;  %v3198_v38 = vld [vmem:[%s3597_s2 + $0x8] sm:$0xff]  ;;  %v3211_v46 = vld [vmem:[%s3597_s2 + $0x18] sm:$0xff]  ;;  %vm1991_vm5 = vcmask 269312   ;;  %vm2009_vm6 = vcmask 359424  }
   0x4   :  { %3618 = sst [smem:[#allocation5_spill]] %s3593_s1  ;;  %vm2358_vm7 = vcmask 1042432   ;;  %vm2345_vm8 = vcmask 744448  }
   0x5   :  { %3619 = sst [smem:[#allocation6_spill]] %s3594_s5  ;;  %s2984_s5 = smov 95  }
   0x6   :  { %s3620_s23 = sld [smem:[#allocation2_spill]] }
   0x7   :  { %s3621_s26 = sld [smem:[#allocation3_spill]] }
   0x8   :  { %s3622_s22 = sld [smem:[#allocation4_spill]] }
   0x9   :  { %s3623_s4 = sld [smem:[#allocation5_spill]] }
   0xc   :  { %v82_v0 = vld [vmem:[%s3620_s23 + $0x18] sm:$0xff]  ;;  %v81_v1 = vld [vmem:[%s3620_s23 + $0x10] sm:$0xff]  ;;  %v80_v3 = vld [vmem:[%s3620_s23 + $0x8] sm:$0xff] }
   0xd   :  { %2711 = vmatprep.subr.mxu0 %v82_v0  ;;  %v65_v2 = vld [vmem:[%s3621_s26] sm:$0xff]  ;;  %v66_v5 = vld [vmem:[%s3621_s26 + $0x8] sm:$0xff]  ;;  %v67_v7 = vld [vmem:[%s3621_s26 + $0x10] sm:$0xff] }
   0xe   :  { %2712 = vmatpush3.msra.mxu0 %v82_v0  ;;  %2719 = vmatprep.mubr.msk.f32.mxu0 %vm90_vm0, %v65_v2  ;;  %v79_v4 = vld [vmem:[%s3620_s23] sm:$0xff]  ;;  %v191_v6 = vld [vmem:[%s3622_s22 + $0x18] sm:$0xff]  ;;  %v190_v8 = vld [vmem:[%s3622_s22 + $0x10] sm:$0xff] }
   0xf   :  { %2713 = vmatprep.subr.mxu0 %v81_v1  ;;  %v68_v9 = vld [vmem:[%s3621_s26 + $0x18] sm:$0xff]  ;;  %v189_v10 = vld [vmem:[%s3622_s22 + $0x8] sm:$0xff]  ;;  %v69_v11 = vld [vmem:[%s3623_s4] sm:$0xff] }
  0x10   :  { %2714 = vmatpush3.msra.mxu0 %v81_v1  ;;  %v188_v12 = vld [vmem:[%s3622_s22] sm:$0xff]  ;;  %v70_v13 = vld [vmem:[%s3623_s4 + $0x8] sm:$0xff]  ;;  %s3624_s22 = sld [smem:[#allocation6_spill]] }
  0x11   :  { %2715 = vmatprep.subr.mxu0 %v80_v3 }
  0x12   :  { %2716 = vmatpush3.msra.mxu0 %v80_v3 }
  0x13   :  { %2717 = vmatprep.subr.mxu0 %v79_v4 }
  0x14   :  { %2718 = vmatpush3.msra.mxu0 %v79_v4 }
  0x15   :  { %2720 = vmatmul.mubr.msk.f32.vlgmr.msra.gmra.mxu0 %vm90_vm0, %v66_v5  ;;  %2725 = vmatprep.subr.mxu0 %v191_v6 }
  0x16   :  { %2726 = vmatpush3.msra.mxu0 %v191_v6  ;;  %2722 = vmatprep.mubr.msk.f32.mxu0 %vm90_vm0, %v67_v7  ;;  %v2537_v15 = vld [vmem:[%s3624_s22] ss:$0 sm:$0xff] }
  0x17   :  { %2727 = vmatprep.subr.mxu0 %v190_v8 }
  0x18   :  { %2728 = vmatpush3.msra.mxu0 %v190_v8 }
  0x19   :  { %2723 = vmatmul.mubr.msk.f32.gmra.mxu0 %vm90_vm0, %v68_v9  ;;  %2729 = vmatprep.subr.mxu0 %v189_v10  ;;  %v2545_v9 = vld [vmem:[%s3598_s9] ss:$0 sm:$0xff]  ;;  %s2983_s9 = smov 106  }
  0x1a   :  { %2730 = vmatpush3.msra.mxu0 %v189_v10  ;;  %2733 = vmatprep.mubr.msk.f32.mxu0 %vm90_vm0, %v69_v11 }
  0x1b   :  { %2731 = vmatprep.subr.mxu0 %v188_v12 }
  0x1c   :  { %2732 = vmatpush3.msra.mxu0 %v188_v12 }
  0x1d   :  { %2734 = vmatmul.mubr.msk.f32.vlgmr.msra.gmra.mxu0 %vm90_vm0, %v70_v13  ;;  %2736 = vmatprep.subr.mxu0 %v283_v28 }
  0x1e   :  { %2744 = vmatprep.mubr.msk.f32.mxu0 %vm90_vm0, %v69_v11  ;;  %2737 = vmatpush3.msra.mxu0 %v283_v28 }
  0x1f   :  { %2738 = vmatprep.subr.mxu0 %v282_v29 }
  0x20   :  { %2739 = vmatpush3.msra.mxu0 %v282_v29 }
  0x21   :  { %2740 = vmatprep.subr.mxu0 %v281_v30 }
  0x22   :  { %2741 = vmatpush3.msra.mxu0 %v281_v30 }
  0x23   :  { %2742 = vmatprep.subr.mxu0 %v280_v31 }
  0x24   :  { %2743 = vmatpush3.msra.mxu0 %v280_v31 }
  0x25   :  { %2745 = vmatmul.mubr.msk.f32.vlgmr.msra.gmra.mxu0 %vm90_vm0, %v70_v13 }
  0xd5   :  { %v2721_v14 = vpop.f32.mrf.mxu0 }
  0xd6   :  { %v3161_v25 = vadd.f32 %v2721_v14, %v2537_v15 }
  0xd7   :  { %v169_v16 = vpop.f32.mrf.mxu0 }
  0xd8   :  { %v3146_v17 = vadd.f32 %v2537_v15, %v169_v16 }
  0xd9   :  { %v2724_v18 = vpop.f32.mrf.mxu0 }
  0xda   :  { %2749 = vmatprep.mubr.msk.f32.mxu1 %vm366_vm1, %v3146_v17  ;;  %v3173_v27 = vadd.f32 %v2724_v18, %v2537_v15 }
  0xdb   :  { %v179_v19 = vpop.f32.mrf.mxu0 }
  0xdc   :  { %v3165_v26 = vadd.f32 %v2537_v15, %v179_v19 }
  0xdd   :  { %v2735_v20 = vpop.f32.mrf.mxu0 }
  0xde   :  { %v3155_v24 = vadd.f32 %v2735_v20, %v2542_v21 }
  0xdf   :  { %v271_v22 = vpop.f32.mrf.mxu0 }
  0xe0   :  { %v3153_v23 = vadd.f32 %v2542_v21, %v271_v22 }
  0xe2   :  { %2747 = vmatprep.subr.msk.mxu1 %vm366_vm1, %v3153_v23 }
  0xe3   :  { %2748 = vmatpush3.xpose.msk.msra.mxu1 %vm366_vm1, %v3153_v23 }
  0xe4   :  { %2752 = vmatprep.subr.msk.mxu1 %vm366_vm1, %v3155_v24 }
  0xe5   :  { %v2746_v8 = vpop.f32.mrf.mxu0 }
  0xe6   :  { %2750 = vmatmul.mubr.msk.f32.vlgmr.msra.gmra.mxu1 %vm366_vm1, %v3161_v25  ;;  %v3225_v10 = vadd.f32 %v2746_v8, %v2545_v9 }
  0xe7   :  { %2753 = vmatpush3.xpose.msk.msra.mxu1 %vm366_vm1, %v3155_v24  ;;  %2754 = vmatprep.mubr.msk.f32.mxu1 %vm366_vm1, %v3165_v26  ;;  %v357_v11 = vpop.f32.mrf.mxu0 }
  0xe8   :  { %v3227_v12 = vadd.f32 %v2545_v9, %v357_v11  ;;  %2762 = vmatprep.subr.mxu1 %v3225_v10 }
  0xea   :  { %2755 = vmatmul.mubr.msk.f32.vlgmr.msra.gmra.mxu1 %vm366_vm1, %v3173_v27  ;;  %2757 = vmatprep.subr.mxu0 %v3227_v12 }
  0xeb   :  { %2763 = vmatpush3.msra.mxu1 %v3225_v10  ;;  %2758 = vmatpush3.msra.mxu0 %v3227_v12 }
 0x1a6   :  { %v2751_v32 = vpop.f32.mrf.mxu1 }
 0x1a7   :  { %v536_v35 = vmul.f32 0.30151135, %v2751_v32 }
 0x1a8   :  { %v442_v33 = vpop.f32.mrf.mxu1 }
 0x1a9   :  { %v535_v36 = vmul.f32 0.30151135, %v442_v33  ;;  %v540_v45 = vadd.f32 %v536_v35, %v3198_v38 }
 0x1aa   :  { %v2756_v37 = vpop.f32.mrf.mxu1 }
 0x1ab   :  { %v539_v39 = vadd.f32 %v535_v36, %v3193_v34  ;;  %v538_v42 = vmul.f32 0.30151135, %v2756_v37  ;;  %v547_v48 = vsel %vm543_vm2, %v540_v45, -inf }
 0x1ac   :  { %v526_v40 = vpop.f32.mrf.mxu1 }
 0x1ad   :  { %v537_v43 = vmul.f32 0.30151135, %v526_v40  ;;  %v544_v44 = vsel %vm543_vm2, %v539_v39, -inf  ;;  %v542_v50 = vadd.f32 %v538_v42, %v3211_v46 }
 0x1ae   :  { %545 = vmax.xlane.f32.xlu0 %v544_v44 }
 0x1af   :  { %v541_v47 = vadd.f32 %v537_v43, %v3204_v41  ;;  %v553_v51 = vsel %vm543_vm2, %v542_v50, -inf }
 0x1b1   :  { %v550_v49 = vsel %vm543_vm2, %v541_v47, -inf }
 0x1b2   :  { %548 = vmax.xlane.f32.xlu0 %v547_v48  ;;  %551 = vmax.xlane.f32.xlu1 %v550_v49 }
 0x1b6   :  { %554 = vmax.xlane.f32.xlu1 %v553_v51 }
 0x237   :  { %v546_v52 = vpop.xlane.xlu0 %545 }
 0x238   :  { %v556_v53 = vsub.f32 %v539_v39, %v546_v52 }
 0x23a   :  { %v560_v54 = vmul.f32 1.442695, %v556_v53 }
 0x23b   :  { %v549_v55 = vpop.xlane.xlu0 %548  ;;  %v552_v56 = vpop.xlane.xlu1 %551 }
 0x23c   :  { %2898 = vpow2.f32 %v560_v54  ;;  %v557_v57 = vsub.f32 %v540_v45, %v549_v55  ;;  %v558_v58 = vsub.f32 %v541_v47, %v552_v56 }
 0x23e   :  { %v562_v59 = vmul.f32 1.442695, %v557_v57  ;;  %v564_v60 = vmul.f32 1.442695, %v558_v58 }
 0x23f   :  { %v555_v61 = vpop.xlane.xlu1 %554 }
 0x240   :  { %2900 = vpow2.f32 %v562_v59  ;;  %v559_v62 = vsub.f32 %v542_v50, %v555_v61 }
 0x241   :  { %2902 = vpow2.f32 %v564_v60 }
 0x242   :  { %v566_v63 = vmul.f32 1.442695, %v559_v62 }
 0x244   :  { %2904 = vpow2.f32 %v566_v63 }
 0x249   :  { %v2899_v0 = vpop.eup %2898 }
 0x24a   :  { %v568_v1 = vsel %vm543_vm2, %v2899_v0, 0.0 }
 0x24b   :  { %569 = vadd.xlane.f32.xlu0 %v568_v1 }
 0x24d   :  { %v2901_v2 = vpop.eup %2900 }
 0x24e   :  { %v2903_v3 = vpop.eup %2902  ;;  %v571_v4 = vsel %vm543_vm2, %v2901_v2, 0.0 }
 0x24f   :  { %572 = vadd.xlane.f32.xlu1 %v571_v4  ;;  %v574_v5 = vsel %vm543_vm2, %v2903_v3, 0.0 }
 0x250   :  { %575 = vadd.xlane.f32.xlu0 %v574_v5 }
 0x251   :  { %v2905_v6 = vpop.eup %2904 }
 0x252   :  { %v577_v7 = vsel %vm543_vm2, %v2905_v6, 0.0 }
 0x253   :  { %578 = vadd.xlane.f32.xlu1 %v577_v7 }
 0x264   :  { %750 = vrot.lane.b32.xlu1 %v3146_v17, %s2982_s28 }
 0x266   :  { %754 = vrot.lane.b32.xlu0 %v3153_v23, %s2982_s28 }
 0x268   :  { %752 = vrot.lane.b32.xlu1 %v3161_v25, %s2982_s28 }
 0x26a   :  { %837 = vrot.lane.b32.xlu0 %v3165_v26, %s2982_s28 }
 0x26c   :  { %841 = vrot.lane.b32.xlu1 %v3155_v24, %s2982_s28 }
 0x270   :  { %839 = vrot.lane.b32.xlu1 %v3173_v27, %s2982_s28 }
 0x2d4   :  { %v570_v13 = vpop.xlane.xlu0 %569 }
 0x2d5   :  { %2906 = vrcp.f32 %v570_v13 }
 0x2d8   :  { %v573_v14 = vpop.xlane.xlu1 %572 }
 0x2d9   :  { %v576_v15 = vpop.xlane.xlu0 %575  ;;  %2908 = vrcp.f32 %v573_v14 }
 0x2da   :  { %2910 = vrcp.f32 %v576_v15 }
 0x2dc   :  { %v579_v16 = vpop.xlane.xlu1 %578 }
 0x2dd   :  { %v755_v18 = vpop.permute.xlu0 %754  ;;  %2912 = vrcp.f32 %v579_v16 }
 0x2de   :  { %2767 = vmatprep.subr.msk.mxu0 %vm366_vm1, %v755_v18 }
 0x2e0   :  { %v751_v19 = vpop.permute.xlu1 %750 }
 0x2e1   :  { %v838_v36 = vpop.permute.xlu0 %837 }
 0x2e2   :  { %v2907_v20 = vpop.eup %2906 }
 0x2e3   :  { %v584_v21 = vmul.f32 %v2907_v20, %v2899_v0 }
 0x2e4   :  { %v753_v22 = vpop.permute.xlu1 %752 }
 0x2e5   :  { %2759 = vmatprep.mubr.msk.f32.mxu0 %vm543_vm2, %v584_v21 }
 0x2e6   :  { %v2909_v28 = vpop.eup %2908 }
 0x2e7   :  { %v2911_v29 = vpop.eup %2910  ;;  %v585_v30 = vmul.f32 %v2909_v28, %v2901_v2 }
 0x2e8   :  { %v842_v31 = vpop.permute.xlu1 %841  ;;  %v586_v32 = vmul.f32 %v2911_v29, %v2903_v3 }
 0x2e9   :  { %2760 = vmatmul.mubr.msk.f32.vlgmr.msra.gmra.mxu0 %vm543_vm2, %v585_v30  ;;  %2772 = vmatprep.subr.msk.mxu1 %vm366_vm1, %v842_v31 }
 0x2ea   :  { %v2913_v33 = vpop.eup %2912  ;;  %2764 = vmatprep.mubr.msk.f32.mxu1 %vm543_vm2, %v586_v32  ;;  %2768 = vmatpush3.xpose.msk.msra.mxu0 %vm366_vm1, %v755_v18 }
 0x2eb   :  { %2769 = vmatprep.mubr.msk.f32.mxu0 %vm366_vm1, %v751_v19  ;;  %v587_v35 = vmul.f32 %v2913_v33, %v2905_v6 }
 0x2ec   :  { %v840_v37 = vpop.permute.xlu1 %839 }
 0x2ed   :  { %2765 = vmatmul.mubr.msk.f32.vlgmr.msra.gmra.mxu1 %vm543_vm2, %v587_v35  ;;  %2770 = vmatmul.mubr.msk.f32.vlgmr.msra.gmra.mxu0 %vm366_vm1, %v753_v22 }
 0x2ee   :  { %2773 = vmatpush3.xpose.msk.msra.mxu1 %vm366_vm1, %v842_v31  ;;  %2774 = vmatprep.mubr.msk.f32.mxu1 %vm366_vm1, %v838_v36 }
 0x2f1   :  { %2775 = vmatmul.mubr.msk.f32.vlgmr.msra.gmra.mxu1 %vm366_vm1, %v840_v37 }
 0x3a9   :  { %v3257_v39 = vpop.f32.mrf.mxu0 }
 0x3ab   :  { %v3259_v40 = vpop.f32.mrf.mxu0 }
 0x3ad   :  { %v3261_v42 = vpop.f32.mrf.mxu1  ;;  %v2771_v43 = vpop.f32.mrf.mxu0 }
 0x3ae   :  { %v925_v44 = vmul.f32 0.30151135, %v2771_v43 }
 0x3af   :  { %v3263_v45 = vpop.f32.mrf.mxu1  ;;  %v828_v47 = vpop.f32.mrf.mxu0 }
 0x3b0   :  { %v924_v48 = vmul.f32 0.30151135, %v828_v47  ;;  %v929_v49 = vadd.f32 %v925_v44, %v3198_v38 }
 0x3b1   :  { %v2776_v50 = vpop.f32.mrf.mxu1 }
 0x3b2   :  { %v935_v51 = vsel %vm543_vm2, %v929_v49, -inf  ;;  %v928_v52 = vadd.f32 %v924_v48, %v3193_v34  ;;  %v927_v54 = vmul.f32 0.30151135, %v2776_v50 }
 0x3b3   :  { %936 = vmax.xlane.f32.xlu1 %v935_v51  ;;  %v915_v53 = vpop.f32.mrf.mxu1 }
 0x3b4   :  { %v926_v55 = vmul.f32 0.30151135, %v915_v53  ;;  %v932_v56 = vsel %vm543_vm2, %v928_v52, -inf  ;;  %v931_v59 = vadd.f32 %v927_v54, %v3211_v46 }
 0x3b5   :  { %933 = vmax.xlane.f32.xlu0 %v932_v56 }
 0x3b6   :  { %v930_v57 = vadd.f32 %v926_v55, %v3204_v41  ;;  %v941_v60 = vsel %vm543_vm2, %v931_v59, -inf }
 0x3b8   :  { %v938_v58 = vsel %vm543_vm2, %v930_v57, -inf }
 0x3b9   :  { %939 = vmax.xlane.f32.xlu0 %v938_v58 }
 0x3bd   :  { %942 = vmax.xlane.f32.xlu0 %v941_v60 }
 0x3c4   :  { %1150 = vrot.lane.b32.xlu1 %v3153_v23, %s2983_s9 }
 0x3c8   :  { %1062 = vrot.lane.b32.xlu1 %v3225_v10, %s2982_s28 }
 0x3cc   :  { %1146 = vrot.lane.b32.xlu1 %v3146_v17, %s2983_s9 }
 0x3d3   :  { %977 = vrot.lane.b32.xlu0 %v3227_v12, %s2982_s28 }
 0x43c   :  { %v937_v61 = vpop.xlane.xlu1 %936 }
 0x43d   :  { %v945_v62 = vsub.f32 %v929_v49, %v937_v61 }
 0x43e   :  { %v934_v63 = vpop.xlane.xlu0 %933 }
 0x43f   :  { %v950_v0 = vmul.f32 1.442695, %v945_v62  ;;  %v944_v1 = vsub.f32 %v928_v52, %v934_v63 }
 0x440   :  { %v1151_v2 = vpop.permute.xlu1 %1150 }
 0x441   :  { %2914 = vpow2.f32 %v950_v0  ;;  %v948_v3 = vmul.f32 1.442695, %v944_v1 }
 0x442   :  { %v940_v4 = vpop.xlane.xlu0 %939 }
 0x443   :  { %2916 = vpow2.f32 %v948_v3  ;;  %v946_v5 = vsub.f32 %v930_v57, %v940_v4 }
 0x444   :  { %v1063_v6 = vpop.permute.xlu1 %1062 }
 0x445   :  { %v952_v7 = vmul.f32 1.442695, %v946_v5  ;;  %2782 = vmatprep.subr.mxu1 %v1063_v6 }
 0x446   :  { %v943_v8 = vpop.xlane.xlu0 %942  ;;  %2783 = vmatpush3.msra.mxu1 %v1063_v6 }
 0x447   :  { %2918 = vpow2.f32 %v952_v7  ;;  %v947_v9 = vsub.f32 %v931_v59, %v943_v8 }
 0x448   :  { %v1147_v28 = vpop.permute.xlu1 %1146 }
 0x449   :  { %v954_v11 = vmul.f32 1.442695, %v947_v9 }
 0x44a   :  { %v978_v13 = vpop.permute.xlu0 %977 }
 0x44b   :  { %2920 = vpow2.f32 %v954_v11  ;;  %2777 = vmatprep.subr.mxu0 %v978_v13 }
 0x44c   :  { %2778 = vmatpush3.msra.mxu0 %v978_v13 }
 0x44d   :  { %2787 = vmatprep.subr.msk.mxu0 %vm366_vm1, %v1151_v2 }
 0x44e   :  { %v2915_v14 = vpop.eup %2914 }
 0x44f   :  { %v959_v15 = vsel %vm543_vm2, %v2915_v14, 0.0 }
 0x450   :  { %v2917_v16 = vpop.eup %2916  ;;  %960 = vadd.xlane.f32.xlu1 %v959_v15 }
 0x451   :  { %v956_v18 = vsel %vm543_vm2, %v2917_v16, 0.0 }
 0x452   :  { %957 = vadd.xlane.f32.xlu0 %v956_v18 }
 0x454   :  { %v2919_v19 = vpop.eup %2918 }
 0x455   :  { %v962_v20 = vsel %vm543_vm2, %v2919_v19, 0.0 }
 0x456   :  { %963 = vadd.xlane.f32.xlu0 %v962_v20 }
 0x458   :  { %v2921_v21 = vpop.eup %2920 }
 0x459   :  { %v965_v22 = vsel %vm543_vm2, %v2921_v21, 0.0 }
 0x45a   :  { %966 = vadd.xlane.f32.xlu1 %v965_v22 }
 0x46b   :  { %1237 = vrot.lane.b32.xlu1 %v3155_v24, %s2983_s9 }
 0x46c   :  { %1148 = vrot.lane.b32.xlu0 %v3161_v25, %s2983_s9 }
 0x46f   :  { %1235 = vrot.lane.b32.xlu1 %v3173_v27, %s2983_s9 }
 0x470   :  { %1233 = vrot.lane.b32.xlu0 %v3165_v26, %s2983_s9 }
 0x4d9   :  { %v961_v29 = vpop.xlane.xlu1 %960 }
 0x4da   :  { %2922 = vrcp.f32 %v961_v29 }
 0x4db   :  { %v958_v30 = vpop.xlane.xlu0 %957 }
 0x4dc   :  { %2924 = vrcp.f32 %v958_v30 }
 0x4df   :  { %v964_v31 = vpop.xlane.xlu0 %963 }
 0x4e0   :  { %2926 = vrcp.f32 %v964_v31 }
 0x4e3   :  { %v967_v32 = vpop.xlane.xlu1 %966  ;;  %v1149_v47 = vpop.permute.xlu0 %1148 }
 0x4e4   :  { %2928 = vrcp.f32 %v967_v32 }
 0x4e7   :  { %v1238_v33 = vpop.permute.xlu1 %1237  ;;  %v2923_v35 = vpop.eup %2922 }
 0x4e8   :  { %2792 = vmatprep.subr.msk.mxu1 %vm366_vm1, %v1238_v33  ;;  %v973_v43 = vmul.f32 %v2923_v35, %v2915_v14  ;;  %v1234_v51 = vpop.permute.xlu0 %1233 }
 0x4e9   :  { %v2925_v36 = vpop.eup %2924 }
 0x4ea   :  { %v972_v37 = vmul.f32 %v2925_v36, %v2917_v16 }
 0x4eb   :  { %v1236_v52 = vpop.permute.xlu1 %1235 }
 0x4ec   :  { %2779 = vmatprep.mubr.msk.f32.mxu0 %vm543_vm2, %v972_v37 }
 0x4ed   :  { %v2927_v44 = vpop.eup %2926  ;;  %2780 = vmatmul.mubr.msk.f32.vlgmr.msra.gmra.mxu0 %vm543_vm2, %v973_v43 }
 0x4ee   :  { %2788 = vmatpush3.xpose.msk.msra.mxu0 %vm366_vm1, %v1151_v2  ;;  %2789 = vmatprep.mubr.msk.f32.mxu0 %vm366_vm1, %v1147_v28  ;;  %v974_v48 = vmul.f32 %v2927_v44, %v2919_v19 }
 0x4f0   :  { %2784 = vmatprep.mubr.msk.f32.mxu1 %vm543_vm2, %v974_v48 }
 0x4f1   :  { %v2929_v49 = vpop.eup %2928  ;;  %2790 = vmatmul.mubr.msk.f32.vlgmr.msra.gmra.mxu0 %vm366_vm1, %v1149_v47 }
 0x4f2   :  { %v975_v50 = vmul.f32 %v2929_v49, %v2921_v21 }
 0x4f4   :  { %2785 = vmatmul.mubr.msk.f32.vlgmr.msra.gmra.mxu1 %vm543_vm2, %v975_v50 }
 0x4f5   :  { %2793 = vmatpush3.xpose.msk.msra.mxu1 %vm366_vm1, %v1238_v33  ;;  %2794 = vmatprep.mubr.msk.f32.mxu1 %vm366_vm1, %v1234_v51 }
 0x4f8   :  { %2795 = vmatmul.mubr.msk.f32.vlgmr.msra.gmra.mxu1 %vm366_vm1, %v1236_v52 }
 0x5ad   :  { %v3305_v53 = vpop.f32.mrf.mxu0 }
 0x5af   :  { %v3307_v54 = vpop.f32.mrf.mxu0 }
 0x5b1   :  { %v2791_v55 = vpop.f32.mrf.mxu0 }
 0x5b2   :  { %v1321_v56 = vmul.f32 0.30151135, %v2791_v55 }
 0x5b3   :  { %v1224_v57 = vpop.f32.mrf.mxu0 }
 0x5b4   :  { %v1320_v58 = vmul.f32 0.30151135, %v1224_v57  ;;  %v3309_v59 = vpop.f32.mrf.mxu1  ;;  %v1325_v60 = vadd.f32 %v1321_v56, %v3198_v38 }
 0x5b6   :  { %v3312_v61 = vpop.f32.mrf.mxu1  ;;  %v1331_v62 = vsel %vm543_vm2, %v1325_v60, -inf  ;;  %v1324_v63 = vadd.f32 %v1320_v58, %v3193_v34 }
 0x5b7   :  { %1332 = vmax.xlane.f32.xlu1 %v1331_v62 }
 0x5b8   :  { %v2796_v0 = vpop.f32.mrf.mxu1  ;;  %v1328_v1 = vsel %vm543_vm2, %v1324_v63, -inf }
 0x5b9   :  { %1329 = vmax.xlane.f32.xlu0 %v1328_v1  ;;  %v1323_v3 = vmul.f32 0.30151135, %v2796_v0 }
 0x5ba   :  { %v1311_v2 = vpop.f32.mrf.mxu1 }
 0x5bb   :  { %v1322_v4 = vmul.f32 0.30151135, %v1311_v2  ;;  %v1327_v7 = vadd.f32 %v1323_v3, %v3211_v46 }
 0x5bd   :  { %v1326_v5 = vadd.f32 %v1322_v4, %v3204_v41  ;;  %v1337_v8 = vsel %vm543_vm2, %v1327_v7, -inf }
 0x5bf   :  { %v1334_v6 = vsel %vm543_vm2, %v1326_v5, -inf }
 0x5c0   :  { %1335 = vmax.xlane.f32.xlu0 %v1334_v6 }
 0x5c4   :  { %1338 = vmax.xlane.f32.xlu0 %v1337_v8 }
 0x5c8   :  { %1544 = vrot.lane.b32.xlu1 %v3153_v23, %s2984_s5 }
 0x5cc   :  { %1456 = vrot.lane.b32.xlu1 %v3225_v10, %s2983_s9 }
 0x5d0   :  { %1540 = vrot.lane.b32.xlu1 %v3146_v17, %s2984_s5 }
 0x5da   :  { %1372 = vrot.lane.b32.xlu0 %v3227_v12, %s2983_s9 }
 0x640   :  { %v1333_v9 = vpop.xlane.xlu1 %1332 }
 0x641   :  { %v1341_v11 = vsub.f32 %v1325_v60, %v1333_v9 }
 0x642   :  { %v1330_v13 = vpop.xlane.xlu0 %1329 }
 0x643   :  { %v1346_v14 = vmul.f32 1.442695, %v1341_v11  ;;  %v1340_v15 = vsub.f32 %v1324_v63, %v1330_v13 }
 0x644   :  { %v1545_v16 = vpop.permute.xlu1 %1544 }
 0x645   :  { %2930 = vpow2.f32 %v1346_v14  ;;  %v1344_v18 = vmul.f32 1.442695, %v1340_v15 }
 0x647   :  { %2932 = vpow2.f32 %v1344_v18 }
 0x648   :  { %v1457_v19 = vpop.permute.xlu1 %1456 }
 0x649   :  { %v1336_v23 = vpop.xlane.xlu0 %1335  ;;  %2802 = vmatprep.subr.mxu1 %v1457_v19 }
 0x64a   :  { %v1342_v20 = vsub.f32 %v1326_v5, %v1336_v23  ;;  %2803 = vmatpush3.msra.mxu1 %v1457_v19 }
 0x64c   :  { %v1348_v21 = vmul.f32 1.442695, %v1342_v20  ;;  %v1541_v44 = vpop.permute.xlu1 %1540 }
 0x64d   :  { %v1339_v22 = vpop.xlane.xlu0 %1338 }
 0x64e   :  { %2934 = vpow2.f32 %v1348_v21  ;;  %v1343_v17 = vsub.f32 %v1327_v7, %v1339_v22 }
 0x650   :  { %v1350_v28 = vmul.f32 1.442695, %v1343_v17 }
 0x651   :  { %v1373_v29 = vpop.permute.xlu0 %1372 }
 0x652   :  { %v2931_v30 = vpop.eup %2930  ;;  %2936 = vpow2.f32 %v1350_v28  ;;  %2797 = vmatprep.subr.mxu0 %v1373_v29 }
 0x653   :  { %2798 = vmatpush3.msra.mxu0 %v1373_v29  ;;  %v1355_v31 = vsel %vm543_vm2, %v2931_v30, 0.0 }
 0x654   :  { %v2933_v32 = vpop.eup %2932  ;;  %1356 = vadd.xlane.f32.xlu1 %v1355_v31  ;;  %2807 = vmatprep.subr.msk.mxu0 %vm366_vm1, %v1545_v16 }
 0x655   :  { %v1352_v33 = vsel %vm543_vm2, %v2933_v32, 0.0 }
 0x656   :  { %1353 = vadd.xlane.f32.xlu0 %v1352_v33 }
 0x65b   :  { %v2935_v35 = vpop.eup %2934 }
 0x65c   :  { %v1358_v36 = vsel %vm543_vm2, %v2935_v35, 0.0 }
 0x65d   :  { %1359 = vadd.xlane.f32.xlu0 %v1358_v36 }
 0x65f   :  { %v2937_v37 = vpop.eup %2936 }
 0x660   :  { %v1361_v43 = vsel %vm543_vm2, %v2937_v37, 0.0 }
 0x661   :  { %1362 = vadd.xlane.f32.xlu1 %v1361_v43 }
 0x672   :  { %1631 = vrot.lane.b32.xlu1 %v3155_v24, %s2984_s5 }
 0x673   :  { %1542 = vrot.lane.b32.xlu0 %v3161_v25, %s2984_s5 }
 0x676   :  { %1629 = vrot.lane.b32.xlu1 %v3173_v27, %s2984_s5 }
 0x677   :  { %1627 = vrot.lane.b32.xlu0 %v3165_v26, %s2984_s5 }
 0x6dd   :  { %v1357_v47 = vpop.xlane.xlu1 %1356 }
 0x6de   :  { %2938 = vrcp.f32 %v1357_v47 }
 0x6df   :  { %v1354_v48 = vpop.xlane.xlu0 %1353 }
 0x6e0   :  { %2940 = vrcp.f32 %v1354_v48 }
 0x6e6   :  { %v1360_v49 = vpop.xlane.xlu0 %1359 }
 0x6e7   :  { %2942 = vrcp.f32 %v1360_v49 }
 0x6ea   :  { %v1363_v50 = vpop.xlane.xlu1 %1362  ;;  %v1543_v27 = vpop.permute.xlu0 %1542 }
 0x6eb   :  { %2944 = vrcp.f32 %v1363_v50  ;;  %v2939_v51 = vpop.eup %2938 }
 0x6ec   :  { %v1369_v25 = vmul.f32 %v2939_v51, %v2931_v30 }
 0x6ed   :  { %v2941_v24 = vpop.eup %2940 }
 0x6ee   :  { %v1632_v52 = vpop.permute.xlu1 %1631  ;;  %v1368_v55 = vmul.f32 %v2941_v24, %v2933_v32  ;;  %v1628_v60 = vpop.permute.xlu0 %1627 }
 0x6ef   :  { %2812 = vmatprep.subr.msk.mxu1 %vm366_vm1, %v1632_v52 }
 0x6f0   :  { %2799 = vmatprep.mubr.msk.f32.mxu0 %vm543_vm2, %v1368_v55 }
 0x6f1   :  { %2800 = vmatmul.mubr.msk.f32.vlgmr.msra.gmra.mxu0 %vm543_vm2, %v1369_v25 }
 0x6f2   :  { %2808 = vmatpush3.xpose.msk.msra.mxu0 %vm366_vm1, %v1545_v16  ;;  %2809 = vmatprep.mubr.msk.f32.mxu0 %vm366_vm1, %v1541_v44  ;;  %v1630_v62 = vpop.permute.xlu1 %1629 }
 0x6f4   :  { %v2943_v26 = vpop.eup %2942 }
 0x6f5   :  { %2810 = vmatmul.mubr.msk.f32.vlgmr.msra.gmra.mxu0 %vm366_vm1, %v1543_v27  ;;  %v1370_v56 = vmul.f32 %v2943_v26, %v2935_v35  ;;  %v2001_v27 = vld [vmem:[%s3599_s10 + $0x28] sm:$0xf] }
 0x6f7   :  { %2804 = vmatprep.mubr.msk.f32.mxu1 %vm543_vm2, %v1370_v56  ;;  %v2000_v56 = vld [vmem:[%s3599_s10 + $0x20] sm:$0xff] }
 0x6f8   :  { %v2945_v57 = vpop.eup %2944 }
 0x6f9   :  { %v1371_v58 = vmul.f32 %v2945_v57, %v2937_v37  ;;  %v1999_v57 = vld [vmem:[%s3599_s10 + $0x18] sm:$0xff] }
 0x6fb   :  { %2805 = vmatmul.mubr.msk.f32.vlgmr.msra.gmra.mxu1 %vm543_vm2, %v1371_v58  ;;  %v1998_v58 = vld [vmem:[%s3599_s10 + $0x10] sm:$0xff] }
 0x6fc   :  { %2813 = vmatpush3.xpose.msk.msra.mxu1 %vm366_vm1, %v1632_v52  ;;  %2814 = vmatprep.mubr.msk.f32.mxu1 %vm366_vm1, %v1628_v60  ;;  %v1997_v60 = vld [vmem:[%s3599_s10 + $0x8] sm:$0xff] }
 0x6ff   :  { %2815 = vmatmul.mubr.msk.f32.vlgmr.msra.gmra.mxu1 %vm366_vm1, %v1630_v62  ;;  %v1996_v62 = vld [vmem:[%s3599_s10] sm:$0xff] }
 0x7b1   :  { %v2801_v63 = vpop.f32.mrf.mxu0 }
 0x7b3   :  { %v1447_v0 = vpop.f32.mrf.mxu0 }
 0x7b5   :  { %v2811_v1 = vpop.f32.mrf.mxu0 }
 0x7b6   :  { %v1715_v2 = vmul.f32 0.30151135, %v2811_v1 }
 0x7b7   :  { %v1618_v3 = vpop.f32.mrf.mxu0 }
 0x7b8   :  { %v1714_v4 = vmul.f32 0.30151135, %v1618_v3  ;;  %v1719_v5 = vadd.f32 %v1715_v2, %v3198_v38 }
 0x7ba   :  { %v1725_v6 = vsel %vm543_vm2, %v1719_v5, -inf  ;;  %v1718_v7 = vadd.f32 %v1714_v4, %v3193_v34 }
 0x7bb   :  { %1726 = vmax.xlane.f32.xlu1 %v1725_v6  ;;  %v2806_v8 = vpop.f32.mrf.mxu1 }
 0x7bc   :  { %v1722_v9 = vsel %vm543_vm2, %v1718_v7, -inf }
 0x7bd   :  { %1723 = vmax.xlane.f32.xlu0 %v1722_v9  ;;  %v1531_v11 = vpop.f32.mrf.mxu1 }
 0x7bf   :  { %v2816_v13 = vpop.f32.mrf.mxu1 }
 0x7c0   :  { %v1717_v15 = vmul.f32 0.30151135, %v2816_v13 }
 0x7c1   :  { %v1705_v14 = vpop.f32.mrf.mxu1 }
 0x7c2   :  { %v1716_v16 = vmul.f32 0.30151135, %v1705_v14  ;;  %v1721_v38 = vadd.f32 %v1717_v15, %v3211_v46 }
 0x7c4   :  { %v1720_v18 = vadd.f32 %v1716_v16, %v3204_v41  ;;  %v1731_v23 = vsel %vm543_vm2, %v1721_v38, -inf }
 0x7c6   :  { %v1728_v19 = vsel %vm543_vm2, %v1720_v18, -inf }
 0x7c7   :  { %1729 = vmax.xlane.f32.xlu0 %v1728_v19 }
 0x7cb   :  { %1732 = vmax.xlane.f32.xlu0 %v1731_v23 }
 0x844   :  { %v1727_v34 = vpop.xlane.xlu1 %1726 }
 0x845   :  { %v1735_v20 = vsub.f32 %v1719_v5, %v1727_v34 }
 0x846   :  { %v1724_v21 = vpop.xlane.xlu0 %1723 }
 0x847   :  { %v1740_v22 = vmul.f32 1.442695, %v1735_v20  ;;  %v1734_v17 = vsub.f32 %v1718_v7, %v1724_v21 }
 0x849   :  { %2946 = vpow2.f32 %v1740_v22  ;;  %v1738_v28 = vmul.f32 1.442695, %v1734_v17 }
 0x84b   :  { %2948 = vpow2.f32 %v1738_v28 }
 0x850   :  { %v1730_v29 = vpop.xlane.xlu0 %1729 }
 0x851   :  { %v1736_v30 = vsub.f32 %v1720_v18, %v1730_v29 }
 0x853   :  { %v1742_v31 = vmul.f32 1.442695, %v1736_v30 }
 0x854   :  { %v1733_v41 = vpop.xlane.xlu0 %1732 }
 0x855   :  { %2950 = vpow2.f32 %v1742_v31  ;;  %v1737_v32 = vsub.f32 %v1721_v38, %v1733_v41 }
 0x856   :  { %v2947_v33 = vpop.eup %2946 }
 0x857   :  { %v1744_v46 = vmul.f32 1.442695, %v1737_v32  ;;  %v1749_v35 = vsel %vm543_vm2, %v2947_v33, 0.0 }
 0x858   :  { %v2949_v36 = vpop.eup %2948  ;;  %1750 = vadd.xlane.f32.xlu1 %v1749_v35 }
 0x859   :  { %2952 = vpow2.f32 %v1744_v46  ;;  %v1746_v37 = vsel %vm543_vm2, %v2949_v36, 0.0  ;;  %v2979_v46 = vld [vmem:[%s3621_s26] sm:$0xff] }
 0x85a   :  { %1747 = vadd.xlane.f32.xlu0 %v1746_v37 }
 0x862   :  { %v2951_v43 = vpop.eup %2950 }
 0x863   :  { %v1752_v44 = vsel %vm543_vm2, %v2951_v43, 0.0 }
 0x864   :  { %1753 = vadd.xlane.f32.xlu0 %v1752_v44 }
 0x866   :  { %v2953_v47 = vpop.eup %2952 }
 0x867   :  { %v1755_v48 = vsel %vm543_vm2, %v2953_v47, 0.0 }
 0x868   :  { %1756 = vadd.xlane.f32.xlu1 %v1755_v48  ;;  %v2980_v48 = vld [vmem:[%s3621_s26 + $0x10] sm:$0xff] }
 0x879   :  { %1850 = vrot.lane.b32.xlu1 %v3225_v10, %s2984_s5 }
 0x87a   :  { %1766 = vrot.lane.b32.xlu0 %v3227_v12, %s2984_s5 }
 0x87d   :  { %1938 = vrot.lane.b32.xlu1 %v3307_v54, %s2985_s29 }
 0x87e   :  { %1954 = vrot.lane.b32.xlu0 %v1447_v0, %s2986_s30 }
 0x881   :  { %1940 = vrot.lane.b32.xlu1 %v3305_v53, %s2985_s29 }
 0x882   :  { %1942 = vrot.lane.b32.xlu0 %v3312_v61, %s2985_s29 }
 0x885   :  { %1956 = vrot.lane.b32.xlu1 %v2801_v63, %s2986_s30 }
 0x886   :  { %1958 = vrot.lane.b32.xlu0 %v1531_v11, %s2986_s30 }
 0x889   :  { %1944 = vrot.lane.b32.xlu1 %v3309_v59, %s2985_s29 }
 0x88d   :  { %1960 = vrot.lane.b32.xlu1 %v2806_v8, %s2986_s30 }
 0x8e1   :  { %v1751_v49 = vpop.xlane.xlu1 %1750 }
 0x8e2   :  { %2954 = vrcp.f32 %v1751_v49 }
 0x8e3   :  { %v1748_v10 = vpop.xlane.xlu0 %1747 }
 0x8e4   :  { %2956 = vrcp.f32 %v1748_v10 }
 0x8ed   :  { %v1754_v50 = vpop.xlane.xlu0 %1753 }
 0x8ee   :  { %2958 = vrcp.f32 %v1754_v50  ;;  %v2981_v50 = vld [vmem:[%s3621_s26 + $0x18] sm:$0xff] }
 0x8ef   :  { %v2955_v12 = vpop.eup %2954 }
 0x8f0   :  { %v1763_v61 = vmul.f32 %v2955_v12, %v2947_v33 }
 0x8f1   :  { %v2957_v51 = vpop.eup %2956  ;;  %v1767_v54 = vpop.permute.xlu0 %1766 }
 0x8f2   :  { %v1757_v24 = vpop.xlane.xlu1 %1756  ;;  %2817 = vmatprep.subr.mxu0 %v1767_v54  ;;  %v1762_v53 = vmul.f32 %v2957_v51, %v2949_v36 }
 0x8f3   :  { %2960 = vrcp.f32 %v1757_v24  ;;  %2818 = vmatpush3.msra.mxu0 %v1767_v54  ;;  %v2988_v54 = vmov 0  }
 0x8f4   :  { %2819 = vmatprep.mubr.msk.f32.mxu0 %vm543_vm2, %v1762_v53  ;;  %2827 = vmatprep.subr.msk.mxu0 %vm2022_vm3, %v2001_v27 }
 0x8f5   :  { %2820 = vmatmul.mubr.msk.f32.vlgmr.msra.gmra.mxu0 %vm543_vm2, %v1763_v61  ;;  %v1955_v6 = vpop.permute.xlu0 %1954  ;;  %2897 = vset.pattern.permute.xlu1 %v2988_v54 }
 0x8f6   :  { %v1851_v59 = vpop.permute.xlu1 %1850  ;;  %2828 = vmatpush3.msk.msra.mxu0 %vm2022_vm3, %v2001_v27  ;;  %2896 = vset.pattern.permute.xlu0 %v2988_v54 }
 0x8f7   :  { %2822 = vmatprep.subr.mxu1 %v1851_v59  ;;  %2829 = vmatprep.subr.mxu0 %v2000_v56 }
 0x8f8   :  { %2823 = vmatpush3.msra.mxu1 %v1851_v59  ;;  %2830 = vmatpush3.msra.mxu0 %v2000_v56 }
 0x8f9   :  { %2831 = vmatprep.subr.mxu0 %v1999_v57  ;;  %v1943_v8 = vpop.permute.xlu0 %1942 }
 0x8fa   :  { %2832 = vmatpush3.msra.mxu0 %v1999_v57  ;;  %v1939_v3 = vpop.permute.xlu1 %1938 }
 0x8fb   :  { %v2959_v52 = vpop.eup %2958  ;;  %2833 = vmatprep.subr.mxu0 %v1998_v58  ;;  %v1982_v13 = vsel %vm366_vm1, %v3259_v40, %v1939_v3  ;;  %v1984_v40 = vsel %vm366_vm1, %v3263_v45, %v1943_v8  ;;  %v2588_v45 = vld [vmem:[%s3600_s11] ss:$0 sm:$0xff] }
 0x8fc   :  { %v1764_v55 = vmul.f32 %v2959_v52, %v2951_v43  ;;  %2834 = vmatpush3.msra.mxu0 %v1998_v58  ;;  %v1987_v18 = vsel %vm1986_vm4, %v1982_v13, %v1955_v6  ;;  %v72_v6 = vld [vmem:[%s3601_s3 + $0x8] sm:$0xff]  ;;  %v71_v8 = vld [vmem:[%s3601_s3] sm:$0xff]  ;;  %v73_v13 = vld [vmem:[%s3601_s3 + $0x10] sm:$0xff] }
 0x8fd   :  { %2835 = vmatprep.subr.mxu0 %v1997_v60  ;;  %v1959_v11 = vpop.permute.xlu0 %1958 }
 0x8fe   :  { %2824 = vmatprep.mubr.msk.f32.mxu1 %vm543_vm2, %v1764_v55  ;;  %2836 = vmatpush3.msra.mxu0 %v1997_v60  ;;  %v1941_v4 = vpop.permute.xlu1 %1940  ;;  %v1989_v20 = vsel %vm1986_vm4, %v1984_v40, %v1959_v11  ;;  %v2214_v11 = vld [vmem:[%s3602_s14] sm:$0xff] }
 0x8ff   :  { %2837 = vmatprep.subr.mxu0 %v1996_v62  ;;  %v1983_v15 = vsel %vm366_vm1, %v3257_v39, %v1941_v4 }
 0x900   :  { %v2961_v25 = vpop.eup %2960  ;;  %2838 = vmatpush3.msra.mxu0 %v1996_v62 }
 0x901   :  { %v1765_v26 = vmul.f32 %v2961_v25, %v2953_v47 }
 0x902   :  { %v1957_v5 = vpop.permute.xlu1 %1956 }
 0x903   :  { %2825 = vmatmul.mubr.msk.f32.vlgmr.msra.gmra.mxu1 %vm543_vm2, %v1765_v26  ;;  %v1988_v19 = vsel %vm1986_vm4, %v1983_v15, %v1957_v5  ;;  %v2217_v5 = vld [vmem:[%s3602_s14 + $0x18] sm:$0xff] }
 0x904   :  { %2845 = vmatprep.subr.mxu1 %v2217_v5  ;;  %v2337_v15 = vld [vmem:[%s3603_s16 + $0x58] sm:$0x7] }
 0x905   :  { %2846 = vmatpush3.msra.mxu1 %v2217_v5 }
 0x906   :  { %v1945_v7 = vpop.permute.xlu1 %1944 }
 0x907   :  { %v1985_v39 = vsel %vm366_vm1, %v3261_v42, %v1945_v7  ;;  %v2978_v42 = vld [vmem:[%s3621_s26 + $0x8] sm:$0xff]  ;;  %v2216_v7 = vld [vmem:[%s3602_s14 + $0x10] sm:$0xff] }
 0x908   :  { %2847 = vmatprep.subr.mxu1 %v2216_v7 }
 0x909   :  { %2848 = vmatpush3.msra.mxu1 %v2216_v7 }
 0x90a   :  { %v1961_v9 = vpop.permute.xlu1 %1960 }
 0x90b   :  { %v1990_v22 = vsel %vm1986_vm4, %v1985_v39, %v1961_v9  ;;  %v2215_v9 = vld [vmem:[%s3602_s14 + $0x8] sm:$0xff] }
 0x90c   :  { %2849 = vmatprep.subr.mxu1 %v2215_v9 }
 0x90d   :  { %2850 = vmatpush3.msra.mxu1 %v2215_v9 }
 0x90e   :  { %2851 = vmatprep.subr.mxu1 %v2214_v11 }
 0x90f   :  { %2852 = vmatpush3.msra.mxu1 %v2214_v11 }
 0x910   :  { %2859 = vmatprep.subr.msk.mxu1 %vm2358_vm7, %v2337_v15 }
 0x9b5   :  { %v2821_v63 = vpop.f32.mrf.mxu0 }
 0x9b6   :  { %1972 = vrot.lane.b32.xlu1 %v2821_v63, %s2987_s7 }
 0x9b7   :  { %v1841_v0 = vpop.f32.mrf.mxu0 }
 0x9b8   :  { %1970 = vrot.lane.b32.xlu0 %v1841_v0, %s2987_s7 }
 0x9c3   :  { %v2826_v1 = vpop.f32.mrf.mxu1 }
 0x9c4   :  { %1976 = vrot.lane.b32.xlu1 %v2826_v1, %s2987_s7 }
 0x9c5   :  { %v1925_v2 = vpop.f32.mrf.mxu1 }
 0x9c6   :  { %1974 = vrot.lane.b32.xlu0 %v1925_v2, %s2987_s7 }
 0xa28   :  { %v1973_v14 = vpop.permute.xlu1 %1972 }
 0xa29   :  { %v1993_v23 = vsel %vm1991_vm5, %v1988_v19, %v1973_v14  ;;  %v74_v14 = vld [vmem:[%s3601_s3 + $0x18] sm:$0xff] }
 0xa2a   :  { %v1971_v16 = vpop.permute.xlu0 %1970 }
 0xa2b   :  { %v1992_v38 = vsel %vm1991_vm5, %v1987_v18, %v1971_v16 }
 0xa2c   :  { %2839 = vmatprep.mubr.msk.f32.mxu0 %vm2009_vm6, %v1992_v38 }
 0xa2d   :  { %2840 = vmatmul.mubr.msk.f32.vlgmr.msra.gmra.mxu0 %vm2009_vm6, %v1993_v23 }
 0xa36   :  { %v1977_v34 = vpop.permute.xlu1 %1976 }
 0xa37   :  { %v1995_v28 = vsel %vm1991_vm5, %v1990_v22, %v1977_v34  ;;  %v2594_v22 = vld [vmem:[%s3604_s12] ss:$0 sm:$0xff] }
 0xa38   :  { %v1975_v21 = vpop.permute.xlu0 %1974 }
 0xa39   :  { %v1994_v17 = vsel %vm1991_vm5, %v1989_v20, %v1975_v21 }
 0xa3a   :  { %2842 = vmatprep.mubr.msk.f32.mxu0 %vm2009_vm6, %v1994_v17 }
 0xa3b   :  { %2843 = vmatmul.mubr.msk.f32.gmra.mxu0 %vm2009_vm6, %v1995_v28 }
 0xaed   :  { %v2841_v29 = vpop.f32.mrf.mxu0 }
 0xaee   :  { %v2098_v30 = vadd.f32 %v2841_v29, %v2588_v45 }
 0xaef   :  { %v2092_v31 = vpop.f32.mrf.mxu0 }
 0xaf0   :  { %v2093_v41 = vadd.f32 %v2588_v45, %v2092_v31  ;;  %v2112_v32 = vadd.f32 %v2978_v42, %v2098_v30  ;;  %v2595_v31 = vld [vmem:[%s3605_s13] ss:$0 sm:$0xff] }
 0xaf2   :  { %v2118_v33 = vsel %vm90_vm0, %v2112_v32, 0.0  ;;  %v2111_v35 = vadd.f32 %v2979_v46, %v2093_v41 }
 0xaf3   :  { %2119 = vadd.xlane.f32.xlu1 %v2118_v33 }
 0xaf4   :  { %v2115_v36 = vsel %vm90_vm0, %v2111_v35, 0.0 }
 0xaf5   :  { %2116 = vadd.xlane.f32.xlu0 %v2115_v36 }
 0xafb   :  { %v2844_v37 = vpop.f32.mrf.mxu0 }
 0xafc   :  { %v2108_v44 = vadd.f32 %v2844_v37, %v2588_v45 }
 0xafd   :  { %v2102_v43 = vpop.f32.mrf.mxu0 }
 0xafe   :  { %v2103_v47 = vadd.f32 %v2588_v45, %v2102_v43  ;;  %v2114_v12 = vadd.f32 %v2981_v50, %v2108_v44  ;;  %v2336_v44 = vld [vmem:[%s3603_s16 + $0x50] sm:$0xff]  ;;  %v2333_v50 = vld [vmem:[%s3603_s16 + $0x38] sm:$0xff] }
 0xb00   :  { %v2113_v49 = vadd.f32 %v2980_v48, %v2103_v47  ;;  %v2124_v51 = vsel %vm90_vm0, %v2114_v12, 0.0  ;;  %v2335_v47 = vld [vmem:[%s3603_s16 + $0x48] sm:$0xff] }
 0xb02   :  { %v2121_v10 = vsel %vm90_vm0, %v2113_v49, 0.0 }
 0xb03   :  { %2122 = vadd.xlane.f32.xlu0 %v2121_v10 }
 0xb07   :  { %2125 = vadd.xlane.f32.xlu0 %v2124_v51 }
 0xb7c   :  { %v2120_v24 = vpop.xlane.xlu1 %2119 }
 0xb7d   :  { %v2129_v53 = vmul.f32 0.03125, %v2120_v24  ;;  %v2332_v24 = vld [vmem:[%s3603_s16 + $0x30] sm:$0xff] }
 0xb7e   :  { %v2117_v61 = vpop.xlane.xlu0 %2116 }
 0xb7f   :  { %v3434_v59 = vsub.f32 %v2112_v32, %v2129_v53  ;;  %v2128_v52 = vmul.f32 0.03125, %v2117_v61 }
 0xb81   :  { %v3436_v55 = vsub.f32 %v2111_v35, %v2128_v52  ;;  %v2137_v25 = vmul.f32 %v3434_v59, %v3434_v59 }
 0xb83   :  { %v2143_v26 = vsel %vm90_vm0, %v2137_v25, 0.0  ;;  %v2136_v27 = vmul.f32 %v3436_v55, %v3436_v55  ;;  %v2330_v25 = vld [vmem:[%s3603_s16 + $0x20] sm:$0xff] }
 0xb84   :  { %2144 = vadd.xlane.f32.xlu1 %v2143_v26 }
 0xb85   :  { %v2140_v56 = vsel %vm90_vm0, %v2136_v27, 0.0 }
 0xb86   :  { %2141 = vadd.xlane.f32.xlu0 %v2140_v56 }
 0xb8c   :  { %v2123_v57 = vpop.xlane.xlu0 %2122 }
 0xb8d   :  { %v2130_v58 = vmul.f32 0.03125, %v2123_v57  ;;  %v2329_v57 = vld [vmem:[%s3603_s16 + $0x18] sm:$0xff] }
 0xb8f   :  { %v3444_v60 = vsub.f32 %v2113_v49, %v2130_v58  ;;  %v2334_v49 = vld [vmem:[%s3603_s16 + $0x40] sm:$0xff]  ;;  %v2328_v58 = vld [vmem:[%s3603_s16 + $0x10] sm:$0xff] }
 0xb90   :  { %v2126_v62 = vpop.xlane.xlu0 %2125 }
 0xb91   :  { %v2131_v63 = vmul.f32 0.03125, %v2126_v62  ;;  %v2138_v0 = vmul.f32 %v3444_v60, %v3444_v60  ;;  %v2326_v62 = vld [vmem:[%s3603_s16] sm:$0xff] }
 0xb93   :  { %v3448_v1 = vsub.f32 %v2114_v12, %v2131_v63  ;;  %v2146_v2 = vsel %vm90_vm0, %v2138_v0, 0.0  ;;  %v2596_v63 = vld [vmem:[%s3606_s15] ss:$0 sm:$0xff] }
 0xb94   :  { %2147 = vadd.xlane.f32.xlu0 %v2146_v2 }
 0xb95   :  { %v2139_v3 = vmul.f32 %v3448_v1, %v3448_v1 }
 0xb97   :  { %v2149_v4 = vsel %vm90_vm0, %v2139_v3, 0.0 }
 0xb98   :  { %2150 = vadd.xlane.f32.xlu1 %v2149_v4 }
 0xba9   :  { %2197 = vperm.xlu1 %2897, %v72_v6  }
 0xbaa   :  { %2192 = vperm.xlu0 %2896, %v71_v8  }
 0xbad   :  { %2202 = vperm.xlu1 %2897, %v73_v13  }
 0xbb1   :  { %2207 = vperm.xlu1 %2897, %v74_v14   ;;  %v2601_v14 = vld [vmem:[%s3607_s17] ss:$0 sm:$0xff] }
 0xc0d   :  { %v2145_v16 = vpop.xlane.xlu1 %2144 }
 0xc0e   :  { %v2153_v18 = vmul.f32 0.03125, %v2145_v16 }
 0xc0f   :  { %v2142_v19 = vpop.xlane.xlu0 %2141 }
 0xc10   :  { %v2157_v38 = vadd.f32 1e-05, %v2153_v18  ;;  %v2152_v23 = vmul.f32 0.03125, %v2142_v19 }
 0xc12   :  { %2962 = vrsqrt.f32 %v2157_v38  ;;  %v2156_v40 = vadd.f32 1e-05, %v2152_v23 }
 0xc14   :  { %2964 = vrsqrt.f32 %v2156_v40 }
 0xc1d   :  { %v2148_v34 = vpop.xlane.xlu0 %2147 }
 0xc1e   :  { %v2154_v20 = vmul.f32 0.03125, %v2148_v34 }
 0xc1f   :  { %v2963_v39 = vpop.eup %2962 }
 0xc20   :  { %v2158_v21 = vadd.f32 1e-05, %v2154_v20  ;;  %v2165_v28 = vmul.f32 %v2963_v39, %v3434_v59  ;;  %v2331_v59 = vld [vmem:[%s3603_s16 + $0x28] sm:$0xff] }
 0xc21   :  { %v2151_v17 = vpop.xlane.xlu1 %2150  ;;  %v2965_v45 = vpop.eup %2964 }
 0xc22   :  { %2966 = vrsqrt.f32 %v2158_v21  ;;  %v2155_v29 = vmul.f32 0.03125, %v2151_v17  ;;  %v2176_v30 = vmul.f32 %v2594_v22, %v2165_v28  ;;  %v2164_v41 = vmul.f32 %v2965_v45, %v3436_v55 }
 0xc24   :  { %v2159_v42 = vadd.f32 1e-05, %v2155_v29  ;;  %v2175_v32 = vmul.f32 %v2594_v22, %v2164_v41  ;;  %v2187_v33 = vadd.f32 %v2595_v31, %v2176_v30 }
 0xc25   :  { %v3490_v46 = vpop.permute.xlu0 %2192  ;;  %v3492_v35 = vpop.permute.xlu1 %2197 }
 0xc26   :  { %2968 = vrsqrt.f32 %v2159_v42  ;;  %v2186_v36 = vadd.f32 %v2595_v31, %v2175_v32  ;;  %v3498_v43 = vmul.f32 %v3492_v35, %v2187_v33 }
 0xc28   :  { %v3495_v37 = vmul.f32 %v3490_v46, %v2186_v36 }
 0xc29   :  { %v3518_v54 = vpop.permute.xlu1 %2202 }
 0xc2a   :  { %2853 = vmatprep.mubr.msk.f32.mxu1 %vm90_vm0, %v3495_v37 }
 0xc2b   :  { %2854 = vmatmul.mubr.msk.f32.vlgmr.msra.gmra.mxu1 %vm90_vm0, %v3498_v43 }
 0xc2c   :  { %2860 = vmatpush3.msk.msra.mxu1 %vm2358_vm7, %v2337_v15 }
 0xc2d   :  { %2861 = vmatprep.subr.mxu1 %v2336_v44  ;;  %v3532_v27 = vpop.permute.xlu1 %2207 }
 0xc2e   :  { %2862 = vmatpush3.msra.mxu1 %v2336_v44 }
 0xc2f   :  { %v2967_v48 = vpop.eup %2966  ;;  %2863 = vmatprep.subr.mxu1 %v2335_v47 }
 0xc30   :  { %v2166_v10 = vmul.f32 %v2967_v48, %v3444_v60  ;;  %2864 = vmatpush3.msra.mxu1 %v2335_v47  ;;  %v2327_v60 = vld [vmem:[%s3603_s16 + $0x8] sm:$0xff] }
 0xc31   :  { %2865 = vmatprep.subr.mxu1 %v2334_v49 }
 0xc32   :  { %v2177_v12 = vmul.f32 %v2594_v22, %v2166_v10  ;;  %2866 = vmatpush3.msra.mxu1 %v2334_v49 }
 0xc33   :  { %v2969_v51 = vpop.eup %2968  ;;  %2867 = vmatprep.subr.mxu1 %v2333_v50 }
 0xc34   :  { %v2188_v53 = vadd.f32 %v2595_v31, %v2177_v12  ;;  %v2167_v61 = vmul.f32 %v2969_v51, %v3448_v1  ;;  %2868 = vmatpush3.msra.mxu1 %v2333_v50 }
 0xc35   :  { %2869 = vmatprep.subr.mxu1 %v2332_v24 }
 0xc36   :  { %v2212_v52 = vmul.f32 %v3518_v54, %v2188_v53  ;;  %v2178_v55 = vmul.f32 %v2594_v22, %v2167_v61  ;;  %2870 = vmatpush3.msra.mxu1 %v2332_v24 }
 0xc37   :  { %2871 = vmatprep.subr.mxu1 %v2331_v59 }
 0xc38   :  { %v2189_v26 = vadd.f32 %v2595_v31, %v2178_v55  ;;  %2856 = vmatprep.mubr.msk.f32.mxu1 %vm90_vm0, %v2212_v52  ;;  %2872 = vmatpush3.msra.mxu1 %v2331_v59 }
 0xc39   :  { %2873 = vmatprep.subr.mxu1 %v2330_v25 }
 0xc3a   :  { %v2213_v56 = vmul.f32 %v3532_v27, %v2189_v26  ;;  %2874 = vmatpush3.msra.mxu1 %v2330_v25 }
 0xc3b   :  { %2875 = vmatprep.subr.mxu1 %v2329_v57 }
 0xc3c   :  { %2857 = vmatmul.mubr.msk.f32.gmra.mxu1 %vm90_vm0, %v2213_v56 }
 0xc3d   :  { %2876 = vmatpush3.msra.mxu1 %v2329_v57 }
 0xc3e   :  { %2877 = vmatprep.subr.mxu1 %v2328_v58 }
 0xc3f   :  { %2878 = vmatpush3.msra.mxu1 %v2328_v58  ;;  %v2607_v58 = vld [vmem:[%s3608_s18] ss:$0 sm:$0xff] }
 0xc40   :  { %2879 = vmatprep.subr.mxu1 %v2327_v60 }
 0xc41   :  { %2880 = vmatpush3.msra.mxu1 %v2327_v60 }
 0xc42   :  { %2881 = vmatprep.subr.mxu1 %v2326_v62 }
 0xc43   :  { %2882 = vmatpush3.msra.mxu1 %v2326_v62 }
 0xceb   :  { %v2855_v0 = vpop.f32.mrf.mxu1 }
 0xcec   :  { %v2309_v1 = vadd.f32 %v2855_v0, %v2596_v63  ;;  %v2608_v0 = vld [vmem:[%s3609_s19] ss:$0 sm:$0xff] }
 0xced   :  { %v2303_v2 = vpop.f32.mrf.mxu1 }
 0xcee   :  { %v2304_v3 = vadd.f32 %v2596_v63, %v2303_v2  ;;  %v2323_v5 = vmax.f32 %v2309_v1, 0.0 }
 0xcf0   :  { %v2322_v4 = vmax.f32 %v2304_v3, 0.0 }
 0xcf2   :  { %2883 = vmatprep.mubr.msk.f32.mxu1 %vm2345_vm8, %v2322_v4 }
 0xcf3   :  { %2884 = vmatmul.mubr.msk.f32.vlgmr.msra.gmra.mxu1 %vm2345_vm8, %v2323_v5 }
 0xcfc   :  { %v2858_v6 = vpop.f32.mrf.mxu1 }
 0xcfd   :  { %v2319_v7 = vadd.f32 %v2858_v6, %v2596_v63 }
 0xcfe   :  { %v2313_v8 = vpop.f32.mrf.mxu1 }
 0xcff   :  { %v2314_v9 = vadd.f32 %v2596_v63, %v2313_v8  ;;  %v2325_v13 = vmax.f32 %v2319_v7, 0.0 }
 0xd01   :  { %v2324_v11 = vmax.f32 %v2314_v9, 0.0 }
 0xd03   :  { %2886 = vmatprep.mubr.msk.f32.mxu1 %vm2345_vm8, %v2324_v11 }
 0xd04   :  { %2887 = vmatmul.mubr.msk.f32.gmra.mxu1 %vm2345_vm8, %v2325_v13 }
 0xdb3   :  { %v2885_v15 = vpop.f32.mrf.mxu1 }
 0xdb4   :  { %v2434_v16 = vadd.f32 %v2885_v15, %v2601_v14 }
 0xdb5   :  { %v2428_v18 = vpop.f32.mrf.mxu1 }
 0xdb6   :  { %v2429_v19 = vadd.f32 %v2601_v14, %v2428_v18  ;;  %v2448_v38 = vadd.f32 %v2434_v16, %v3498_v43 }
 0xdb8   :  { %v2454_v23 = vsel %vm90_vm0, %v2448_v38, 0.0  ;;  %v2447_v40 = vadd.f32 %v2429_v19, %v3495_v37 }
 0xdb9   :  { %2455 = vadd.xlane.f32.xlu0 %v2454_v23 }
 0xdba   :  { %v2451_v34 = vsel %vm90_vm0, %v2447_v40, 0.0 }
 0xdbb   :  { %2452 = vadd.xlane.f32.xlu1 %v2451_v34 }
 0xdc4   :  { %v2888_v20 = vpop.f32.mrf.mxu1 }
 0xdc5   :  { %v2444_v21 = vadd.f32 %v2888_v20, %v2601_v14 }
 0xdc6   :  { %v2438_v39 = vpop.f32.mrf.mxu1 }
 0xdc7   :  { %v2439_v22 = vadd.f32 %v2601_v14, %v2438_v39  ;;  %v2450_v45 = vadd.f32 %v2444_v21, %v2213_v56 }
 0xdc9   :  { %v2449_v17 = vadd.f32 %v2439_v22, %v2212_v52  ;;  %v2460_v29 = vsel %vm90_vm0, %v2450_v45, 0.0 }
 0xdcb   :  { %v2457_v28 = vsel %vm90_vm0, %v2449_v17, 0.0 }
 0xdcc   :  { %2458 = vadd.xlane.f32.xlu1 %v2457_v28 }
 0xdd0   :  { %2461 = vadd.xlane.f32.xlu1 %v2460_v29 }
 0xe42   :  { %v2456_v30 = vpop.xlane.xlu0 %2455 }
 0xe43   :  { %v2464_v31 = vmul.f32 0.03125, %v2456_v30 }
 0xe44   :  { %v2453_v41 = vpop.xlane.xlu1 %2452 }
 0xe45   :  { %v2468_v42 = vsub.f32 %v2448_v38, %v2464_v31  ;;  %v2463_v32 = vmul.f32 0.03125, %v2453_v41 }
 0xe47   :  { %v2467_v33 = vsub.f32 %v2447_v40, %v2463_v32  ;;  %v2472_v36 = vmul.f32 %v2468_v42, %v2468_v42 }
 0xe49   :  { %v2478_v37 = vsel %vm90_vm0, %v2472_v36, 0.0  ;;  %v2471_v43 = vmul.f32 %v2467_v33, %v2467_v33 }
 0xe4a   :  { %2479 = vadd.xlane.f32.xlu1 %v2478_v37 }
 0xe4b   :  { %v2475_v44 = vsel %vm90_vm0, %v2471_v43, 0.0 }
 0xe4e   :  { %2476 = vadd.xlane.f32.xlu1 %v2475_v44 }
 0xe55   :  { %v2459_v47 = vpop.xlane.xlu1 %2458 }
 0xe56   :  { %v2465_v48 = vmul.f32 0.03125, %v2459_v47 }
 0xe58   :  { %v2469_v49 = vsub.f32 %v2449_v17, %v2465_v48 }
 0xe59   :  { %v2462_v10 = vpop.xlane.xlu1 %2461 }
 0xe5a   :  { %v2466_v50 = vmul.f32 0.03125, %v2462_v10  ;;  %v2473_v12 = vmul.f32 %v2469_v49, %v2469_v49 }
 0xe5c   :  { %v2470_v51 = vsub.f32 %v2450_v45, %v2466_v50  ;;  %v2481_v24 = vsel %vm90_vm0, %v2473_v12, 0.0 }
 0xe5d   :  { %2482 = vadd.xlane.f32.xlu0 %v2481_v24 }
 0xe5e   :  { %v2474_v53 = vmul.f32 %v2470_v51, %v2470_v51 }
 0xe60   :  { %v2484_v61 = vsel %vm90_vm0, %v2474_v53, 0.0 }
 0xe61   :  { %2485 = vadd.xlane.f32.xlu1 %v2484_v61 }
 0xed3   :  { %v2480_v59 = vpop.xlane.xlu1 %2479 }
 0xed4   :  { %v2488_v52 = vmul.f32 0.03125, %v2480_v59 }
 0xed6   :  { %v2492_v55 = vadd.f32 1e-05, %v2488_v52 }
 0xed7   :  { %v2477_v25 = vpop.xlane.xlu1 %2476 }
 0xed8   :  { %2970 = vrsqrt.f32 %v2492_v55  ;;  %v2487_v26 = vmul.f32 0.03125, %v2477_v25 }
 0xeda   :  { %v2491_v56 = vadd.f32 1e-05, %v2487_v26 }
 0xedc   :  { %2972 = vrsqrt.f32 %v2491_v56 }
 0xee5   :  { %v2971_v57 = vpop.eup %2970 }
 0xee6   :  { %v2483_v60 = vpop.xlane.xlu0 %2482  ;;  %v2500_v62 = vmul.f32 %v2971_v57, %v2468_v42 }
 0xee7   :  { %v2489_v63 = vmul.f32 0.03125, %v2483_v60 }
 0xee8   :  { %v2511_v1 = vmul.f32 %v2607_v58, %v2500_v62 }
 0xee9   :  { %v2493_v2 = vadd.f32 1e-05, %v2489_v63  ;;  %v2973_v3 = vpop.eup %2972 }
 0xeea   :  { %v2486_v4 = vpop.xlane.xlu1 %2485  ;;  %v2522_v5 = vadd.f32 %v2608_v0, %v2511_v1  ;;  %v2499_v6 = vmul.f32 %v2973_v3, %v2467_v33 }
 0xeeb   :  { %2974 = vrsqrt.f32 %v2493_v2  ;;  %v2490_v7 = vmul.f32 0.03125, %v2486_v4 }
 0xeec   :  { %v2526_v8 = vmul.f32 %v2522_v5, %v3492_v35  ;;  %v2510_v9 = vmul.f32 %v2607_v58, %v2499_v6 }
 0xeed   :  { %v2494_v11 = vadd.f32 1e-05, %v2490_v7 }
 0xeee   :  { %2530 = vst.msk [vmem:[%s3610_s20 + $0x8] sm:$0xff] %vm90_vm0, %v2526_v8  ;;  %v2521_v13 = vadd.f32 %v2608_v0, %v2510_v9 }
 0xeef   :  { %2976 = vrsqrt.f32 %v2494_v11 }
 0xef0   :  { %v2525_v14 = vmul.f32 %v2521_v13, %v3490_v46 }
 0xef2   :  { %2529 = vst.msk [vmem:[%s3610_s20] sm:$0xff] %vm90_vm0, %v2525_v14 }
 0xef8   :  { %v2975_v15 = vpop.eup %2974 }
 0xef9   :  { %v2501_v16 = vmul.f32 %v2975_v15, %v2469_v49 }
 0xefb   :  { %v2512_v18 = vmul.f32 %v2607_v58, %v2501_v16 }
 0xefc   :  { %v2977_v35 = vpop.eup %2976 }
 0xefd   :  { %v2523_v19 = vadd.f32 %v2608_v0, %v2512_v18  ;;  %v2502_v38 = vmul.f32 %v2977_v35, %v2470_v51 }
 0xeff   :  { %v2527_v23 = vmul.f32 %v2523_v19, %v3518_v54  ;;  %v2513_v40 = vmul.f32 %v2607_v58, %v2502_v38 }
 0xf01   :  { %2531 = vst.msk [vmem:[%s3610_s20 + $0x10] sm:$0xff] %vm90_vm0, %v2527_v23  ;;  %v2524_v46 = vadd.f32 %v2608_v0, %v2513_v40 }
 0xf03   :  { %v2528_v34 = vmul.f32 %v2524_v46, %v3532_v27 }
 0xf05   :  { %2532 = vst.msk [vmem:[%s3610_s20 + $0x18] sm:$0xff] %vm90_vm0, %v2528_v34 }

// kernel: unet_encoder_forward.7
= control target key start
LH: loop header
LB: loop body
LE: loop exit
PB: predicated region body
PF: predicated region fallthrough
CT: control target
= control target key end

     0   :  { %s3794_s0 = inlined_call_operand.vmem [shape: f32[2,16,32], index: 0, kind: input, shape index: {}, may-alias: {0,1}]   ;;  %s3795_s1 = inlined_call_operand.vmem [shape: f32[2,16,32], index: 1, kind: input, shape index: {}, may-alias: {0,1}]   ;;  %s3796_s2 = inlined_call_operand.vmem [shape: f32[2,16,16], index: 2, kind: input, shape index: {}]   ;;  %s3797_s3 = inlined_call_operand.vmem [shape: f32[2,16,1], index: 3, kind: input, shape index: {}]   ;;  %s3798_s4 = inlined_call_operand.vmem [shape: f32[32,32], index: 4, kind: input, shape index: {}]   ;;  %s3799_s5 = inlined_call_operand.vmem [shape: f32[1,32], index: 5, kind: input, shape index: {}]   ;;  %s3800_s6 = inlined_call_operand.vmem [shape: f32[32,32], index: 6, kind: input, shape index: {}]   ;;  %s3801_s7 = inlined_call_operand.vmem [shape: f32[1,32], index: 7, kind: input, shape index: {}]   ;;  %s3802_s8 = inlined_call_operand.vmem [shape: f32[32,32], index: 8, kind: input, shape index: {}]   ;;  %s3803_s9 = inlined_call_operand.vmem [shape: f32[1,32], index: 9, kind: input, shape index: {}]   ;;  %s3804_s10 = inlined_call_operand.vmem [shape: f32[32,32], index: 10, kind: input, shape index: {}]   ;;  %s3805_s11 = inlined_call_operand.vmem [shape: f32[1,32], index: 11, kind: input, shape index: {}]   ;;  %s3806_s12 = inlined_call_operand.vmem [shape: f32[1,32], index: 12, kind: input, shape index: {}]   ;;  %s3807_s13 = inlined_call_operand.vmem [shape: f32[1,32], index: 13, kind: input, shape index: {}]   ;;  %s3808_s14 = inlined_call_operand.vmem [shape: f32[32,64], index: 14, kind: input, shape index: {}]   ;;  %s3809_s15 = inlined_call_operand.vmem [shape: f32[1,64], index: 15, kind: input, shape index: {}]   ;;  %s3810_s16 = inlined_call_operand.vmem [shape: f32[64,32], index: 16, kind: input, shape index: {}]   ;;  %s3811_s17 = inlined_call_operand.vmem [shape: f32[1,32], index: 17, kind: input, shape index: {}]   ;;  %s3812_s18 = inlined_call_operand.vmem [shape: f32[1,32], index: 18, kind: input, shape index: {}]   ;;  %s3813_s19 = inlined_call_operand.vmem [shape: f32[1,32], index: 19, kind: input, shape index: {}]   ;;  %s3814_s20 = inlined_call_operand.hbm [shape: f32[2,16,32], index: 20, kind: output, shape index: {}]  }
   0x1   :  { %3820 = sst [smem:[#allocation5_spill]] %s3794_s0 }
   0x2   :  { %3821 = sst [smem:[#allocation6_spill]] %s3795_s1 }
   0x3   :  { %3822 = sst [smem:[#allocation7_spill]] %s3796_s2 }
   0x4   :  { %3823 = sst [smem:[#allocation8_spill]] %s3797_s3 }
   0x5   :  { %3824 = sst [smem:[#allocation9_spill]] %s3798_s4 }
   0x6   :  { %s3825_s23 = sld [smem:[#allocation9_spill]]  ;;  %vm93_vm0 = vcmask 261120   ;;  %v302_v6 = vld [vmem:[%s3802_s8 + $0x18] sm:$0xff]  ;;  %v301_v7 = vld [vmem:[%s3802_s8 + $0x10] sm:$0xff] }
   0x7   :  { %s3826_s26 = sld [smem:[#allocation5_spill]]  ;;  %v194_v9 = vld [vmem:[%s3800_s6 + $0x18] sm:$0xff]  ;;  %2838 = vmatprep.subr.mxu0 %v302_v6 }
   0x8   :  { %s3827_s21 = sld [smem:[#allocation6_spill]] }
   0xc   :  { %v85_v0 = vld [vmem:[%s3825_s23 + $0x18] sm:$0xff]  ;;  %v84_v1 = vld [vmem:[%s3825_s23 + $0x10] sm:$0xff]  ;;  %v83_v3 = vld [vmem:[%s3825_s23 + $0x8] sm:$0xff] }
   0xd   :  { %2810 = vmatprep.subr.mxu1 %v85_v0  ;;  %v66_v2 = vld [vmem:[%s3826_s26] sm:$0xff]  ;;  %v67_v8 = vld [vmem:[%s3826_s26 + $0x8] sm:$0xff] }
   0xe   :  { %2811 = vmatpush3.msra.mxu1 %v85_v0  ;;  %2818 = vmatprep.mubr.msk.f32.mxu1 %vm93_vm0, %v66_v2  ;;  %v82_v4 = vld [vmem:[%s3825_s23] sm:$0xff] }
   0xf   :  { %2812 = vmatprep.subr.mxu1 %v84_v1  ;;  %v70_v5 = vld [vmem:[%s3827_s21] sm:$0xff] }
  0x10   :  { %2813 = vmatpush3.msra.mxu1 %v84_v1  ;;  %2846 = vmatprep.mubr.msk.f32.mxu0 %vm93_vm0, %v70_v5 }
  0x11   :  { %2814 = vmatprep.subr.mxu1 %v83_v3 }
  0x12   :  { %2815 = vmatpush3.msra.mxu1 %v83_v3 }
  0x13   :  { %25 = vsyncpa [#allocation3], 0  ;;  %2816 = vmatprep.subr.mxu1 %v82_v4  ;;  %v68_v10 = vld [vmem:[%s3826_s26 + $0x10] sm:$0xff]  ;;  %2839 = vmatpush3.msra.mxu0 %v302_v6  ;;  %v69_v12 = vld [vmem:[%s3826_s26 + $0x18] sm:$0xff]  ;;  %vm395_vm1 = vcmask 64512   ;;  %s3828_s25 = sld [smem:[#allocation7_spill]] }
  0x14   :  { %2817 = vmatpush3.msra.mxu1 %v82_v4  ;;  %v193_v11 = vld [vmem:[%s3800_s6 + $0x10] sm:$0xff]  ;;  %2840 = vmatprep.subr.mxu0 %v301_v7  ;;  %v192_v13 = vld [vmem:[%s3800_s6 + $0x8] sm:$0xff]  ;;  %v191_v14 = vld [vmem:[%s3800_s6] sm:$0xff]  ;;  %vm578_vm2 = vcmask 130048   ;;  %s3131_s29 = smov 120   ;;  %s3132_s30 = smov 112  }
  0x15   :  { %2819 = vmatmul.mubr.msk.f32.vlgmr.msra.gmra.mxu1 %vm93_vm0, %v67_v8  ;;  %2824 = vmatprep.subr.mxu1 %v194_v9  ;;  %v71_v15 = vld [vmem:[%s3827_s21 + $0x8] sm:$0xff]  ;;  %v72_v16 = vld [vmem:[%s3827_s21 + $0x10] sm:$0xff]  ;;  %v73_v17 = vld [vmem:[%s3827_s21 + $0x18] sm:$0xff]  ;;  %s3133_s0 = smov 104   ;;  %s3134_s1 = smov 8   ;;  %vm2069_vm3 = vcmask 195584  }
  0x16   :  { %2825 = vmatpush3.msra.mxu1 %v194_v9  ;;  %2821 = vmatprep.mubr.msk.f32.mxu1 %vm93_vm0, %v68_v10  ;;  %v300_v18 = vld [vmem:[%s3802_s8 + $0x8] sm:$0xff]  ;;  %v299_v19 = vld [vmem:[%s3802_s8] sm:$0xff]  ;;  %s3135_s21 = smov 16   ;;  %s3136_s3 = smov 24   ;;  %vm2412_vm4 = vcmask 523264  }
  0x17   :  { %2826 = vmatprep.subr.mxu1 %v193_v11  ;;  %2841 = vmatpush3.msra.mxu0 %v301_v7  ;;  %v2612_v21 = vld [vmem:[%s3799_s5] ss:$0 sm:$0xff]  ;;  %s3829_s24 = sld [smem:[#allocation8_spill]] }
  0x18   :  { %2827 = vmatpush3.msra.mxu1 %v193_v11  ;;  %2842 = vmatprep.subr.mxu0 %v300_v18  ;;  %v2617_v26 = vld [vmem:[%s3801_s7] ss:$0 sm:$0xff] }
  0x19   :  { %2822 = vmatmul.mubr.msk.f32.gmra.mxu1 %vm93_vm0, %v69_v12  ;;  %2828 = vmatprep.subr.mxu1 %v192_v13  ;;  %v3366_v38 = vld [vmem:[%s3803_s9] ss:$0 sm:$0xff]  ;;  %v3392_v52 = vld [vmem:[%s3828_s25 + $0x8] sm:$0xff]  ;;  %v3398_v55 = vld [vmem:[%s3828_s25 + $0x10] sm:$0xff] }
  0x1a   :  { %2829 = vmatpush3.msra.mxu1 %v192_v13  ;;  %2832 = vmatprep.mubr.msk.f32.mxu1 %vm93_vm0, %v70_v5  ;;  %v3387_v48 = vld [vmem:[%s3828_s25] sm:$0xff]  ;;  %v3405_v60 = vld [vmem:[%s3828_s25 + $0x18] sm:$0xff] }
  0x1b   :  { %2830 = vmatprep.subr.mxu1 %v191_v14  ;;  %2843 = vmatpush3.msra.mxu0 %v300_v18 }
  0x1c   :  { %2831 = vmatpush3.msra.mxu1 %v191_v14  ;;  %2844 = vmatprep.subr.mxu0 %v299_v19 }
  0x1d   :  { %2833 = vmatmul.mubr.msk.f32.vlgmr.msra.gmra.mxu1 %vm93_vm0, %v71_v15  ;;  %2845 = vmatpush3.msra.mxu0 %v299_v19 }
  0x1e   :  { %2835 = vmatprep.mubr.msk.f32.mxu1 %vm93_vm0, %v72_v16  ;;  %2847 = vmatmul.mubr.msk.f32.vlgmr.msra.gmra.mxu0 %vm93_vm0, %v71_v15 }
  0x1f   :  { %2849 = vmatprep.mubr.msk.f32.mxu0 %vm93_vm0, %v72_v16 }
  0x21   :  { %2836 = vmatmul.mubr.msk.f32.gmra.mxu1 %vm93_vm0, %v73_v17 }
  0x22   :  { %2850 = vmatmul.mubr.msk.f32.gmra.mxu0 %vm93_vm0, %v73_v17 }
  0xd5   :  { %v2820_v20 = vpop.f32.mrf.mxu1 }
  0xd6   :  { %v3351_v36 = vadd.f32 %v2820_v20, %v2612_v21 }
  0xd7   :  { %v172_v22 = vpop.f32.mrf.mxu1 }
  0xd8   :  { %v3320_v23 = vadd.f32 %v2612_v21, %v172_v22 }
  0xd9   :  { %v2823_v24 = vpop.f32.mrf.mxu1 }
  0xda   :  { %2856 = vmatprep.mubr.msk.f32.mxu1 %vm395_vm1, %v3320_v23  ;;  %v3359_v37 = vadd.f32 %v2823_v24, %v2612_v21 }
  0xdb   :  { %v182_v25 = vpop.f32.mrf.mxu1 }
  0xdc   :  { %v3327_v27 = vadd.f32 %v2612_v21, %v182_v25 }
  0xdd   :  { %v2834_v28 = vpop.f32.mrf.mxu1 }
  0xde   :  { %v3329_v29 = vadd.f32 %v2834_v28, %v2617_v26  ;;  %2863 = vmatprep.mubr.msk.f32.mxu0 %vm395_vm1, %v3327_v27  ;;  %v2848_v39 = vpop.f32.mrf.mxu0 }
  0xdf   :  { %v280_v30 = vpop.f32.mrf.mxu1  ;;  %v3369_v40 = vadd.f32 %v2848_v39, %v3366_v38 }
  0xe0   :  { %v3333_v31 = vadd.f32 %v2617_v26, %v280_v30  ;;  %2852 = vmatprep.subr.msk.mxu1 %vm395_vm1, %v3329_v29  ;;  %v376_v41 = vpop.f32.mrf.mxu0 }
  0xe1   :  { %v2837_v32 = vpop.f32.mrf.mxu1  ;;  %2853 = vmatpush3.xpose.msk.msra.mxu1 %vm395_vm1, %v3329_v29  ;;  %v3372_v42 = vadd.f32 %v3366_v38, %v376_v41 }
  0xe2   :  { %v3339_v33 = vadd.f32 %v2837_v32, %v2617_v26  ;;  %2854 = vmatprep.subr.msk.mxu1 %vm395_vm1, %v3333_v31  ;;  %v2851_v43 = vpop.f32.mrf.mxu0 }
  0xe3   :  { %v290_v34 = vpop.f32.mrf.mxu1  ;;  %v3377_v44 = vadd.f32 %v2851_v43, %v3366_v38 }
  0xe4   :  { %v3343_v35 = vadd.f32 %v2617_v26, %v290_v34  ;;  %2859 = vmatprep.subr.msk.mxu0 %vm395_vm1, %v3339_v33  ;;  %v3382_v46 = vpop.f32.mrf.mxu0 }
  0xe5   :  { %2855 = vmatpush3.xpose.msk.msra.mxu1 %vm395_vm1, %v3333_v31  ;;  %2860 = vmatpush3.xpose.msk.msra.mxu0 %vm395_vm1, %v3339_v33 }
  0xe6   :  { %2861 = vmatprep.subr.msk.mxu0 %vm395_vm1, %v3343_v35  ;;  %2866 = vmatprep.subr.mxu1 %v3369_v40 }
  0xe8   :  { %2857 = vmatmul.mubr.msk.f32.vlgmr.msra.gmra.mxu1 %vm395_vm1, %v3351_v36 }
  0xe9   :  { %2862 = vmatpush3.xpose.msk.msra.mxu0 %vm395_vm1, %v3343_v35  ;;  %2867 = vmatpush3.msra.mxu1 %v3369_v40 }
  0xea   :  { %2868 = vmatprep.subr.mxu1 %v3372_v42 }
  0xeb   :  { %2869 = vmatpush3.msra.mxu1 %v3372_v42 }
  0xec   :  { %2864 = vmatmul.mubr.msk.f32.vlgmr.msra.gmra.mxu0 %vm395_vm1, %v3359_v37  ;;  %2873 = vmatprep.subr.mxu1 %v3377_v44 }
 0x1a8   :  { %v2858_v45 = vpop.f32.mrf.mxu1 }
 0x1a9   :  { %v571_v49 = vmul.f32 0.35355338, %v2858_v45 }
 0x1aa   :  { %v474_v47 = vpop.f32.mrf.mxu1 }
 0x1ab   :  { %v570_v50 = vmul.f32 0.35355338, %v474_v47  ;;  %v575_v59 = vadd.f32 %v571_v49, %v3392_v52 }
 0x1ac   :  { %v2865_v51 = vpop.f32.mrf.mxu0 }
 0x1ad   :  { %v574_v53 = vadd.f32 %v570_v50, %v3387_v48  ;;  %v573_v56 = vmul.f32 0.35355338, %v2865_v51  ;;  %v582_v63 = vsel %vm578_vm2, %v575_v59, -inf  ;;  %v3441_v51 = vadd.f32 %v3366_v38, %v3382_v46 }
 0x1ae   :  { %v561_v54 = vpop.f32.mrf.mxu0 }
 0x1af   :  { %v572_v57 = vmul.f32 0.35355338, %v561_v54  ;;  %v579_v58 = vsel %vm578_vm2, %v574_v53, -inf  ;;  %v577_v0 = vadd.f32 %v573_v56, %v3405_v60 }
 0x1b0   :  { %580 = vmax.xlane.f32.xlu0 %v579_v58 }
 0x1b1   :  { %v576_v61 = vadd.f32 %v572_v57, %v3398_v55  ;;  %v588_v1 = vsel %vm578_vm2, %v577_v0, -inf }
 0x1b3   :  { %v585_v62 = vsel %vm578_vm2, %v576_v61, -inf }
 0x1b4   :  { %586 = vmax.xlane.f32.xlu1 %v585_v62  ;;  %583 = vmax.xlane.f32.xlu0 %v582_v63 }
 0x1b8   :  { %589 = vmax.xlane.f32.xlu1 %v588_v1 }
 0x1c9   :  { %789 = vrot.lane.b32.xlu1 %v3333_v31, %s3131_s29 }
 0x1ca   :  { %791 = vrot.lane.b32.xlu0 %v3329_v29, %s3131_s29 }
 0x1cd   :  { %882 = vrot.lane.b32.xlu1 %v3339_v33, %s3131_s29 }
 0x1d1   :  { %785 = vrot.lane.b32.xlu1 %v3320_v23, %s3131_s29 }
 0x239   :  { %v581_v2 = vpop.xlane.xlu0 %580 }
 0x23a   :  { %v591_v3 = vsub.f32 %v574_v53, %v581_v2 }
 0x23c   :  { %v595_v4 = vmul.f32 1.442695, %v591_v3 }
 0x23d   :  { %v587_v5 = vpop.xlane.xlu1 %586  ;;  %v584_v6 = vpop.xlane.xlu0 %583 }
 0x23e   :  { %3025 = vpow2.f32 %v595_v4  ;;  %v593_v7 = vsub.f32 %v576_v61, %v587_v5  ;;  %v592_v8 = vsub.f32 %v575_v59, %v584_v6 }
 0x240   :  { %v599_v9 = vmul.f32 1.442695, %v593_v7  ;;  %v597_v10 = vmul.f32 1.442695, %v592_v8 }
 0x241   :  { %v590_v11 = vpop.xlane.xlu1 %589  ;;  %v792_v12 = vpop.permute.xlu0 %791 }
 0x242   :  { %3027 = vpow2.f32 %v599_v9  ;;  %v594_v13 = vsub.f32 %v577_v0, %v590_v11  ;;  %2880 = vmatprep.subr.msk.mxu0 %vm395_vm1, %v792_v12 }
 0x243   :  { %3029 = vpow2.f32 %v597_v10  ;;  %2881 = vmatpush3.xpose.msk.msra.mxu0 %vm395_vm1, %v792_v12 }
 0x244   :  { %v601_v14 = vmul.f32 1.442695, %v594_v13 }
 0x245   :  { %v790_v15 = vpop.permute.xlu1 %789 }
 0x246   :  { %3031 = vpow2.f32 %v601_v14  ;;  %2882 = vmatprep.subr.msk.mxu0 %vm395_vm1, %v790_v15 }
 0x247   :  { %2883 = vmatpush3.xpose.msk.msra.mxu0 %vm395_vm1, %v790_v15 }
 0x249   :  { %v883_v16 = vpop.permute.xlu1 %882 }
 0x24b   :  { %v3026_v17 = vpop.eup %3025 }
 0x24c   :  { %v603_v18 = vsel %vm578_vm2, %v3026_v17, 0.0 }
 0x24d   :  { %v786_v19 = vpop.permute.xlu1 %785  ;;  %604 = vadd.xlane.f32.xlu0 %v603_v18 }
 0x24e   :  { %2884 = vmatprep.mubr.msk.f32.mxu0 %vm395_vm1, %v786_v19 }
 0x24f   :  { %v3028_v20 = vpop.eup %3027 }
 0x250   :  { %v3030_v21 = vpop.eup %3029  ;;  %v609_v22 = vsel %vm578_vm2, %v3028_v20, 0.0 }
 0x251   :  { %610 = vadd.xlane.f32.xlu0 %v609_v22  ;;  %v606_v24 = vsel %vm578_vm2, %v3030_v21, 0.0 }
 0x252   :  { %607 = vadd.xlane.f32.xlu1 %v606_v24 }
 0x253   :  { %v3032_v25 = vpop.eup %3031 }
 0x254   :  { %v612_v26 = vsel %vm578_vm2, %v3032_v25, 0.0 }
 0x256   :  { %613 = vadd.xlane.f32.xlu1 %v612_v26 }
 0x267   :  { %880 = vrot.lane.b32.xlu1 %v3343_v35, %s3131_s29  ;;  %787 = vrot.lane.b32.xlu0 %v3351_v36, %s3131_s29 }
 0x26b   :  { %878 = vrot.lane.b32.xlu1 %v3359_v37, %s3131_s29  ;;  %876 = vrot.lane.b32.xlu0 %v3327_v27, %s3131_s29 }
 0x2d6   :  { %v605_v28 = vpop.xlane.xlu0 %604 }
 0x2d7   :  { %3033 = vrcp.f32 %v605_v28 }
 0x2da   :  { %v611_v30 = vpop.xlane.xlu0 %610 }
 0x2db   :  { %v608_v32 = vpop.xlane.xlu1 %607  ;;  %3035 = vrcp.f32 %v611_v30 }
 0x2dc   :  { %3037 = vrcp.f32 %v608_v32 }
 0x2de   :  { %v788_v34 = vpop.permute.xlu0 %787 }
 0x2df   :  { %v614_v39 = vpop.xlane.xlu1 %613  ;;  %2885 = vmatmul.mubr.msk.f32.vlgmr.msra.gmra.mxu0 %vm395_vm1, %v788_v34 }
 0x2e0   :  { %3039 = vrcp.f32 %v614_v39 }
 0x2e2   :  { %v877_v56 = vpop.permute.xlu0 %876 }
 0x2e3   :  { %v881_v57 = vpop.permute.xlu1 %880 }
 0x2e4   :  { %v3034_v41 = vpop.eup %3033 }
 0x2e5   :  { %v619_v43 = vmul.f32 %v3034_v41, %v3026_v17 }
 0x2e7   :  { %2870 = vmatprep.mubr.msk.f32.mxu1 %vm578_vm2, %v619_v43  ;;  %v879_v38 = vpop.permute.xlu1 %878 }
 0x2e8   :  { %v3036_v45 = vpop.eup %3035 }
 0x2e9   :  { %v3038_v47 = vpop.eup %3037  ;;  %v621_v49 = vmul.f32 %v3036_v45, %v3028_v20 }
 0x2ea   :  { %v620_v50 = vmul.f32 %v3038_v47, %v3030_v21 }
 0x2ec   :  { %2871 = vmatmul.mubr.msk.f32.vlgmr.msra.gmra.mxu1 %vm578_vm2, %v620_v50 }
 0x2ed   :  { %v3040_v53 = vpop.eup %3039  ;;  %2874 = vmatpush3.msra.mxu1 %v3377_v44  ;;  %2877 = vmatprep.mubr.msk.f32.mxu1 %vm578_vm2, %v621_v49 }
 0x2ee   :  { %2875 = vmatprep.subr.mxu1 %v3441_v51  ;;  %v622_v54 = vmul.f32 %v3040_v53, %v3032_v25 }
 0x2ef   :  { %2876 = vmatpush3.msra.mxu1 %v3441_v51 }
 0x2f0   :  { %2887 = vmatprep.subr.msk.mxu1 %vm395_vm1, %v883_v16  ;;  %2878 = vmatmul.mubr.msk.f32.vlgmr.msra.gmra.mxu1 %vm578_vm2, %v622_v54 }
 0x2f1   :  { %2888 = vmatpush3.xpose.msk.msra.mxu1 %vm395_vm1, %v883_v16  ;;  %2891 = vmatprep.mubr.msk.f32.mxu1 %vm395_vm1, %v877_v56 }
 0x2f2   :  { %2889 = vmatprep.subr.msk.mxu1 %vm395_vm1, %v881_v57 }
 0x2f5   :  { %2890 = vmatpush3.xpose.msk.msra.mxu1 %vm395_vm1, %v881_v57 }
 0x2f8   :  { %2892 = vmatmul.mubr.msk.f32.vlgmr.msra.gmra.mxu1 %vm395_vm1, %v879_v38 }
 0x39f   :  { %v2886_v46 = vpop.f32.mrf.mxu0 }
 0x3a0   :  { %v968_v58 = vmul.f32 0.35355338, %v2886_v46 }
 0x3a1   :  { %v867_v59 = vpop.f32.mrf.mxu0 }
 0x3a2   :  { %v967_v61 = vmul.f32 0.35355338, %v867_v59  ;;  %v972_v62 = vadd.f32 %v968_v58, %v3392_v52 }
 0x3a4   :  { %v978_v63 = vsel %vm578_vm2, %v972_v62, -inf  ;;  %v971_v0 = vadd.f32 %v967_v61, %v3387_v48 }
 0x3a5   :  { %979 = vmax.xlane.f32.xlu1 %v978_v63 }
 0x3a6   :  { %v975_v1 = vsel %vm578_vm2, %v971_v0, -inf }
 0x3a7   :  { %976 = vmax.xlane.f32.xlu0 %v975_v1 }
 0x3ac   :  { %v3459_v2 = vpop.f32.mrf.mxu1 }
 0x3ae   :  { %v3461_v3 = vpop.f32.mrf.mxu1 }
 0x3b0   :  { %v3463_v4 = vpop.f32.mrf.mxu1 }
 0x3b2   :  { %v3465_v5 = vpop.f32.mrf.mxu1 }
 0x3b8   :  { %v2893_v6 = vpop.f32.mrf.mxu1 }
 0x3b9   :  { %v970_v8 = vmul.f32 0.35355338, %v2893_v6 }
 0x3ba   :  { %v958_v7 = vpop.f32.mrf.mxu1 }
 0x3bb   :  { %v969_v9 = vmul.f32 0.35355338, %v958_v7  ;;  %v974_v12 = vadd.f32 %v970_v8, %v3405_v60 }
 0x3bd   :  { %v973_v10 = vadd.f32 %v969_v9, %v3398_v55  ;;  %v984_v13 = vsel %vm578_vm2, %v974_v12, -inf }
 0x3bf   :  { %v981_v11 = vsel %vm578_vm2, %v973_v10, -inf }
 0x3c0   :  { %982 = vmax.xlane.f32.xlu0 %v981_v11 }
 0x3c4   :  { %985 = vmax.xlane.f32.xlu0 %v984_v13 }
 0x42e   :  { %v980_v14 = vpop.xlane.xlu1 %979 }
 0x42f   :  { %v988_v15 = vsub.f32 %v972_v62, %v980_v14 }
 0x430   :  { %v977_v16 = vpop.xlane.xlu0 %976 }
 0x431   :  { %v993_v17 = vmul.f32 1.442695, %v988_v15  ;;  %v987_v18 = vsub.f32 %v971_v0, %v977_v16 }
 0x433   :  { %3041 = vpow2.f32 %v993_v17  ;;  %v991_v19 = vmul.f32 1.442695, %v987_v18 }
 0x435   :  { %3043 = vpow2.f32 %v991_v19 }
 0x440   :  { %v3042_v20 = vpop.eup %3041 }
 0x441   :  { %v1002_v21 = vsel %vm578_vm2, %v3042_v20, 0.0 }
 0x442   :  { %v3044_v22 = vpop.eup %3043  ;;  %1003 = vadd.xlane.f32.xlu1 %v1002_v21 }
 0x443   :  { %v999_v24 = vsel %vm578_vm2, %v3044_v22, 0.0 }
 0x444   :  { %1000 = vadd.xlane.f32.xlu0 %v999_v24 }
 0x449   :  { %v983_v25 = vpop.xlane.xlu0 %982 }
 0x44a   :  { %v989_v26 = vsub.f32 %v973_v10, %v983_v25 }
 0x44c   :  { %v995_v30 = vmul.f32 1.442695, %v989_v26 }
 0x44d   :  { %v986_v28 = vpop.xlane.xlu0 %985 }
 0x44e   :  { %v990_v32 = vsub.f32 %v974_v12, %v986_v28  ;;  %3045 = vpow2.f32 %v995_v30 }
 0x450   :  { %v997_v34 = vmul.f32 1.442695, %v990_v32 }
 0x452   :  { %3047 = vpow2.f32 %v997_v34 }
 0x453   :  { %1021 = vrot.lane.b32.xlu1 %v3372_v42, %s3131_s29 }
 0x457   :  { %1112 = vrot.lane.b32.xlu1 %v3377_v44, %s3131_s29 }
 0x45a   :  { %1023 = vrot.lane.b32.xlu0 %v3369_v40, %s3131_s29 }
 0x45b   :  { %1203 = vrot.lane.b32.xlu1 %v3329_v29, %s3132_s30  ;;  %v3046_v39 = vpop.eup %3045 }
 0x45c   :  { %v1005_v41 = vsel %vm578_vm2, %v3046_v39, 0.0 }
 0x45e   :  { %1110 = vrot.lane.b32.xlu0 %v3441_v51, %s3131_s29 }
 0x45f   :  { %1201 = vrot.lane.b32.xlu1 %v3333_v31, %s3132_s30  ;;  %v3048_v43 = vpop.eup %3047 }
 0x460   :  { %v1008_v45 = vsel %vm578_vm2, %v3048_v43, 0.0 }
 0x462   :  { %1294 = vrot.lane.b32.xlu0 %v3339_v33, %s3132_s30 }
 0x463   :  { %1197 = vrot.lane.b32.xlu1 %v3320_v23, %s3132_s30 }
 0x481   :  { %1006 = vadd.xlane.f32.xlu0 %v1005_v41 }
 0x487   :  { %1009 = vadd.xlane.f32.xlu1 %v1008_v45 }
 0x497   :  { %1199 = vrot.lane.b32.xlu0 %v3351_v36, %s3132_s30 }
 0x498   :  { %1292 = vrot.lane.b32.xlu1 %v3343_v35, %s3132_s30 }
 0x49b   :  { %1288 = vrot.lane.b32.xlu0 %v3327_v27, %s3132_s30 }
 0x49c   :  { %1290 = vrot.lane.b32.xlu1 %v3359_v37, %s3132_s30 }
 0x4cb   :  { %v1004_v47 = vpop.xlane.xlu1 %1003 }
 0x4cc   :  { %3049 = vrcp.f32 %v1004_v47 }
 0x4cd   :  { %v1001_v49 = vpop.xlane.xlu0 %1000 }
 0x4ce   :  { %3051 = vrcp.f32 %v1001_v49 }
 0x4cf   :  { %v1022_v50 = vpop.permute.xlu1 %1021 }
 0x4d1   :  { %v1024_v53 = vpop.permute.xlu0 %1023 }
 0x4d2   :  { %2894 = vmatprep.subr.mxu0 %v1024_v53 }
 0x4d3   :  { %v1113_v54 = vpop.permute.xlu1 %1112  ;;  %2895 = vmatpush3.msra.mxu0 %v1024_v53 }
 0x4d4   :  { %2896 = vmatprep.subr.mxu0 %v1022_v50  ;;  %2901 = vmatprep.subr.mxu1 %v1113_v54 }
 0x4d5   :  { %2897 = vmatpush3.msra.mxu0 %v1022_v50  ;;  %2902 = vmatpush3.msra.mxu1 %v1113_v54  ;;  %v1111_v56 = vpop.permute.xlu0 %1110 }
 0x4d6   :  { %2903 = vmatprep.subr.mxu1 %v1111_v56 }
 0x4d7   :  { %v1204_v57 = vpop.permute.xlu1 %1203  ;;  %2904 = vmatpush3.msra.mxu1 %v1111_v56 }
 0x4d8   :  { %2908 = vmatprep.subr.msk.mxu0 %vm395_vm1, %v1204_v57 }
 0x4d9   :  { %v1295_v38 = vpop.permute.xlu0 %1294  ;;  %v3050_v46 = vpop.eup %3049 }
 0x4da   :  { %2915 = vmatprep.subr.msk.mxu1 %vm395_vm1, %v1295_v38  ;;  %v1016_v62 = vmul.f32 %v3050_v46, %v3042_v20 }
 0x4db   :  { %v3052_v58 = vpop.eup %3051  ;;  %v1202_v59 = vpop.permute.xlu1 %1201 }
 0x4dc   :  { %v1015_v61 = vmul.f32 %v3052_v58, %v3044_v22 }
 0x4de   :  { %2898 = vmatprep.mubr.msk.f32.mxu0 %vm578_vm2, %v1015_v61 }
 0x4df   :  { %v1198_v63 = vpop.permute.xlu1 %1197  ;;  %2899 = vmatmul.mubr.msk.f32.vlgmr.msra.gmra.mxu0 %vm578_vm2, %v1016_v62 }
 0x4e0   :  { %2909 = vmatpush3.xpose.msk.msra.mxu0 %vm395_vm1, %v1204_v57  ;;  %2912 = vmatprep.mubr.msk.f32.mxu0 %vm395_vm1, %v1198_v63 }
 0x4e1   :  { %2910 = vmatprep.subr.msk.mxu0 %vm395_vm1, %v1202_v59 }
 0x4e4   :  { %2911 = vmatpush3.xpose.msk.msra.mxu0 %vm395_vm1, %v1202_v59 }
 0x50a   :  { %v1007_v0 = vpop.xlane.xlu0 %1006 }
 0x50b   :  { %3053 = vrcp.f32 %v1007_v0 }
 0x50e   :  { %v1200_v1 = vpop.permute.xlu0 %1199 }
 0x50f   :  { %2913 = vmatmul.mubr.msk.f32.vlgmr.msra.gmra.mxu0 %vm395_vm1, %v1200_v1 }
 0x510   :  { %v1010_v6 = vpop.xlane.xlu1 %1009 }
 0x511   :  { %3055 = vrcp.f32 %v1010_v6 }
 0x512   :  { %v1289_v11 = vpop.permute.xlu0 %1288 }
 0x514   :  { %v1293_v12 = vpop.permute.xlu1 %1292 }
 0x518   :  { %v3054_v7 = vpop.eup %3053  ;;  %v1291_v13 = vpop.permute.xlu1 %1290 }
 0x519   :  { %v1017_v8 = vmul.f32 %v3054_v7, %v3046_v39 }
 0x51b   :  { %2905 = vmatprep.mubr.msk.f32.mxu1 %vm578_vm2, %v1017_v8 }
 0x51e   :  { %v3056_v9 = vpop.eup %3055 }
 0x51f   :  { %v1018_v10 = vmul.f32 %v3056_v9, %v3048_v43 }
 0x521   :  { %2906 = vmatmul.mubr.msk.f32.vlgmr.msra.gmra.mxu1 %vm578_vm2, %v1018_v10 }
 0x522   :  { %2916 = vmatpush3.xpose.msk.msra.mxu1 %vm395_vm1, %v1295_v38  ;;  %2919 = vmatprep.mubr.msk.f32.mxu1 %vm395_vm1, %v1289_v11 }
 0x523   :  { %2917 = vmatprep.subr.msk.mxu1 %vm395_vm1, %v1293_v12 }
 0x526   :  { %2918 = vmatpush3.xpose.msk.msra.mxu1 %vm395_vm1, %v1293_v12 }
 0x529   :  { %2920 = vmatmul.mubr.msk.f32.vlgmr.msra.gmra.mxu1 %vm395_vm1, %v1291_v13 }
 0x59f   :  { %v3515_v14 = vpop.f32.mrf.mxu0 }
 0x5a1   :  { %v3517_v15 = vpop.f32.mrf.mxu0 }
 0x5cf   :  { %v2914_v16 = vpop.f32.mrf.mxu0 }
 0x5d0   :  { %v1380_v17 = vmul.f32 0.35355338, %v2914_v16 }
 0x5d1   :  { %v1279_v18 = vpop.f32.mrf.mxu0 }
 0x5d2   :  { %v1379_v19 = vmul.f32 0.35355338, %v1279_v18  ;;  %v1384_v20 = vadd.f32 %v1380_v17, %v3392_v52 }
 0x5d4   :  { %v1390_v21 = vsel %vm578_vm2, %v1384_v20, -inf  ;;  %v1383_v22 = vadd.f32 %v1379_v19, %v3387_v48 }
 0x5d5   :  { %1391 = vmax.xlane.f32.xlu1 %v1390_v21 }
 0x5d6   :  { %v1387_v24 = vsel %vm578_vm2, %v1383_v22, -inf }
 0x5d7   :  { %1388 = vmax.xlane.f32.xlu0 %v1387_v24 }
 0x5e1   :  { %v3523_v25 = vpop.f32.mrf.mxu1 }
 0x5e3   :  { %v3525_v26 = vpop.f32.mrf.mxu1 }
 0x5e9   :  { %v2921_v28 = vpop.f32.mrf.mxu1 }
 0x5ea   :  { %v1382_v32 = vmul.f32 0.35355338, %v2921_v28 }
 0x5eb   :  { %v1370_v30 = vpop.f32.mrf.mxu1 }
 0x5ec   :  { %v1381_v34 = vmul.f32 0.35355338, %v1370_v30  ;;  %v1386_v43 = vadd.f32 %v1382_v32, %v3405_v60 }
 0x5ee   :  { %v1385_v39 = vadd.f32 %v1381_v34, %v3398_v55  ;;  %v1396_v45 = vsel %vm578_vm2, %v1386_v43, -inf }
 0x5f0   :  { %v1393_v41 = vsel %vm578_vm2, %v1385_v39, -inf }
 0x5f1   :  { %1394 = vmax.xlane.f32.xlu0 %v1393_v41 }
 0x5f5   :  { %1397 = vmax.xlane.f32.xlu0 %v1396_v45 }
 0x65e   :  { %v1392_v47 = vpop.xlane.xlu1 %1391 }
 0x65f   :  { %v1400_v49 = vsub.f32 %v1384_v20, %v1392_v47 }
 0x660   :  { %v1389_v50 = vpop.xlane.xlu0 %1388 }
 0x661   :  { %v1405_v53 = vmul.f32 1.442695, %v1400_v49  ;;  %v1399_v54 = vsub.f32 %v1383_v22, %v1389_v50 }
 0x663   :  { %3057 = vpow2.f32 %v1405_v53  ;;  %v1403_v56 = vmul.f32 1.442695, %v1399_v54 }
 0x665   :  { %3059 = vpow2.f32 %v1403_v56 }
 0x670   :  { %v3058_v57 = vpop.eup %3057 }
 0x671   :  { %v1414_v38 = vsel %vm578_vm2, %v3058_v57, 0.0 }
 0x672   :  { %v3060_v46 = vpop.eup %3059  ;;  %1415 = vadd.xlane.f32.xlu1 %v1414_v38 }
 0x673   :  { %v1411_v58 = vsel %vm578_vm2, %v3060_v46, 0.0 }
 0x674   :  { %1412 = vadd.xlane.f32.xlu0 %v1411_v58 }
 0x67a   :  { %v1395_v59 = vpop.xlane.xlu0 %1394 }
 0x67b   :  { %v1401_v61 = vsub.f32 %v1385_v39, %v1395_v59 }
 0x67d   :  { %v1407_v63 = vmul.f32 1.442695, %v1401_v61 }
 0x67e   :  { %v1398_v62 = vpop.xlane.xlu0 %1397 }
 0x67f   :  { %v1402_v0 = vsub.f32 %v1386_v43, %v1398_v62  ;;  %3061 = vpow2.f32 %v1407_v63 }
 0x681   :  { %v1409_v1 = vmul.f32 1.442695, %v1402_v0 }
 0x683   :  { %1431 = vrot.lane.b32.xlu1 %v3372_v42, %s3132_s30  ;;  %3063 = vpow2.f32 %v1409_v1 }
 0x687   :  { %1520 = vrot.lane.b32.xlu1 %v3377_v44, %s3132_s30 }
 0x68a   :  { %1433 = vrot.lane.b32.xlu0 %v3369_v40, %s3132_s30 }
 0x68b   :  { %1611 = vrot.lane.b32.xlu1 %v3329_v29, %s3133_s0 }
 0x68c   :  { %v3062_v29 = vpop.eup %3061 }
 0x68d   :  { %v1417_v6 = vsel %vm578_vm2, %v3062_v29, 0.0 }
 0x68e   :  { %1518 = vrot.lane.b32.xlu0 %v3441_v51, %s3132_s30 }
 0x68f   :  { %1609 = vrot.lane.b32.xlu1 %v3333_v31, %s3133_s0 }
 0x690   :  { %v3064_v7 = vpop.eup %3063 }
 0x691   :  { %v1420_v31 = vsel %vm578_vm2, %v3064_v7, 0.0 }
 0x692   :  { %1702 = vrot.lane.b32.xlu0 %v3339_v33, %s3133_s0 }
 0x693   :  { %1605 = vrot.lane.b32.xlu1 %v3320_v23, %s3133_s0 }
 0x6b1   :  { %1418 = vadd.xlane.f32.xlu0 %v1417_v6 }
 0x6b7   :  { %1421 = vadd.xlane.f32.xlu1 %v1420_v31 }
 0x6c7   :  { %1607 = vrot.lane.b32.xlu0 %v3351_v36, %s3133_s0 }
 0x6c8   :  { %1700 = vrot.lane.b32.xlu1 %v3343_v35, %s3133_s0 }
 0x6cb   :  { %1696 = vrot.lane.b32.xlu0 %v3327_v27, %s3133_s0 }
 0x6cc   :  { %1698 = vrot.lane.b32.xlu1 %v3359_v37, %s3133_s0 }
 0x6fb   :  { %v1416_v23 = vpop.xlane.xlu1 %1415 }
 0x6fc   :  { %3065 = vrcp.f32 %v1416_v23 }
 0x6fd   :  { %v1413_v33 = vpop.xlane.xlu0 %1412 }
 0x6fe   :  { %3067 = vrcp.f32 %v1413_v33 }
 0x6ff   :  { %v1432_v8 = vpop.permute.xlu1 %1431 }
 0x701   :  { %v1434_v9 = vpop.permute.xlu0 %1433 }
 0x702   :  { %2922 = vmatprep.subr.mxu0 %v1434_v9 }
 0x703   :  { %v1521_v10 = vpop.permute.xlu1 %1520  ;;  %2923 = vmatpush3.msra.mxu0 %v1434_v9 }
 0x704   :  { %2924 = vmatprep.subr.mxu0 %v1432_v8  ;;  %2929 = vmatprep.subr.mxu1 %v1521_v10 }
 0x705   :  { %2925 = vmatpush3.msra.mxu0 %v1432_v8  ;;  %2930 = vmatpush3.msra.mxu1 %v1521_v10  ;;  %v1519_v35 = vpop.permute.xlu0 %1518 }
 0x706   :  { %2931 = vmatprep.subr.mxu1 %v1519_v35 }
 0x707   :  { %v1612_v36 = vpop.permute.xlu1 %1611  ;;  %2932 = vmatpush3.msra.mxu1 %v1519_v35 }
 0x708   :  { %2936 = vmatprep.subr.msk.mxu0 %vm395_vm1, %v1612_v36 }
 0x709   :  { %v1703_v27 = vpop.permute.xlu0 %1702  ;;  %v3066_v37 = vpop.eup %3065 }
 0x70a   :  { %2943 = vmatprep.subr.msk.mxu1 %vm395_vm1, %v1703_v27  ;;  %v1428_v16 = vmul.f32 %v3066_v37, %v3058_v57 }
 0x70b   :  { %v3068_v11 = vpop.eup %3067  ;;  %v1610_v12 = vpop.permute.xlu1 %1609 }
 0x70c   :  { %v1427_v13 = vmul.f32 %v3068_v11, %v3060_v46 }
 0x70e   :  { %2926 = vmatprep.mubr.msk.f32.mxu0 %vm578_vm2, %v1427_v13 }
 0x70f   :  { %v1606_v17 = vpop.permute.xlu1 %1605  ;;  %2927 = vmatmul.mubr.msk.f32.vlgmr.msra.gmra.mxu0 %vm578_vm2, %v1428_v16 }
 0x710   :  { %2937 = vmatpush3.xpose.msk.msra.mxu0 %vm395_vm1, %v1612_v36  ;;  %2940 = vmatprep.mubr.msk.f32.mxu0 %vm395_vm1, %v1606_v17 }
 0x711   :  { %2938 = vmatprep.subr.msk.mxu0 %vm395_vm1, %v1610_v12 }
 0x714   :  { %2939 = vmatpush3.xpose.msk.msra.mxu0 %vm395_vm1, %v1610_v12 }
 0x73a   :  { %v1419_v18 = vpop.xlane.xlu0 %1418 }
 0x73b   :  { %3069 = vrcp.f32 %v1419_v18 }
 0x73e   :  { %v1608_v19 = vpop.permute.xlu0 %1607 }
 0x73f   :  { %2941 = vmatmul.mubr.msk.f32.vlgmr.msra.gmra.mxu0 %vm395_vm1, %v1608_v19 }
 0x740   :  { %v1422_v20 = vpop.xlane.xlu1 %1421 }
 0x741   :  { %3071 = vrcp.f32 %v1422_v20 }
 0x742   :  { %v1697_v30 = vpop.permute.xlu0 %1696 }
 0x744   :  { %v1701_v32 = vpop.permute.xlu1 %1700 }
 0x748   :  { %v3070_v21 = vpop.eup %3069  ;;  %v1699_v34 = vpop.permute.xlu1 %1698 }
 0x749   :  { %v1429_v22 = vmul.f32 %v3070_v21, %v3062_v29 }
 0x74b   :  { %2933 = vmatprep.mubr.msk.f32.mxu1 %vm578_vm2, %v1429_v22 }
 0x74e   :  { %v3072_v24 = vpop.eup %3071 }
 0x74f   :  { %v1430_v28 = vmul.f32 %v3072_v24, %v3064_v7 }
 0x751   :  { %2934 = vmatmul.mubr.msk.f32.vlgmr.msra.gmra.mxu1 %vm578_vm2, %v1430_v28 }
 0x752   :  { %2944 = vmatpush3.xpose.msk.msra.mxu1 %vm395_vm1, %v1703_v27  ;;  %2947 = vmatprep.mubr.msk.f32.mxu1 %vm395_vm1, %v1697_v30 }
 0x753   :  { %2945 = vmatprep.subr.msk.mxu1 %vm395_vm1, %v1701_v32 }
 0x756   :  { %2946 = vmatpush3.xpose.msk.msra.mxu1 %vm395_vm1, %v1701_v32  ;;  %v2077_v32 = vld [vmem:[%s3804_s10 + $0x18] sm:$0xff] }
 0x759   :  { %2948 = vmatmul.mubr.msk.f32.vlgmr.msra.gmra.mxu1 %vm395_vm1, %v1699_v34  ;;  %v2076_v34 = vld [vmem:[%s3804_s10 + $0x10] sm:$0xff] }
 0x7cf   :  { %v2928_v39 = vpop.f32.mrf.mxu0 }
 0x7d1   :  { %v1509_v41 = vpop.f32.mrf.mxu0 }
 0x7ff   :  { %v2942_v43 = vpop.f32.mrf.mxu0 }
 0x800   :  { %v1788_v45 = vmul.f32 0.35355338, %v2942_v43 }
 0x801   :  { %v1687_v47 = vpop.f32.mrf.mxu0 }
 0x802   :  { %v1787_v49 = vmul.f32 0.35355338, %v1687_v47  ;;  %v1792_v50 = vadd.f32 %v1788_v45, %v3392_v52 }
 0x804   :  { %v1798_v53 = vsel %vm578_vm2, %v1792_v50, -inf  ;;  %v1791_v54 = vadd.f32 %v1787_v49, %v3387_v48 }
 0x805   :  { %1799 = vmax.xlane.f32.xlu1 %v1798_v53 }
 0x806   :  { %v1795_v56 = vsel %vm578_vm2, %v1791_v54, -inf }
 0x807   :  { %1796 = vmax.xlane.f32.xlu0 %v1795_v56 }
 0x811   :  { %v3579_v57 = vpop.f32.mrf.mxu1 }
 0x813   :  { %v3581_v38 = vpop.f32.mrf.mxu1 }
 0x819   :  { %v2949_v46 = vpop.f32.mrf.mxu1 }
 0x81a   :  { %v1790_v59 = vmul.f32 0.35355338, %v2949_v46 }
 0x81b   :  { %v1778_v58 = vpop.f32.mrf.mxu1 }
 0x81c   :  { %v1789_v61 = vmul.f32 0.35355338, %v1778_v58  ;;  %v1794_v63 = vadd.f32 %v1790_v59, %v3405_v60 }
 0x81e   :  { %v1793_v62 = vadd.f32 %v1789_v61, %v3398_v55  ;;  %v1804_v48 = vsel %vm578_vm2, %v1794_v63, -inf }
 0x820   :  { %v1801_v52 = vsel %vm578_vm2, %v1793_v62, -inf }
 0x821   :  { %1802 = vmax.xlane.f32.xlu0 %v1801_v52 }
 0x825   :  { %1805 = vmax.xlane.f32.xlu0 %v1804_v48 }
 0x88e   :  { %v1800_v0 = vpop.xlane.xlu1 %1799 }
 0x88f   :  { %v1808_v1 = vsub.f32 %v1792_v50, %v1800_v0 }
 0x890   :  { %v1797_v29 = vpop.xlane.xlu0 %1796 }
 0x891   :  { %v1813_v6 = vmul.f32 1.442695, %v1808_v1  ;;  %v1807_v7 = vsub.f32 %v1791_v54, %v1797_v29 }
 0x893   :  { %3073 = vpow2.f32 %v1813_v6  ;;  %v1811_v31 = vmul.f32 1.442695, %v1807_v7 }
 0x895   :  { %3075 = vpow2.f32 %v1811_v31 }
 0x8a0   :  { %v3074_v23 = vpop.eup %3073 }
 0x8a1   :  { %v1822_v33 = vsel %vm578_vm2, %v3074_v23, 0.0 }
 0x8a2   :  { %v3076_v55 = vpop.eup %3075  ;;  %1823 = vadd.xlane.f32.xlu1 %v1822_v33 }
 0x8a3   :  { %v1819_v8 = vsel %vm578_vm2, %v3076_v55, 0.0 }
 0x8a4   :  { %1820 = vadd.xlane.f32.xlu0 %v1819_v8  ;;  %v3105_v8 = vld [vmem:[%s3826_s26 + $0x8] sm:$0xff] }
 0x8aa   :  { %v1803_v60 = vpop.xlane.xlu0 %1802 }
 0x8ab   :  { %v1809_v9 = vsub.f32 %v1793_v62, %v1803_v60 }
 0x8ad   :  { %v1815_v10 = vmul.f32 1.442695, %v1809_v9 }
 0x8ae   :  { %v1806_v35 = vpop.xlane.xlu0 %1805 }
 0x8af   :  { %3077 = vpow2.f32 %v1815_v10  ;;  %v1810_v36 = vsub.f32 %v1794_v63, %v1806_v35  ;;  %v3106_v10 = vld [vmem:[%s3826_s26] sm:$0xff] }
 0x8b1   :  { %v1817_v27 = vmul.f32 1.442695, %v1810_v36 }
 0x8b3   :  { %3079 = vpow2.f32 %v1817_v27 }
 0x8bc   :  { %v3078_v37 = vpop.eup %3077 }
 0x8bd   :  { %v1825_v11 = vsel %vm578_vm2, %v3078_v37, 0.0 }
 0x8be   :  { %1826 = vadd.xlane.f32.xlu0 %v1825_v11 }
 0x8c0   :  { %v3080_v12 = vpop.eup %3079 }
 0x8c1   :  { %v1828_v13 = vsel %vm578_vm2, %v3080_v12, 0.0 }
 0x8c2   :  { %1829 = vadd.xlane.f32.xlu1 %v1828_v13  ;;  %v3107_v13 = vld [vmem:[%s3826_s26 + $0x10] sm:$0xff] }
 0x8d3   :  { %1839 = vrot.lane.b32.xlu1 %v3372_v42, %s3133_s0 }
 0x8d4   :  { %1841 = vrot.lane.b32.xlu0 %v3369_v40, %s3133_s0 }
 0x8d7   :  { %1928 = vrot.lane.b32.xlu1 %v3377_v44, %s3133_s0 }
 0x8d8   :  { %2017 = vrot.lane.b32.xlu0 %v3517_v15, %s3134_s1 }
 0x8db   :  { %1926 = vrot.lane.b32.xlu1 %v3441_v51, %s3133_s0 }
 0x8dc   :  { %2033 = vrot.lane.b32.xlu0 %v1509_v41, %s3135_s21  ;;  %v2074_v41 = vld [vmem:[%s3804_s10] sm:$0xff] }
 0x8df   :  { %2019 = vrot.lane.b32.xlu1 %v3515_v14, %s3134_s1 }
 0x8e3   :  { %2035 = vrot.lane.b32.xlu1 %v2928_v39, %s3135_s21  ;;  %v2075_v39 = vld [vmem:[%s3804_s10 + $0x8] sm:$0xff] }
 0x92b   :  { %v1824_v44 = vpop.xlane.xlu1 %1823 }
 0x92d   :  { %v1821_v42 = vpop.xlane.xlu0 %1820 }
 0x92e   :  { %3081 = vrcp.f32 %v1821_v42 }
 0x92f   :  { %3083 = vrcp.f32 %v1824_v44 }
 0x93b   :  { %v3082_v40 = vpop.eup %3081 }
 0x93c   :  { %v1835_v16 = vmul.f32 %v3082_v40, %v3076_v55  ;;  %v3084_v18 = vpop.eup %3083 }
 0x93d   :  { %v1836_v14 = vmul.f32 %v3084_v18, %v3074_v23 }
 0x93e   :  { %2954 = vmatprep.mubr.msk.f32.mxu0 %vm578_vm2, %v1835_v16  ;;  %v3108_v16 = vld [vmem:[%s3826_s26 + $0x18] sm:$0xff] }
 0x947   :  { %v1827_v15 = vpop.xlane.xlu0 %1826 }
 0x948   :  { %3085 = vrcp.f32 %v1827_v15 }
 0x94b   :  { %v1830_v17 = vpop.xlane.xlu1 %1829  ;;  %v1842_v51 = vpop.permute.xlu0 %1841 }
 0x94c   :  { %3087 = vrcp.f32 %v1830_v17  ;;  %2950 = vmatprep.subr.mxu0 %v1842_v51  ;;  %v3137_v17 = vmov 0  }
 0x94d   :  { %2951 = vmatpush3.msra.mxu0 %v1842_v51  ;;  %3024 = vset.pattern.permute.xlu1 %v3137_v17 }
 0x94e   :  { %3023 = vset.pattern.permute.xlu0 %v3137_v17 }
 0x94f   :  { %v1840_v19 = vpop.permute.xlu1 %1839  ;;  %v2018_v53 = vpop.permute.xlu0 %2017 }
 0x950   :  { %2952 = vmatprep.subr.mxu0 %v1840_v19 }
 0x951   :  { %2953 = vmatpush3.msra.mxu0 %v1840_v19 }
 0x952   :  { %2955 = vmatmul.mubr.msk.f32.vlgmr.msra.gmra.mxu0 %vm578_vm2, %v1836_v14  ;;  %2964 = vmatprep.subr.mxu0 %v2077_v32 }
 0x953   :  { %v1929_v20 = vpop.permute.xlu1 %1928  ;;  %2965 = vmatpush3.msra.mxu0 %v2077_v32  ;;  %v2034_v56 = vpop.permute.xlu0 %2033 }
 0x954   :  { %2957 = vmatprep.subr.mxu1 %v1929_v20  ;;  %2966 = vmatprep.subr.mxu0 %v2076_v34 }
 0x955   :  { %v3086_v21 = vpop.eup %3085  ;;  %2958 = vmatpush3.msra.mxu1 %v1929_v20  ;;  %2967 = vmatpush3.msra.mxu0 %v2076_v34 }
 0x956   :  { %v1837_v22 = vmul.f32 %v3086_v21, %v3078_v37  ;;  %2968 = vmatprep.subr.mxu0 %v2075_v39 }
 0x957   :  { %v1927_v24 = vpop.permute.xlu1 %1926  ;;  %2969 = vmatpush3.msra.mxu0 %v2075_v39 }
 0x958   :  { %2959 = vmatprep.subr.mxu1 %v1927_v24  ;;  %2961 = vmatprep.mubr.msk.f32.mxu1 %vm578_vm2, %v1837_v22 }
 0x959   :  { %v3088_v28 = vpop.eup %3087  ;;  %2960 = vmatpush3.msra.mxu1 %v1927_v24  ;;  %2970 = vmatprep.subr.mxu0 %v2074_v41 }
 0x95a   :  { %v1838_v30 = vmul.f32 %v3088_v28, %v3080_v12  ;;  %2971 = vmatpush3.msra.mxu0 %v2074_v41 }
 0x95b   :  { %v2020_v50 = vpop.permute.xlu1 %2019 }
 0x95c   :  { %2962 = vmatmul.mubr.msk.f32.vlgmr.msra.gmra.mxu1 %vm578_vm2, %v1838_v30 }
 0x95f   :  { %v2036_v54 = vpop.permute.xlu1 %2035 }
 0xa12   :  { %v2956_v43 = vpop.f32.mrf.mxu0 }
 0xa13   :  { %2051 = vrot.lane.b32.xlu1 %v2956_v43, %s3136_s3 }
 0xa14   :  { %v1917_v45 = vpop.f32.mrf.mxu0 }
 0xa15   :  { %2049 = vrot.lane.b32.xlu0 %v1917_v45, %s3136_s3 }
 0xa17   :  { %2023 = vrot.lane.b32.xlu1 %v3523_v25, %s3134_s1  ;;  %v2061_v25 = vsel %vm395_vm1, %v3461_v3, %v2018_v53 }
 0xa19   :  { %2021 = vrot.lane.b32.xlu0 %v3525_v26, %s3134_s1  ;;  %v2065_v26 = vsel %vm578_vm2, %v2061_v25, %v2034_v56  ;;  %v75_v56 = vld [vmem:[%s3829_s24 + $0x8] sm:$0xff]  ;;  %v74_v25 = vld [vmem:[%s3829_s24] sm:$0xff] }
 0xa1b   :  { %2039 = vrot.lane.b32.xlu1 %v3579_v57, %s3135_s21  ;;  %v2062_v57 = vsel %vm395_vm1, %v3459_v2, %v2020_v50 }
 0xa1c   :  { %v2963_v47 = vpop.f32.mrf.mxu1 }
 0xa1d   :  { %2037 = vrot.lane.b32.xlu0 %v3581_v38, %s3135_s21  ;;  %v2066_v38 = vsel %vm578_vm2, %v2062_v57, %v2036_v54  ;;  %v2288_v54 = vld [vmem:[%s3808_s14 + $0x18] sm:$0xff]  ;;  %v76_v57 = vld [vmem:[%s3829_s24 + $0x10] sm:$0xff] }
 0xa1e   :  { %v2004_v49 = vpop.f32.mrf.mxu1  ;;  %2978 = vmatprep.subr.mxu1 %v2288_v54 }
 0xa1f   :  { %2055 = vrot.lane.b32.xlu1 %v2963_v47, %s3136_s3  ;;  %2979 = vmatpush3.msra.mxu1 %v2288_v54 }
 0xa21   :  { %2053 = vrot.lane.b32.xlu0 %v2004_v49, %s3136_s3 }
 0xa85   :  { %v2052_v46 = vpop.permute.xlu1 %2051 }
 0xa86   :  { %v2071_v61 = vsel %vm2069_vm3, %v2066_v38, %v2052_v46  ;;  %v2287_v46 = vld [vmem:[%s3808_s14 + $0x10] sm:$0xff]  ;;  %v77_v38 = vld [vmem:[%s3829_s24 + $0x18] sm:$0xff] }
 0xa87   :  { %v2050_v58 = vpop.permute.xlu0 %2049  ;;  %2980 = vmatprep.subr.mxu1 %v2287_v46 }
 0xa88   :  { %v2070_v59 = vsel %vm2069_vm3, %v2065_v26, %v2050_v58  ;;  %v2286_v26 = vld [vmem:[%s3808_s14 + $0x8] sm:$0xff]  ;;  %2981 = vmatpush3.msra.mxu1 %v2287_v46  ;;  %v2285_v58 = vld [vmem:[%s3808_s14] sm:$0xff] }
 0xa89   :  { %v2024_v62 = vpop.permute.xlu1 %2023  ;;  %2972 = vmatprep.mubr.msk.f32.mxu0 %vm93_vm0, %v2070_v59  ;;  %2982 = vmatprep.subr.mxu1 %v2286_v26  ;;  %v2404_v59 = vld [vmem:[%s3810_s16 + $0x38] sm:$0xff] }
 0xa8a   :  { %2973 = vmatmul.mubr.msk.f32.vlgmr.msra.gmra.mxu0 %vm93_vm0, %v2071_v61  ;;  %v2064_v2 = vsel %vm395_vm1, %v3463_v4, %v2024_v62  ;;  %2983 = vmatpush3.msra.mxu1 %v2286_v26  ;;  %v2403_v61 = vld [vmem:[%s3810_s16 + $0x30] sm:$0xff]  ;;  %v2402_v62 = vld [vmem:[%s3810_s16 + $0x28] sm:$0xff] }
 0xa8b   :  { %v2022_v52 = vpop.permute.xlu0 %2021  ;;  %2984 = vmatprep.subr.mxu1 %v2285_v58  ;;  %2992 = vmatprep.subr.mxu0 %v2404_v59 }
 0xa8c   :  { %v2063_v48 = vsel %vm395_vm1, %v3465_v5, %v2022_v52  ;;  %v2675_v5 = vld [vmem:[%s3805_s11] ss:$0 sm:$0xff]  ;;  %2985 = vmatpush3.msra.mxu1 %v2285_v58  ;;  %2993 = vmatpush3.msra.mxu0 %v2404_v59 }
 0xa8d   :  { %v2040_v3 = vpop.permute.xlu1 %2039  ;;  %2994 = vmatprep.subr.mxu0 %v2403_v61  ;;  %v2401_v52 = vld [vmem:[%s3810_s16 + $0x20] sm:$0xff] }
 0xa8e   :  { %v2068_v6 = vsel %vm578_vm2, %v2064_v2, %v2040_v3  ;;  %2995 = vmatpush3.msra.mxu0 %v2403_v61 }
 0xa8f   :  { %v2038_v63 = vpop.permute.xlu0 %2037  ;;  %2996 = vmatprep.subr.mxu0 %v2402_v62 }
 0xa90   :  { %v2067_v1 = vsel %vm578_vm2, %v2063_v48, %v2038_v63  ;;  %2997 = vmatpush3.msra.mxu0 %v2402_v62 }
 0xa91   :  { %v2056_v0 = vpop.permute.xlu1 %2055  ;;  %2998 = vmatprep.subr.mxu0 %v2401_v52 }
 0xa92   :  { %v2073_v31 = vsel %vm2069_vm3, %v2068_v6, %v2056_v0  ;;  %2999 = vmatpush3.msra.mxu0 %v2401_v52 }
 0xa93   :  { %v2054_v29 = vpop.permute.xlu0 %2053 }
 0xa94   :  { %v2072_v7 = vsel %vm2069_vm3, %v2067_v1, %v2054_v29 }
 0xa95   :  { %2975 = vmatprep.mubr.msk.f32.mxu0 %vm93_vm0, %v2072_v7 }
 0xa96   :  { %2976 = vmatmul.mubr.msk.f32.gmra.mxu0 %vm93_vm0, %v2073_v31 }
 0xb4a   :  { %v2974_v23 = vpop.f32.mrf.mxu0 }
 0xb4b   :  { %v2169_v33 = vadd.f32 %v2974_v23, %v2675_v5  ;;  %v2680_v23 = vld [vmem:[%s3806_s12] ss:$0 sm:$0xff] }
 0xb4c   :  { %v2163_v4 = vpop.f32.mrf.mxu0 }
 0xb4d   :  { %v2164_v55 = vadd.f32 %v2675_v5, %v2163_v4  ;;  %v2183_v60 = vadd.f32 %v3105_v8, %v2169_v33 }
 0xb4f   :  { %v2189_v9 = vsel %vm93_vm0, %v2183_v60, 0.0  ;;  %v2182_v35 = vadd.f32 %v3106_v10, %v2164_v55 }
 0xb50   :  { %2190 = vadd.xlane.f32.xlu1 %v2189_v9  ;;  %v2681_v9 = vld [vmem:[%s3807_s13] ss:$0 sm:$0xff] }
 0xb51   :  { %v2186_v36 = vsel %vm93_vm0, %v2182_v35, 0.0 }
 0xb52   :  { %2187 = vadd.xlane.f32.xlu0 %v2186_v36 }
 0xb56   :  { %v2977_v27 = vpop.f32.mrf.mxu0 }
 0xb57   :  { %v2179_v11 = vadd.f32 %v2977_v27, %v2675_v5 }
 0xb58   :  { %v2173_v37 = vpop.f32.mrf.mxu0 }
 0xb59   :  { %v2174_v12 = vadd.f32 %v2675_v5, %v2173_v37  ;;  %v2185_v44 = vadd.f32 %v3108_v16, %v2179_v11 }
 0xb5b   :  { %v2184_v42 = vadd.f32 %v3107_v13, %v2174_v12  ;;  %v2195_v15 = vsel %vm93_vm0, %v2185_v44, 0.0 }
 0xb5d   :  { %v2192_v40 = vsel %vm93_vm0, %v2184_v42, 0.0 }
 0xb5e   :  { %2193 = vadd.xlane.f32.xlu0 %v2192_v40 }
 0xb62   :  { %2196 = vadd.xlane.f32.xlu0 %v2195_v15 }
 0xbd9   :  { %v2191_v51 = vpop.xlane.xlu1 %2190 }
 0xbda   :  { %v2200_v18 = vmul.f32 0.03125, %v2191_v51 }
 0xbdb   :  { %v2188_v19 = vpop.xlane.xlu0 %2187 }
 0xbdc   :  { %v3668_v14 = vsub.f32 %v2183_v60, %v2200_v18  ;;  %v2199_v20 = vmul.f32 0.03125, %v2188_v19 }
 0xbde   :  { %v3670_v21 = vsub.f32 %v2182_v35, %v2199_v20  ;;  %v2208_v22 = vmul.f32 %v3668_v14, %v3668_v14 }
 0xbe0   :  { %v2214_v24 = vsel %vm93_vm0, %v2208_v22, 0.0  ;;  %v2207_v28 = vmul.f32 %v3670_v21, %v3670_v21  ;;  %v2400_v22 = vld [vmem:[%s3810_s16 + $0x18] sm:$0xff] }
 0xbe1   :  { %2215 = vadd.xlane.f32.xlu1 %v2214_v24  ;;  %3000 = vmatprep.subr.mxu0 %v2400_v22  ;;  %v2399_v24 = vld [vmem:[%s3810_s16 + $0x10] sm:$0xff] }
 0xbe2   :  { %v2211_v30 = vsel %vm93_vm0, %v2207_v28, 0.0  ;;  %3001 = vmatpush3.msra.mxu0 %v2400_v22  ;;  %v2398_v28 = vld [vmem:[%s3810_s16 + $0x8] sm:$0xff] }
 0xbe3   :  { %2212 = vadd.xlane.f32.xlu0 %v2211_v30  ;;  %3002 = vmatprep.subr.mxu0 %v2399_v24  ;;  %v2397_v30 = vld [vmem:[%s3810_s16] sm:$0xff] }
 0xbe4   :  { %3003 = vmatpush3.msra.mxu0 %v2399_v24 }
 0xbe5   :  { %3004 = vmatprep.subr.mxu0 %v2398_v28 }
 0xbe6   :  { %3005 = vmatpush3.msra.mxu0 %v2398_v28 }
 0xbe7   :  { %v2194_v32 = vpop.xlane.xlu0 %2193  ;;  %3006 = vmatprep.subr.mxu0 %v2397_v30 }
 0xbe8   :  { %v2201_v34 = vmul.f32 0.03125, %v2194_v32  ;;  %3007 = vmatpush3.msra.mxu0 %v2397_v30  ;;  %v2682_v32 = vld [vmem:[%s3809_s15] ss:$0 sm:$0xff] }
 0xbe9   :  { %v2692_v30 = vld [vmem:[%s3812_s18] ss:$0 sm:$0xff]  ;;  %s3138_s18 = smov [#allocation2]  }
 0xbea   :  { %v3678_v39 = vsub.f32 %v2184_v42, %v2201_v34 }
 0xbeb   :  { %v2197_v41 = vpop.xlane.xlu0 %2196 }
 0xbec   :  { %v2202_v43 = vmul.f32 0.03125, %v2197_v41  ;;  %v2209_v45 = vmul.f32 %v3678_v39, %v3678_v39 }
 0xbee   :  { %v3682_v47 = vsub.f32 %v2185_v44, %v2202_v43  ;;  %v2217_v49 = vsel %vm93_vm0, %v2209_v45, 0.0 }
 0xbef   :  { %2218 = vadd.xlane.f32.xlu0 %v2217_v49 }
 0xbf0   :  { %v2210_v50 = vmul.f32 %v3682_v47, %v3682_v47 }
 0xbf2   :  { %v2220_v53 = vsel %vm93_vm0, %v2210_v50, 0.0 }
 0xbf3   :  { %2221 = vadd.xlane.f32.xlu1 %v2220_v53 }
 0xc04   :  { %2268 = vperm.xlu1 %3024, %v75_v56  }
 0xc05   :  { %2263 = vperm.xlu0 %3023, %v74_v25   ;;  %v2687_v25 = vld [vmem:[%s3811_s17] ss:$0 sm:$0xff] }
 0xc08   :  { %2273 = vperm.xlu1 %3024, %v76_v57  }
 0xc0c   :  { %2278 = vperm.xlu1 %3024, %v77_v38  }
 0xc6a   :  { %v2216_v3 = vpop.xlane.xlu1 %2215 }
 0xc6b   :  { %v2224_v63 = vmul.f32 0.03125, %v2216_v3 }
 0xc6c   :  { %v2213_v48 = vpop.xlane.xlu0 %2212 }
 0xc6d   :  { %v2228_v0 = vadd.f32 1e-05, %v2224_v63  ;;  %v2223_v2 = vmul.f32 0.03125, %v2213_v48 }
 0xc6f   :  { %3089 = vrsqrt.f32 %v2228_v0  ;;  %v2227_v1 = vadd.f32 1e-05, %v2223_v2 }
 0xc71   :  { %3091 = vrsqrt.f32 %v2227_v1 }
 0xc78   :  { %v2219_v29 = vpop.xlane.xlu0 %2218 }
 0xc79   :  { %v2225_v6 = vmul.f32 0.03125, %v2219_v29 }
 0xc7b   :  { %v2229_v7 = vadd.f32 1e-05, %v2225_v6 }
 0xc7c   :  { %v3090_v31 = vpop.eup %3089  ;;  %v2222_v5 = vpop.xlane.xlu1 %2221 }
 0xc7d   :  { %3093 = vrsqrt.f32 %v2229_v7  ;;  %v2226_v33 = vmul.f32 0.03125, %v2222_v5  ;;  %v2236_v4 = vmul.f32 %v3090_v31, %v3668_v14 }
 0xc7e   :  { %v3092_v55 = vpop.eup %3091 }
 0xc7f   :  { %v2230_v8 = vadd.f32 1e-05, %v2226_v33  ;;  %v2247_v60 = vmul.f32 %v2680_v23, %v2236_v4  ;;  %v2235_v10 = vmul.f32 %v3092_v55, %v3670_v21 }
 0xc80   :  { %v3732_v27 = vpop.permute.xlu0 %2263  ;;  %v3734_v37 = vpop.permute.xlu1 %2268 }
 0xc81   :  { %3095 = vrsqrt.f32 %v2230_v8  ;;  %v2246_v35 = vmul.f32 %v2680_v23, %v2235_v10  ;;  %v2258_v36 = vadd.f32 %v2681_v9, %v2247_v60 }
 0xc83   :  { %v2257_v11 = vadd.f32 %v2681_v9, %v2246_v35  ;;  %v2282_v13 = vmul.f32 %v3734_v37, %v2258_v36 }
 0xc84   :  { %v3741_v15 = vpop.permute.xlu1 %2273 }
 0xc85   :  { %v2281_v12 = vmul.f32 %v3732_v27, %v2257_v11 }
 0xc87   :  { %2986 = vmatprep.mubr.msk.f32.mxu1 %vm93_vm0, %v2281_v12 }
 0xc88   :  { %2987 = vmatmul.mubr.msk.f32.vlgmr.msra.gmra.mxu1 %vm93_vm0, %v2282_v13  ;;  %v3746_v20 = vpop.permute.xlu1 %2278 }
 0xc8a   :  { %v3094_v42 = vpop.eup %3093 }
 0xc8b   :  { %v2237_v40 = vmul.f32 %v3094_v42, %v3678_v39 }
 0xc8d   :  { %v2248_v16 = vmul.f32 %v2680_v23, %v2237_v40 }
 0xc8e   :  { %v3096_v44 = vpop.eup %3095 }
 0xc8f   :  { %v2259_v17 = vadd.f32 %v2681_v9, %v2248_v16  ;;  %v2238_v51 = vmul.f32 %v3096_v44, %v3682_v47 }
 0xc91   :  { %v2283_v18 = vmul.f32 %v3741_v15, %v2259_v17  ;;  %v2249_v19 = vmul.f32 %v2680_v23, %v2238_v51 }
 0xc93   :  { %v2260_v14 = vadd.f32 %v2681_v9, %v2249_v19  ;;  %2989 = vmatprep.mubr.msk.f32.mxu1 %vm93_vm0, %v2283_v18 }
 0xc95   :  { %v2284_v21 = vmul.f32 %v3746_v20, %v2260_v14 }
 0xc97   :  { %2990 = vmatmul.mubr.msk.f32.gmra.mxu1 %vm93_vm0, %v2284_v21 }
 0xd48   :  { %v2988_v34 = vpop.f32.mrf.mxu1 }
 0xd49   :  { %v2380_v39 = vadd.f32 %v2988_v34, %v2682_v32 }
 0xd4a   :  { %v2374_v41 = vpop.f32.mrf.mxu1 }
 0xd4b   :  { %v2375_v43 = vadd.f32 %v2682_v32, %v2374_v41  ;;  %v2394_v47 = vmax.f32 %v2380_v39, 0.0  ;;  %v2693_v41 = vld [vmem:[%s3813_s19] ss:$0 sm:$0xff]  ;;  %s2601_s19 = sshll.u32 %s3138_s18, 4  ;;  %s2602_s19 = int_to_ptr.vmem [resolvable:$true] %s2601_s19 }
 0xd4c   :  { %s3109_s29 = scalar_lea.vmem %s2602_s19, 512  ;;  %p3114_p1 = scmp.lt.s32.totalorder %s2602_s19, %s2602_s19 }
 0xd4d   :  { %v2393_v45 = vmax.f32 %v2375_v43, 0.0  ;;  %p3110_p0 = scmp.ne.s32.totalorder %s2602_s19, %s3109_s29  ;;  %p3115_p2 = scmp.lt.s32.totalorder %s3109_s29, %s3109_s29 }
 0xd4f   :  { %3008 = vmatprep.mubr.msk.f32.mxu0 %vm2412_vm4, %v2393_v45  ;;  %p3116_p3 = por %p3115_p2, %p3114_p1 }
 0xd50   :  { %3009 = vmatmul.mubr.msk.f32.vlgmr.msra.gmra.mxu0 %vm2412_vm4, %v2394_v47 }
 0xd51   :  { %p3117_p4 = pnand %p3116_p3, %p3110_p0 }
 0xd57   :  { %v2991_v49 = vpop.f32.mrf.mxu1 }
 0xd58   :  { %v2390_v50 = vadd.f32 %v2991_v49, %v2682_v32 }
 0xd59   :  { %v2384_v53 = vpop.f32.mrf.mxu1 }
 0xd5a   :  { %v2385_v54 = vadd.f32 %v2682_v32, %v2384_v53  ;;  %v2396_v46 = vmax.f32 %v2390_v50, 0.0 }
 0xd5c   :  { %v2395_v56 = vmax.f32 %v2385_v54, 0.0 }
 0xd5e   :  { %3011 = vmatprep.mubr.msk.f32.mxu0 %vm2412_vm4, %v2395_v56 }
 0xd5f   :  { %3012 = vmatmul.mubr.msk.f32.gmra.mxu0 %vm2412_vm4, %v2396_v46 }
 0xe10   :  { %v3010_v26 = vpop.f32.mrf.mxu0 }
 0xe11   :  { %v2497_v57 = vadd.f32 %v3010_v26, %v2687_v25 }
 0xe12   :  { %v2491_v58 = vpop.f32.mrf.mxu0 }
 0xe13   :  { %v2492_v38 = vadd.f32 %v2687_v25, %v2491_v58  ;;  %v2511_v59 = vadd.f32 %v2497_v57, %v2282_v13 }
 0xe15   :  { %v2517_v61 = vsel %vm93_vm0, %v2511_v59, 0.0  ;;  %v2510_v62 = vadd.f32 %v2492_v38, %v2281_v12 }
 0xe16   :  { %2518 = vadd.xlane.f32.xlu0 %v2517_v61 }
 0xe17   :  { %v2514_v52 = vsel %vm93_vm0, %v2510_v62, 0.0 }
 0xe18   :  { %2515 = vadd.xlane.f32.xlu1 %v2514_v52 }
 0xe1f   :  { %v3013_v3 = vpop.f32.mrf.mxu0 }
 0xe20   :  { %v2507_v48 = vadd.f32 %v3013_v3, %v2687_v25 }
 0xe21   :  { %v2501_v63 = vpop.f32.mrf.mxu0 }
 0xe22   :  { %v2502_v0 = vadd.f32 %v2687_v25, %v2501_v63  ;;  %v2513_v1 = vadd.f32 %v2507_v48, %v2284_v21 }
 0xe24   :  { %v2512_v2 = vadd.f32 %v2502_v0, %v2283_v18  ;;  %v2523_v6 = vsel %vm93_vm0, %v2513_v1, 0.0 }
 0xe26   :  { %v2520_v29 = vsel %vm93_vm0, %v2512_v2, 0.0 }
 0xe27   :  { %2521 = vadd.xlane.f32.xlu1 %v2520_v29 }
 0xe2b   :  { %2524 = vadd.xlane.f32.xlu1 %v2523_v6 }
 0xe9f   :  { %v2519_v7 = vpop.xlane.xlu0 %2518 }
 0xea0   :  { %v2527_v31 = vmul.f32 0.03125, %v2519_v7 }
 0xea1   :  { %v2516_v5 = vpop.xlane.xlu1 %2515 }
 0xea2   :  { %v2526_v23 = vmul.f32 0.03125, %v2516_v5  ;;  %v2531_v33 = vsub.f32 %v2511_v59, %v2527_v31 }
 0xea4   :  { %v2530_v4 = vsub.f32 %v2510_v62, %v2526_v23  ;;  %v2535_v60 = vmul.f32 %v2531_v33, %v2531_v33 }
 0xea6   :  { %v2534_v55 = vmul.f32 %v2530_v4, %v2530_v4  ;;  %v2541_v9 = vsel %vm93_vm0, %v2535_v60, 0.0 }
 0xea8   :  { %v2538_v8 = vsel %vm93_vm0, %v2534_v55, 0.0 }
 0xea9   :  { %2539 = vadd.xlane.f32.xlu1 %v2538_v8 }
 0xead   :  { %2542 = vadd.xlane.f32.xlu1 %v2541_v9 }
 0xeb0   :  { %v2522_v10 = vpop.xlane.xlu1 %2521 }
 0xeb1   :  { %v2528_v35 = vmul.f32 0.03125, %v2522_v10 }
 0xeb3   :  { %v2532_v36 = vsub.f32 %v2512_v2, %v2528_v35 }
 0xeb4   :  { %v2525_v11 = vpop.xlane.xlu1 %2524 }
 0xeb5   :  { %v2529_v12 = vmul.f32 0.03125, %v2525_v11  ;;  %v2536_v13 = vmul.f32 %v2532_v36, %v2532_v36 }
 0xeb7   :  { %v2533_v42 = vsub.f32 %v2513_v1, %v2529_v12  ;;  %v2544_v40 = vsel %vm93_vm0, %v2536_v13, 0.0 }
 0xeb8   :  { %2545 = vadd.xlane.f32.xlu0 %v2544_v40 }
 0xeb9   :  { %v2537_v16 = vmul.f32 %v2533_v42, %v2533_v42 }
 0xebb   :  { %v2547_v44 = vsel %vm93_vm0, %v2537_v16, 0.0 }
 0xebc   :  { %2548 = vadd.xlane.f32.xlu1 %v2547_v44 }
 0xf32   :  { %v2540_v17 = vpop.xlane.xlu1 %2539 }
 0xf33   :  { %v2550_v51 = vmul.f32 0.03125, %v2540_v17 }
 0xf35   :  { %v2554_v18 = vadd.f32 1e-05, %v2550_v51 }
 0xf36   :  { %v2543_v19 = vpop.xlane.xlu1 %2542 }
 0xf37   :  { %3097 = vrsqrt.f32 %v2554_v18  ;;  %v2551_v14 = vmul.f32 0.03125, %v2543_v19 }
 0xf39   :  { %v2555_v21 = vadd.f32 1e-05, %v2551_v14 }
 0xf3b   :  { %3099 = vrsqrt.f32 %v2555_v21 }
 0xf41   :  { %v2546_v22 = vpop.xlane.xlu0 %2545 }
 0xf42   :  { %v2552_v24 = vmul.f32 0.03125, %v2546_v22 }
 0xf44   :  { %v3098_v28 = vpop.eup %3097  ;;  %v2556_v32 = vadd.f32 1e-05, %v2552_v24 }
 0xf45   :  { %v2562_v34 = vmul.f32 %v3098_v28, %v2530_v4  ;;  %v2549_v39 = vpop.xlane.xlu1 %2548 }
 0xf46   :  { %3101 = vrsqrt.f32 %v2556_v32  ;;  %v2553_v43 = vmul.f32 0.03125, %v2549_v39 }
 0xf47   :  { %v2573_v45 = vmul.f32 %v2692_v30, %v2562_v34 }
 0xf48   :  { %v3100_v47 = vpop.eup %3099  ;;  %v2557_v49 = vadd.f32 1e-05, %v2553_v43 }
 0xf49   :  { %v2563_v50 = vmul.f32 %v3100_v47, %v2531_v33  ;;  %v2584_v53 = vadd.f32 %v2693_v41, %v2573_v45 }
 0xf4a   :  { %3103 = vrsqrt.f32 %v2557_v49 }
 0xf4b   :  { %v2574_v54 = vmul.f32 %v2692_v30, %v2563_v50  ;;  %v2588_v56 = vmul.f32 %v2584_v53, %v3732_v27 }
 0xf4d   :  { %v2585_v46 = vadd.f32 %v2693_v41, %v2574_v54  ;;  %2592 = vst.msk [vmem:[#allocation2] sm:$0xff] %vm93_vm0, %v2588_v56 }
 0xf4f   :  { %v2589_v25 = vmul.f32 %v2585_v46, %v3734_v37 }
 0xf51   :  { %2593 = vst.msk [vmem:[#allocation2 + $0x8] sm:$0xff] %vm93_vm0, %v2589_v25 }
 0xf53   :  { %v3102_v26 = vpop.eup %3101 }
 0xf54   :  { %v2564_v57 = vmul.f32 %v3102_v26, %v2532_v36 }
 0xf56   :  { %v2575_v58 = vmul.f32 %v2692_v30, %v2564_v57 }
 0xf57   :  { %v3104_v38 = vpop.eup %3103 }
 0xf58   :  { %v2586_v59 = vadd.f32 %v2693_v41, %v2575_v58  ;;  %v2565_v61 = vmul.f32 %v3104_v38, %v2533_v42 }
 0xf5a   :  { %v2576_v62 = vmul.f32 %v2692_v30, %v2565_v61  ;;  %v2590_v52 = vmul.f32 %v2586_v59, %v3741_v15 }
 0xf5c   :  { %v2587_v3 = vadd.f32 %v2693_v41, %v2576_v62  ;;  %2594 = vst.msk [vmem:[#allocation2 + $0x10] sm:$0xff] %vm93_vm0, %v2590_v52 }
 0xf5e   :  { %v2591_v27 = vmul.f32 %v2587_v3, %v3746_v20 }
 0xf60   :  { %2595 = vst.msk [vmem:[#allocation2 + $0x18] sm:$0xff] %vm93_vm0, %v2591_v27 }
 0xf61   :  { %3120 = shalt.err (!%p3117_p4)
}
 0xf62   :  { %s3139_s30 = smov 128  }
 0xf63   :  { %2607 = dma.vmem_to_hbm [thread:$0]  %s2602_s19, 512, %s3814_s20, [#allocation3], %s3139_s30, %s3139_s30, %s3134_s1  }
 0xf64   :  { %3129 = dma.done.wait [#allocation3], 512  }
 0xf65   :  { %3130 = vsyncadd [#allocation3], 4294966784 }
 0xf66   :  { %2611 = vsyncpa [#allocation3], 1 }

</bundles_post_ra>
